<compile_context>
chip_gen: v5e
topology: v5e:2x2
jax: 0.10.0
libtpu: 0.0.40
codegen_flags: <defaults>
</compile_context>

<pallas_src>
import functools

import jax
import jax.numpy as jnp
from jax import lax
from jax.experimental import pallas as pl
from jax.experimental.pallas import tpu as pltpu


_SUBLANE = 8
_LANE = 128
_MIB = 1024 * 1024


def _categorical_forward_kernel(sa_ref, sba_ref, a_ref, b_ref, out_ref, *, use_mxu):
    sa = sa_ref[...]          # (bn, k)    float32
    sba = sba_ref[...]        # (bn, k, k) float32
    a = a_ref[...]            # (bn, m)    int32
    b = b_ref[...]            # (bn, m)    int32

    bn, k = sa.shape
    m = a.shape[1]

    # log_softmax(sa, axis=1)                              -> (bn, k)
    sa_sh = sa - jnp.max(sa, axis=1, keepdims=True)
    lsa = sa_sh - jnp.log(jnp.sum(jnp.exp(sa_sh), axis=1, keepdims=True))

    # log_softmax(sba, axis=2)                             -> (bn, k, k)
    sba_sh = sba - jnp.max(sba, axis=2, keepdims=True)
    lsba = sba_sh - jnp.log(jnp.sum(jnp.exp(sba_sh), axis=2, keepdims=True))

    if use_mxu:
        # ---- Large k: one-hot contraction on the MXU ------------------------
        # Fold lsa into the conditional logits (O(bn*k^2) adds) so a single
        # contraction returns the full joint row, and transpose once so the
        # contraction is the canonical batched NN form 'nqp,npm->nqm'.
        ljoint_t = jnp.swapaxes(lsba + lsa[:, :, None], 1, 2)        # (bn, q, p)

        # bf16x3 split: MXU stays on native bf16 passes on every generation
        # while the gathered values keep ~f32 accuracy (one-hot RHS is exact).
        hi = ljoint_t.astype(jnp.bfloat16)
        r1 = ljoint_t - hi.astype(jnp.float32)
        mi = r1.astype(jnp.bfloat16)
        lo = (r1 - mi.astype(jnp.float32)).astype(jnp.bfloat16)

        iota_k = lax.broadcasted_iota(jnp.int32, (bn, k, m), 1)      # reused for a & b
        onehot_a = (iota_k == a[:, None, :]).astype(jnp.float32).astype(jnp.bfloat16)

        # row_sel[i, q, j] = (lsba + lsa)[i, a[i, j], q]
        row_sel = jnp.einsum('nqp,npm->nqm', hi, onehot_a,
                             preferred_element_type=jnp.float32)
        row_sel = row_sel + jnp.einsum('nqp,npm->nqm', mi, onehot_a,
                                       preferred_element_type=jnp.float32)
        row_sel = row_sel + jnp.einsum('nqp,npm->nqm', lo, onehot_a,
                                       preferred_element_type=jnp.float32)

        # b-gather: mask + cross-sublane reduce (iota reused, no second iota).
        out = jnp.sum(jnp.where(iota_k == b[:, None, :], row_sel, 0.0), axis=1)
    else:
        # ---- Small k: pure-VPU gather ---------------------------------------
        # Matches over p are disjoint -> overwrite-selects (no adds); the lsa
        # gather is fused into the same loop with a (bn, m) accumulator.
        # TODO(synk): for the 32 <= k < crossover range a partially unrolled
        # fori_loop would bound live ranges further; full unroll is kept here
        # for lowering robustness since the MXU crossover caps k on this path.
        row_sel = jnp.zeros((bn, k, m), jnp.float32)
        lsa_sel = jnp.zeros((bn, m), jnp.float32)
        for p in range(k):
            pick = a == p                                            # (bn, m)
            row_sel = jnp.where(pick[:, None, :],
                                lsba[:, p, :][:, :, None], row_sel)  # (bn, k, m)
            lsa_sel = jnp.where(pick, lsa[:, p][:, None], lsa_sel)   # (bn, m)

        # b-gather as an unrolled overwrite-select over (bn, m) slices.
        out = row_sel[:, 0, :]
        for q in range(1, k):
            out = jnp.where(b == q, row_sel[:, q, :], out)
        out = out + lsa_sel

    out_ref[...] = out.astype(out_ref.dtype)


def _round_up(x, mult):
    return ((x + mult - 1) // mult) * mult


def _generation_config():
    """Generation-aware VMEM budget / limit, MXU crossover and grid depth."""
    kind = ""
    try:
        kind = jax.devices()[0].device_kind.lower()
    except Exception:
        pass
    if "7" in kind:      # v7x: 64 MiB VMEM per TensorCore, 2 TCs, 256-wide MXU
        return dict(vmem_limit=48 * _MIB, vmem_budget=40 * _MIB,
                    mxu_min_k=32, min_steps=4)
    if "v6" in kind:     # v6e: 128 MiB VMEM, 256-wide MXU
        return dict(vmem_limit=96 * _MIB, vmem_budget=64 * _MIB,
                    mxu_min_k=32, min_steps=2)
    if "v5" in kind:     # v5e / v5p: 128 MiB VMEM, 128-wide MXU
        return dict(vmem_limit=96 * _MIB, vmem_budget=64 * _MIB,
                    mxu_min_k=64, min_steps=2)
    # Unknown generation: conservative settings that fit v7x-sized VMEM too.
    return dict(vmem_limit=48 * _MIB, vmem_budget=32 * _MIB,
                mxu_min_k=64, min_steps=2)


def _choose_block_n(n, k, m_pad, *, use_mxu, vmem_budget, min_steps):
    """Model-axis block size (multiple of 8, or n itself when n <= 8)."""
    if n <= _SUBLANE:
        return int(n)
    kk = 4 * k * k
    km = 4 * k * m_pad
    if use_mxu:
        # dbl-buffered sba + lsba/ljoint_t + bf16 pieces + row_sel/onehot/iota
        per_model = 6 * kk + 3 * km + 4 * (10 * m_pad + 4 * k)
    else:
        per_model = 4 * kk + 2 * km + 4 * (10 * m_pad + 4 * k)
    cap = max(_SUBLANE, vmem_budget // max(per_model, 1))
    target = min(n, cap)
    if n >= min_steps * _SUBLANE:
        # Keep >= min_steps grid steps so the sba DMA overlaps compute (and
        # each v7x TensorCore still gets >= 2 steps under "parallel" sharding).
        target = min(target, pl.cdiv(n, min_steps))
    bn = max(_SUBLANE, (target // _SUBLANE) * _SUBLANE)
    return int(bn)
    # TODO(synk): very large k * m per model may still exceed VMEM; a second
    # grid axis tiling the sample dimension would be needed for such shapes.


def categorical_module_forward(sa, sba, a, b, is_btoa=False):
    """Pallas TPU implementation of CategoricalModule.forward."""
    if is_btoa:
        a, b = b, a
    sa = jnp.asarray(sa, jnp.float32)
    sba = jnp.asarray(sba, jnp.float32)
    a = jnp.asarray(a, jnp.int32)
    b = jnp.asarray(b, jnp.int32)

    n, k = sa.shape
    m = a.shape[1]

    cfg = _generation_config()
    use_mxu = k >= cfg["mxu_min_k"]

    # Pad only the cheap sample axis of the index arrays to a lane multiple so
    # the output store is lane-dense.  The model axis is NOT padded anywhere:
    # the grid uses ragged trailing blocks, so sba never round-trips HBM.
    m_pad = _round_up(m, _LANE)
    if m_pad != m:
        a = jnp.pad(a, ((0, 0), (0, m_pad - m)))   # index 0 is valid; cols discarded
        b = jnp.pad(b, ((0, 0), (0, m_pad - m)))

    bn = _choose_block_n(n, k, m_pad, use_mxu=use_mxu,
                         vmem_budget=cfg["vmem_budget"],
                         min_steps=cfg["min_steps"])
    grid = (pl.cdiv(n, bn),)

    kernel = functools.partial(_categorical_forward_kernel, use_mxu=use_mxu)

    gather_flops = (6 * k * k * m_pad + 6 * k * m_pad) if use_mxu \
        else (k * k * m_pad + 6 * k * m_pad)
    cost = pl.CostEstimate(
        flops=int(n * (5 * k * k + 5 * k + gather_flops)),
        transcendentals=int(n * (k * k + 2 * k + 2)),
        bytes_accessed=int(4 * n * (k * k + k + 3 * m_pad)),
    )

    compiler_kwargs = dict(dimension_semantics=("parallel",))
    if cfg["vmem_limit"] is not None:
        compiler_kwargs["vmem_limit_bytes"] = int(cfg["vmem_limit"])

    out = pl.pallas_call(
        kernel,
        out_shape=jax.ShapeDtypeStruct((n, m_pad), jnp.float32),
        grid=grid,
        in_specs=[
            pl.BlockSpec((bn, k), lambda i: (i, 0)),
            pl.BlockSpec((bn, k, k), lambda i: (i, 0, 0)),
            pl.BlockSpec((bn, m_pad), lambda i: (i, 0)),
            pl.BlockSpec((bn, m_pad), lambda i: (i, 0)),
        ],
        out_specs=pl.BlockSpec((bn, m_pad), lambda i: (i, 0)),
        compiler_params=pltpu.CompilerParams(**compiler_kwargs),
        cost_estimate=cost,
    )(sa, sba, a, b)

    return out[:, :m]


def _reference_forward(sa, sba, a, b, is_btoa=False):
    """Pure-JAX reference mirroring the PyTorch forward."""
    if is_btoa:
        a, b = b, a
    lsa = jax.nn.log_softmax(sa, axis=1)
    lsba = jax.nn.log_softmax(sba, axis=2)
    joint = lsba + lsa[:, :, None]
    n, m = a.shape
    rows = jnp.repeat(jnp.arange(n)[:, None], m, axis=1)
    return joint[rows.reshape(-1), a.reshape(-1), b.reshape(-1)].reshape(n, m)


if __name__ == "__main__":
    key = jax.random.PRNGKey(0)

    def _run_case(idx, n, k, m):
        ks = jax.random.split(jax.random.fold_in(key, idx), 4)
        sa = jax.random.normal(ks[0], (n, k), dtype=jnp.float32)
        sa = sa - sa.mean(axis=1, keepdims=True)            # centered logits (sample_joint)
        sba = jax.random.normal(ks[1], (n, k, k), dtype=jnp.float32)
        sba = sba - sba.mean(axis=2, keepdims=True)
        a = jax.random.randint(ks[2], (n, m), 0, k, dtype=jnp.int32)
        b = jax.random.randint(ks[3], (n, m), 0, k, dtype=jnp.int32)
        for is_btoa in (False, True):
            out = jax.block_until_ready(
                categorical_module_forward(sa, sba, a, b, is_btoa=is_btoa))
            ref = _reference_forward(sa, sba, a, b, is_btoa=is_btoa)
            assert out.shape == (n, m)
            assert jnp.allclose(out, ref, atol=1e-5, rtol=1e-5), \
                f"mismatch vs reference (case {idx}, is_btoa={is_btoa})"

    # Small-k VPU gather path: ragged model axis (n % 8 != 0) and a sample
    # axis that needs lane padding (m % 128 != 0).
    _run_case(0, 13, 16, 200)
    # Large-k MXU one-hot path (also exercises the n < 8 single-block case).
    _run_case(1, 4, 128, 128)

    print("KERNEL_OK")
</pallas_src>

<mosaic_0001>
module attributes {stable_mosaic.version = 11 : i64} {
  func.func @_categorical_forward_kernel(%arg0: i32, %arg1: memref<8x16xf32, #tpu.memory_space<vmem>>, %arg2: memref<8x16x16xf32, #tpu.memory_space<vmem>>, %arg3: memref<8x256xi32, #tpu.memory_space<vmem>>, %arg4: memref<8x256xi32, #tpu.memory_space<vmem>>, %arg5: memref<8x256xf32, #tpu.memory_space<vmem>>) attributes {dimension_semantics = [#tpu.dimension_semantics<parallel>], iteration_bounds = array<i64: 2>, scalar_prefetch = 0 : i64, scratch_operands = 0 : i64, tpu.core_type = #tpu.core_type<tc>, window_params = [{transform_indices = @transform_0, window_bounds = array<i64: 8, 16>}, {transform_indices = @transform_1, window_bounds = array<i64: 8, 16, 16>}, {transform_indices = @transform_2, window_bounds = array<i64: 8, 256>}, {transform_indices = @transform_3, window_bounds = array<i64: 8, 256>}, {transform_indices = @transform_4, window_bounds = array<i64: 8, 256>}]} {
    %c0 = arith.constant 0 : index
    %c0_0 = arith.constant 0 : index
    %0 = vector.load %arg1[%c0, %c0_0] : memref<8x16xf32, #tpu.memory_space<vmem>>, vector<8x16xf32>
    %c0_1 = arith.constant 0 : index
    %c0_2 = arith.constant 0 : index
    %c0_3 = arith.constant 0 : index
    %1 = vector.load %arg2[%c0_1, %c0_2, %c0_3] : memref<8x16x16xf32, #tpu.memory_space<vmem>>, vector<8x16x16xf32>
    %c0_4 = arith.constant 0 : index
    %c0_5 = arith.constant 0 : index
    %2 = vector.load %arg3[%c0_4, %c0_5] : memref<8x256xi32, #tpu.memory_space<vmem>>, vector<8x256xi32>
    %c0_6 = arith.constant 0 : index
    %c0_7 = arith.constant 0 : index
    %3 = vector.load %arg4[%c0_6, %c0_7] : memref<8x256xi32, #tpu.memory_space<vmem>>, vector<8x256xi32>
    %cst = arith.constant dense<0xFF800000> : vector<8xf32>
    %4 = vector.multi_reduction <maximumf>, %0, %cst [1] : vector<8x16xf32> to vector<8xf32>
    %5 = vector.shape_cast %4 : vector<8xf32> to vector<8x1xf32>
    %6 = vector.broadcast %5 : vector<8x1xf32> to vector<8x16xf32>
    %7 = arith.subf %0, %6 : vector<8x16xf32>
    %8 = math.exp %7 : vector<8x16xf32>
    %cst_8 = arith.constant dense<0.000000e+00> : vector<8xf32>
    %9 = vector.multi_reduction <add>, %8, %cst_8 [1] : vector<8x16xf32> to vector<8xf32>
    %10 = vector.shape_cast %9 : vector<8xf32> to vector<8x1xf32>
    %11 = math.log %10 : vector<8x1xf32>
    %12 = vector.broadcast %11 : vector<8x1xf32> to vector<8x16xf32>
    %13 = arith.subf %7, %12 : vector<8x16xf32>
    %cst_9 = arith.constant dense<0xFF800000> : vector<8x16xf32>
    %14 = vector.multi_reduction <maximumf>, %1, %cst_9 [2] : vector<8x16x16xf32> to vector<8x16xf32>
    %15 = vector.shape_cast %14 : vector<8x16xf32> to vector<8x16x1xf32>
    %16 = vector.broadcast %15 : vector<8x16x1xf32> to vector<8x16x16xf32>
    %17 = arith.subf %1, %16 : vector<8x16x16xf32>
    %18 = math.exp %17 : vector<8x16x16xf32>
    %cst_10 = arith.constant dense<0.000000e+00> : vector<8x16xf32>
    %19 = vector.multi_reduction <add>, %18, %cst_10 [2] : vector<8x16x16xf32> to vector<8x16xf32>
    %20 = vector.shape_cast %19 : vector<8x16xf32> to vector<8x16x1xf32>
    %21 = math.log %20 : vector<8x16x1xf32>
    %22 = vector.broadcast %21 : vector<8x16x1xf32> to vector<8x16x16xf32>
    %23 = arith.subf %17, %22 : vector<8x16x16xf32>
    %cst_11 = arith.constant 0.000000e+00 : f32
    %24 = vector.broadcast %cst_11 : f32 to vector<8x16x256xf32>
    %cst_12 = arith.constant 0.000000e+00 : f32
    %25 = vector.broadcast %cst_12 : f32 to vector<8x256xf32>
    %c0_i32 = arith.constant 0 : i32
    %26 = vector.broadcast %c0_i32 : i32 to vector<8x256xi32>
    %27 = arith.cmpi eq, %2, %26 : vector<8x256xi32>
    %28 = vector.shape_cast %27 : vector<8x256xi1> to vector<8x1x256xi1>
    %29 = vector.extract_strided_slice %23 {offsets = [0, 0, 0], sizes = [8, 1, 16], strides = [1, 1, 1]} : vector<8x16x16xf32> to vector<8x1x16xf32>
    %30 = vector.shape_cast %29 : vector<8x1x16xf32> to vector<8x16xf32>
    %31 = vector.shape_cast %30 : vector<8x16xf32> to vector<8x16x1xf32>
    %32 = vector.shape_cast %28 : vector<8x1x256xi1> to vector<8x1x256xi1>
    %33 = vector.broadcast %32 : vector<8x1x256xi1> to vector<8x16x256xi1>
    %34 = vector.shape_cast %31 : vector<8x16x1xf32> to vector<8x16x1xf32>
    %35 = vector.broadcast %34 : vector<8x16x1xf32> to vector<8x16x256xf32>
    %36 = arith.select %33, %35, %24 : vector<8x16x256xi1>, vector<8x16x256xf32>
    %37 = vector.extract_strided_slice %13 {offsets = [0, 0], sizes = [8, 1], strides = [1, 1]} : vector<8x16xf32> to vector<8x1xf32>
    %38 = vector.shape_cast %37 : vector<8x1xf32> to vector<8xf32>
    %39 = vector.shape_cast %38 : vector<8xf32> to vector<8x1xf32>
    %40 = vector.shape_cast %39 : vector<8x1xf32> to vector<8x1xf32>
    %41 = vector.broadcast %40 : vector<8x1xf32> to vector<8x256xf32>
    %42 = arith.select %27, %41, %25 : vector<8x256xi1>, vector<8x256xf32>
    %c1_i32 = arith.constant 1 : i32
    %43 = vector.broadcast %c1_i32 : i32 to vector<8x256xi32>
    %44 = arith.cmpi eq, %2, %43 : vector<8x256xi32>
    %45 = vector.shape_cast %44 : vector<8x256xi1> to vector<8x1x256xi1>
    %46 = vector.extract_strided_slice %23 {offsets = [0, 1, 0], sizes = [8, 1, 16], strides = [1, 1, 1]} : vector<8x16x16xf32> to vector<8x1x16xf32>
    %47 = vector.shape_cast %46 : vector<8x1x16xf32> to vector<8x16xf32>
    %48 = vector.shape_cast %47 : vector<8x16xf32> to vector<8x16x1xf32>
    %49 = vector.shape_cast %45 : vector<8x1x256xi1> to vector<8x1x256xi1>
    %50 = vector.broadcast %49 : vector<8x1x256xi1> to vector<8x16x256xi1>
    %51 = vector.shape_cast %48 : vector<8x16x1xf32> to vector<8x16x1xf32>
    %52 = vector.broadcast %51 : vector<8x16x1xf32> to vector<8x16x256xf32>
    %53 = arith.select %50, %52, %36 : vector<8x16x256xi1>, vector<8x16x256xf32>
    %54 = vector.extract_strided_slice %13 {offsets = [0, 1], sizes = [8, 1], strides = [1, 1]} : vector<8x16xf32> to vector<8x1xf32>
    %55 = vector.shape_cast %54 : vector<8x1xf32> to vector<8xf32>
    %56 = vector.shape_cast %55 : vector<8xf32> to vector<8x1xf32>
    %57 = vector.shape_cast %56 : vector<8x1xf32> to vector<8x1xf32>
    %58 = vector.broadcast %57 : vector<8x1xf32> to vector<8x256xf32>
    %59 = arith.select %44, %58, %42 : vector<8x256xi1>, vector<8x256xf32>
    %c2_i32 = arith.constant 2 : i32
    %60 = vector.broadcast %c2_i32 : i32 to vector<8x256xi32>
    %61 = arith.cmpi eq, %2, %60 : vector<8x256xi32>
    %62 = vector.shape_cast %61 : vector<8x256xi1> to vector<8x1x256xi1>
    %63 = vector.extract_strided_slice %23 {offsets = [0, 2, 0], sizes = [8, 1, 16], strides = [1, 1, 1]} : vector<8x16x16xf32> to vector<8x1x16xf32>
    %64 = vector.shape_cast %63 : vector<8x1x16xf32> to vector<8x16xf32>
    %65 = vector.shape_cast %64 : vector<8x16xf32> to vector<8x16x1xf32>
    %66 = vector.shape_cast %62 : vector<8x1x256xi1> to vector<8x1x256xi1>
    %67 = vector.broadcast %66 : vector<8x1x256xi1> to vector<8x16x256xi1>
    %68 = vector.shape_cast %65 : vector<8x16x1xf32> to vector<8x16x1xf32>
    %69 = vector.broadcast %68 : vector<8x16x1xf32> to vector<8x16x256xf32>
    %70 = arith.select %67, %69, %53 : vector<8x16x256xi1>, vector<8x16x256xf32>
    %71 = vector.extract_strided_slice %13 {offsets = [0, 2], sizes = [8, 1], strides = [1, 1]} : vector<8x16xf32> to vector<8x1xf32>
    %72 = vector.shape_cast %71 : vector<8x1xf32> to vector<8xf32>
    %73 = vector.shape_cast %72 : vector<8xf32> to vector<8x1xf32>
    %74 = vector.shape_cast %73 : vector<8x1xf32> to vector<8x1xf32>
    %75 = vector.broadcast %74 : vector<8x1xf32> to vector<8x256xf32>
    %76 = arith.select %61, %75, %59 : vector<8x256xi1>, vector<8x256xf32>
    %c3_i32 = arith.constant 3 : i32
    %77 = vector.broadcast %c3_i32 : i32 to vector<8x256xi32>
    %78 = arith.cmpi eq, %2, %77 : vector<8x256xi32>
    %79 = vector.shape_cast %78 : vector<8x256xi1> to vector<8x1x256xi1>
    %80 = vector.extract_strided_slice %23 {offsets = [0, 3, 0], sizes = [8, 1, 16], strides = [1, 1, 1]} : vector<8x16x16xf32> to vector<8x1x16xf32>
    %81 = vector.shape_cast %80 : vector<8x1x16xf32> to vector<8x16xf32>
    %82 = vector.shape_cast %81 : vector<8x16xf32> to vector<8x16x1xf32>
    %83 = vector.shape_cast %79 : vector<8x1x256xi1> to vector<8x1x256xi1>
    %84 = vector.broadcast %83 : vector<8x1x256xi1> to vector<8x16x256xi1>
    %85 = vector.shape_cast %82 : vector<8x16x1xf32> to vector<8x16x1xf32>
    %86 = vector.broadcast %85 : vector<8x16x1xf32> to vector<8x16x256xf32>
    %87 = arith.select %84, %86, %70 : vector<8x16x256xi1>, vector<8x16x256xf32>
    %88 = vector.extract_strided_slice %13 {offsets = [0, 3], sizes = [8, 1], strides = [1, 1]} : vector<8x16xf32> to vector<8x1xf32>
    %89 = vector.shape_cast %88 : vector<8x1xf32> to vector<8xf32>
    %90 = vector.shape_cast %89 : vector<8xf32> to vector<8x1xf32>
    %91 = vector.shape_cast %90 : vector<8x1xf32> to vector<8x1xf32>
    %92 = vector.broadcast %91 : vector<8x1xf32> to vector<8x256xf32>
    %93 = arith.select %78, %92, %76 : vector<8x256xi1>, vector<8x256xf32>
    %c4_i32 = arith.constant 4 : i32
    %94 = vector.broadcast %c4_i32 : i32 to vector<8x256xi32>
    %95 = arith.cmpi eq, %2, %94 : vector<8x256xi32>
    %96 = vector.shape_cast %95 : vector<8x256xi1> to vector<8x1x256xi1>
    %97 = vector.extract_strided_slice %23 {offsets = [0, 4, 0], sizes = [8, 1, 16], strides = [1, 1, 1]} : vector<8x16x16xf32> to vector<8x1x16xf32>
    %98 = vector.shape_cast %97 : vector<8x1x16xf32> to vector<8x16xf32>
    %99 = vector.shape_cast %98 : vector<8x16xf32> to vector<8x16x1xf32>
    %100 = vector.shape_cast %96 : vector<8x1x256xi1> to vector<8x1x256xi1>
    %101 = vector.broadcast %100 : vector<8x1x256xi1> to vector<8x16x256xi1>
    %102 = vector.shape_cast %99 : vector<8x16x1xf32> to vector<8x16x1xf32>
    %103 = vector.broadcast %102 : vector<8x16x1xf32> to vector<8x16x256xf32>
    %104 = arith.select %101, %103, %87 : vector<8x16x256xi1>, vector<8x16x256xf32>
    %105 = vector.extract_strided_slice %13 {offsets = [0, 4], sizes = [8, 1], strides = [1, 1]} : vector<8x16xf32> to vector<8x1xf32>
    %106 = vector.shape_cast %105 : vector<8x1xf32> to vector<8xf32>
    %107 = vector.shape_cast %106 : vector<8xf32> to vector<8x1xf32>
    %108 = vector.shape_cast %107 : vector<8x1xf32> to vector<8x1xf32>
    %109 = vector.broadcast %108 : vector<8x1xf32> to vector<8x256xf32>
    %110 = arith.select %95, %109, %93 : vector<8x256xi1>, vector<8x256xf32>
    %c5_i32 = arith.constant 5 : i32
    %111 = vector.broadcast %c5_i32 : i32 to vector<8x256xi32>
    %112 = arith.cmpi eq, %2, %111 : vector<8x256xi32>
    %113 = vector.shape_cast %112 : vector<8x256xi1> to vector<8x1x256xi1>
    %114 = vector.extract_strided_slice %23 {offsets = [0, 5, 0], sizes = [8, 1, 16], strides = [1, 1, 1]} : vector<8x16x16xf32> to vector<8x1x16xf32>
    %115 = vector.shape_cast %114 : vector<8x1x16xf32> to vector<8x16xf32>
    %116 = vector.shape_cast %115 : vector<8x16xf32> to vector<8x16x1xf32>
    %117 = vector.shape_cast %113 : vector<8x1x256xi1> to vector<8x1x256xi1>
    %118 = vector.broadcast %117 : vector<8x1x256xi1> to vector<8x16x256xi1>
    %119 = vector.shape_cast %116 : vector<8x16x1xf32> to vector<8x16x1xf32>
    %120 = vector.broadcast %119 : vector<8x16x1xf32> to vector<8x16x256xf32>
    %121 = arith.select %118, %120, %104 : vector<8x16x256xi1>, vector<8x16x256xf32>
    %122 = vector.extract_strided_slice %13 {offsets = [0, 5], sizes = [8, 1], strides = [1, 1]} : vector<8x16xf32> to vector<8x1xf32>
    %123 = vector.shape_cast %122 : vector<8x1xf32> to vector<8xf32>
    %124 = vector.shape_cast %123 : vector<8xf32> to vector<8x1xf32>
    %125 = vector.shape_cast %124 : vector<8x1xf32> to vector<8x1xf32>
    %126 = vector.broadcast %125 : vector<8x1xf32> to vector<8x256xf32>
    %127 = arith.select %112, %126, %110 : vector<8x256xi1>, vector<8x256xf32>
    %c6_i32 = arith.constant 6 : i32
    %128 = vector.broadcast %c6_i32 : i32 to vector<8x256xi32>
    %129 = arith.cmpi eq, %2, %128 : vector<8x256xi32>
    %130 = vector.shape_cast %129 : vector<8x256xi1> to vector<8x1x256xi1>
    %131 = vector.extract_strided_slice %23 {offsets = [0, 6, 0], sizes = [8, 1, 16], strides = [1, 1, 1]} : vector<8x16x16xf32> to vector<8x1x16xf32>
    %132 = vector.shape_cast %131 : vector<8x1x16xf32> to vector<8x16xf32>
    %133 = vector.shape_cast %132 : vector<8x16xf32> to vector<8x16x1xf32>
    %134 = vector.shape_cast %130 : vector<8x1x256xi1> to vector<8x1x256xi1>
    %135 = vector.broadcast %134 : vector<8x1x256xi1> to vector<8x16x256xi1>
    %136 = vector.shape_cast %133 : vector<8x16x1xf32> to vector<8x16x1xf32>
    %137 = vector.broadcast %136 : vector<8x16x1xf32> to vector<8x16x256xf32>
    %138 = arith.select %135, %137, %121 : vector<8x16x256xi1>, vector<8x16x256xf32>
    %139 = vector.extract_strided_slice %13 {offsets = [0, 6], sizes = [8, 1], strides = [1, 1]} : vector<8x16xf32> to vector<8x1xf32>
    %140 = vector.shape_cast %139 : vector<8x1xf32> to vector<8xf32>
    %141 = vector.shape_cast %140 : vector<8xf32> to vector<8x1xf32>
    %142 = vector.shape_cast %141 : vector<8x1xf32> to vector<8x1xf32>
    %143 = vector.broadcast %142 : vector<8x1xf32> to vector<8x256xf32>
    %144 = arith.select %129, %143, %127 : vector<8x256xi1>, vector<8x256xf32>
    %c7_i32 = arith.constant 7 : i32
    %145 = vector.broadcast %c7_i32 : i32 to vector<8x256xi32>
    %146 = arith.cmpi eq, %2, %145 : vector<8x256xi32>
    %147 = vector.shape_cast %146 : vector<8x256xi1> to vector<8x1x256xi1>
    %148 = vector.extract_strided_slice %23 {offsets = [0, 7, 0], sizes = [8, 1, 16], strides = [1, 1, 1]} : vector<8x16x16xf32> to vector<8x1x16xf32>
    %149 = vector.shape_cast %148 : vector<8x1x16xf32> to vector<8x16xf32>
    %150 = vector.shape_cast %149 : vector<8x16xf32> to vector<8x16x1xf32>
    %151 = vector.shape_cast %147 : vector<8x1x256xi1> to vector<8x1x256xi1>
    %152 = vector.broadcast %151 : vector<8x1x256xi1> to vector<8x16x256xi1>
    %153 = vector.shape_cast %150 : vector<8x16x1xf32> to vector<8x16x1xf32>
    %154 = vector.broadcast %153 : vector<8x16x1xf32> to vector<8x16x256xf32>
    %155 = arith.select %152, %154, %138 : vector<8x16x256xi1>, vector<8x16x256xf32>
    %156 = vector.extract_strided_slice %13 {offsets = [0, 7], sizes = [8, 1], strides = [1, 1]} : vector<8x16xf32> to vector<8x1xf32>
    %157 = vector.shape_cast %156 : vector<8x1xf32> to vector<8xf32>
    %158 = vector.shape_cast %157 : vector<8xf32> to vector<8x1xf32>
    %159 = vector.shape_cast %158 : vector<8x1xf32> to vector<8x1xf32>
    %160 = vector.broadcast %159 : vector<8x1xf32> to vector<8x256xf32>
    %161 = arith.select %146, %160, %144 : vector<8x256xi1>, vector<8x256xf32>
    %c8_i32 = arith.constant 8 : i32
    %162 = vector.broadcast %c8_i32 : i32 to vector<8x256xi32>
    %163 = arith.cmpi eq, %2, %162 : vector<8x256xi32>
    %164 = vector.shape_cast %163 : vector<8x256xi1> to vector<8x1x256xi1>
    %165 = vector.extract_strided_slice %23 {offsets = [0, 8, 0], sizes = [8, 1, 16], strides = [1, 1, 1]} : vector<8x16x16xf32> to vector<8x1x16xf32>
    %166 = vector.shape_cast %165 : vector<8x1x16xf32> to vector<8x16xf32>
    %167 = vector.shape_cast %166 : vector<8x16xf32> to vector<8x16x1xf32>
    %168 = vector.shape_cast %164 : vector<8x1x256xi1> to vector<8x1x256xi1>
    %169 = vector.broadcast %168 : vector<8x1x256xi1> to vector<8x16x256xi1>
    %170 = vector.shape_cast %167 : vector<8x16x1xf32> to vector<8x16x1xf32>
    %171 = vector.broadcast %170 : vector<8x16x1xf32> to vector<8x16x256xf32>
    %172 = arith.select %169, %171, %155 : vector<8x16x256xi1>, vector<8x16x256xf32>
    %173 = vector.extract_strided_slice %13 {offsets = [0, 8], sizes = [8, 1], strides = [1, 1]} : vector<8x16xf32> to vector<8x1xf32>
    %174 = vector.shape_cast %173 : vector<8x1xf32> to vector<8xf32>
    %175 = vector.shape_cast %174 : vector<8xf32> to vector<8x1xf32>
    %176 = vector.shape_cast %175 : vector<8x1xf32> to vector<8x1xf32>
    %177 = vector.broadcast %176 : vector<8x1xf32> to vector<8x256xf32>
    %178 = arith.select %163, %177, %161 : vector<8x256xi1>, vector<8x256xf32>
    %c9_i32 = arith.constant 9 : i32
    %179 = vector.broadcast %c9_i32 : i32 to vector<8x256xi32>
    %180 = arith.cmpi eq, %2, %179 : vector<8x256xi32>
    %181 = vector.shape_cast %180 : vector<8x256xi1> to vector<8x1x256xi1>
    %182 = vector.extract_strided_slice %23 {offsets = [0, 9, 0], sizes = [8, 1, 16], strides = [1, 1, 1]} : vector<8x16x16xf32> to vector<8x1x16xf32>
    %183 = vector.shape_cast %182 : vector<8x1x16xf32> to vector<8x16xf32>
    %184 = vector.shape_cast %183 : vector<8x16xf32> to vector<8x16x1xf32>
    %185 = vector.shape_cast %181 : vector<8x1x256xi1> to vector<8x1x256xi1>
    %186 = vector.broadcast %185 : vector<8x1x256xi1> to vector<8x16x256xi1>
    %187 = vector.shape_cast %184 : vector<8x16x1xf32> to vector<8x16x1xf32>
    %188 = vector.broadcast %187 : vector<8x16x1xf32> to vector<8x16x256xf32>
    %189 = arith.select %186, %188, %172 : vector<8x16x256xi1>, vector<8x16x256xf32>
    %190 = vector.extract_strided_slice %13 {offsets = [0, 9], sizes = [8, 1], strides = [1, 1]} : vector<8x16xf32> to vector<8x1xf32>
    %191 = vector.shape_cast %190 : vector<8x1xf32> to vector<8xf32>
    %192 = vector.shape_cast %191 : vector<8xf32> to vector<8x1xf32>
    %193 = vector.shape_cast %192 : vector<8x1xf32> to vector<8x1xf32>
    %194 = vector.broadcast %193 : vector<8x1xf32> to vector<8x256xf32>
    %195 = arith.select %180, %194, %178 : vector<8x256xi1>, vector<8x256xf32>
    %c10_i32 = arith.constant 10 : i32
    %196 = vector.broadcast %c10_i32 : i32 to vector<8x256xi32>
    %197 = arith.cmpi eq, %2, %196 : vector<8x256xi32>
    %198 = vector.shape_cast %197 : vector<8x256xi1> to vector<8x1x256xi1>
    %199 = vector.extract_strided_slice %23 {offsets = [0, 10, 0], sizes = [8, 1, 16], strides = [1, 1, 1]} : vector<8x16x16xf32> to vector<8x1x16xf32>
    %200 = vector.shape_cast %199 : vector<8x1x16xf32> to vector<8x16xf32>
    %201 = vector.shape_cast %200 : vector<8x16xf32> to vector<8x16x1xf32>
    %202 = vector.shape_cast %198 : vector<8x1x256xi1> to vector<8x1x256xi1>
    %203 = vector.broadcast %202 : vector<8x1x256xi1> to vector<8x16x256xi1>
    %204 = vector.shape_cast %201 : vector<8x16x1xf32> to vector<8x16x1xf32>
    %205 = vector.broadcast %204 : vector<8x16x1xf32> to vector<8x16x256xf32>
    %206 = arith.select %203, %205, %189 : vector<8x16x256xi1>, vector<8x16x256xf32>
    %207 = vector.extract_strided_slice %13 {offsets = [0, 10], sizes = [8, 1], strides = [1, 1]} : vector<8x16xf32> to vector<8x1xf32>
    %208 = vector.shape_cast %207 : vector<8x1xf32> to vector<8xf32>
    %209 = vector.shape_cast %208 : vector<8xf32> to vector<8x1xf32>
    %210 = vector.shape_cast %209 : vector<8x1xf32> to vector<8x1xf32>
    %211 = vector.broadcast %210 : vector<8x1xf32> to vector<8x256xf32>
    %212 = arith.select %197, %211, %195 : vector<8x256xi1>, vector<8x256xf32>
    %c11_i32 = arith.constant 11 : i32
    %213 = vector.broadcast %c11_i32 : i32 to vector<8x256xi32>
    %214 = arith.cmpi eq, %2, %213 : vector<8x256xi32>
    %215 = vector.shape_cast %214 : vector<8x256xi1> to vector<8x1x256xi1>
    %216 = vector.extract_strided_slice %23 {offsets = [0, 11, 0], sizes = [8, 1, 16], strides = [1, 1, 1]} : vector<8x16x16xf32> to vector<8x1x16xf32>
    %217 = vector.shape_cast %216 : vector<8x1x16xf32> to vector<8x16xf32>
    %218 = vector.shape_cast %217 : vector<8x16xf32> to vector<8x16x1xf32>
    %219 = vector.shape_cast %215 : vector<8x1x256xi1> to vector<8x1x256xi1>
    %220 = vector.broadcast %219 : vector<8x1x256xi1> to vector<8x16x256xi1>
    %221 = vector.shape_cast %218 : vector<8x16x1xf32> to vector<8x16x1xf32>
    %222 = vector.broadcast %221 : vector<8x16x1xf32> to vector<8x16x256xf32>
    %223 = arith.select %220, %222, %206 : vector<8x16x256xi1>, vector<8x16x256xf32>
    %224 = vector.extract_strided_slice %13 {offsets = [0, 11], sizes = [8, 1], strides = [1, 1]} : vector<8x16xf32> to vector<8x1xf32>
    %225 = vector.shape_cast %224 : vector<8x1xf32> to vector<8xf32>
    %226 = vector.shape_cast %225 : vector<8xf32> to vector<8x1xf32>
    %227 = vector.shape_cast %226 : vector<8x1xf32> to vector<8x1xf32>
    %228 = vector.broadcast %227 : vector<8x1xf32> to vector<8x256xf32>
    %229 = arith.select %214, %228, %212 : vector<8x256xi1>, vector<8x256xf32>
    %c12_i32 = arith.constant 12 : i32
    %230 = vector.broadcast %c12_i32 : i32 to vector<8x256xi32>
    %231 = arith.cmpi eq, %2, %230 : vector<8x256xi32>
    %232 = vector.shape_cast %231 : vector<8x256xi1> to vector<8x1x256xi1>
    %233 = vector.extract_strided_slice %23 {offsets = [0, 12, 0], sizes = [8, 1, 16], strides = [1, 1, 1]} : vector<8x16x16xf32> to vector<8x1x16xf32>
    %234 = vector.shape_cast %233 : vector<8x1x16xf32> to vector<8x16xf32>
    %235 = vector.shape_cast %234 : vector<8x16xf32> to vector<8x16x1xf32>
    %236 = vector.shape_cast %232 : vector<8x1x256xi1> to vector<8x1x256xi1>
    %237 = vector.broadcast %236 : vector<8x1x256xi1> to vector<8x16x256xi1>
    %238 = vector.shape_cast %235 : vector<8x16x1xf32> to vector<8x16x1xf32>
    %239 = vector.broadcast %238 : vector<8x16x1xf32> to vector<8x16x256xf32>
    %240 = arith.select %237, %239, %223 : vector<8x16x256xi1>, vector<8x16x256xf32>
    %241 = vector.extract_strided_slice %13 {offsets = [0, 12], sizes = [8, 1], strides = [1, 1]} : vector<8x16xf32> to vector<8x1xf32>
    %242 = vector.shape_cast %241 : vector<8x1xf32> to vector<8xf32>
    %243 = vector.shape_cast %242 : vector<8xf32> to vector<8x1xf32>
    %244 = vector.shape_cast %243 : vector<8x1xf32> to vector<8x1xf32>
    %245 = vector.broadcast %244 : vector<8x1xf32> to vector<8x256xf32>
    %246 = arith.select %231, %245, %229 : vector<8x256xi1>, vector<8x256xf32>
    %c13_i32 = arith.constant 13 : i32
    %247 = vector.broadcast %c13_i32 : i32 to vector<8x256xi32>
    %248 = arith.cmpi eq, %2, %247 : vector<8x256xi32>
    %249 = vector.shape_cast %248 : vector<8x256xi1> to vector<8x1x256xi1>
    %250 = vector.extract_strided_slice %23 {offsets = [0, 13, 0], sizes = [8, 1, 16], strides = [1, 1, 1]} : vector<8x16x16xf32> to vector<8x1x16xf32>
    %251 = vector.shape_cast %250 : vector<8x1x16xf32> to vector<8x16xf32>
    %252 = vector.shape_cast %251 : vector<8x16xf32> to vector<8x16x1xf32>
    %253 = vector.shape_cast %249 : vector<8x1x256xi1> to vector<8x1x256xi1>
    %254 = vector.broadcast %253 : vector<8x1x256xi1> to vector<8x16x256xi1>
    %255 = vector.shape_cast %252 : vector<8x16x1xf32> to vector<8x16x1xf32>
    %256 = vector.broadcast %255 : vector<8x16x1xf32> to vector<8x16x256xf32>
    %257 = arith.select %254, %256, %240 : vector<8x16x256xi1>, vector<8x16x256xf32>
    %258 = vector.extract_strided_slice %13 {offsets = [0, 13], sizes = [8, 1], strides = [1, 1]} : vector<8x16xf32> to vector<8x1xf32>
    %259 = vector.shape_cast %258 : vector<8x1xf32> to vector<8xf32>
    %260 = vector.shape_cast %259 : vector<8xf32> to vector<8x1xf32>
    %261 = vector.shape_cast %260 : vector<8x1xf32> to vector<8x1xf32>
    %262 = vector.broadcast %261 : vector<8x1xf32> to vector<8x256xf32>
    %263 = arith.select %248, %262, %246 : vector<8x256xi1>, vector<8x256xf32>
    %c14_i32 = arith.constant 14 : i32
    %264 = vector.broadcast %c14_i32 : i32 to vector<8x256xi32>
    %265 = arith.cmpi eq, %2, %264 : vector<8x256xi32>
    %266 = vector.shape_cast %265 : vector<8x256xi1> to vector<8x1x256xi1>
    %267 = vector.extract_strided_slice %23 {offsets = [0, 14, 0], sizes = [8, 1, 16], strides = [1, 1, 1]} : vector<8x16x16xf32> to vector<8x1x16xf32>
    %268 = vector.shape_cast %267 : vector<8x1x16xf32> to vector<8x16xf32>
    %269 = vector.shape_cast %268 : vector<8x16xf32> to vector<8x16x1xf32>
    %270 = vector.shape_cast %266 : vector<8x1x256xi1> to vector<8x1x256xi1>
    %271 = vector.broadcast %270 : vector<8x1x256xi1> to vector<8x16x256xi1>
    %272 = vector.shape_cast %269 : vector<8x16x1xf32> to vector<8x16x1xf32>
    %273 = vector.broadcast %272 : vector<8x16x1xf32> to vector<8x16x256xf32>
    %274 = arith.select %271, %273, %257 : vector<8x16x256xi1>, vector<8x16x256xf32>
    %275 = vector.extract_strided_slice %13 {offsets = [0, 14], sizes = [8, 1], strides = [1, 1]} : vector<8x16xf32> to vector<8x1xf32>
    %276 = vector.shape_cast %275 : vector<8x1xf32> to vector<8xf32>
    %277 = vector.shape_cast %276 : vector<8xf32> to vector<8x1xf32>
    %278 = vector.shape_cast %277 : vector<8x1xf32> to vector<8x1xf32>
    %279 = vector.broadcast %278 : vector<8x1xf32> to vector<8x256xf32>
    %280 = arith.select %265, %279, %263 : vector<8x256xi1>, vector<8x256xf32>
    %c15_i32 = arith.constant 15 : i32
    %281 = vector.broadcast %c15_i32 : i32 to vector<8x256xi32>
    %282 = arith.cmpi eq, %2, %281 : vector<8x256xi32>
    %283 = vector.shape_cast %282 : vector<8x256xi1> to vector<8x1x256xi1>
    %284 = vector.extract_strided_slice %23 {offsets = [0, 15, 0], sizes = [8, 1, 16], strides = [1, 1, 1]} : vector<8x16x16xf32> to vector<8x1x16xf32>
    %285 = vector.shape_cast %284 : vector<8x1x16xf32> to vector<8x16xf32>
    %286 = vector.shape_cast %285 : vector<8x16xf32> to vector<8x16x1xf32>
    %287 = vector.shape_cast %283 : vector<8x1x256xi1> to vector<8x1x256xi1>
    %288 = vector.broadcast %287 : vector<8x1x256xi1> to vector<8x16x256xi1>
    %289 = vector.shape_cast %286 : vector<8x16x1xf32> to vector<8x16x1xf32>
    %290 = vector.broadcast %289 : vector<8x16x1xf32> to vector<8x16x256xf32>
    %291 = arith.select %288, %290, %274 : vector<8x16x256xi1>, vector<8x16x256xf32>
    %292 = vector.extract_strided_slice %13 {offsets = [0, 15], sizes = [8, 1], strides = [1, 1]} : vector<8x16xf32> to vector<8x1xf32>
    %293 = vector.shape_cast %292 : vector<8x1xf32> to vector<8xf32>
    %294 = vector.shape_cast %293 : vector<8xf32> to vector<8x1xf32>
    %295 = vector.shape_cast %294 : vector<8x1xf32> to vector<8x1xf32>
    %296 = vector.broadcast %295 : vector<8x1xf32> to vector<8x256xf32>
    %297 = arith.select %282, %296, %280 : vector<8x256xi1>, vector<8x256xf32>
    %298 = vector.extract_strided_slice %291 {offsets = [0, 0, 0], sizes = [8, 1, 256], strides = [1, 1, 1]} : vector<8x16x256xf32> to vector<8x1x256xf32>
    %299 = vector.shape_cast %298 : vector<8x1x256xf32> to vector<8x256xf32>
    %c1_i32_13 = arith.constant 1 : i32
    %300 = vector.broadcast %c1_i32_13 : i32 to vector<8x256xi32>
    %301 = arith.cmpi eq, %3, %300 : vector<8x256xi32>
    %302 = vector.extract_strided_slice %291 {offsets = [0, 1, 0], sizes = [8, 1, 256], strides = [1, 1, 1]} : vector<8x16x256xf32> to vector<8x1x256xf32>
    %303 = vector.shape_cast %302 : vector<8x1x256xf32> to vector<8x256xf32>
    %304 = arith.select %301, %303, %299 : vector<8x256xi1>, vector<8x256xf32>
    %c2_i32_14 = arith.constant 2 : i32
    %305 = vector.broadcast %c2_i32_14 : i32 to vector<8x256xi32>
    %306 = arith.cmpi eq, %3, %305 : vector<8x256xi32>
    %307 = vector.extract_strided_slice %291 {offsets = [0, 2, 0], sizes = [8, 1, 256], strides = [1, 1, 1]} : vector<8x16x256xf32> to vector<8x1x256xf32>
    %308 = vector.shape_cast %307 : vector<8x1x256xf32> to vector<8x256xf32>
    %309 = arith.select %306, %308, %304 : vector<8x256xi1>, vector<8x256xf32>
    %c3_i32_15 = arith.constant 3 : i32
    %310 = vector.broadcast %c3_i32_15 : i32 to vector<8x256xi32>
    %311 = arith.cmpi eq, %3, %310 : vector<8x256xi32>
    %312 = vector.extract_strided_slice %291 {offsets = [0, 3, 0], sizes = [8, 1, 256], strides = [1, 1, 1]} : vector<8x16x256xf32> to vector<8x1x256xf32>
    %313 = vector.shape_cast %312 : vector<8x1x256xf32> to vector<8x256xf32>
    %314 = arith.select %311, %313, %309 : vector<8x256xi1>, vector<8x256xf32>
    %c4_i32_16 = arith.constant 4 : i32
    %315 = vector.broadcast %c4_i32_16 : i32 to vector<8x256xi32>
    %316 = arith.cmpi eq, %3, %315 : vector<8x256xi32>
    %317 = vector.extract_strided_slice %291 {offsets = [0, 4, 0], sizes = [8, 1, 256], strides = [1, 1, 1]} : vector<8x16x256xf32> to vector<8x1x256xf32>
    %318 = vector.shape_cast %317 : vector<8x1x256xf32> to vector<8x256xf32>
    %319 = arith.select %316, %318, %314 : vector<8x256xi1>, vector<8x256xf32>
    %c5_i32_17 = arith.constant 5 : i32
    %320 = vector.broadcast %c5_i32_17 : i32 to vector<8x256xi32>
    %321 = arith.cmpi eq, %3, %320 : vector<8x256xi32>
    %322 = vector.extract_strided_slice %291 {offsets = [0, 5, 0], sizes = [8, 1, 256], strides = [1, 1, 1]} : vector<8x16x256xf32> to vector<8x1x256xf32>
    %323 = vector.shape_cast %322 : vector<8x1x256xf32> to vector<8x256xf32>
    %324 = arith.select %321, %323, %319 : vector<8x256xi1>, vector<8x256xf32>
    %c6_i32_18 = arith.constant 6 : i32
    %325 = vector.broadcast %c6_i32_18 : i32 to vector<8x256xi32>
    %326 = arith.cmpi eq, %3, %325 : vector<8x256xi32>
    %327 = vector.extract_strided_slice %291 {offsets = [0, 6, 0], sizes = [8, 1, 256], strides = [1, 1, 1]} : vector<8x16x256xf32> to vector<8x1x256xf32>
    %328 = vector.shape_cast %327 : vector<8x1x256xf32> to vector<8x256xf32>
    %329 = arith.select %326, %328, %324 : vector<8x256xi1>, vector<8x256xf32>
    %c7_i32_19 = arith.constant 7 : i32
    %330 = vector.broadcast %c7_i32_19 : i32 to vector<8x256xi32>
    %331 = arith.cmpi eq, %3, %330 : vector<8x256xi32>
    %332 = vector.extract_strided_slice %291 {offsets = [0, 7, 0], sizes = [8, 1, 256], strides = [1, 1, 1]} : vector<8x16x256xf32> to vector<8x1x256xf32>
    %333 = vector.shape_cast %332 : vector<8x1x256xf32> to vector<8x256xf32>
    %334 = arith.select %331, %333, %329 : vector<8x256xi1>, vector<8x256xf32>
    %c8_i32_20 = arith.constant 8 : i32
    %335 = vector.broadcast %c8_i32_20 : i32 to vector<8x256xi32>
    %336 = arith.cmpi eq, %3, %335 : vector<8x256xi32>
    %337 = vector.extract_strided_slice %291 {offsets = [0, 8, 0], sizes = [8, 1, 256], strides = [1, 1, 1]} : vector<8x16x256xf32> to vector<8x1x256xf32>
    %338 = vector.shape_cast %337 : vector<8x1x256xf32> to vector<8x256xf32>
    %339 = arith.select %336, %338, %334 : vector<8x256xi1>, vector<8x256xf32>
    %c9_i32_21 = arith.constant 9 : i32
    %340 = vector.broadcast %c9_i32_21 : i32 to vector<8x256xi32>
    %341 = arith.cmpi eq, %3, %340 : vector<8x256xi32>
    %342 = vector.extract_strided_slice %291 {offsets = [0, 9, 0], sizes = [8, 1, 256], strides = [1, 1, 1]} : vector<8x16x256xf32> to vector<8x1x256xf32>
    %343 = vector.shape_cast %342 : vector<8x1x256xf32> to vector<8x256xf32>
    %344 = arith.select %341, %343, %339 : vector<8x256xi1>, vector<8x256xf32>
    %c10_i32_22 = arith.constant 10 : i32
    %345 = vector.broadcast %c10_i32_22 : i32 to vector<8x256xi32>
    %346 = arith.cmpi eq, %3, %345 : vector<8x256xi32>
    %347 = vector.extract_strided_slice %291 {offsets = [0, 10, 0], sizes = [8, 1, 256], strides = [1, 1, 1]} : vector<8x16x256xf32> to vector<8x1x256xf32>
    %348 = vector.shape_cast %347 : vector<8x1x256xf32> to vector<8x256xf32>
    %349 = arith.select %346, %348, %344 : vector<8x256xi1>, vector<8x256xf32>
    %c11_i32_23 = arith.constant 11 : i32
    %350 = vector.broadcast %c11_i32_23 : i32 to vector<8x256xi32>
    %351 = arith.cmpi eq, %3, %350 : vector<8x256xi32>
    %352 = vector.extract_strided_slice %291 {offsets = [0, 11, 0], sizes = [8, 1, 256], strides = [1, 1, 1]} : vector<8x16x256xf32> to vector<8x1x256xf32>
    %353 = vector.shape_cast %352 : vector<8x1x256xf32> to vector<8x256xf32>
    %354 = arith.select %351, %353, %349 : vector<8x256xi1>, vector<8x256xf32>
    %c12_i32_24 = arith.constant 12 : i32
    %355 = vector.broadcast %c12_i32_24 : i32 to vector<8x256xi32>
    %356 = arith.cmpi eq, %3, %355 : vector<8x256xi32>
    %357 = vector.extract_strided_slice %291 {offsets = [0, 12, 0], sizes = [8, 1, 256], strides = [1, 1, 1]} : vector<8x16x256xf32> to vector<8x1x256xf32>
    %358 = vector.shape_cast %357 : vector<8x1x256xf32> to vector<8x256xf32>
    %359 = arith.select %356, %358, %354 : vector<8x256xi1>, vector<8x256xf32>
    %c13_i32_25 = arith.constant 13 : i32
    %360 = vector.broadcast %c13_i32_25 : i32 to vector<8x256xi32>
    %361 = arith.cmpi eq, %3, %360 : vector<8x256xi32>
    %362 = vector.extract_strided_slice %291 {offsets = [0, 13, 0], sizes = [8, 1, 256], strides = [1, 1, 1]} : vector<8x16x256xf32> to vector<8x1x256xf32>
    %363 = vector.shape_cast %362 : vector<8x1x256xf32> to vector<8x256xf32>
    %364 = arith.select %361, %363, %359 : vector<8x256xi1>, vector<8x256xf32>
    %c14_i32_26 = arith.constant 14 : i32
    %365 = vector.broadcast %c14_i32_26 : i32 to vector<8x256xi32>
    %366 = arith.cmpi eq, %3, %365 : vector<8x256xi32>
    %367 = vector.extract_strided_slice %291 {offsets = [0, 14, 0], sizes = [8, 1, 256], strides = [1, 1, 1]} : vector<8x16x256xf32> to vector<8x1x256xf32>
    %368 = vector.shape_cast %367 : vector<8x1x256xf32> to vector<8x256xf32>
    %369 = arith.select %366, %368, %364 : vector<8x256xi1>, vector<8x256xf32>
    %c15_i32_27 = arith.constant 15 : i32
    %370 = vector.broadcast %c15_i32_27 : i32 to vector<8x256xi32>
    %371 = arith.cmpi eq, %3, %370 : vector<8x256xi32>
    %372 = vector.extract_strided_slice %291 {offsets = [0, 15, 0], sizes = [8, 1, 256], strides = [1, 1, 1]} : vector<8x16x256xf32> to vector<8x1x256xf32>
    %373 = vector.shape_cast %372 : vector<8x1x256xf32> to vector<8x256xf32>
    %374 = arith.select %371, %373, %369 : vector<8x256xi1>, vector<8x256xf32>
    %375 = arith.addf %374, %297 : vector<8x256xf32>
    %c0_28 = arith.constant 0 : index
    %c0_29 = arith.constant 0 : index
    %376 = vector.load %arg5[%c0_28, %c0_29] : memref<8x256xf32, #tpu.memory_space<vmem>>, vector<8x256xf32>
    tpu.vector_store %arg5[%c0_28, %c0_29], %375 {strides = array<i32>} : memref<8x256xf32, #tpu.memory_space<vmem>>, vector<8x256xf32>,
    return
  }
  func.func @transform_0(%arg0: i32) -> (i32, i32) {
    %c0_i32 = arith.constant 0 : i32
    %c0_i32_0 = arith.constant 0 : i32
    return %arg0, %c0_i32 : i32, i32
  }
  func.func @transform_1(%arg0: i32) -> (i32, i32, i32) {
    %c0_i32 = arith.constant 0 : i32
    %c0_i32_0 = arith.constant 0 : i32
    %c0_i32_1 = arith.constant 0 : i32
    return %arg0, %c0_i32, %c0_i32_0 : i32, i32, i32
  }
  func.func @transform_2(%arg0: i32) -> (i32, i32) {
    %c0_i32 = arith.constant 0 : i32
    %c0_i32_0 = arith.constant 0 : i32
    return %arg0, %c0_i32 : i32, i32
  }
  func.func @transform_3(%arg0: i32) -> (i32, i32) {
    %c0_i32 = arith.constant 0 : i32
    %c0_i32_0 = arith.constant 0 : i32
    return %arg0, %c0_i32 : i32, i32
  }
  func.func @transform_4(%arg0: i32) -> (i32, i32) {
    %c0_i32 = arith.constant 0 : i32
    %c0_i32_0 = arith.constant 0 : i32
    return %arg0, %c0_i32 : i32, i32
  }
}

</mosaic_0001>

<bundles_post_ra>
// kernel: tpu_custom_call.1
= control target key start
LH: loop header
LB: loop body
LE: loop exit
PB: predicated region body
PF: predicated region fallthrough
CT: control target
= control target key end

     0   :  { %s11848_s0 = inlined_call_operand.hbm [shape: f32[13,16], index: 0, kind: input, shape index: {}]   ;;  %s11849_s1 = inlined_call_operand.hbm [shape: f32[13,16,16], index: 1, kind: input, shape index: {}]   ;;  %s11850_s2 = inlined_call_operand.hbm [shape: s32[13,256], index: 2, kind: input, shape index: {}]   ;;  %s11851_s3 = inlined_call_operand.hbm [shape: s32[13,256], index: 3, kind: input, shape index: {}]   ;;  %s11852_s4 = inlined_call_operand.hbm [shape: f32[13,256], index: 4, kind: output, shape index: {}]  }
   0x1   :  { %12658 = sst [smem:[#allocation279_spill]] %s11848_s0 }
   0x2   :  { %12659 = sst [smem:[#allocation280_spill]] %s11849_s1 }
   0x3   :  { %9 = vsyncpa [#allocation3], 0 }
   0x4   :  { %11 = vsyncpa [#allocation3 + $0x1], 0 }
   0x5   :  { %12 = vsyncpa [#allocation6], 0 }
   0x6   :  { %14 = vsyncpa [#allocation6 + $0x1], 0 }
   0x7   :  { %15 = vsyncpa [#allocation9], 0 }
   0x8   :  { %17 = vsyncpa [#allocation9 + $0x1], 0 }
   0x9   :  { %18 = vsyncpa [#allocation4], 0 }
   0xa   :  { %20 = vsyncpa [#allocation4 + $0x1], 0  ;;  %s5218_s15 = smov 0   ;;  %s5220_s16 = smov 0  }
   0xb   :  { %s5222_s17 = smov 0   ;;  %s5224_s18 = smov 0  }
   0xc LB: > { %s5239_s19 = sadd.s32 4294967295, %s5172_s18   ;;  %s4675_s20 = sadd.s32 4294967294, %s5172_s18   ;;  %s5172_s18 = sphi %s5224_s18, %s14970_s18   ;;  %s5168_s17 = sphi %s5222_s17, %s14969_s17   ;;  %s5164_s16 = sphi %s5220_s16, %s14968_s16   ;;  %s5160_s15 = sphi %s5218_s15, %s14967_s15  }
   0xd   : > { %s5243_s21 = sadd.s32 1, %s5172_s18   ;;  %s33_s22 = sadd.s32 1, %s5168_s17 }
   0xe   : > { %s30_s23 = ssub.s32 %s5172_s18, %s5243_s21  ;;  %p40_p0 = scmp.ne.s32.totalorder %s5168_s17, %s5164_s16 }
   0xf   : > { %p31_p1 = scmp.eq.s32.totalorder %s30_s23, 0  ;;  %p41_p2 = scmp.eq.s32.totalorder %s5172_s18, 0 }
  0x10   : > { %p46_p3 = scmp.ne.s32.totalorder %s5164_s16, %s5160_s15  ;;  %p47_p4 = scmp.eq.s32.totalorder %s5239_s19, 0 }
  0x11   : > { %s5255_s24 = scalar_select %p31_p1, %s5168_s17, %s33_s22  }
  0x12   : > { %p5257_p5 = por %p41_p2, %p40_p0  ;;  %p5261_p6 = por %p47_p4, %p46_p3 }
  0x13   : > { %12660 = sst [smem:[#allocation15_spill]] %s5255_s24  ;;  %p148_p7 = scmp.eq.s32.totalorder %s5239_s19, 1 }
  0x14   : > { %p154_p8 = scmp.eq.s32.totalorder %s4675_s20, 1  ;;  %p11854_p11 = scmp.ge.s32.totalorder %s5172_s18, 2 }
  0x15   : > { %p5266_p9 = por %p148_p7, %p40_p0  ;;  %s5278_s29 = sand.u32 (!%p11854_p11), 1, %s5168_s17  }
  0x16   : > { %p5270_p10 = por %p154_p8, %p46_p3  ;;  %170 = sbr.rel (%p11854_p11) target bundleno = 118 (0x76), region = 16 }
  0x17   : > { %s4679_s30 = sshll.u32 (!%p11854_p11), %s5172_s18, 3  ;;  %s4678_s5 = sshll.u32 (!%p11854_p11), %s5278_s29, 3 }
  0x18   : > { %s12664_s28 = scalar_select %p5270_p10, 1, 0 }
  0x19   : > { %s12665_s0 = sld [smem:[#allocation279_spill]] (!%p11854_p11)  ;;  %s178_s10 = scalar_lea.vmem (!%p11854_p11), [#allocation2], %s4678_s5 }
  0x1a   : > { %s186_s11 = sshll.u32 (!%p11854_p11), %s178_s10, 4  ;;  %s175_s12 = scalar_lea.sflag (!%p11854_p11), [#allocation3], %s5278_s29  ;;  %s187_s11 = int_to_ptr.vmem [resolvable:$true] %s186_s11 }
  0x1f   : > { %s182_s8 = scalar_lea.hbm %s12665_s0, %s4679_s30  ;;  %s4981_s23 = scalar_lea.hbm %s12665_s0, 16 }
  0x20   : > { %s184_s9 = sshll.u32 %s182_s8, 4  ;;  %s185_s9 = int_to_ptr.hbm [resolvable:$true] %s184_s9 }
  0x21   : > { %s4975_s13 = sshra.s32 %s185_s9, 4  ;;  %s4976_s13 = int_to_ptr.hbm [resolvable:$true] %s4975_s13 }
  0x22   : > { %s4977_s14 = scalar_lea.hbm %s4976_s13, 8  ;;  %p4982_p1 = scmp.lt.s32.totalorder %s4976_s13, %s12665_s0 }
  0x23   : > { %p4978_p12 = scmp.ne.s32.totalorder %s4976_s13, %s4977_s14  ;;  %p4983_p2 = scmp.lt.s32.totalorder %s4981_s23, %s4977_s14 }
  0x25   : > { %p4979_p13 = pnand %p4978_p12, %p5257_p5  ;;  %p4984_p3 = por %p4983_p2, %p4982_p1 }
  0x27   : > { %p4980_p0 = pneg %p4979_p13 }
  0x29   : > { %p4985_p4 = pnand %p4984_p3, %p4980_p0 }
  0x2b   : > { %4988 = shalt.err (!%p4985_p4)
}
  0x2c   : > { %4715 = dma.hbm_to_vmem [thread:$0]  (%p5257_p5), %s185_s9, 128, %s187_s11, %s175_s12  }
  0x2d   : > { %192 = sbr.rel (!%p5257_p5) target bundleno = 88 (0x58), region = 24  ;;  %s193_s5 = sand.u32 (%p5257_p5), 1, %s5172_s18  }
  0x2e   : > { %s4680_s7 = sshll.u32 (%p5257_p5), %s5278_s29, 7  ;;  %s199_s8 = ssub.s32 (%p5257_p5), 13, %s4679_s30 }
  0x2f   : > { %p200_p7 = scmp.lt.s32.totalorder (%p5257_p5), %s199_s8, 8  ;;  %s5303_s14 = scalar_lea.sflag (%p5257_p5), [#allocation6], %s193_s5 }
  0x30   : > { %s197_s20 = scalar_lea.vmem (%p5257_p5), [#allocation5], %s4680_s7 }
  0x32   : > { %s14972_s8 = smov (!%p200_p7, %s199_s8), 8 }
  0x33   : > { %s4707_s24 = sshll.u32 %s14972_s8, 4 }
  0x34   : > { %s204_s10 = ssub.s32 128, %s4707_s24 }
  0x35   : > { %s205_s13 = sshll.u32 %s204_s10, 4 }
  0x36   : > { %206 = vsyncadd %s5303_s14, %s205_s13  ;;  %p5306_p8 = scmp.ne.s32.totalorder %s4707_s24, 0  ;;  %s4709_s30 = sshll.u32 %s5172_s18, 7 }
  0x37   : > { %s12667_s1 = sld [smem:[#allocation280_spill]]  ;;  %s215_s23 = sshll.u32 %s197_s20, 4  ;;  %s5314_s23 = int_to_ptr.vmem [resolvable:$true] %s215_s23 }
  0x38   : > { %s11853_s5 = sshll.u32 %s14972_s8, 8 }
  0x39   : > { %s5005_s24 = sshrl.u32 %s11853_s5, 4 }
  0x3d   : > { %s210_s22 = scalar_lea.hbm %s12667_s1, %s4709_s30  ;;  %s5014_s20 = scalar_lea.hbm %s12667_s1, 208 }
  0x3e   : > { %s213_s6 = sshll.u32 %s210_s22, 4  ;;  %s5316_s6 = int_to_ptr.hbm [resolvable:$true] %s213_s6 }
  0x3f   : > { %s5003_s7 = sshra.s32 %s5316_s6, 4  ;;  %s5004_s7 = int_to_ptr.hbm [resolvable:$true] %s5003_s7 }
  0x40   : > { %s5010_s10 = scalar_lea.hbm %s5004_s7, %s5005_s24  ;;  %p5015_p1 = scmp.lt.s32.totalorder %s5004_s7, %s12667_s1 }
  0x41   : > { %p5011_p12 = scmp.ne.s32.totalorder %s5004_s7, %s5010_s10  ;;  %p5016_p2 = scmp.lt.s32.totalorder %s5014_s20, %s5010_s10 }
  0x43   : > { %p5012_p13 = pnand %p5011_p12, %p5306_p8  ;;  %p5017_p3 = por %p5016_p2, %p5015_p1 }
  0x45   : > { %p5013_p0 = pneg %p5012_p13 }
  0x47   : > { %p5018_p4 = pnand %p5017_p3, %p5013_p0 }
  0x49   : > { %5021 = shalt.err (!%p5018_p4)
}
  0x4a   : > { %s5022_s22 = sshra.s32 %s5314_s23, 4  ;;  %s5174_s0 = smov [#allocation5]   ;;  %s5023_s22 = int_to_ptr.vmem [resolvable:$true] %s5022_s22 }
  0x4b   : > { %s5029_s5 = scalar_lea.vmem %s5023_s22, %s5005_s24  ;;  %s5033_s13 = scalar_lea.vmem %s5174_s0, 256 }
  0x4c   : > { %p5030_p7 = scmp.ne.s32.totalorder %s5023_s22, %s5029_s5  ;;  %p5035_p11 = scmp.lt.s32.totalorder %s5033_s13, %s5029_s5 }
  0x4e   : > { %p5031_p12 = pnand %p5030_p7, %p5306_p8 }
  0x50   : > { %p5032_p13 = pneg %p5031_p12 }
  0x52   : > { %p5037_p10 = pnand %p5035_p11, %p5032_p13 }
  0x54   : > { %5040 = shalt.err (!%p5037_p10)
}
  0x55   : > { %s5175_s11 = smov 128   ;;  %s5176_s7 = smov 8  }
  0x56   : > { %s12668_s10 = sshll.u32 %s14972_s8, 8 }
  0x57   : > { %221 = dma.hbm_to_vmem [thread:$0]  (%p5306_p8), %s5316_s6, %s12668_s10, %s5314_s23, %s5303_s14, %s5175_s11, %s5175_s11, %s5176_s7  }
  0x58 PF: > { %s225_s24 = sand.u32 1, %s5172_s18   ;;  %s4690_s0 = sshll.u32 %s5278_s29, 4 }
  0x59   : > { %s4712_s5 = sshll.u32 %s5172_s18, 4  ;;  %s229_s20 = scalar_lea.vmem [#allocation7], %s4690_s0 }
  0x5a   : > { %s238_s30 = sshll.u32 %s229_s20, 4  ;;  %s234_s13 = scalar_lea.hbm %s11850_s2, %s4712_s5  ;;  %s239_s30 = int_to_ptr.vmem [resolvable:$true] %s238_s30 }
  0x5b   : > { %s236_s1 = sshll.u32 %s234_s13, 4  ;;  %s226_s9 = scalar_lea.sflag [#allocation6], %s225_s24  ;;  %s237_s1 = int_to_ptr.hbm [resolvable:$true] %s236_s1 }
  0x5c   : > { %s5042_s8 = sshra.s32 %s237_s1, 4  ;;  %s5048_s11 = scalar_lea.hbm %s11850_s2, 32  ;;  %s5043_s8 = int_to_ptr.hbm [resolvable:$true] %s5042_s8 }
  0x5d   : > { %s5044_s14 = scalar_lea.hbm %s5043_s8, 16  ;;  %p5049_p0 = scmp.lt.s32.totalorder %s5043_s8, %s11850_s2 }
  0x5e   : > { %p5045_p10 = scmp.ne.s32.totalorder %s5043_s8, %s5044_s14  ;;  %p5050_p1 = scmp.lt.s32.totalorder %s5048_s11, %s5044_s14 }
  0x60   : > { %p5046_p11 = pnand %p5045_p10, %p5257_p5  ;;  %p5051_p2 = por %p5050_p1, %p5049_p0 }
  0x62   : > { %p5047_p8 = pneg %p5046_p11 }
  0x64   : > { %p5052_p3 = pnand %p5051_p2, %p5047_p8 }
  0x66   : > { %5055 = shalt.err (!%p5052_p3)
}
  0x67   : > { %4716 = dma.hbm_to_vmem [thread:$0]  (%p5257_p5), %s237_s1, 256, %s239_s30, %s226_s9  }
  0x68   : > { %s254_s12 = scalar_lea.hbm %s11851_s3, %s4712_s5  ;;  %s249_s22 = scalar_lea.vmem [#allocation8], %s4690_s0 }
  0x69   : > { %s258_s13 = sshll.u32 %s249_s22, 4  ;;  %s256_s23 = sshll.u32 %s254_s12, 4  ;;  %s259_s13 = int_to_ptr.vmem [resolvable:$true] %s258_s13  ;;  %s257_s23 = int_to_ptr.hbm [resolvable:$true] %s256_s23 }
  0x6a   : > { %s246_s6 = scalar_lea.sflag [#allocation9], %s5278_s29  ;;  %s5070_s8 = sshra.s32 %s257_s23, 4  ;;  %s5071_s8 = int_to_ptr.hbm [resolvable:$true] %s5070_s8 }
  0x6b   : > { %s5072_s14 = scalar_lea.hbm %s5071_s8, 16  ;;  %s5076_s1 = scalar_lea.hbm %s11851_s3, 32 }
  0x6c   : > { %p5073_p4 = scmp.ne.s32.totalorder %s5071_s8, %s5072_s14  ;;  %p5077_p13 = scmp.lt.s32.totalorder %s5071_s8, %s11851_s3 }
  0x6d   : > { %p5078_p10 = scmp.lt.s32.totalorder %s5076_s1, %s5072_s14 }
  0x6e   : > { %p5074_p7 = pnand %p5073_p4, %p5257_p5 }
  0x6f   : > { %p5079_p11 = por %p5078_p10, %p5077_p13 }
  0x70   : > { %p5075_p12 = pneg %p5074_p7 }
  0x72   : > { %p5080_p8 = pnand %p5079_p11, %p5075_p12 }
  0x74   : > { %5083 = shalt.err (!%p5080_p8)
}
  0x75   : > { %4717 = dma.hbm_to_vmem [thread:$0]  (%p5257_p5), %s257_s23, 256, %s259_s13, %s246_s6  }
  0x76 PF: > { %p4696_p0 = scmp.ge.s32.totalorder %s5172_s18, 1  ;;  %p263_p1 = scmp.lt.s32.totalorder %s5172_s18, 3 }
  0x78   : > { %p264_p2 = pnand %p4696_p0, %p263_p1 }
  0x7a   : > { %267 = sbr.rel (%p264_p2) target bundleno = 1991 (0x7c7), region = 36 }
  0x7f   : > { %s5373_s29 = sand.u32 1, %s5164_s16  }
  0x80   : > { %s4697_s0 = sshll.u32 %s5373_s29, 3  ;;  %s270_s5 = scalar_lea.sflag [#allocation3], %s5373_s29 }
  0x81   : > { %s273_s10 = scalar_lea.vmem [#allocation2], %s4697_s0 }
  0x82   : > { %5143 = dma.done.wait (%p5261_p6), %s270_s5, 128  }
  0x83   : > { %5145 = vsyncadd (%p5261_p6), %s270_s5, 4294967168  ;;  %s279_s25 = sand.u32 1, %s5239_s19   ;;  %s4698_s24 = sshll.u32 %s5373_s29, 7 }
  0x84   : > { %s280_s20 = scalar_lea.sflag [#allocation6], %s279_s25  ;;  %s5383_s12 = scalar_lea.vmem [#allocation5], %s4698_s24 }
  0x85   : > { %5147 = dma.done.wait (%p5261_p6), %s280_s20, 2304  }
  0x86   : > { %5149 = vsyncadd (%p5261_p6), %s280_s20, 4294964992  ;;  %s5390_s22 = sshll.u32 %s5373_s29, 4  ;;  %s300_s23 = scalar_lea.sflag [#allocation9], %s5373_s29 }
  0x87   : > { %s5393_s13 = scalar_lea.vmem [#allocation7], %s5390_s22  ;;  %s303_s6 = scalar_lea.vmem [#allocation8], %s5390_s22 }
  0x88   : > { %5151 = dma.done.wait (%p5261_p6), %s300_s23, 256  }
  0x89   : > { %5153 = vsyncadd (%p5261_p6), %s300_s23, 4294967040  ;;  %vm371_vm0 = vcmask 130048   ;;  %v353_v0 = vld [vmem:[%s5383_s12 + $0x10] sm:$0xff]  ;;  %v351_v1 = vld [vmem:[%s5383_s12] sm:$0xff]  ;;  %vm11976_vm3 = vcmask 1041409   ;;  %vm11977_vm4 = vcmask 1042434  }
  0x8a   : > { %v350_v2 = vld [vmem:[%s273_s10] sm:$0xff]  ;;  %v390_v3 = vsel %vm371_vm0, %v353_v0, -inf  ;;  %v384_v4 = vsel %vm371_vm0, %v351_v1, -inf  ;;  %v352_v6 = vld [vmem:[%s5383_s12 + $0x8] sm:$0xff]  ;;  %v355_v8 = vld [vmem:[%s5383_s12 + $0x20] sm:$0xff]  ;;  %vm11972_vm7 = vcmask 1044484  }
  0x8b   : > { %v372_v5 = vsel %vm371_vm0, %v350_v2, -inf  ;;  %391 = vmax.xlane.f32.xlu2 %v390_v3  ;;  %385 = vmax.xlane.f32.xlu1 %v384_v4  ;;  %v354_v7 = vld [vmem:[%s5383_s12 + $0x18] sm:$0xff]  ;;  %v387_v9 = vsel %vm371_vm0, %v352_v6, -inf  ;;  %v396_v11 = vsel %vm371_vm0, %v355_v8, -inf  ;;  %v5413_v12 = vld [vmem:[%s5383_s12 + $0x28] sm:$0xff]  ;;  %v5416_v13 = vld [vmem:[%s5383_s12 + $0x30] sm:$0xff] }
  0x8c   : > { %373 = vmax.xlane.f32.xlu0 %v372_v5  ;;  %v393_v10 = vsel %vm371_vm0, %v354_v7, -inf  ;;  %v5419_v14 = vld [vmem:[%s5383_s12 + $0x38] sm:$0xff]  ;;  %v399_v15 = vsel %vm371_vm0, %v5413_v12, -inf  ;;  %v402_v16 = vsel %vm371_vm0, %v5416_v13, -inf  ;;  %v5428_v18 = vld [vmem:[%s5383_s12 + $0x40] sm:$0xff]  ;;  %v5431_v19 = vld [vmem:[%s5383_s12 + $0x48] sm:$0xff] }
  0x8d   : > { %v405_v17 = vsel %vm371_vm0, %v5419_v14, -inf  ;;  %v5434_v20 = vld [vmem:[%s5383_s12 + $0x50] sm:$0xff]  ;;  %v408_v21 = vsel %vm371_vm0, %v5428_v18, -inf  ;;  %v411_v22 = vsel %vm371_vm0, %v5431_v19, -inf  ;;  %v5443_v24 = vld [vmem:[%s5383_s12 + $0x58] sm:$0xff]  ;;  %v5446_v25 = vld [vmem:[%s5383_s12 + $0x60] sm:$0xff] }
  0x8e   : > { %v414_v23 = vsel %vm371_vm0, %v5434_v20, -inf  ;;  %v5449_v26 = vld [vmem:[%s5383_s12 + $0x68] sm:$0xff]  ;;  %v417_v27 = vsel %vm371_vm0, %v5443_v24, -inf  ;;  %v420_v28 = vsel %vm371_vm0, %v5446_v25, -inf  ;;  %v5458_v30 = vld [vmem:[%s5383_s12 + $0x70] sm:$0xff]  ;;  %v5461_v31 = vld [vmem:[%s5383_s12 + $0x78] sm:$0xff] }
  0x8f   : > { %v423_v29 = vsel %vm371_vm0, %v5449_v26, -inf  ;;  %v426_v32 = vsel %vm371_vm0, %v5458_v30, -inf  ;;  %v429_v33 = vsel %vm371_vm0, %v5461_v31, -inf  ;;  %vm11979_vm8 = vcmask 1046528   ;;  %s4714_s26 = sshll.u32 %s5239_s19, 4  ;;  %s343_s11 = scalar_lea.vmem [#allocation10], %s5390_s22 }
  0x90   : > { %s4534_s14 = scalar_lea.hbm %s11852_s4, %s4714_s26  ;;  %s4536_s7 = sshll.u32 %s343_s11, 4  ;;  %s4537_s7 = int_to_ptr.vmem [resolvable:$true] %s4536_s7 }
  0x91   : > { %s4538_s1 = sshll.u32 %s4534_s14, 4  ;;  %s4523_s30 = scalar_lea.sflag [#allocation4], %s5373_s29  ;;  %s4539_s1 = int_to_ptr.hbm [resolvable:$true] %s4538_s1 }
  0x92   : > { %s5112_s9 = sshra.s32 %s4539_s1, 4  ;;  %s5118_s25 = scalar_lea.hbm %s11852_s4, 32  ;;  %s5113_s9 = int_to_ptr.hbm [resolvable:$true] %s5112_s9 }
  0x93   : > { %388 = vmax.xlane.f32.xlu1 %v387_v9  ;;  %394 = vmax.xlane.f32.xlu2 %v393_v10  ;;  %s5114_s0 = scalar_lea.hbm %s5113_s9, 16  ;;  %p5119_p4 = scmp.lt.s32.totalorder %s5113_s9, %s11852_s4 }
  0x94   : > { %397 = vmax.xlane.f32.xlu0 %v396_v11  ;;  %p5115_p5 = scmp.ne.s32.totalorder %s5113_s9, %s5114_s0  ;;  %p5120_p7 = scmp.lt.s32.totalorder %s5118_s25, %s5114_s0 }
  0x96   : > { %p5116_p6 = pnand %p5115_p5, %p5266_p9  ;;  %p5121_p12 = por %p5120_p7, %p5119_p4 }
  0x98   : > { %p5117_p3 = pneg %p5116_p6 }
  0x9a   : > { %p5122_p13 = pnand %p5121_p12, %p5117_p3 }
  0x9b   : > { %400 = vmax.xlane.f32.xlu1 %v399_v15  ;;  %403 = vmax.xlane.f32.xlu2 %v402_v16 }
  0x9c   : > { %406 = vmax.xlane.f32.xlu0 %v405_v17 }
  0xa3   : > { %409 = vmax.xlane.f32.xlu1 %v408_v21  ;;  %412 = vmax.xlane.f32.xlu2 %v411_v22 }
  0xa4   : > { %415 = vmax.xlane.f32.xlu0 %v414_v23 }
  0xab   : > { %418 = vmax.xlane.f32.xlu1 %v417_v27  ;;  %421 = vmax.xlane.f32.xlu2 %v420_v28 }
  0xac   : > { %424 = vmax.xlane.f32.xlu0 %v423_v29 }
  0xb3   : > { %427 = vmax.xlane.f32.xlu1 %v426_v32  ;;  %430 = vmax.xlane.f32.xlu2 %v429_v33 }
  0xfe   : > { %v392_v34 = vpop.xlane.xlu2 %391  ;;  %v386_v35 = vpop.xlane.xlu1 %385 }
  0xff   : > { %v5467_v36 = vsub.f32 %v353_v0, %v392_v34  ;;  %v374_v37 = vpop.xlane.xlu0 %373  ;;  %v5472_v40 = vsub.f32 %v351_v1, %v386_v35 }
 0x100   : > { %v5469_v38 = vsub.f32 %v350_v2, %v374_v37 }
 0x101   : > { %v452_v39 = vmul.f32 1.442695, %v5467_v36  ;;  %v448_v42 = vmul.f32 1.442695, %v5472_v40 }
 0x102   : > { %v376_v41 = vmul.f32 1.442695, %v5469_v38 }
 0x103   : > { %4901 = vpow2.f32 %v452_v39 }
 0x104   : > { %4903 = vpow2.f32 %v376_v41 }
 0x105   : > { %4905 = vpow2.f32 %v448_v42 }
 0x106   : > { %v389_v43 = vpop.xlane.xlu1 %388  ;;  %v395_v44 = vpop.xlane.xlu2 %394 }
 0x107   : > { %v5476_v45 = vsub.f32 %v352_v6, %v389_v43  ;;  %v398_v46 = vpop.xlane.xlu0 %397  ;;  %v5481_v50 = vsub.f32 %v354_v7, %v395_v44 }
 0x108   : > { %v5478_v47 = vsub.f32 %v355_v8, %v398_v46 }
 0x109   : > { %12669 = vst [vmem:[#allocation16_spill] sm:$0xff] %v5476_v45  ;;  %v4902_v48 = vpop.eup %4901  ;;  %v450_v49 = vmul.f32 1.442695, %v5476_v45  ;;  %v454_v55 = vmul.f32 1.442695, %v5481_v50 }
 0x10a   : > { %v486_v51 = vsel %vm371_vm0, %v4902_v48, 0.0  ;;  %v4904_v52 = vpop.eup %4903  ;;  %v456_v53 = vmul.f32 1.442695, %v5478_v47 }
 0x10b   : > { %4907 = vpow2.f32 %v450_v49  ;;  %487 = vadd.xlane.f32.xlu2 %v486_v51  ;;  %v378_v54 = vsel %vm371_vm0, %v4904_v52, 0.0  ;;  %v4906_v58 = vpop.eup %4905 }
 0x10c   : > { %379 = vadd.xlane.f32.xlu0 %v378_v54  ;;  %4909 = vpow2.f32 %v456_v53  ;;  %v480_v2 = vsel %vm371_vm0, %v4906_v58, 0.0 }
 0x10d   : > { %4911 = vpow2.f32 %v454_v55 }
 0x10e   : > { %v401_v56 = vpop.xlane.xlu1 %400  ;;  %v404_v57 = vpop.xlane.xlu2 %403 }
 0x10f   : > { %v5488_v59 = vsub.f32 %v5413_v12, %v401_v56  ;;  %v407_v60 = vpop.xlane.xlu0 %406  ;;  %v5495_v0 = vsub.f32 %v5416_v13, %v404_v57 }
 0x110   : > { %v5491_v61 = vsub.f32 %v5419_v14, %v407_v60 }
 0x111   : > { %v4908_v62 = vpop.eup %4907  ;;  %v458_v63 = vmul.f32 1.442695, %v5488_v59  ;;  %v460_v5 = vmul.f32 1.442695, %v5495_v0 }
 0x112   : > { %v483_v1 = vsel %vm371_vm0, %v4908_v62, 0.0  ;;  %v462_v3 = vmul.f32 1.442695, %v5491_v61  ;;  %v4910_v4 = vpop.eup %4909 }
 0x113   : > { %4913 = vpow2.f32 %v458_v63  ;;  %484 = vadd.xlane.f32.xlu1 %v483_v1  ;;  %v4912_v8 = vpop.eup %4911  ;;  %v492_v11 = vsel %vm371_vm0, %v4910_v4, 0.0  ;;  %v5177_v63 = vmov 2   ;;  %v5178_v1 = vmov 1  }
 0x114   : > { %481 = vadd.xlane.f32.xlu0 %v480_v2  ;;  %4915 = vpow2.f32 %v462_v3  ;;  %v489_v17 = vsel %vm371_vm0, %v4912_v8, 0.0  ;;  %4780 = vset.pattern.permute.xlu2 %v5178_v1  ;;  %v11874_v2 = vmov 0   ;;  %v613_v8 = vlaneseq }
 0x115   : > { %4917 = vpow2.f32 %v460_v5  ;;  %4781 = vset.pattern.permute.xlu0 %v5177_v63  ;;  %4779 = vset.pattern.permute.xlu1 %v11874_v2 }
 0x116   : > { %v410_v6 = vpop.xlane.xlu1 %409  ;;  %v413_v7 = vpop.xlane.xlu2 %412 }
 0x117   : > { %v5502_v9 = vsub.f32 %v5428_v18, %v410_v6  ;;  %v416_v10 = vpop.xlane.xlu0 %415  ;;  %v5510_v15 = vsub.f32 %v5431_v19, %v413_v7 }
 0x118   : > { %v5506_v12 = vsub.f32 %v5434_v20, %v416_v10 }
 0x119   : > { %v4914_v13 = vpop.eup %4913  ;;  %v464_v14 = vmul.f32 1.442695, %v5502_v9  ;;  %v466_v20 = vmul.f32 1.442695, %v5510_v15 }
 0x11a   : > { %v495_v16 = vsel %vm371_vm0, %v4914_v13, 0.0  ;;  %v468_v18 = vmul.f32 1.442695, %v5506_v12  ;;  %v4916_v21 = vpop.eup %4915  ;;  %v5554_v13 = vshrl.u32 %v613_v8, 7 }
 0x11b   : > { %4919 = vpow2.f32 %v464_v14  ;;  %496 = vadd.xlane.f32.xlu2 %v495_v16  ;;  %493 = vadd.xlane.f32.xlu1 %v492_v11  ;;  %v4918_v27 = vpop.eup %4917  ;;  %v501_v29 = vsel %vm371_vm0, %v4916_v21, 0.0 }
 0x11c   : > { %490 = vadd.xlane.f32.xlu0 %v489_v17  ;;  %4921 = vpow2.f32 %v468_v18  ;;  %v498_v39 = vsel %vm371_vm0, %v4918_v27, 0.0  ;;  %12672 = vst [vmem:[#allocation19_spill] sm:$0xff] %v5554_v13  ;;  %v5560_v18 = vadd.s32 8, %v5554_v13 }
 0x11d   : > { %4923 = vpow2.f32 %v466_v20  ;;  %v5180_v20 = vmov 5  }
 0x11e   : > { %v419_v22 = vpop.xlane.xlu1 %418  ;;  %v422_v23 = vpop.xlane.xlu2 %421 }
 0x11f   : > { %v5517_v28 = vsub.f32 %v5443_v24, %v419_v22  ;;  %v425_v19 = vpop.xlane.xlu0 %424  ;;  %v5525_v35 = vsub.f32 %v5446_v25, %v422_v23 }
 0x120   : > { %v5521_v32 = vsub.f32 %v5449_v26, %v425_v19 }
 0x121   : > { %v4920_v33 = vpop.eup %4919  ;;  %v470_v34 = vmul.f32 1.442695, %v5517_v28  ;;  %v472_v26 = vmul.f32 1.442695, %v5525_v35 }
 0x122   : > { %v504_v37 = vsel %vm371_vm0, %v4920_v33, 0.0  ;;  %v474_v24 = vmul.f32 1.442695, %v5521_v32  ;;  %v4922_v41 = vpop.eup %4921 }
 0x123   : > { %4925 = vpow2.f32 %v470_v34  ;;  %505 = vadd.xlane.f32.xlu2 %v504_v37  ;;  %502 = vadd.xlane.f32.xlu1 %v501_v29  ;;  %v4924_v44 = vpop.eup %4923  ;;  %v510_v25 = vsel %vm371_vm0, %v4922_v41, 0.0  ;;  %v5181_v37 = vmov 8  }
 0x124   : > { %499 = vadd.xlane.f32.xlu0 %v498_v39  ;;  %4927 = vpow2.f32 %v474_v24  ;;  %v507_v53 = vsel %vm371_vm0, %v4924_v44, 0.0 }
 0x125   : > { %4929 = vpow2.f32 %v472_v26 }
 0x126   : > { %v428_v42 = vpop.xlane.xlu1 %427  ;;  %v431_v43 = vpop.xlane.xlu2 %430 }
 0x127   : > { %v5532_v46 = vsub.f32 %v5458_v30, %v428_v42  ;;  %v5537_v51 = vsub.f32 %v5461_v31, %v431_v43 }
 0x129   : > { %v4926_v48 = vpop.eup %4925  ;;  %v476_v49 = vmul.f32 1.442695, %v5532_v46  ;;  %v478_v30 = vmul.f32 1.442695, %v5537_v51 }
 0x12a   : > { %v513_v52 = vsel %vm371_vm0, %v4926_v48, 0.0  ;;  %v4928_v54 = vpop.eup %4927 }
 0x12b   : > { %4931 = vpow2.f32 %v476_v49  ;;  %514 = vadd.xlane.f32.xlu2 %v513_v52  ;;  %511 = vadd.xlane.f32.xlu1 %v510_v25  ;;  %v4930_v55 = vpop.eup %4929  ;;  %v519_v56 = vsel %vm371_vm0, %v4928_v54, 0.0  ;;  %v5182_v25 = vmov 11  }
 0x12c   : > { %508 = vadd.xlane.f32.xlu0 %v507_v53  ;;  %4933 = vpow2.f32 %v478_v30  ;;  %v516_v31 = vsel %vm371_vm0, %v4930_v55, 0.0  ;;  %v5183_v55 = vmov 14  }
 0x131   : > { %v4932_v57 = vpop.eup %4931 }
 0x132   : > { %v522_v58 = vsel %vm371_vm0, %v4932_v57, 0.0  ;;  %v4934_v60 = vpop.eup %4933 }
 0x133   : > { %523 = vadd.xlane.f32.xlu2 %v522_v58  ;;  %520 = vadd.xlane.f32.xlu1 %v519_v56  ;;  %v525_v62 = vsel %vm371_vm0, %v4934_v60, 0.0 }
 0x134   : > { %517 = vadd.xlane.f32.xlu0 %v516_v31 }
 0x13c   : > { %526 = vadd.xlane.f32.xlu0 %v525_v62 }
 0x17e   : > { %v488_v11 = vpop.xlane.xlu2 %487 }
 0x17f   : > { %v380_v3 = vpop.xlane.xlu0 %379 }
 0x180   : > { %4935 = vlog2.f32 %v380_v3 }
 0x186   : > { %v5547_v4 = vpop.xlane.xlu1 %484  ;;  %v4936_v5 = vpop.eup %4935 }
 0x187   : > { %12670 = vst [vmem:[#allocation17_spill] sm:$0xff] %v5547_v4  ;;  %v382_v6 = vmul.f32 0.6931472, %v4936_v5  ;;  %v482_v7 = vpop.xlane.xlu0 %481 }
 0x188   : > { %4937 = vlog2.f32 %v482_v7 }
 0x189   : > { %v5550_v10 = vsub.f32 %v5469_v38, %v382_v6  ;;  %4939 = vlog2.f32 %v488_v11 }
 0x18b   : > { %12671 = vst [vmem:[#allocation18_spill] sm:$0xff] %v5550_v10  ;;  %1210 = vperm.xlu0 %4781, %v5550_v10   ;;  %1000 = vperm.xlu2 %4780, %v5550_v10  }
 0x18c   : > { %790 = vperm.xlu1 %4779, %v5550_v10  }
 0x18e   : > { %v4938_v14 = vpop.eup %4937  ;;  %v494_v16 = vpop.xlane.xlu1 %493 }
 0x18f   : > { %v5557_v17 = vpop.xlane.xlu0 %490  ;;  %v529_v21 = vmul.f32 0.6931472, %v4938_v14  ;;  %4941 = vlog2.f32 %v494_v16  ;;  %v5562_v38 = vpop.xlane.xlu2 %496 }
 0x190   : > { %v4940_v23 = vpop.eup %4939 }
 0x191   : > { %v5568_v22 = vsub.f32 %v5472_v40, %v529_v21  ;;  %v533_v29 = vmul.f32 0.6931472, %v4940_v23 }
 0x193   : > { %4822 = vset.pattern.permute.xlu0 %v5180_v20  ;;  %4783 = vset.pattern.permute.xlu2 %v5560_v18  ;;  %12673 = vst [vmem:[#allocation20_spill] sm:$0xff] %v5568_v22  ;;  %v612_v33 = vperm.slane %v5568_v22, 0  ;;  %v5572_v39 = vsub.f32 %v5467_v36, %v533_v29 }
 0x194   : > { %4782 = vset.pattern.permute.xlu1 %v5554_v13  ;;  %1840 = vperm.xlu0 %4822, %v5550_v10  }
 0x195   : > { %v4942_v27 = vpop.eup %4941  ;;  %12674 = vst [vmem:[#allocation21_spill] sm:$0xff] %v5572_v39  ;;  %v625_v26 = vperm.slane %v5572_v39, 0  ;;  %v836_v8 = vperm.slane %v5572_v39, 1  ;;  %v11876_v23 = vperm.slane %v5572_v39, 4 }
 0x196   : > { %v537_v34 = vmul.f32 0.6931472, %v4942_v27  ;;  %v5580_v44 = vpop.xlane.xlu1 %502 }
 0x197   : > { %v500_v19 = vpop.xlane.xlu0 %499  ;;  %v506_v24 = vpop.xlane.xlu2 %505 }
 0x198   : > { %4943 = vlog2.f32 %v500_v19  ;;  %v5576_v40 = vsub.f32 %v5478_v47, %v537_v34 }
 0x199   : > { %4945 = vlog2.f32 %v506_v24 }
 0x19a   : > { %v638_v43 = vperm.slane %v5576_v40, 0  ;;  %v849_v14 = vperm.slane %v5576_v40, 1  ;;  %v1269_v16 = vperm.slane %v5576_v40, 3 }
 0x19b   : > { %623 = vperm.xlu2 %4783, %v612_v33  }
 0x19c   : > { %617 = vperm.xlu1 %4782, %v612_v33   ;;  %4845 = vset.pattern.permute.xlu0 %v5181_v37 }
 0x19d   : > { %2470 = vperm.xlu0 %4845, %v5550_v10  }
 0x19e   : > { %v4944_v41 = vpop.eup %4943  ;;  %v512_v54 = vpop.xlane.xlu1 %511 }
 0x19f   : > { %v541_v42 = vmul.f32 0.6931472, %v4944_v41  ;;  %v4946_v47 = vpop.eup %4945  ;;  %v5586_v48 = vpop.xlane.xlu2 %514  ;;  %4947 = vlog2.f32 %v512_v54  ;;  %v11869_v41 = vperm.slane %v5576_v40, 6  ;;  %v11879_v54 = vperm.slane %v5572_v39, 2 }
 0x1a0   : > { %v545_v49 = vmul.f32 0.6931472, %v4946_v47  ;;  %v5589_v53 = vpop.xlane.xlu0 %508  ;;  %v11866_v47 = vperm.slane %v5572_v39, 7 }
 0x1a1   : > { %v5583_v36 = vsub.f32 %v5495_v0, %v541_v42 }
 0x1a2   : > { %v5592_v30 = vsub.f32 %v5502_v9, %v545_v49 }
 0x1a3   : > { %636 = vperm.xlu2 %4783, %v625_v26   ;;  %v651_v52 = vperm.slane %v5583_v36, 0  ;;  %v862_v20 = vperm.slane %v5583_v36, 1  ;;  %v11871_v34 = vperm.slane %v5583_v36, 5 }
 0x1a4   : > { %643 = vperm.xlu1 %4782, %v638_v43   ;;  %12675 = vst [vmem:[#allocation22_spill] sm:$0xff] %v5592_v30  ;;  %v664_v56 = vperm.slane %v5592_v30, 0  ;;  %v875_v19 = vperm.slane %v5592_v30, 1 }
 0x1a5   : > { %4868 = vset.pattern.permute.xlu0 %v5182_v25  ;;  %v4948_v58 = vpop.eup %4947  ;;  %v1033_v25 = vperm.slane %v5568_v22, 2 }
 0x1a6   : > { %3100 = vperm.xlu0 %4868, %v5550_v10   ;;  %v549_v9 = vmul.f32 0.6931472, %v4948_v58 }
 0x1a7   : > { %v524_v0 = vpop.xlane.xlu2 %523 }
 0x1a8   : > { %4949 = vlog2.f32 %v524_v0  ;;  %v518_v57 = vpop.xlane.xlu0 %517  ;;  %v5602_v60 = vsub.f32 %v5506_v12, %v549_v9 }
 0x1a9   : > { %4951 = vlog2.f32 %v518_v57 }
 0x1aa   : > { %v677_v5 = vperm.slane %v5602_v60, 0  ;;  %v888_v11 = vperm.slane %v5602_v60, 1  ;;  %v11872_v29 = vperm.slane %v5602_v60, 4  ;;  %4953 = vlog2.f32 %v5580_v44 }
 0x1ab   : > { %649 = vperm.xlu2 %4783, %v638_v43   ;;  %4955 = vlog2.f32 %v5562_v38  ;;  %v11864_v44 = vperm.slane %v5602_v60, 7 }
 0x1ac   : > { %656 = vperm.xlu1 %4782, %v651_v52  }
 0x1ae   : > { %4891 = vset.pattern.permute.xlu0 %v5183_v55  ;;  %v4950_v31 = vpop.eup %4949 }
 0x1af   : > { %3730 = vperm.xlu0 %4891, %v5550_v10   ;;  %v557_v62 = vmul.f32 0.6931472, %v4950_v31  ;;  %v4952_v63 = vpop.eup %4951 }
 0x1b0   : > { %v553_v3 = vmul.f32 0.6931472, %v4952_v63  ;;  %v527_v27 = vpop.xlane.xlu0 %526  ;;  %v1059_v63 = vperm.slane %v5576_v40, 2 }
 0x1b1   : > { %v5605_v1 = vsub.f32 %v5532_v46, %v557_v62  ;;  %v823_v46 = vperm.slane %v5568_v22, 1  ;;  %4957 = vlog2.f32 %v527_v27 }
 0x1b2   : > { %v5609_v6 = vsub.f32 %v5525_v35, %v553_v3  ;;  %v1072_v35 = vperm.slane %v5583_v36, 2  ;;  %4959 = vlog2.f32 %v5557_v17 }
 0x1b3   : > { %662 = vperm.xlu2 %4783, %v651_v52   ;;  %12676 = vst [vmem:[#allocation23_spill] sm:$0xff] %v5605_v1  ;;  %v703_v7 = vperm.slane %v5605_v1, 0  ;;  %v11877_v21 = vperm.slane %v5605_v1, 3  ;;  %v11867_v43 = vperm.slane %v5605_v1, 6  ;;  %v4954_v52 = vpop.eup %4953  ;;  %4961 = vlog2.f32 %v5586_v48 }
 0x1b4   : > { %669 = vperm.xlu1 %4782, %v664_v56   ;;  %v690_v12 = vperm.slane %v5609_v6, 0  ;;  %v901_v37 = vperm.slane %v5609_v6, 1  ;;  %v543_v55 = vmul.f32 0.6931472, %v4954_v52  ;;  %v4956_v58 = vpop.eup %4955 }
 0x1b5   : > { %v539_v38 = vmul.f32 0.6931472, %v4956_v58 }
 0x1b6   : > { %v5678_v0 = vsub.f32 %v5491_v61, %v543_v55 }
 0x1b7   : > { %4892 = vset.pattern.permute.xlu0 %v5554_v13  ;;  %v5687_v31 = vsub.f32 %v5488_v59, %v539_v38  ;;  %v4958_v61 = vpop.eup %4957 }
 0x1b8   : > { %12681 = vst [vmem:[#allocation28_spill] sm:$0xff] %v5678_v0  ;;  %v11863_v9 = vperm.slane %v5678_v0, 0  ;;  %v559_v3 = vmul.f32 0.6931472, %v4958_v61  ;;  %v1111_v61 = vperm.slane %v5609_v6, 2 }
 0x1b9   : > { %12683 = vst [vmem:[#allocation30_spill] sm:$0xff] %v5687_v31 }
 0x1bb   : > { %4784 = vset.pattern.permute.xlu2 %v5554_v13 }
 0x1bc   : > { %4785 = vset.pattern.permute.xlu1 %v5560_v18 }
 0x1bf   : > { %630 = vperm.xlu0 %4892, %v625_v26   ;;  %v914_v26 = vperm.slane %v5605_v1, 1 }
 0x1c3   : > { %682 = vperm.xlu2 %4784, %v677_v5  }
 0x1c4   : > { %688 = vperm.xlu1 %4785, %v677_v5   ;;  %v11862_v5 = vperm.slane %v5687_v31, 1 }
 0x1c7   : > { %708 = vperm.xlu0 %4892, %v703_v7  }
 0x1cb   : > { %695 = vperm.xlu2 %4784, %v690_v12  }
 0x1cc   : > { %701 = vperm.xlu1 %4785, %v690_v12   ;;  %v4960_v12 = vpop.eup %4959 }
 0x1cd   : > { %v535_v17 = vmul.f32 0.6931472, %v4960_v12 }
 0x1cf   : > { %841 = vperm.xlu0 %4892, %v836_v8  }
 0x1d3   : > { %4786 = vset.pattern.permute.xlu2 %v5560_v18 }
 0x1d4   : > { %834 = vperm.xlu1 %4785, %v823_v46  }
 0x1d7   : > { %893 = vperm.xlu0 %4892, %v888_v11  }
 0x1db   : > { %714 = vperm.xlu2 %4786, %v703_v7   ;;  %v5697_v7 = vsub.f32 %v5537_v51, %v559_v3  ;;  %v1124_v3 = vperm.slane %v5605_v1, 2 }
 0x1dc   : > { %4789 = vset.pattern.permute.xlu1 %v5554_v13 }
 0x1dd   : > { %12685 = vst [vmem:[#allocation32_spill] sm:$0xff] %v5697_v7 }
 0x1df   : > { %1077 = vperm.xlu0 %4892, %v1072_v35  }
 0x1e3   : > { %4787 = vset.pattern.permute.xlu2 %v5554_v13 }
 0x1e4   : > { %854 = vperm.xlu1 %4789, %v849_v14  }
 0x1e5   : > { %v5728_v52 = vpop.permute.xlu2 %1000 }
 0x1e6   : > { %12691 = vst [vmem:[#allocation38_spill] sm:$0xff] %v5728_v52 }
 0x1e7   : > { %1274 = vperm.xlu0 %4892, %v1269_v16  }
 0x1eb   : > { %828 = vperm.xlu2 %4787, %v823_v46   ;;  %v5708_v46 = vsub.f32 %v5481_v50, %v535_v17  ;;  %v11878_v50 = vperm.slane %v5602_v60, 2  ;;  %v11858_v17 = vperm.slane %v5697_v7, 4 }
 0x1ec   : > { %4791 = vset.pattern.permute.xlu1 %v5560_v18 }
 0x1ed   : > { %12687 = vst [vmem:[#allocation34_spill] sm:$0xff] %v5708_v46  ;;  %v11859_v48 = vperm.slane %v5708_v46, 2 }
 0x1ef   : > { %1339 = vperm.xlu0 %4892, %v11877_v21  }
 0x1f3   : > { %4788 = vset.pattern.permute.xlu2 %v5560_v18 }
 0x1f4   : > { %873 = vperm.xlu1 %4791, %v862_v20  }
 0x1f5   : > { %v5738_v58 = vpop.permute.xlu2 %623 }
 0x1f6   : > { %12693 = vst [vmem:[#allocation40_spill] sm:$0xff] %v5738_v58 }
 0x1f7   : > { %1471 = vperm.xlu0 %4892, %v11876_v23   ;;  %v1321_v23 = vperm.slane %v5609_v6, 3 }
 0x1fb   : > { %847 = vperm.xlu2 %4788, %v836_v8   ;;  %v11860_v8 = vperm.slane %v5697_v7, 1 }
 0x1fc   : > { %886 = vperm.xlu1 %4791, %v875_v19  }
 0x1fd   : > { %v5641_v33 = vpop.permute.xlu0 %1210  ;;  %v5749_v12 = vpop.permute.xlu2 %636 }
 0x1fe   : > { %12677 = vst [vmem:[#allocation24_spill] sm:$0xff] %v5641_v33 }
 0x1ff   : > { %1523 = vperm.xlu0 %4892, %v11872_v29  }
 0x203   : > { %4790 = vset.pattern.permute.xlu2 %v5554_v13 }
 0x204   : > { %4793 = vset.pattern.permute.xlu1 %v5554_v13 }
 0x206   : > { %v5649_v24 = vpop.permute.xlu0 %1840 }
 0x207   : > { %1707 = vperm.xlu0 %4892, %v11871_v34   ;;  %12678 = vst [vmem:[#allocation25_spill] sm:$0xff] %v5649_v24 }
 0x20b   : > { %867 = vperm.xlu2 %4790, %v862_v20   ;;  %v1085_v20 = vperm.slane %v5592_v30, 2 }
 0x20c   : > { %906 = vperm.xlu1 %4793, %v901_v37  }
 0x20f   : > { %1904 = vperm.xlu0 %4892, %v11869_v41   ;;  %v5657_v42 = vpop.permute.xlu0 %2470  ;;  %v1295_v41 = vperm.slane %v5592_v30, 3 }
 0x210   : > { %12679 = vst [vmem:[#allocation26_spill] sm:$0xff] %v5657_v42  ;;  %v12725_v42 = vperm.slane %v5605_v1, 3 }
 0x213   : > { %880 = vperm.xlu2 %4790, %v875_v19  }
 0x214   : > { %919 = vperm.xlu1 %4793, %v914_v26  }
 0x217   : > { %1969 = vperm.xlu0 %4892, %v11867_v43  }
 0x218   : > { %v5666_v49 = vpop.permute.xlu0 %3100 }
 0x219   : > { %12680 = vst [vmem:[#allocation27_spill] sm:$0xff] %v5666_v49 }
 0x21b   : > { %4792 = vset.pattern.permute.xlu2 %v5560_v18 }
 0x21c   : > { %1038 = vperm.xlu1 %4793, %v1033_v25  }
 0x21f   : > { %2101 = vperm.xlu0 %4892, %v11866_v47  }
 0x221   : > { %v5680_v57 = vpop.permute.xlu0 %3730 }
 0x222   : > { %12682 = vst [vmem:[#allocation29_spill] sm:$0xff] %v5680_v57 }
 0x223   : > { %899 = vperm.xlu2 %4792, %v888_v11   ;;  %v4962_v11 = vpop.eup %4961 }
 0x224   : > { %1051 = vperm.xlu1 %4793, %v11879_v54   ;;  %v551_v27 = vmul.f32 0.6931472, %v4962_v11 }
 0x226   : > { %v5717_v19 = vsub.f32 %v5517_v28, %v551_v27  ;;  %v11856_v28 = vperm.slane %v5678_v0, 3  ;;  %v5758_v27 = vpop.permute.xlu2 %649 }
 0x227   : > { %2153 = vperm.xlu0 %4892, %v11864_v44   ;;  %v1282_v44 = vperm.slane %v5583_v36, 3 }
 0x228   : > { %12689 = vst [vmem:[#allocation36_spill] sm:$0xff] %v5717_v19 }
 0x22b   : > { %912 = vperm.xlu2 %4792, %v901_v37  }
 0x22c   : > { %4795 = vset.pattern.permute.xlu1 %v5560_v18 }
 0x22f   : > { %2337 = vperm.xlu0 %4892, %v11863_v9  }
 0x231   : > { %v5689_v62 = vpop.permute.xlu0 %630 }
 0x232   : > { %12684 = vst [vmem:[#allocation31_spill] sm:$0xff] %v5689_v62 }
 0x233   : > { %1044 = vperm.xlu2 %4792, %v1033_v25   ;;  %v11857_v25 = vperm.slane %v5717_v19, 2 }
 0x234   : > { %1070 = vperm.xlu1 %4795, %v1059_v63  }
 0x237   : > { %2534 = vperm.xlu0 %4892, %v11862_v5  }
 0x239   : > { %v5699_v59 = vpop.permute.xlu0 %708 }
 0x23a   : > { %12686 = vst [vmem:[#allocation33_spill] sm:$0xff] %v5699_v59  ;;  %v5929_v59 = vld [vmem:[%s5393_s13 + $0x8] sm:$0xff] }
 0x23b   : > { %4794 = vset.pattern.permute.xlu2 %v5554_v13  ;;  %12746 = vst [vmem:[#allocation89_spill] sm:$0xff] %v5929_v59  ;;  %vm11964_vm1 = vcmp.eq.s32.totalorder %v5929_v59, 0  ;;  %vm11943_vm6 = vcmp.eq.s32.totalorder %v5929_v59, 1  ;;  %vm11940_vm11 = vcmp.eq.s32.totalorder %v5929_v59, 2  ;;  %vm11947_vm13 = vcmp.eq.s32.totalorder %v5929_v59, 3 }
 0x23c   : > { %4797 = vset.pattern.permute.xlu1 %v5554_v13 }
 0x23f   : > { %2599 = vperm.xlu0 %4892, %v11860_v8  }
 0x241   : > { %v5710_v51 = vpop.permute.xlu0 %841 }
 0x242   : > { %12688 = vst [vmem:[#allocation35_spill] sm:$0xff] %v5710_v51 }
 0x243   : > { %1064 = vperm.xlu2 %4794, %v1059_v63   ;;  %v11855_v63 = vperm.slane %v5687_v31, 4 }
 0x244   : > { %1090 = vperm.xlu1 %4797, %v1085_v20  }
 0x247   : > { %2731 = vperm.xlu0 %4892, %v11859_v48   ;;  %v5767_v48 = vpop.permute.xlu2 %662 }
 0x248   : > { %12698 = vst [vmem:[#allocation45_spill] sm:$0xff] %v5767_v48  ;;  %v12779_v48 = vperm.slane %v5697_v7, 2 }
 0x249   : > { %v5719_v37 = vpop.permute.xlu0 %893 }
 0x24a   : > { %12690 = vst [vmem:[#allocation37_spill] sm:$0xff] %v5719_v37 }
 0x24b   : > { %4796 = vset.pattern.permute.xlu2 %v5560_v18 }
 0x24c   : > { %1103 = vperm.xlu1 %4797, %v11878_v50  }
 0x24f   : > { %2783 = vperm.xlu0 %4892, %v11857_v25   ;;  %v1256_v25 = vperm.slane %v5572_v39, 3  ;;  %v5775_v5 = vpop.permute.xlu2 %682 }
 0x250   : > { %12700 = vst [vmem:[#allocation47_spill] sm:$0xff] %v5775_v5 }
 0x251   : > { %v5730_v55 = vpop.permute.xlu0 %1077 }
 0x252   : > { %12692 = vst [vmem:[#allocation39_spill] sm:$0xff] %v5730_v55 }
 0x253   : > { %1083 = vperm.xlu2 %4796, %v1072_v35  }
 0x254   : > { %4799 = vset.pattern.permute.xlu1 %v5560_v18 }
 0x257   : > { %2967 = vperm.xlu0 %4892, %v11856_v28   ;;  %v5790_v43 = vpop.permute.xlu2 %695 }
 0x258   : > { %12704 = vst [vmem:[#allocation51_spill] sm:$0xff] %v5790_v43 }
 0x259   : > { %v5740_v38 = vpop.permute.xlu0 %1274 }
 0x25a   : > { %12694 = vst [vmem:[#allocation41_spill] sm:$0xff] %v5740_v38 }
 0x25b   : > { %1096 = vperm.xlu2 %4796, %v1085_v20   ;;  %v1243_v20 = vperm.slane %v5568_v22, 3 }
 0x25c   : > { %1122 = vperm.xlu1 %4799, %v1111_v61  }
 0x25f   : > { %3164 = vperm.xlu0 %4892, %v11855_v63   ;;  %v11861_v63 = vperm.slane %v5708_v46, 5 }
 0x261   : > { %v5746_v35 = vpop.permute.xlu0 %1339 }
 0x262   : > { %12695 = vst [vmem:[#allocation42_spill] sm:$0xff] %v5746_v35 }
 0x263   : > { %4798 = vset.pattern.permute.xlu2 %v5554_v13 }
 0x264   : > { %1135 = vperm.xlu1 %4799, %v1124_v3  }
 0x267   : > { %3229 = vperm.xlu0 %4892, %v11858_v17   ;;  %v11865_v17 = vperm.slane %v5717_v19, 5 }
 0x269   : > { %v5755_v11 = vpop.permute.xlu0 %1471 }
 0x26a   : > { %12696 = vst [vmem:[#allocation43_spill] sm:$0xff] %v5755_v11  ;;  %v1505_v11 = vperm.slane %v5592_v30, 4 }
 0x26b   : > { %1116 = vperm.xlu2 %4798, %v1111_v61   ;;  %v521_v61 = vpop.xlane.xlu1 %520 }
 0x26c   : > { %1254 = vperm.xlu1 %4799, %v1243_v20   ;;  %4963 = vlog2.f32 %v521_v61 }
 0x26d   : > { %4965 = vlog2.f32 %v5589_v53 }
 0x26f   : > { %3361 = vperm.xlu0 %4892, %v11861_v63   ;;  %v11868_v63 = vperm.slane %v5678_v0, 6  ;;  %v12785_v0 = vmov 0 }
 0x271   : > { %v5763_v28 = vpop.permute.xlu0 %1523 }
 0x272   : > { %12697 = vst [vmem:[#allocation44_spill] sm:$0xff] %v5763_v28  ;;  %v4964_v9 = vpop.eup %4963  ;;  %v12722_v28 = vperm.slane %v5602_v60, 2 }
 0x273   : > { %1129 = vperm.xlu2 %4798, %v1124_v3   ;;  %v5785_v61 = vpop.permute.xlu1 %790 }
 0x274   : > { %1267 = vperm.xlu1 %4799, %v1256_v25   ;;  %12702 = vst [vmem:[#allocation49_spill] sm:$0xff] %v5785_v61 }
 0x277   : > { %3413 = vperm.xlu0 %4892, %v11865_v17   ;;  %v555_v17 = vmul.f32 0.6931472, %v4964_v9 }
 0x279   : > { %v5771_v8 = vpop.permute.xlu0 %1707  ;;  %v5788_v47 = vsub.f32 %v5521_v32, %v555_v17 }
 0x27a   : > { %12699 = vst [vmem:[#allocation46_spill] sm:$0xff] %v5771_v8 }
 0x27b   : > { %1248 = vperm.xlu2 %4798, %v1243_v20   ;;  %v11870_v20 = vperm.slane %v5687_v31, 7  ;;  %12703 = vst [vmem:[#allocation50_spill] sm:$0xff] %v5788_v47  ;;  %v11873_v9 = vperm.slane %v5788_v47, 7 }
 0x27c   : > { %4801 = vset.pattern.permute.xlu1 %v5554_v13 }
 0x27f   : > { %3597 = vperm.xlu0 %4892, %v11868_v63  }
 0x281   : > { %v5779_v3 = vpop.permute.xlu0 %1904 }
 0x282   : > { %12701 = vst [vmem:[#allocation48_spill] sm:$0xff] %v5779_v3  ;;  %v12753_v3 = vperm.slane %v5602_v60, 4 }
 0x283   : > { %1261 = vperm.xlu2 %4798, %v1256_v25   ;;  %v5799_v25 = vpop.permute.xlu1 %617 }
 0x284   : > { %1287 = vperm.xlu1 %4801, %v1282_v44   ;;  %12706 = vst [vmem:[#allocation53_spill] sm:$0xff] %v5799_v25 }
 0x287   : > { %3794 = vperm.xlu0 %4892, %v11870_v20   ;;  %v5801_v20 = vpop.permute.xlu2 %714 }
 0x289   : > { %v5792_v63 = vpop.permute.xlu0 %1969 }
 0x28a   : > { %12705 = vst [vmem:[#allocation52_spill] sm:$0xff] %v5792_v63 }
 0x28b   : > { %4800 = vset.pattern.permute.xlu2 %v5560_v18  ;;  %v5813_v29 = vpop.permute.xlu1 %643 }
 0x28c   : > { %1300 = vperm.xlu1 %4801, %v1295_v41   ;;  %12710 = vst [vmem:[#allocation57_spill] sm:$0xff] %v5813_v29 }
 0x28f   : > { %3846 = vperm.xlu0 %4892, %v11873_v9   ;;  %v5809_v17 = vpop.permute.xlu2 %828  ;;  %v1308_v9 = vperm.slane %v5602_v60, 3 }
 0x290   : > { %12708 = vst [vmem:[#allocation55_spill] sm:$0xff] %v5809_v17 }
 0x291   : > { %v5803_v32 = vpop.permute.xlu0 %2101 }
 0x292   : > { %12707 = vst [vmem:[#allocation54_spill] sm:$0xff] %v5803_v32  ;;  %v12737_v32 = vperm.slane %v5572_v39, 4 }
 0x293   : > { %1280 = vperm.xlu2 %4800, %v1269_v16   ;;  %v5824_v21 = vpop.permute.xlu1 %656 }
 0x294   : > { %4803 = vset.pattern.permute.xlu1 %v5560_v18  ;;  %12712 = vst [vmem:[#allocation59_spill] sm:$0xff] %v5824_v21 }
 0x297   : > { %4896 = vset.pattern.permute.xlu0 %v5560_v18  ;;  %v5818_v2 = vpop.permute.xlu2 %847 }
 0x299   : > { %v5811_v34 = vpop.permute.xlu0 %2153 }
 0x29a   : > { %12709 = vst [vmem:[#allocation56_spill] sm:$0xff] %v5811_v34 }
 0x29b   : > { %1293 = vperm.xlu2 %4800, %v1282_v44   ;;  %v5833_v54 = vpop.permute.xlu1 %669 }
 0x29c   : > { %1319 = vperm.xlu1 %4803, %v1308_v9   ;;  %12715 = vst [vmem:[#allocation62_spill] sm:$0xff] %v5833_v54 }
 0x29f   : > { %675 = vperm.xlu0 %4896, %v664_v56   ;;  %v5828_v50 = vpop.permute.xlu2 %867  ;;  %v5184_v56 = vmov 3  }
 0x2a0   : > { %12713 = vst [vmem:[#allocation60_spill] sm:$0xff] %v5828_v50 }
 0x2a1   : > { %v5820_v16 = vpop.permute.xlu0 %2337 }
 0x2a2   : > { %12711 = vst [vmem:[#allocation58_spill] sm:$0xff] %v5820_v16 }
 0x2a3   : > { %4802 = vset.pattern.permute.xlu2 %v5554_v13 }
 0x2a4   : > { %1332 = vperm.xlu1 %4803, %v1321_v23  }
 0x2a7   : > { %860 = vperm.xlu0 %4896, %v849_v14   ;;  %v5839_v49 = vpop.permute.xlu2 %880  ;;  %v5842_v14 = vpop.permute.xlu1 %688 }
 0x2a8   : > { %12717 = vst [vmem:[#allocation64_spill] sm:$0xff] %v5839_v49 }
 0x2a9   : > { %v5830_v44 = vpop.permute.xlu0 %2534  ;;  %12718 = vst [vmem:[#allocation65_spill] sm:$0xff] %v5842_v14 }
 0x2aa   : > { %12714 = vst [vmem:[#allocation61_spill] sm:$0xff] %v5830_v44 }
 0x2ab   : > { %1313 = vperm.xlu2 %4802, %v1308_v9   ;;  %v12719_v9 = vperm.slane %v5572_v39, 2 }
 0x2ac   : > { %4805 = vset.pattern.permute.xlu1 %v5184_v56 }
 0x2ad   : > { %1420 = vperm.xlu1 %4805, %v5550_v10  }
 0x2af   : > { %925 = vperm.xlu0 %4896, %v914_v26   ;;  %v5848_v34 = vpop.permute.xlu2 %899  ;;  %v1453_v26 = vperm.slane %v5568_v22, 4 }
 0x2b0   : > { %12721 = vst [vmem:[#allocation67_spill] sm:$0xff] %v5848_v34  ;;  %v12810_v34 = vmov 0 }
 0x2b1   : > { %v5837_v57 = vpop.permute.xlu0 %2599 }
 0x2b2   : > { %12716 = vst [vmem:[#allocation63_spill] sm:$0xff] %v5837_v57  ;;  %v11903_v57 = vperm.slane %v5602_v60, 5 }
 0x2b3   : > { %1326 = vperm.xlu2 %4802, %v1321_v23   ;;  %v5854_v23 = vpop.permute.xlu1 %701 }
 0x2b4   : > { %12723 = vst [vmem:[#allocation68_spill] sm:$0xff] %v5854_v23 }
 0x2b5   : > { %4807 = vset.pattern.permute.xlu1 %v5560_v18 }
 0x2b7   : > { %1057 = vperm.xlu0 %4896, %v12719_v9   ;;  %v5860_v9 = vpop.permute.xlu2 %912 }
 0x2b8   : > { %12726 = vst [vmem:[#allocation70_spill] sm:$0xff] %v5860_v9 }
 0x2b9   : > { %v5846_v56 = vpop.permute.xlu0 %2731 }
 0x2ba   : > { %12720 = vst [vmem:[#allocation66_spill] sm:$0xff] %v5846_v56 }
 0x2bb   : > { %4804 = vset.pattern.permute.xlu2 %v5560_v18  ;;  %v5865_v24 = vpop.permute.xlu1 %834 }
 0x2bc   : > { %12728 = vst [vmem:[#allocation72_spill] sm:$0xff] %v5865_v24 }
 0x2bd   : > { %1464 = vperm.xlu1 %4807, %v1453_v26  }
 0x2bf   : > { %1109 = vperm.xlu0 %4896, %v12722_v28   ;;  %v1479_v28 = vperm.slane %v5576_v40, 4  ;;  %v5869_v33 = vpop.permute.xlu2 %1044 }
 0x2c0   : > { %12729 = vst [vmem:[#allocation73_spill] sm:$0xff] %v5869_v33 }
 0x2c1   : > { %v5856_v37 = vpop.permute.xlu0 %2783 }
 0x2c2   : > { %12724 = vst [vmem:[#allocation69_spill] sm:$0xff] %v5856_v37 }
 0x2c3   : > { %1345 = vperm.xlu2 %4804, %v12725_v42   ;;  %v5873_v42 = vpop.permute.xlu1 %854 }
 0x2c4   : > { %12731 = vst [vmem:[#allocation75_spill] sm:$0xff] %v5873_v42 }
 0x2c5   : > { %4809 = vset.pattern.permute.xlu1 %v5554_v13 }
 0x2c7   : > { %1306 = vperm.xlu0 %4896, %v1295_v41   ;;  %v1544_v41 = vperm.slane %v5605_v1, 4 }
 0x2c9   : > { %v5863_v5 = vpop.permute.xlu0 %2967 }
 0x2ca   : > { %12727 = vst [vmem:[#allocation71_spill] sm:$0xff] %v5863_v5  ;;  %v5877_v5 = vpop.permute.xlu2 %1064 }
 0x2cb   : > { %4806 = vset.pattern.permute.xlu2 %v5554_v13  ;;  %12732 = vst [vmem:[#allocation76_spill] sm:$0xff] %v5877_v5  ;;  %v5881_v61 = vpop.permute.xlu1 %873 }
 0x2cc   : > { %12734 = vst [vmem:[#allocation78_spill] sm:$0xff] %v5881_v61 }
 0x2cd   : > { %1484 = vperm.xlu1 %4809, %v1479_v28  }
 0x2cf   : > { %1490 = vperm.xlu0 %4896, %v1479_v28   ;;  %v1492_v28 = vperm.slane %v5583_v36, 4 }
 0x2d1   : > { %v5871_v37 = vpop.permute.xlu0 %3164 }
 0x2d2   : > { %12730 = vst [vmem:[#allocation74_spill] sm:$0xff] %v5871_v37  ;;  %v1676_v37 = vperm.slane %v5572_v39, 5  ;;  %v5886_v56 = vpop.permute.xlu2 %1083 }
 0x2d3   : > { %1458 = vperm.xlu2 %4806, %v1453_v26   ;;  %12735 = vst [vmem:[#allocation79_spill] sm:$0xff] %v5886_v56 }
 0x2d5   : > { %4811 = vset.pattern.permute.xlu1 %v5560_v18 }
 0x2d7   : > { %1555 = vperm.xlu0 %4896, %v1544_v41  }
 0x2d9   : > { %v5879_v52 = vpop.permute.xlu0 %3229 }
 0x2da   : > { %12733 = vst [vmem:[#allocation77_spill] sm:$0xff] %v5879_v52  ;;  %v5893_v52 = vpop.permute.xlu1 %886  ;;  %v5898_v63 = vpop.permute.xlu2 %1096 }
 0x2db   : > { %4808 = vset.pattern.permute.xlu2 %v5560_v18 }
 0x2dd   : > { %1503 = vperm.xlu1 %4811, %v1492_v28  }
 0x2df   : > { %1687 = vperm.xlu0 %4896, %v1676_v37  }
 0x2e1   : > { %v5888_v26 = vpop.permute.xlu0 %3361 }
 0x2e2   : > { %12736 = vst [vmem:[#allocation80_spill] sm:$0xff] %v5888_v26  ;;  %v5903_v26 = vpop.permute.xlu1 %906  ;;  %v5909_v51 = vpop.permute.xlu2 %1116 }
 0x2e3   : > { %1477 = vperm.xlu2 %4808, %v12737_v32   ;;  %12739 = vst [vmem:[#allocation82_spill] sm:$0xff] %v5903_v26  ;;  %v11908_v32 = vperm.slane %v5592_v30, 6 }
 0x2e4   : > { %12740 = vst [vmem:[#allocation83_spill] sm:$0xff] %v5909_v51  ;;  %v5185_v51 = vmov 4  }
 0x2e5   : > { %1516 = vperm.xlu1 %4811, %v1505_v11  }
 0x2e7   : > { %1739 = vperm.xlu0 %4896, %v11903_v57   ;;  %v1531_v57 = vperm.slane %v5609_v6, 4 }
 0x2e9   : > { %v5900_v49 = vpop.permute.xlu0 %3413 }
 0x2ea   : > { %12738 = vst [vmem:[#allocation81_spill] sm:$0xff] %v5900_v49  ;;  %v11911_v49 = vperm.slane %v5576_v40, 7  ;;  %v5915_v54 = vpop.permute.xlu1 %919  ;;  %v5919_v62 = vpop.permute.xlu2 %1129 }
 0x2eb   : > { %4810 = vset.pattern.permute.xlu2 %v5554_v13  ;;  %12742 = vst [vmem:[#allocation85_spill] sm:$0xff] %v5915_v54  ;;  %v4966_v54 = vpop.eup %4965 }
 0x2ec   : > { %12743 = vst [vmem:[#allocation86_spill] sm:$0xff] %v5919_v62 }
 0x2ed   : > { %4813 = vset.pattern.permute.xlu1 %v5554_v13 }
 0x2ef   : > { %1936 = vperm.xlu0 %4896, %v11908_v32   ;;  %v11912_v32 = vperm.slane %v5605_v1, 7 }
 0x2f1   : > { %v5912_v35 = vpop.permute.xlu0 %3597 }
 0x2f2   : > { %12741 = vst [vmem:[#allocation84_spill] sm:$0xff] %v5912_v35  ;;  %v5926_v35 = vpop.permute.xlu1 %1038 }
 0x2f3   : > { %1497 = vperm.xlu2 %4810, %v1492_v28   ;;  %12745 = vst [vmem:[#allocation88_spill] sm:$0xff] %v5926_v35 }
 0x2f5   : > { %1536 = vperm.xlu1 %4813, %v1531_v57  }
 0x2f7   : > { %2120 = vperm.xlu0 %4896, %v11911_v49   ;;  %v11917_v49 = vperm.slane %v5568_v22, 5 }
 0x2f9   : > { %v5922_v28 = vpop.permute.xlu0 %3794 }
 0x2fa   : > { %12744 = vst [vmem:[#allocation87_spill] sm:$0xff] %v5922_v28  ;;  %v12749_v28 = vmov 0   ;;  %v5951_v44 = vpop.permute.xlu1 %1051 }
 0x2fb   : > { %1510 = vperm.xlu2 %4810, %v1505_v11   ;;  %v5935_v11 = vpop.permute.xlu2 %1248  ;;  %v579_v62 = vsel %vm11964_vm1, 1, %v12749_v28  ;;  %12751 = vst [vmem:[#allocation93_spill] sm:$0xff] %v5951_v44  ;;  %v1008_v29 = vsel %vm11940_vm11, 1, %v12749_v28 }
 0x2fc   : > { %12747 = vst [vmem:[#allocation90_spill] sm:$0xff] %v5935_v11  ;;  %v547_v11 = vmul.f32 0.6931472, %v4966_v54 }
 0x2fd   : > { %1549 = vperm.xlu1 %4813, %v1544_v41   ;;  %v11919_v41 = vperm.slane %v5708_v46, 0 }
 0x2fe   : > { %v5974_v54 = vsub.f32 %v5510_v15, %v547_v11 }
 0x2ff   : > { %2185 = vperm.xlu0 %4896, %v11912_v32   ;;  %v5941_v32 = vld [vmem:[%s5393_s13] sm:$0xff] }
 0x300   : > { %12748 = vst [vmem:[#allocation91_spill] sm:$0xff] %v5941_v32  ;;  %vm11968_vm2 = vcmp.eq.s32.totalorder %v5941_v32, 0  ;;  %vm11963_vm10 = vcmp.eq.s32.totalorder %v5941_v32, 1  ;;  %vm11944_vm15 = vcmp.eq.s32.totalorder %v5941_v32, 2 }
 0x301   : > { %v5949_v53 = vpop.permute.xlu0 %3846  ;;  %12756 = vst [vmem:[#allocation97_spill] sm:$0xff] %v5974_v54  ;;  %v6009_v5 = vsel %vm11963_vm10, 1, %v12749_v28  ;;  %v6055_v24 = vsel %vm11944_vm15, 1, %v12749_v28  ;;  %vm11958_vm15 = vcmp.eq.s32.totalorder %v5941_v32, 3 }
 0x302   : > { %12750 = vst [vmem:[#allocation92_spill] sm:$0xff] %v5949_v53  ;;  %v11926_v53 = vperm.slane %v5717_v19, 0  ;;  %v5978_v35 = vpop.permute.xlu1 %1070  ;;  %v6104_v33 = vsel %vm11958_vm15, 1, %v12749_v28  ;;  %vm11975_vm15 = vcmp.eq.s32.totalorder %v5929_v59, 4 }
 0x303   : > { %4812 = vset.pattern.permute.xlu2 %v5560_v18  ;;  %v5966_v44 = vpop.permute.xlu2 %1261  ;;  %12768 = vst [vmem:[#allocation101_spill] sm:$0xff] %v6055_v24 }
 0x304   : > { %12755 = vst [vmem:[#allocation96_spill] sm:$0xff] %v5966_v44 }
 0x305   : > { %1668 = vperm.xlu1 %4813, %v11917_v49   ;;  %v5953_v49 = vrot.slane %v579_v62, 7 }
 0x307   : > { %2317 = vperm.xlu0 %4896, %v11919_v41   ;;  %12752 = vst [vmem:[#allocation94_spill] sm:$0xff] %v5953_v49  ;;  %v5960_v41 = vsel %vm11968_vm2, 1, %v12749_v28 }
 0x308   : > { %12754 = vst [vmem:[#allocation95_spill] sm:$0xff] %v5960_v41  ;;  %v584_v38 = vsel %vm11976_vm3, %v5960_v41, %v5953_v49 }
 0x309   : > { %v585_v62 = vrot.slane %v584_v38, 1  ;;  %v11930_v38 = vperm.slane %v5974_v54, 1 }
 0x30b   : > { %1529 = vperm.xlu2 %4812, %v12753_v3   ;;  %v587_v3 = vsel %vm11977_vm4, %v5960_v41, %v5953_v49  ;;  %vm605_vm5 = vcmp.ne.s32.totalorder %v585_v62, 0  ;;  %v5987_v11 = vpop.permute.xlu2 %1280  ;;  %v593_v62 = vsel %vm11972_vm7, %v5960_v41, %v5953_v49 }
 0x30c   : > { %v717_v15 = vsel %vm605_vm5, 1, %v12749_v28  ;;  %v594_v42 = vrot.slane %v593_v62, 4  ;;  %v12758_v62 = vperm.slane %v5576_v40, 5  ;;  %vm11973_vm5 = vcmask 1045509  }
 0x30d   : > { %1681 = vperm.xlu1 %4813, %v1676_v37   ;;  %v588_v37 = vrot.slane %v587_v3, 2  ;;  %v6012_v3 = vpop.permute.xlu1 %1090  ;;  %v727_v25 = vperm.slane %v717_v15, 1 }
 0x30e   : > { %12757 = vst [vmem:[#allocation98_spill] sm:$0xff] %v6012_v3  ;;  %vm608_vm0 = vcmp.ne.s32.totalorder %v594_v42, 0  ;;  %v6057_v42 = vrot.slane %v1008_v29, 7  ;;  %v12770_v3 = vmov 0 }
 0x30f   : > { %2369 = vperm.xlu0 %4896, %v11926_v53   ;;  %v798_v53 = vsel %vm11943_vm6, 1, %v12749_v28  ;;  %vm606_vm9 = vcmp.ne.s32.totalorder %v588_v37, 0  ;;  %v602_v37 = vsel %vm11979_vm8, %v5953_v49, %v5960_v41  ;;  %vm6038_vm14 = vcmp.eq.s32.totalorder %v727_v25, 1 }
 0x310   : > { %v5998_v61 = vrot.slane %v798_v53, 7  ;;  %v718_v44 = vsel %vm606_vm9, 1, %v12749_v28  ;;  %v603_v26 = vrot.slane %v602_v37, 7  ;;  %v12759_v37 = vmov 0  ;;  %12769 = vst [vmem:[#allocation102_spill] sm:$0xff] %v6057_v42 }
 0x311   : > { %v5976_v56 = vpop.permute.xlu0 %675  ;;  %v728_v53 = vperm.slane %v718_v44, 0  ;;  %v729_v43 = vperm.slane %v718_v44, 1  ;;  %v720_v29 = vsel %vm608_vm0, 1, %v12749_v28 }
 0x312   : > { %vm6048_vm9 = vcmp.ne.s32.totalorder %v603_v26, 0  ;;  %v1218_v26 = vsel %vm11947_vm13, 1, %v12749_v28  ;;  %v813_v8 = vsel %vm11979_vm8, %v5998_v61, %v6009_v5  ;;  %v733_v55 = vperm.slane %v720_v29, 1 }
 0x313   : > { %1542 = vperm.xlu2 %4812, %v1531_v57   ;;  %v726_v57 = vperm.slane %v717_v15, 0  ;;  %v803_v15 = vsel %vm11977_vm4, %v6009_v5, %v5998_v61  ;;  %vm6059_vm11 = vcmp.eq.s32.totalorder %v728_v53, 1  ;;  %vm6070_vm6 = vcmp.eq.s32.totalorder %v729_v43, 1 }
 0x314   : > { %v804_v25 = vrot.slane %v803_v15, 2  ;;  %v12771_v3 = vsel %vm6059_vm11, 4294967295, %v12770_v3  ;;  %v6085_v43 = vsel %vm11973_vm5, %v5960_v41, %v5953_v49  ;;  %v6095_v9 = vrot.slane %v1218_v26, 7 }
 0x315   : > { %4817 = vset.pattern.permute.xlu1 %v5560_v18  ;;  %vm6030_vm12 = vcmp.eq.s32.totalorder %v726_v57, 1  ;;  %v807_v57 = vsel %vm11972_vm7, %v6009_v5, %v5998_v61  ;;  %12772 = vst [vmem:[#allocation103_spill] sm:$0xff] %v12771_v3  ;;  %v6093_v15 = vpop.permute.xlu1 %1103  ;;  %v814_v41 = vrot.slane %v813_v8, 7  ;;  %vm6147_vm1 = vcmp.eq.s32.totalorder %v733_v55, 1 }
 0x316   : > { %v12760_v37 = vsel %vm6030_vm12, 4294967295, %v12759_v37  ;;  %v808_v53 = vrot.slane %v807_v57, 4  ;;  %12777 = vst [vmem:[#allocation106_spill] sm:$0xff] %v6085_v43  ;;  %vm817_vm0 = vcmp.ne.s32.totalorder %v804_v25, 0  ;;  %v1013_v57 = vsel %vm11977_vm4, %v6055_v24, %v6057_v42 }
 0x317   : > { %2566 = vperm.xlu0 %4896, %v11930_v38   ;;  %12761 = vst [vmem:[#allocation99_spill] sm:$0xff] %v12760_v37  ;;  %v12762_v38 = vmov 0  ;;  %v1017_v25 = vsel %vm11972_vm7, %v6055_v24, %v6057_v42  ;;  %v929_v23 = vsel %vm817_vm0, 1, %v12749_v28  ;;  %v1014_v21 = vrot.slane %v1013_v57, 2 }
 0x318   : > { %v12763_v38 = vsel %vm6038_vm14, 4294967295, %v12762_v38  ;;  %12778 = vst [vmem:[#allocation107_spill] sm:$0xff] %v6093_v15  ;;  %v1227_v58 = vsel %vm11972_vm7, %v6104_v33, %v6095_v9  ;;  %v1018_v49 = vrot.slane %v1017_v25, 4  ;;  %v12781_v57 = vmov 0 }
 0x319   : > { %v6003_v17 = vpop.permute.xlu0 %860  ;;  %12764 = vst [vmem:[#allocation100_spill] sm:$0xff] %v12763_v38  ;;  %v939_v47 = vperm.slane %v929_v23, 0  ;;  %vm1027_vm2 = vcmp.ne.s32.totalorder %v1014_v21, 0  ;;  %vm11978_vm7 = vcmp.eq.s32.totalorder %v5941_v32, 4  ;;  %v12798_v21 = vmov 0 }
 0x31a   : > { %vm1029_vm5 = vcmp.ne.s32.totalorder %v1018_v49, 0 }
 0x31b   : > { %4814 = vset.pattern.permute.xlu2 %v5185_v51  ;;  %v801_v51 = vsel %vm11976_vm3, %v6009_v5, %v5998_v61 }
 0x31c   : > { %1630 = vperm.xlu2 %4814, %v5550_v10   ;;  %v802_v44 = vrot.slane %v801_v51, 1  ;;  %v12774_v51 = vmov 0  ;;  %v12795_v10 = vperm.slane %v5568_v22, 5 }
 0x31d   : > { %1700 = vperm.xlu1 %4817, %v12758_v62   ;;  %v12765_v62 = vperm.slane %v5687_v31, 2  ;;  %v12775_v51 = vsel %vm6070_vm6, 4294967295, %v12774_v51  ;;  %v6154_v4 = vpop.permute.xlu1 %1122 }
 0x31e   : > { %12776 = vst [vmem:[#allocation105_spill] sm:$0xff] %v12775_v51  ;;  %vm816_vm13 = vcmp.ne.s32.totalorder %v802_v44, 0  ;;  %v732_v44 = vperm.slane %v720_v29, 0  ;;  %v12788_v29 = vmov 0 }
 0x31f   : > { %2750 = vperm.xlu0 %4896, %v12765_v62   ;;  %v6066_v62 = vpop.permute.xlu2 %1293  ;;  %v6111_v50 = vsel %vm816_vm13, 1, %v12749_v28  ;;  %12794 = vst [vmem:[#allocation114_spill] sm:$0xff] %v6154_v4 }
 0x320   : > { %12773 = vst [vmem:[#allocation104_spill] sm:$0xff] %v6066_v62  ;;  %v723_v62 = vsel %vm6048_vm9, 1, %v12749_v28  ;;  %vm819_vm9 = vcmp.ne.s32.totalorder %v808_v53, 0  ;;  %vm6131_vm13 = vcmp.eq.s32.totalorder %v732_v44, 1  ;;  %v1228_v44 = vrot.slane %v1227_v58, 4 }
 0x321   : > { %v6068_v16 = vpop.permute.xlu0 %925  ;;  %v738_v26 = vperm.slane %v723_v62, 0  ;;  %v739_v15 = vperm.slane %v723_v62, 1  ;;  %v1223_v62 = vsel %vm11977_vm4, %v6104_v33, %v6095_v9  ;;  %v12782_v57 = vsel %vm6131_vm13, 4294967295, %v12781_v57 }
 0x322   : > { %12783 = vst [vmem:[#allocation109_spill] sm:$0xff] %v12782_v57  ;;  %v931_v8 = vsel %vm819_vm9, 1, %v12749_v28  ;;  %v1224_v45 = vrot.slane %v1223_v62, 2  ;;  %vm822_vm9 = vcmp.ne.s32.totalorder %v814_v41, 0  ;;  %v940_v58 = vperm.slane %v929_v23, 1 }
 0x323   : > { %vm6138_vm0 = vcmp.eq.s32.totalorder %v738_v26, 1  ;;  %vm6142_vm10 = vcmp.eq.s32.totalorder %v739_v15, 1  ;;  %v1428_v26 = vsel %vm11975_vm15, 1, %v12749_v28  ;;  %v943_v15 = vperm.slane %v931_v8, 0 }
 0x324   : > { %4815 = vset.pattern.permute.xlu2 %v5560_v18  ;;  %v12786_v0 = vsel %vm6138_vm0, 4294967295, %v12785_v0  ;;  %v12789_v29 = vsel %vm6142_vm10, 4294967295, %v12788_v29  ;;  %v12796_v62 = vperm.slane %v5592_v30, 5  ;;  %v6169_v4 = vrot.slane %v1428_v26, 7 }
 0x325   : > { %4819 = vset.pattern.permute.xlu1 %v5554_v13  ;;  %12787 = vst [vmem:[#allocation111_spill] sm:$0xff] %v12786_v0  ;;  %vm1239_vm15 = vcmp.ne.s32.totalorder %v1228_v44, 0  ;;  %v6172_v49 = vsel %vm822_vm9, 1, %v12749_v28  ;;  %v6177_v23 = vsel %vm11978_vm7, 1, %v12749_v28  ;;  %vm1237_vm3 = vcmp.ne.s32.totalorder %v1224_v45, 0 }
 0x326   : > { %12790 = vst [vmem:[#allocation112_spill] sm:$0xff] %v12789_v29  ;;  %vm6182_vm4 = vcmp.eq.s32.totalorder %v939_v47, 1  ;;  %v1023_v44 = vsel %vm11979_vm8, %v6057_v42, %v6055_v24  ;;  %v12801_v26 = vmov 0  ;;  %vm12804_vm9 = vcmask 1042434   ;;  %v12920_v29 = vld [vmem:[#allocation106_spill] sm:$0xff] }
 0x327   : > { %2815 = vperm.xlu0 %4896, %v12779_v48   ;;  %v6129_v53 = vpop.permute.xlu2 %1313  ;;  %v944_v48 = vperm.slane %v931_v8, 1  ;;  %v12797_v8 = vperm.slane %v5708_v46, 3  ;;  %v12799_v21 = vsel %vm6182_vm4, 4294967295, %v12798_v21  ;;  %v1433_v41 = vsel %vm12804_vm9, %v6177_v23, %v6169_v4 }
 0x328   : > { %12780 = vst [vmem:[#allocation108_spill] sm:$0xff] %v6129_v53  ;;  %v12791_v53 = vmov 0  ;;  %vm6208_vm8 = vcmp.eq.s32.totalorder %v940_v58, 1  ;;  %v949_v14 = vperm.slane %v6172_v49, 0  ;;  %v774_v39 = vsel %vm6131_vm13, %v5976_v56, 0.0 }
 0x329   : > { %v6136_v25 = vpop.permute.xlu0 %1057  ;;  %v12792_v53 = vsel %vm6147_vm1, 4294967295, %v12791_v53  ;;  %12800 = vst [vmem:[#allocation115_spill] sm:$0xff] %v12799_v21  ;;  %vm6201_vm7 = vcmp.eq.s32.totalorder %v944_v48, 1  ;;  %v12811_v34 = vsel %vm6208_vm8, 4294967295, %v12810_v34  ;;  %v6217_v48 = vsel %vm1237_vm3, 1, %v12749_v28 }
 0x32a   : > { %12784 = vst [vmem:[#allocation110_spill] sm:$0xff] %v6136_v25  ;;  %v1024_v30 = vrot.slane %v1023_v44, 7  ;;  %v775_v58 = vsel %vm6147_vm1, %v5976_v56, 0.0  ;;  %v12814_v25 = vmov 0  ;;  %v12817_v56 = vperm.slane %v5602_v60, 5 }
 0x32b   : > { %12793 = vst [vmem:[#allocation113_spill] sm:$0xff] %v12792_v53  ;;  %vm6287_vm13 = vcmp.eq.s32.totalorder %v949_v14, 1  ;;  %v12878_v53 = vperm.slane %v6111_v50, 0  ;;  %v12879_v0 = vmov 0  ;;  %v12970_v21 = vmov 0 }
 0x32c   : > { %1674 = vperm.xlu2 %4815, %v12795_v10   ;;  %v1139_v10 = vsel %vm1027_vm2, 1, %v12749_v28  ;;  %vm6189_vm2 = vcmp.eq.s32.totalorder %v943_v15, 1  ;;  %v1351_v15 = vsel %vm1239_vm15, 1, %v12749_v28  ;;  %12812 = vst [vmem:[#allocation119_spill] sm:$0xff] %v12811_v34  ;;  %vm12818_vm15 = vcmask 1046528  }
 0x32d   : > { %1720 = vperm.xlu1 %4819, %v12796_v62   ;;  %v1141_v62 = vsel %vm1029_vm5, 1, %v12749_v28  ;;  %v12802_v26 = vsel %vm6189_vm2, 4294967295, %v12801_v26  ;;  %vm12805_vm5 = vcmask 1041409   ;;  %v1149_v47 = vperm.slane %v1139_v10, 0  ;;  %vm12819_vm9 = vmmov %vm12818_vm15 }
 0x32e   : > { %12803 = vst [vmem:[#allocation116_spill] sm:$0xff] %v12802_v26  ;;  %v6199_v45 = vsel %vm12805_vm5, %v6055_v24, %v6057_v42  ;;  %v1153_v46 = vperm.slane %v1141_v62, 0  ;;  %v1434_v24 = vrot.slane %v1433_v41, 2  ;;  %v1363_v57 = vperm.slane %v1351_v15, 0 }
 0x32f   : > { %2947 = vperm.xlu0 %4896, %v12797_v8   ;;  %v12806_v8 = vmov 0  ;;  %v6219_v22 = vpop.permute.xlu2 %1326  ;;  %v1012_v43 = vrot.slane %v6199_v45, 1  ;;  %v1364_v7 = vperm.slane %v1351_v15, 1  ;;  %v1150_v1 = vperm.slane %v1139_v10, 1 }
 0x330   : > { %v12807_v8 = vsel %vm6201_vm7, 4294967295, %v12806_v8  ;;  %12813 = vst [vmem:[#allocation120_spill] sm:$0xff] %v6219_v22  ;;  %vm6227_vm3 = vcmp.eq.s32.totalorder %v1149_v47, 1  ;;  %v985_v44 = vsel %vm6189_vm2, %v5893_v52, %v774_v39  ;;  %v1233_v41 = vsel %vm12818_vm15, %v6095_v9, %v6104_v33 }
 0x331   : > { %12808 = vst [vmem:[#allocation117_spill] sm:$0xff] %v12807_v8  ;;  %v6205_v55 = vpop.permute.xlu0 %1109  ;;  %v12815_v25 = vsel %vm6227_vm3, 4294967295, %v12814_v25  ;;  %v986_v10 = vsel %vm6201_vm7, %v5893_v52, %v775_v58  ;;  %v1359_v45 = vperm.slane %v6217_v48, 0  ;;  %v1443_v47 = vsel %vm12819_vm9, %v6169_v4, %v6177_v23 }
 0x332   : > { %12809 = vst [vmem:[#allocation118_spill] sm:$0xff] %v6205_v55  ;;  %v1154_v55 = vperm.slane %v1141_v62, 1  ;;  %v6239_v62 = vpop.permute.xlu1 %1135  ;;  %vm6249_vm2 = vcmp.ne.s32.totalorder %v1024_v30, 0  ;;  %v12822_v15 = vperm.slane %v5717_v19, 3  ;;  %vm6255_vm15 = vcmp.eq.s32.totalorder %v1153_v46, 1 }
 0x333   : > { %12816 = vst [vmem:[#allocation121_spill] sm:$0xff] %v12815_v25  ;;  %v12826_v52 = vmov 0  ;;  %vm1447_vm1 = vcmp.ne.s32.totalorder %v1434_v24, 0  ;;  %v1195_v58 = vsel %vm6255_vm15, %v5898_v63, %v985_v44  ;;  %vm6266_vm9 = vcmp.eq.s32.totalorder %v1363_v57, 1 }
 0x334   : > { %4816 = vset.pattern.permute.xlu2 %v5554_v13  ;;  %vm6259_vm7 = vcmp.eq.s32.totalorder %v1154_v55, 1  ;;  %v12829_v30 = vmov 0  ;;  %vm6270_vm5 = vcmp.eq.s32.totalorder %v1364_v7, 1  ;;  %v12832_v42 = vmov 0 }
 0x335   : > { %1733 = vperm.xlu1 %4819, %v12817_v56   ;;  %v12823_v56 = vmov 0  ;;  %v12827_v52 = vsel %vm6259_vm7, 4294967295, %v12826_v52  ;;  %v12830_v30 = vsel %vm6266_vm9, 4294967295, %v12829_v30  ;;  %v12833_v42 = vsel %vm6270_vm5, 4294967295, %v12832_v42 }
 0x336   : > { %v12824_v56 = vsel %vm6255_vm15, 4294967295, %v12823_v56  ;;  %12828 = vst [vmem:[#allocation123_spill] sm:$0xff] %v12827_v52  ;;  %v1234_v46 = vrot.slane %v1233_v41, 7  ;;  %v12835_v55 = vsel %vm6059_vm11, %v5758_v27, 0.0  ;;  %v1196_v57 = vsel %vm6259_vm7, %v5898_v63, %v986_v10 }
 0x337   : > { %2999 = vperm.xlu0 %4896, %v12822_v15   ;;  %12825 = vst [vmem:[#allocation122_spill] sm:$0xff] %v12824_v56  ;;  %v977_v24 = vsel %vm6182_vm4, %v6003_v17, %v12835_v55  ;;  %v1444_v15 = vrot.slane %v1443_v47, 7  ;;  %vm12836_vm15 = vcmp.eq.s32.totalorder %v5929_v59, 5  ;;  %v12837_v41 = vmov 0 }
 0x338   : > { %12831 = vst [vmem:[#allocation124_spill] sm:$0xff] %v12830_v30  ;;  %v1638_v7 = vsel %vm12836_vm15, 1, %v12749_v28  ;;  %v12838_v41 = vsel %vm6287_vm13, 4294967295, %v12837_v41  ;;  %v1559_v63 = vsel %vm1447_vm1, 1, %v12749_v28  ;;  %vm12014_vm7 = vcmp.eq.s32.totalorder %v5941_v32, 5 }
 0x339   : > { %12834 = vst [vmem:[#allocation125_spill] sm:$0xff] %v12833_v42  ;;  %v1307_v44 = vpop.permute.xlu0 %1306  ;;  %vm6301_vm4 = vcmp.eq.s32.totalorder %v1150_v1, 1  ;;  %v12842_v10 = vmov 0  ;;  %v1144_v14 = vsel %vm6249_vm2, 1, %v12749_v28  ;;  %v12845_v47 = vsel %vm6070_vm6, %v5758_v27, 0.0  ;;  %v12976_v51 = vld [vmem:[#allocation118_spill] sm:$0xff] }
 0x33a   : > { %12839 = vst [vmem:[#allocation126_spill] sm:$0xff] %v12838_v41  ;;  %v6293_v56 = vsel %vm6266_vm9, %v1307_v44, %v1195_v58  ;;  %v6297_v55 = vsel %vm6270_vm5, %v1307_v44, %v1196_v57  ;;  %v12843_v10 = vsel %vm6301_vm4, 4294967295, %v12842_v10  ;;  %v978_v58 = vsel %vm6208_vm8, %v6003_v17, %v12845_v47  ;;  %v6315_v57 = vpop.permute.xlu2 %1345 }
 0x33b   : > { %12840 = vst [vmem:[#allocation127_spill] sm:$0xff] %v6293_v56  ;;  %v1360_v44 = vperm.slane %v6217_v48, 1  ;;  %vm12846_vm1 = vcmask 1041409   ;;  %v1187_v39 = vsel %vm6227_vm3, %v5978_v35, %v977_v24  ;;  %v12847_v59 = vperm.slane %v5576_v40, 5 }
 0x33c   : > { %12841 = vst [vmem:[#allocation128_spill] sm:$0xff] %v6297_v55  ;;  %v1221_v1 = vsel %vm12846_vm1, %v6104_v33, %v6095_v9  ;;  %vm6326_vm2 = vcmp.ne.s32.totalorder %v1234_v46, 0  ;;  %v6330_v17 = vrot.slane %v1638_v7, 7  ;;  %v1569_v48 = vperm.slane %v1559_v63, 0 }
 0x33d   : > { %12844 = vst [vmem:[#allocation129_spill] sm:$0xff] %v12843_v10  ;;  %1694 = vperm.xlu2 %4816, %v12847_v59   ;;  %4821 = vset.pattern.permute.xlu1 %v5560_v18  ;;  %v1570_v47 = vperm.slane %v1559_v63, 1  ;;  %vm1452_vm15 = vcmp.ne.s32.totalorder %v1444_v15, 0  ;;  %v6336_v42 = vsel %vm12014_vm7, 1, %v12749_v28  ;;  %vm6338_vm1 = vcmp.ne.s32.totalorder %v1012_v43, 0 }
 0x33e   : > { %v1188_v59 = vsel %vm6301_vm4, %v5978_v35, %v978_v58  ;;  %vm6345_vm5 = vcmp.eq.s32.totalorder %v1359_v45, 1  ;;  %v12852_v46 = vmov 0  ;;  %vm12855_vm9 = vcmask 1041409   ;;  %v6361_v45 = vpop.permute.xlu1 %1254 }
 0x33f   : > { %v12853_v46 = vsel %vm6345_vm5, 4294967295, %v12852_v46  ;;  %v1641_v15 = vsel %vm12855_vm9, %v6336_v42, %v6330_v17  ;;  %v1159_v7 = vperm.slane %v1144_v14, 0  ;;  %v1160_v63 = vperm.slane %v1144_v14, 1  ;;  %vm12856_vm7 = vmmov %vm12855_vm9  ;;  %12861 = vst [vmem:[#allocation132_spill] sm:$0xff] %v6361_v45 }
 0x340   : > { %12854 = vst [vmem:[#allocation130_spill] sm:$0xff] %v12853_v46  ;;  %v1431_v43 = vsel %vm12856_vm7, %v6177_v23, %v6169_v4  ;;  %vm6355_vm3 = vcmp.eq.s32.totalorder %v1360_v44, 1  ;;  %v12857_v32 = vmov 0  ;;  %v12860_v35 = vperm.slane %v5974_v54, 4  ;;  %v12950_v46 = vld [vmem:[#allocation21_spill] sm:$0xff] }
 0x341   : > { %v12858_v32 = vsel %vm6355_vm3, 4294967295, %v12857_v32  ;;  %v1222_v58 = vrot.slane %v1221_v1, 1  ;;  %v6366_v30 = vsel %vm6345_vm5, %v5987_v11, %v1187_v39  ;;  %v1354_v14 = vsel %vm6326_vm2, 1, %v12749_v28  ;;  %v6385_v39 = vpop.permute.xlu0 %1490 }
 0x342   : > { %12859 = vst [vmem:[#allocation131_spill] sm:$0xff] %v12858_v32  ;;  %3196 = vperm.xlu0 %4896, %v12860_v35   ;;  %v1564_v44 = vsel %vm1452_vm15, 1, %v12749_v28  ;;  %vm6372_vm7 = vcmp.eq.s32.totalorder %v1569_v48, 1  ;;  %v12863_v52 = vmov 0  ;;  %vm6376_vm9 = vcmp.eq.s32.totalorder %v1570_v47, 1 }
 0x343   : > { %12862 = vst [vmem:[#allocation133_spill] sm:$0xff] %v6366_v30  ;;  %v12864_v52 = vsel %vm6372_vm7, 4294967295, %v12863_v52  ;;  %v12866_v35 = vmov 0  ;;  %v6383_v1 = vsel %vm6355_vm3, %v5987_v11, %v1188_v59  ;;  %v1642_v8 = vrot.slane %v1641_v15, 1 }
 0x344   : > { %12865 = vst [vmem:[#allocation134_spill] sm:$0xff] %v12864_v52  ;;  %v12867_v35 = vsel %vm6376_vm9, 4294967295, %v12866_v35  ;;  %v12871_v27 = vperm.slane %v6172_v49, 1  ;;  %v12872_v26 = vmov 0  ;;  %v1432_v48 = vrot.slane %v1431_v43, 1 }
 0x345   : > { %12868 = vst [vmem:[#allocation135_spill] sm:$0xff] %v12867_v35  ;;  %v12875_v59 = vsel %vm6138_vm0, %v5801_v20, 0.0  ;;  %v12876_v15 = vsel %vm6142_vm10, %v5801_v20, 0.0  ;;  %v1579_v47 = vperm.slane %v1564_v44, 0  ;;  %v1580_v11 = vperm.slane %v1564_v44, 1  ;;  %4818 = vset.pattern.permute.xlu2 %v5560_v18 }
 0x346   : > { %12869 = vst [vmem:[#allocation136_spill] sm:$0xff] %v6383_v1  ;;  %vm6389_vm2 = vcmp.eq.s32.totalorder %v12871_v27, 1  ;;  %v997_v49 = vsel %vm6287_vm13, %v6068_v16, %v12875_v59  ;;  %v6415_v27 = vpop.permute.xlu2 %1458  ;;  %vm6419_vm15 = vcmp.eq.s32.totalorder %v12878_v53, 1  ;;  %v1138_v59 = vsel %vm6338_vm1, 1, %v12749_v28 }
 0x347   : > { %12870 = vst [vmem:[#allocation137_spill] sm:$0xff] %v6385_v39  ;;  %v12873_v26 = vsel %vm6389_vm2, 4294967295, %v12872_v26  ;;  %v998_v43 = vsel %vm6389_vm2, %v6068_v16, %v12876_v15  ;;  %v12880_v0 = vsel %vm6419_vm15, 4294967295, %v12879_v0  ;;  %v1369_v20 = vperm.slane %v1354_v14, 0 }
 0x348   : > { %12874 = vst [vmem:[#allocation138_spill] sm:$0xff] %v12873_v26  ;;  %v1370_v41 = vperm.slane %v1354_v14, 1  ;;  %vm6427_vm13 = vcmp.eq.s32.totalorder %v1159_v7, 1  ;;  %v12882_v16 = vmov 0  ;;  %vm6431_vm2 = vcmp.eq.s32.totalorder %v1160_v63, 1 }
 0x349   : > { %12877 = vst [vmem:[#allocation139_spill] sm:$0xff] %v6415_v27  ;;  %v12883_v16 = vsel %vm6427_vm13, 4294967295, %v12882_v16  ;;  %v12885_v44 = vmov 0  ;;  %vm1236_vm10 = vcmp.ne.s32.totalorder %v1222_v58, 0  ;;  %v12888_v53 = vperm.slane %v5609_v6, 5  ;;  %v12922_v27 = vld [vmem:[#allocation101_spill] sm:$0xff] }
 0x34a   : > { %12881 = vst [vmem:[#allocation140_spill] sm:$0xff] %v12880_v0  ;;  %v12886_v44 = vsel %vm6431_vm2, 4294967295, %v12885_v44  ;;  %vm1656_vm0 = vcmp.ne.s32.totalorder %v1642_v8, 0  ;;  %v12889_v24 = vperm.slane %v6111_v50, 1  ;;  %v12890_v15 = vmov 0 }
 0x34b   : > { %12884 = vst [vmem:[#allocation141_spill] sm:$0xff] %v12883_v16  ;;  %1752 = vperm.xlu1 %4821, %v12888_v53   ;;  %v1207_v7 = vsel %vm6427_vm13, %v6239_v62, %v997_v49  ;;  %v1208_v63 = vsel %vm6431_vm2, %v6239_v62, %v998_v43  ;;  %vm1446_vm3 = vcmp.ne.s32.totalorder %v1432_v48, 0  ;;  %v1147_v58 = vperm.slane %v1138_v59, 0  ;;  %v12916_v16 = vld [vmem:[#allocation110_spill] sm:$0xff] }
 0x34c   : > { %12887 = vst [vmem:[#allocation142_spill] sm:$0xff] %v12886_v44  ;;  %vm6439_vm1 = vcmp.eq.s32.totalorder %v12889_v24, 1  ;;  %v1148_v14 = vperm.slane %v1138_v59, 1  ;;  %v12893_v53 = vperm.slane %v5687_v31, 5  ;;  %vm6451_vm5 = vcmp.eq.s32.totalorder %v1579_v47, 1  ;;  %v6483_v59 = vpop.permute.xlu0 %1555 }
 0x34d   : > { %v12891_v15 = vsel %vm6439_vm1, 4294967295, %v12890_v15  ;;  %v12894_v50 = vmov 0  ;;  %vm6455_vm4 = vcmp.eq.s32.totalorder %v1580_v11, 1  ;;  %v12897_v8 = vmov 0 }
 0x34e   : > { %12892 = vst [vmem:[#allocation143_spill] sm:$0xff] %v12891_v15  ;;  %3380 = vperm.xlu0 %4896, %v12893_v53   ;;  %v12895_v50 = vsel %vm6451_vm5, 4294967295, %v12894_v50  ;;  %v12898_v8 = vsel %vm6455_vm4, 4294967295, %v12897_v8  ;;  %v1348_v49 = vsel %vm1236_vm10, 1, %v12749_v28  ;;  %vm6460_vm13 = vcmp.eq.s32.totalorder %v1369_v20, 1  ;;  %v1478_v38 = vpop.permute.xlu2 %1477 }
 0x34f   : > { %12896 = vst [vmem:[#allocation144_spill] sm:$0xff] %v12895_v50  ;;  %v12900_v24 = vmov 0  ;;  %vm6464_vm2 = vcmp.eq.s32.totalorder %v1370_v41, 1  ;;  %v12903_v62 = vmov 0  ;;  %v1768_v48 = vsel %vm1656_vm0, 1, %v12749_v28 }
 0x350   : > { %12899 = vst [vmem:[#allocation145_spill] sm:$0xff] %v12898_v8  ;;  %v12901_v24 = vsel %vm6460_vm13, 4294967295, %v12900_v24  ;;  %v12904_v62 = vsel %vm6464_vm2, 4294967295, %v12903_v62  ;;  %vm12906_vm8 = vcmask 1045509   ;;  %v1558_v11 = vsel %vm1446_vm3, 1, %v12749_v28 }
 0x351   : > { %12902 = vst [vmem:[#allocation146_spill] sm:$0xff] %v12901_v24  ;;  %v809_v47 = vsel %vm12906_vm8, %v6009_v5, %v5998_v61  ;;  %v6476_v43 = vsel %vm6460_vm13, %v6315_v57, %v1207_v7  ;;  %v6481_v41 = vsel %vm6464_vm2, %v6315_v57, %v1208_v63  ;;  %v12907_v20 = vsel %vm6030_vm12, %v5749_v12, 0.0  ;;  %v1268_v57 = vpop.permute.xlu1 %1267 }
 0x352   : > { %12905 = vst [vmem:[#allocation147_spill] sm:$0xff] %v12904_v62  ;;  %v973_v53 = vsel %vm6419_vm15, %v5818_v2, %v12907_v20  ;;  %v12908_v7 = vsel %vm6038_vm14, %v5749_v12, 0.0  ;;  %v1357_v20 = vperm.slane %v1348_v49, 0  ;;  %v1358_v24 = vperm.slane %v1348_v49, 1 }
 0x353   : > { %v974_v62 = vsel %vm6439_vm1, %v5818_v2, %v12908_v7  ;;  %v1777_v37 = vperm.slane %v1768_v48, 0  ;;  %v1778_v12 = vperm.slane %v1768_v48, 1  ;;  %vm6507_vm8 = vcmp.eq.s32.totalorder %v1147_v58, 1  ;;  %v12917_v48 = vld [vmem:[#allocation23_spill] sm:$0xff] }
 0x354   : > { %v12909_v44 = vmov 0  ;;  %vm6511_vm10 = vcmp.eq.s32.totalorder %v1148_v14, 1  ;;  %v12912_v2 = vmov 0  ;;  %v1567_v7 = vperm.slane %v1558_v11, 0  ;;  %v12919_v14 = vld [vmem:[#allocation32_spill] sm:$0xff] }
 0x355   : > { %v12910_v44 = vsel %vm6507_vm8, 4294967295, %v12909_v44  ;;  %v12913_v2 = vsel %vm6511_vm10, 4294967295, %v12912_v2  ;;  %v1568_v63 = vperm.slane %v1558_v11, 1  ;;  %v12915_v15 = vperm.slane %v5583_v36, 5  ;;  %v12921_v11 = vld [vmem:[#allocation102_spill] sm:$0xff] }
 0x356   : > { %12911 = vst [vmem:[#allocation148_spill] sm:$0xff] %v12910_v44  ;;  %v1183_v49 = vsel %vm6507_vm8, %v12916_v16, %v973_v53  ;;  %v1184_v58 = vsel %vm6511_vm10, %v12916_v16, %v974_v62  ;;  %v12918_v0 = vperm.slane %v12917_v48, 5  ;;  %v12056_v26 = vperm.slane %v12919_v14, 5 }
 0x357   : > { %12914 = vst [vmem:[#allocation149_spill] sm:$0xff] %v12913_v2  ;;  %1713 = vperm.xlu2 %4818, %v12915_v15   ;;  %v597_v55 = vrot.slane %v12920_v29, 5  ;;  %v810_v56 = vrot.slane %v809_v47, 5  ;;  %vm12923_vm0 = vcmask 1045509   ;;  %vm6530_vm3 = vcmp.eq.s32.totalorder %v1357_v20, 1 }
 0x358   : > { %1765 = vperm.xlu1 %4821, %v12918_v0   ;;  %v1019_v15 = vsel %vm12923_vm0, %v12922_v27, %v12921_v11  ;;  %v12924_v32 = vmov 0  ;;  %vm6534_vm8 = vcmp.eq.s32.totalorder %v1358_v24, 1  ;;  %v12927_v53 = vmov 0  ;;  %3445 = vperm.xlu0 %4896, %v12056_v26   ;;  %v12949_v26 = vld [vmem:[#allocation34_spill] sm:$0xff] }
 0x359   : > { %v12925_v32 = vsel %vm6530_vm3, 4294967295, %v12924_v32  ;;  %v12928_v53 = vsel %vm6534_vm8, 4294967295, %v12927_v53  ;;  %vm6540_vm10 = vcmp.eq.s32.totalorder %v1777_v37, 1  ;;  %v12930_v0 = vmov 0 }
 0x35a   : > { %12926 = vst [vmem:[#allocation110_spill] sm:$0xff] %v12925_v32  ;;  %v12931_v0 = vsel %vm6540_vm10, 4294967295, %v12930_v0  ;;  %vm6544_vm1 = vcmp.eq.s32.totalorder %v1778_v12, 1  ;;  %v12933_v29 = vmov 0  ;;  %v1393_v16 = vsel %vm6530_vm3, %v1268_v57, %v1183_v49  ;;  %v1688_v12 = vpop.permute.xlu0 %1687  ;;  %v6564_v49 = vpop.permute.xlu1 %1287 }
 0x35b   : > { %12929 = vst [vmem:[#allocation23_spill] sm:$0xff] %v12928_v53  ;;  %v12934_v29 = vsel %vm6544_vm1, 4294967295, %v12933_v29  ;;  %v1394_v24 = vsel %vm6534_vm8, %v1268_v57, %v1184_v58  ;;  %vm6552_vm0 = vcmp.eq.s32.totalorder %v1567_v7, 1  ;;  %v12936_v62 = vmov 0 }
 0x35c   : > { %12932 = vst [vmem:[#allocation106_spill] sm:$0xff] %v12931_v0  ;;  %v12937_v62 = vsel %vm6552_vm0, 4294967295, %v12936_v62  ;;  %vm6556_vm15 = vcmp.eq.s32.totalorder %v1568_v63, 1  ;;  %v12939_v47 = vmov 0  ;;  %v1603_v37 = vsel %vm6552_vm0, %v1478_v38, %v1393_v16  ;;  %v6577_v16 = vpop.permute.xlu2 %1497 }
 0x35d   : > { %12935 = vst [vmem:[#allocation102_spill] sm:$0xff] %v12934_v29  ;;  %v12940_v47 = vsel %vm6556_vm15, 4294967295, %v12939_v47  ;;  %v1604_v20 = vsel %vm6556_vm15, %v1478_v38, %v1394_v24  ;;  %vm609_vm2 = vcmp.ne.s32.totalorder %v597_v55, 0  ;;  %vm820_vm3 = vcmp.ne.s32.totalorder %v810_v56, 0  ;;  %v12944_v38 = vld [vmem:[#allocation20_spill] sm:$0xff]  ;;  %v12946_v24 = vld [vmem:[#allocation22_spill] sm:$0xff] }
 0x35e   : > { %12938 = vst [vmem:[#allocation101_spill] sm:$0xff] %v12937_v62  ;;  %v6568_v57 = vsel %vm6540_vm10, %v1688_v12, %v1603_v37  ;;  %v6572_v63 = vsel %vm6544_vm1, %v1688_v12, %v1604_v20  ;;  %v1020_v7 = vrot.slane %v1019_v15, 5  ;;  %vm12942_vm0 = vcmask 1045509  }
 0x35f   : > { %12941 = vst [vmem:[#allocation150_spill] sm:$0xff] %v12940_v47  ;;  %v1229_v58 = vsel %vm12942_vm0, %v6104_v33, %v6095_v9  ;;  %v12067_v55 = vperm.slane %v12944_v38, 6  ;;  %vm12945_vm15 = vmmov %vm12942_vm0  ;;  %v12947_v37 = vperm.slane %v12946_v24, 5  ;;  %v721_v15 = vsel %vm609_vm2, 1, %v12749_v28 }
 0x360   : > { %12943 = vst [vmem:[#allocation151_spill] sm:$0xff] %v6577_v16  ;;  %v1649_v56 = vsel %vm12945_vm15, %v6336_v42, %v6330_v17  ;;  %vm12948_vm1 = vmmov %vm12942_vm0  ;;  %v932_v12 = vsel %vm820_vm3, 1, %v12749_v28  ;;  %v12070_v29 = vperm.slane %v12949_v26, 6  ;;  %v1230_v0 = vrot.slane %v1229_v58, 5 }
 0x361   : > { %1726 = vperm.xlu2 %4818, %v12947_v37   ;;  %v1439_v20 = vsel %vm12948_vm1, %v6177_v23, %v6169_v4  ;;  %1884 = vperm.xlu1 %4821, %v12067_v55   ;;  %v1650_v47 = vrot.slane %v1649_v56, 5  ;;  %vm1030_vm0 = vcmp.ne.s32.totalorder %v1020_v7, 0  ;;  %v734_v62 = vperm.slane %v721_v15, 0 }
 0x362   : > { %3577 = vperm.xlu0 %4896, %v12070_v29   ;;  %v1440_v37 = vrot.slane %v1439_v20, 5  ;;  %v735_v53 = vperm.slane %v721_v15, 1  ;;  %v945_v32 = vperm.slane %v932_v12, 0  ;;  %v946_v2 = vperm.slane %v932_v12, 1 }
 0x363   : > { %v1142_v44 = vsel %vm1030_vm0, 1, %v12749_v28  ;;  %vm1240_vm2 = vcmp.ne.s32.totalorder %v1230_v0, 0  ;;  %vm1660_vm15 = vcmp.ne.s32.totalorder %v1650_v47, 0  ;;  %v1886_v10 = vperm.slane %v12950_v46, 6  ;;  %v6613_v0 = vpop.permute.xlu1 %1300  ;;  %v12968_v47 = vld [vmem:[#allocation67_spill] sm:$0xff] }
 0x364   : > { %vm6597_vm1 = vcmp.ne.s32.totalorder %v1440_v37, 0  ;;  %vm6601_vm3 = vcmp.eq.s32.totalorder %v734_v62, 1  ;;  %v12953_v7 = vmov 0  ;;  %vm6605_vm10 = vcmp.eq.s32.totalorder %v735_v53, 1  ;;  %12962 = vst [vmem:[#allocation152_spill] sm:$0xff] %v6613_v0  ;;  %v6618_v12 = vpop.permute.xlu2 %1510  ;;  %v12964_v37 = vld [vmem:[#allocation65_spill] sm:$0xff] }
 0x365   : > { %v12954_v7 = vsel %vm6601_vm3, 4294967295, %v12953_v7  ;;  %v12956_v58 = vmov 0  ;;  %vm6609_vm8 = vcmp.eq.s32.totalorder %v945_v32, 1  ;;  %v12959_v56 = vmov 0  ;;  %12963 = vst [vmem:[#allocation153_spill] sm:$0xff] %v6618_v12 }
 0x366   : > { %12955 = vst [vmem:[#allocation20_spill] sm:$0xff] %v12954_v7  ;;  %v12957_v58 = vsel %vm6605_vm10, 4294967295, %v12956_v58  ;;  %v12960_v56 = vsel %vm6609_vm8, 4294967295, %v12959_v56  ;;  %v1155_v20 = vperm.slane %v1142_v44, 0  ;;  %v1156_v15 = vperm.slane %v1142_v44, 1 }
 0x367   : > { %12958 = vst [vmem:[#allocation22_spill] sm:$0xff] %v12957_v58  ;;  %v1352_v62 = vsel %vm1240_vm2, 1, %v12749_v28  ;;  %v1772_v53 = vsel %vm1660_vm15, 1, %v12749_v28  ;;  %v778_v32 = vsel %vm6601_vm3, %v12964_v37, 0.0  ;;  %v779_v29 = vsel %vm6605_vm10, %v12964_v37, 0.0 }
 0x368   : > { %12961 = vst [vmem:[#allocation21_spill] sm:$0xff] %v12960_v56  ;;  %vm6627_vm0 = vcmp.eq.s32.totalorder %v946_v2, 1  ;;  %v12965_v0 = vmov 0  ;;  %v1562_v44 = vsel %vm6597_vm1, 1, %v12749_v28  ;;  %v989_v12 = vsel %vm6609_vm8, %v12968_v47, %v778_v32 }
 0x369   : > { %4820 = vset.pattern.permute.xlu2 %v5554_v13  ;;  %1897 = vperm.xlu1 %4821, %v1886_v10   ;;  %v12966_v0 = vsel %vm6627_vm0, 4294967295, %v12965_v0  ;;  %v990_v7 = vsel %vm6627_vm0, %v12968_v47, %v779_v29  ;;  %v12969_v25 = vperm.slane %v5717_v19, 6  ;;  %v1365_v37 = vperm.slane %v1352_v62, 0 }
 0x36a   : > { %12967 = vst [vmem:[#allocation65_spill] sm:$0xff] %v12966_v0  ;;  %v1366_v2 = vperm.slane %v1352_v62, 1  ;;  %v1785_v58 = vperm.slane %v1772_v53, 0  ;;  %v1786_v34 = vperm.slane %v1772_v53, 1  ;;  %vm6642_vm2 = vcmp.eq.s32.totalorder %v1155_v20, 1 }
 0x36b   : > { %3629 = vperm.xlu0 %4896, %v12969_v25   ;;  %v12971_v21 = vsel %vm6642_vm2, 4294967295, %v12970_v21  ;;  %vm6646_vm15 = vcmp.eq.s32.totalorder %v1156_v15, 1  ;;  %v12973_v55 = vmov 0  ;;  %v1575_v32 = vperm.slane %v1562_v44, 0  ;;  %v1320_v62 = vpop.permute.xlu1 %1319 }
 0x36c   : > { %12972 = vst [vmem:[#allocation67_spill] sm:$0xff] %v12971_v21  ;;  %v12974_v55 = vsel %vm6646_vm15, 4294967295, %v12973_v55  ;;  %v1576_v56 = vperm.slane %v1562_v44, 1  ;;  %v1199_v29 = vsel %vm6642_vm2, %v12976_v51, %v989_v12  ;;  %v1200_v25 = vsel %vm6646_vm15, %v12976_v51, %v990_v7 }
 0x36d   : > { %12975 = vst [vmem:[#allocation154_spill] sm:$0xff] %v12974_v55  ;;  %v12085_v47 = vperm.slane %v5974_v54, 7  ;;  %vm6657_vm1 = vcmp.eq.s32.totalorder %v1365_v37, 1  ;;  %v12977_v20 = vmov 0  ;;  %vm6661_vm0 = vcmp.eq.s32.totalorder %v1366_v2, 1  ;;  %v1740_v2 = vpop.permute.xlu0 %1739 }
 0x36e   : > { %v12978_v20 = vsel %vm6657_vm1, 4294967295, %v12977_v20  ;;  %v12980_v15 = vmov 0  ;;  %v12983_v53 = vperm.slane %v5609_v6, 5  ;;  %vm6667_vm8 = vcmp.eq.s32.totalorder %v1785_v58, 1 }
 0x36f   : > { %12979 = vst [vmem:[#allocation118_spill] sm:$0xff] %v12978_v20  ;;  %v12981_v15 = vsel %vm6661_vm0, 4294967295, %v12980_v15  ;;  %v12984_v12 = vmov 0  ;;  %vm6671_vm2 = vcmp.eq.s32.totalorder %v1786_v34, 1  ;;  %v12987_v51 = vmov 0  ;;  %v1530_v34 = vpop.permute.xlu2 %1529  ;;  %v13017_v20 = vld [vmem:[#allocation17_spill] sm:$0xff] }
 0x370   : > { %12982 = vst [vmem:[#allocation155_spill] sm:$0xff] %v12981_v15  ;;  %v12985_v12 = vsel %vm6667_vm8, 4294967295, %v12984_v12  ;;  %v12988_v51 = vsel %vm6671_vm2, 4294967295, %v12987_v51  ;;  %v1409_v7 = vsel %vm6657_vm1, %v1320_v62, %v1199_v29  ;;  %v1410_v44 = vsel %vm6661_vm0, %v1320_v62, %v1200_v25 }
 0x371   : > { %1746 = vperm.xlu2 %4820, %v12983_v53   ;;  %12986 = vst [vmem:[#allocation156_spill] sm:$0xff] %v12985_v12  ;;  %4824 = vset.pattern.permute.xlu1 %v5554_v13  ;;  %vm6680_vm15 = vcmp.eq.s32.totalorder %v1575_v32, 1  ;;  %v12990_v37 = vmov 0  ;;  %vm6684_vm10 = vcmp.eq.s32.totalorder %v1576_v56, 1  ;;  %v12993_v58 = vmov 0 }
 0x372   : > { %12989 = vst [vmem:[#allocation157_spill] sm:$0xff] %v12988_v51  ;;  %v12991_v37 = vsel %vm6680_vm15, 4294967295, %v12990_v37  ;;  %v12994_v58 = vsel %vm6684_vm10, 4294967295, %v12993_v58  ;;  %v1619_v53 = vsel %vm6680_vm15, %v1530_v34, %v1409_v7  ;;  %v1620_v29 = vsel %vm6684_vm10, %v1530_v34, %v1410_v44 }
 0x373   : > { %12992 = vst [vmem:[#allocation158_spill] sm:$0xff] %v12991_v37  ;;  %3826 = vperm.xlu0 %4896, %v12085_v47   ;;  %v6696_v32 = vsel %vm6667_vm8, %v1740_v2, %v1619_v53  ;;  %v6700_v56 = vsel %vm6671_vm2, %v1740_v2, %v1620_v29  ;;  %v1912_v25 = vperm.slane %v5583_v36, 6  ;;  %v12998_v62 = vperm.slane %v12917_v48, 5  ;;  %v6709_v34 = vpop.permute.xlu1 %1332  ;;  %v13005_v47 = vld [vmem:[#allocation18_spill] sm:$0xff] }
 0x374   : > { %12995 = vst [vmem:[#allocation159_spill] sm:$0xff] %v12994_v58  ;;  %v12999_v7 = vperm.slane %v12944_v38, 6  ;;  %v13000_v44 = vperm.slane %v12946_v24, 6  ;;  %v1938_v2 = vperm.slane %v5602_v60, 6  ;;  %v2083_v58 = vperm.slane %v12944_v38, 7 }
 0x375   : > { %12996 = vst [vmem:[#allocation160_spill] sm:$0xff] %v6696_v32  ;;  %v13011_v37 = vperm.slane %v12917_v48, 6  ;;  %v2122_v38 = vperm.slane %v5583_v36, 7  ;;  %4967 = vlog2.f32 %v13017_v20  ;;  %v13018_v36 = vperm.slane %v12950_v46, 7  ;;  %v13023_v20 = vld [vmem:[#allocation16_spill] sm:$0xff]  ;;  %v7041_v35 = vpop.permute.xlu0 %1936 }
 0x376   : > { %12997 = vst [vmem:[#allocation161_spill] sm:$0xff] %v6700_v56  ;;  %vm12150_vm2 = vcmask 1043459   ;;  %vm12149_vm8 = vcmask 1040384   ;;  %vm12140_vm10 = vcmask 1046534   ;;  %vm13091_vm14 = vcmask 1046534  }
 0x377   : > { %13113 = vst [vmem:[#allocation217_spill] sm:$0xff] %v7041_v35  ;;  %v13121_v35 = vmov 0  ;;  %vm13199_vm11 = vcmask 1046534  }
 0x379   : > { %1759 = vperm.xlu2 %4820, %v12998_v62   ;;  %1917 = vperm.xlu1 %4824, %v1912_v25   ;;  %v1951_v62 = vperm.slane %v5609_v6, 6 }
 0x37b   : > { %v6712_v53 = vpop.permute.xlu1 %1420 }
 0x37c   : > { %13001 = vst [vmem:[#allocation162_spill] sm:$0xff] %v6712_v53 }
 0x381   : > { %1878 = vperm.xlu2 %4820, %v12999_v7   ;;  %1930 = vperm.xlu1 %4824, %v13000_v44   ;;  %v13003_v7 = vperm.slane %v5576_v40, 6 }
 0x383   : > { %v6716_v29 = vpop.permute.xlu1 %1464 }
 0x384   : > { %13002 = vst [vmem:[#allocation163_spill] sm:$0xff] %v6716_v29 }
 0x389   : > { %1891 = vperm.xlu2 %4820, %v1886_v10   ;;  %4826 = vset.pattern.permute.xlu1 %v5560_v18  ;;  %v5186_v10 = vmov 6  }
 0x38b   : > { %v6721_v44 = vpop.permute.xlu1 %1484 }
 0x38c   : > { %13004 = vst [vmem:[#allocation164_spill] sm:$0xff] %v6721_v44 }
 0x391   : > { %4823 = vset.pattern.permute.xlu2 %v5560_v18  ;;  %1949 = vperm.xlu1 %4826, %v1938_v2  }
 0x393   : > { %v6724_v51 = vpop.permute.xlu1 %1503 }
 0x394   : > { %13006 = vst [vmem:[#allocation165_spill] sm:$0xff] %v6724_v51 }
 0x399   : > { %1910 = vperm.xlu2 %4823, %v13003_v7   ;;  %1962 = vperm.xlu1 %4826, %v1951_v62  }
 0x39b   : > { %v6728_v12 = vpop.permute.xlu1 %1516 }
 0x39c   : > { %13007 = vst [vmem:[#allocation166_spill] sm:$0xff] %v6728_v12 }
 0x3a1   : > { %1923 = vperm.xlu2 %4823, %v1912_v25   ;;  %4828 = vset.pattern.permute.xlu1 %v5186_v10  ;;  %v13010_v10 = vperm.slane %v5576_v40, 7 }
 0x3a2   : > { %2050 = vperm.xlu1 %4828, %v13005_v47  }
 0x3a3   : > { %v6731_v7 = vpop.permute.xlu1 %1536 }
 0x3a4   : > { %13008 = vst [vmem:[#allocation167_spill] sm:$0xff] %v6731_v7 }
 0x3a9   : > { %4825 = vset.pattern.permute.xlu2 %v5554_v13 }
 0x3aa   : > { %4830 = vset.pattern.permute.xlu1 %v5560_v18 }
 0x3ab   : > { %v6734_v25 = vpop.permute.xlu1 %1549 }
 0x3ac   : > { %13009 = vst [vmem:[#allocation168_spill] sm:$0xff] %v6734_v25 }
 0x3b1   : > { %1943 = vperm.xlu2 %4825, %v1938_v2  }
 0x3b2   : > { %2094 = vperm.xlu1 %4830, %v2083_v58  }
 0x3b3   : > { %v6741_v15 = vpop.permute.xlu1 %1668 }
 0x3b4   : > { %13012 = vst [vmem:[#allocation169_spill] sm:$0xff] %v6741_v15 }
 0x3b9   : > { %1956 = vperm.xlu2 %4825, %v1951_v62   ;;  %v2135_v62 = vperm.slane %v12946_v24, 7  ;;  %v4968_v24 = vpop.eup %4967 }
 0x3ba   : > { %4832 = vset.pattern.permute.xlu1 %v5554_v13  ;;  %v531_v0 = vmul.f32 0.6931472, %v4968_v24 }
 0x3bb   : > { %v6746_v2 = vpop.permute.xlu1 %1681 }
 0x3bc   : > { %13013 = vst [vmem:[#allocation170_spill] sm:$0xff] %v6746_v2  ;;  %v13022_v2 = vperm.slane %v12917_v48, 7 }
 0x3c1   : > { %4827 = vset.pattern.permute.xlu2 %v5560_v18 }
 0x3c2   : > { %2114 = vperm.xlu1 %4832, %v13010_v10   ;;  %v6751_v10 = vpop.permute.xlu2 %1542 }
 0x3c3   : > { %v6749_v40 = vpop.permute.xlu1 %1700  ;;  %13015 = vst [vmem:[#allocation172_spill] sm:$0xff] %v6751_v10 }
 0x3c4   : > { %13014 = vst [vmem:[#allocation171_spill] sm:$0xff] %v6749_v40 }
 0x3c9   : > { %1975 = vperm.xlu2 %4827, %v13011_v37  }
 0x3ca   : > { %4834 = vset.pattern.permute.xlu1 %v5560_v18  ;;  %v6761_v55 = vpop.permute.xlu2 %1630 }
 0x3cb   : > { %v6755_v37 = vpop.permute.xlu1 %1720  ;;  %13019 = vst [vmem:[#allocation17_spill] sm:$0xff] %v6761_v55  ;;  %v13028_v55 = vperm.slane %v12949_v26, 0 }
 0x3cc   : > { %13016 = vst [vmem:[#allocation173_spill] sm:$0xff] %v6755_v37  ;;  %v6771_v37 = vsub.f32 %v13023_v20, %v531_v0 }
 0x3ce   : > { %13024 = vst [vmem:[#allocation16_spill] sm:$0xff] %v6771_v37 }
 0x3d1   : > { %4829 = vset.pattern.permute.xlu2 %v5554_v13 }
 0x3d2   : > { %2133 = vperm.xlu1 %4834, %v2122_v38   ;;  %v6766_v53 = vpop.permute.xlu2 %1674 }
 0x3d3   : > { %v6763_v21 = vpop.permute.xlu1 %1733  ;;  %13021 = vst [vmem:[#allocation175_spill] sm:$0xff] %v6766_v53 }
 0x3d4   : > { %13020 = vst [vmem:[#allocation174_spill] sm:$0xff] %v6763_v21 }
 0x3d9   : > { %2088 = vperm.xlu2 %4829, %v2083_v58   ;;  %v2161_v58 = vperm.slane %v5609_v6, 7  ;;  %v2293_v6 = vperm.slane %v6771_v37, 0 }
 0x3da   : > { %2146 = vperm.xlu1 %4834, %v2135_v62  }
 0x3db   : > { %v6773_v46 = vpop.permute.xlu1 %1752 }
 0x3dc   : > { %13025 = vst [vmem:[#allocation176_spill] sm:$0xff] %v6773_v46  ;;  %v13064_v46 = vmov 0 }
 0x3e1   : > { %4831 = vset.pattern.permute.xlu2 %v5560_v18 }
 0x3e2   : > { %4836 = vset.pattern.permute.xlu1 %v5554_v13 }
 0x3e3   : > { %v6778_v21 = vpop.permute.xlu1 %1765 }
 0x3e9   : > { %2107 = vperm.xlu2 %4831, %v13018_v36   ;;  %v6776_v36 = vpop.permute.xlu2 %1694 }
 0x3ea   : > { %2166 = vperm.xlu1 %4836, %v2161_v58   ;;  %13026 = vst [vmem:[#allocation177_spill] sm:$0xff] %v6776_v36 }
 0x3eb   : > { %v6785_v48 = vpop.permute.xlu1 %1884 }
 0x3ec   : > { %13029 = vst [vmem:[#allocation179_spill] sm:$0xff] %v6785_v48  ;;  %v2516_v48 = vperm.slane %v12949_v26, 1 }
 0x3f1   : > { %4833 = vset.pattern.permute.xlu2 %v5554_v13  ;;  %v6780_v24 = vpop.permute.xlu2 %1713 }
 0x3f2   : > { %2179 = vperm.xlu1 %4836, %v13022_v2   ;;  %13027 = vst [vmem:[#allocation178_spill] sm:$0xff] %v6780_v24  ;;  %v2319_v2 = vperm.slane %v5687_v31, 0  ;;  %v5187_v24 = vmov 7  }
 0x3f3   : > { %v6795_v20 = vpop.permute.xlu1 %1897 }
 0x3f9   : > { %2127 = vperm.xlu2 %4833, %v2122_v38   ;;  %v6788_v0 = vpop.permute.xlu2 %1726  ;;  %v13031_v38 = vperm.slane %v5602_v60, 7 }
 0x3fa   : > { %2298 = vperm.xlu1 %4836, %v2293_v6   ;;  %13030 = vst [vmem:[#allocation180_spill] sm:$0xff] %v6788_v0  ;;  %v2345_v0 = vperm.slane %v5974_v54, 0 }
 0x401   : > { %2140 = vperm.xlu2 %4833, %v2135_v62   ;;  %v6793_v62 = vpop.permute.xlu2 %1746 }
 0x402   : > { %2311 = vperm.xlu1 %4836, %v13028_v55   ;;  %13032 = vst [vmem:[#allocation181_spill] sm:$0xff] %v6793_v62  ;;  %v6798_v55 = vpop.permute.xlu1 %1917  ;;  %v13047_v62 = vld [vmem:[#allocation28_spill] sm:$0xff] }
 0x403   : > { %13033 = vst [vmem:[#allocation182_spill] sm:$0xff] %v6798_v55  ;;  %v13048_v53 = vperm.slane %v13047_v62, 0 }
 0x409   : > { %4835 = vset.pattern.permute.xlu2 %v5560_v18  ;;  %v6800_v25 = vpop.permute.xlu2 %1759 }
 0x40a   : > { %4840 = vset.pattern.permute.xlu1 %v5560_v18  ;;  %13034 = vst [vmem:[#allocation183_spill] sm:$0xff] %v6800_v25  ;;  %v6804_v60 = vpop.permute.xlu1 %1930  ;;  %v13041_v25 = vld [vmem:[#allocation50_spill] sm:$0xff] }
 0x40b   : > { %13035 = vst [vmem:[#allocation184_spill] sm:$0xff] %v6804_v60  ;;  %v2371_v51 = vperm.slane %v13041_v25, 0  ;;  %v2384_v60 = vperm.slane %v12919_v14, 0 }
 0x411   : > { %2159 = vperm.xlu2 %4835, %v13031_v38   ;;  %v6806_v38 = vpop.permute.xlu2 %1878 }
 0x412   : > { %2330 = vperm.xlu1 %4840, %v2319_v2   ;;  %13036 = vst [vmem:[#allocation185_spill] sm:$0xff] %v6806_v38  ;;  %v6811_v15 = vpop.permute.xlu1 %1949 }
 0x413   : > { %13038 = vst [vmem:[#allocation186_spill] sm:$0xff] %v6811_v15 }
 0x419   : > { %2172 = vperm.xlu2 %4835, %v2161_v58   ;;  %v13037_v58 = vperm.slane %v5717_v19, 0  ;;  %v6813_v12 = vpop.permute.xlu2 %1891 }
 0x41a   : > { %4842 = vset.pattern.permute.xlu1 %v5554_v13  ;;  %13039 = vst [vmem:[#allocation187_spill] sm:$0xff] %v6813_v12 }
 0x421   : > { %4837 = vset.pattern.permute.xlu2 %v5187_v24  ;;  %v6816_v24 = vpop.permute.xlu1 %1962  ;;  %v6819_v36 = vpop.permute.xlu2 %1910 }
 0x422   : > { %2260 = vperm.xlu2 %4837, %v13005_v47   ;;  %2350 = vperm.xlu1 %4842, %v2345_v0   ;;  %13040 = vst [vmem:[#allocation188_spill] sm:$0xff] %v6816_v24 }
 0x423   : > { %13042 = vst [vmem:[#allocation189_spill] sm:$0xff] %v6819_v36 }
 0x429   : > { %v6825_v38 = vpop.permute.xlu2 %1923 }
 0x42a   : > { %4838 = vset.pattern.permute.xlu2 %v5560_v18  ;;  %2363 = vperm.xlu1 %4842, %v13037_v58   ;;  %v6823_v58 = vpop.permute.xlu1 %2050  ;;  %13044 = vst [vmem:[#allocation191_spill] sm:$0xff] %v6825_v38 }
 0x42b   : > { %13043 = vst [vmem:[#allocation190_spill] sm:$0xff] %v6823_v58 }
 0x431   : > { %v6831_v44 = vpop.permute.xlu2 %1943 }
 0x432   : > { %2304 = vperm.xlu2 %4838, %v2293_v6   ;;  %4844 = vset.pattern.permute.xlu1 %v5560_v18  ;;  %v2503_v6 = vperm.slane %v6771_v37, 1  ;;  %v6829_v12 = vpop.permute.xlu1 %2094  ;;  %13046 = vst [vmem:[#allocation193_spill] sm:$0xff] %v6831_v44 }
 0x433   : > { %13045 = vst [vmem:[#allocation192_spill] sm:$0xff] %v6829_v12  ;;  %v12124_v12 = vperm.slane %v13047_v62, 1 }
 0x439   : > { %v6838_v58 = vpop.permute.xlu2 %1956 }
 0x43a   : > { %4839 = vset.pattern.permute.xlu2 %v5554_v13  ;;  %2382 = vperm.xlu1 %4844, %v2371_v51   ;;  %13050 = vst [vmem:[#allocation195_spill] sm:$0xff] %v6838_v58 }
 0x441   : > { %v6843_v7 = vpop.permute.xlu2 %1975 }
 0x442   : > { %2324 = vperm.xlu2 %4839, %v2319_v2   ;;  %2395 = vperm.xlu1 %4844, %v2384_v60   ;;  %v6836_v2 = vpop.permute.xlu1 %2114 }
 0x443   : > { %13049 = vst [vmem:[#allocation194_spill] sm:$0xff] %v6836_v2 }
 0x449   : > { %v6851_v44 = vpop.permute.xlu2 %2088 }
 0x44a   : > { %4841 = vset.pattern.permute.xlu2 %v5560_v18  ;;  %2514 = vperm.xlu1 %4844, %v2503_v6   ;;  %v6840_v38 = vpop.permute.xlu1 %2133  ;;  %13053 = vst [vmem:[#allocation198_spill] sm:$0xff] %v6851_v44  ;;  %v13061_v44 = vld [vmem:[#allocation95_spill] sm:$0xff] }
 0x44b   : > { %13051 = vst [vmem:[#allocation196_spill] sm:$0xff] %v6840_v38 }
 0x451   : > { %v6857_v2 = vpop.permute.xlu2 %2107 }
 0x452   : > { %2343 = vperm.xlu2 %4841, %v13048_v53   ;;  %2527 = vperm.xlu1 %4844, %v2516_v48   ;;  %v6849_v53 = vpop.permute.xlu1 %2146 }
 0x453   : > { %13052 = vst [vmem:[#allocation197_spill] sm:$0xff] %v6849_v53  ;;  %v13060_v53 = vld [vmem:[#allocation94_spill] sm:$0xff] }
 0x459   : > { %v6860_v58 = vpop.permute.xlu2 %2127 }
 0x45a   : > { %2356 = vperm.xlu2 %4841, %v2345_v0   ;;  %4847 = vset.pattern.permute.xlu1 %v5554_v13  ;;  %v13054_v0 = vperm.slane %v5974_v54, 1  ;;  %13056 = vst [vmem:[#allocation200_spill] sm:$0xff] %v6860_v58  ;;  %v13129_v58 = vmov 0 }
 0x45c   : > { %v6855_v38 = vpop.permute.xlu1 %2166 }
 0x45d   : > { %13055 = vst [vmem:[#allocation199_spill] sm:$0xff] %v6855_v38  ;;  %v590_v38 = vsel %vm12150_vm2, %v13061_v44, %v13060_v53 }
 0x462   : > { %4843 = vset.pattern.permute.xlu2 %v5554_v13  ;;  %2547 = vperm.xlu1 %4847, %v12124_v12   ;;  %v12131_v12 = vperm.slane %v5717_v19, 1 }
 0x464   : > { %v6862_v29 = vpop.permute.xlu1 %2179 }
 0x465   : > { %13057 = vst [vmem:[#allocation201_spill] sm:$0xff] %v6862_v29 }
 0x46a   : > { %2376 = vperm.xlu2 %4843, %v2371_v51   ;;  %2560 = vperm.xlu1 %4847, %v13054_v0   ;;  %v6867_v51 = vpop.permute.xlu2 %2140 }
 0x46b   : > { %13058 = vst [vmem:[#allocation202_spill] sm:$0xff] %v6867_v51  ;;  %v599_v51 = vsel %vm12140_vm10, %v13061_v44, %v13060_v53 }
 0x46c   : > { %v6869_v0 = vpop.permute.xlu1 %2298  ;;  %v600_v29 = vrot.slane %v599_v51, 6  ;;  %v1015_v51 = vsel %vm12150_vm2, %v12922_v27, %v12921_v11 }
 0x46d   : > { %13059 = vst [vmem:[#allocation203_spill] sm:$0xff] %v6869_v0  ;;  %v1016_v10 = vrot.slane %v1015_v51, 3 }
 0x46e   : > { %vm610_vm10 = vcmp.ne.s32.totalorder %v600_v29, 0 }
 0x46f   : > { %v722_v24 = vsel %vm610_vm10, 1, %v12749_v28  ;;  %vm1028_vm3 = vcmp.ne.s32.totalorder %v1016_v10, 0  ;;  %v13092_v10 = vld [vmem:[#allocation68_spill] sm:$0xff] }
 0x470   : > { %v736_v56 = vperm.slane %v722_v24, 0 }
 0x472   : > { %2389 = vperm.xlu2 %4843, %v2384_v60   ;;  %4849 = vset.pattern.permute.xlu1 %v5560_v18  ;;  %v12138_v60 = vperm.slane %v13041_v25, 1  ;;  %v6883_v0 = vpop.permute.xlu2 %2159  ;;  %vm6949_vm13 = vcmp.eq.s32.totalorder %v736_v56, 1 }
 0x473   : > { %13062 = vst [vmem:[#allocation94_spill] sm:$0xff] %v6883_v0  ;;  %v737_v0 = vperm.slane %v722_v24, 1 }
 0x47a   : > { %2508 = vperm.xlu2 %4843, %v2503_v6   ;;  %2579 = vperm.xlu1 %4849, %v12131_v12   ;;  %v582_v6 = vsel %vm12149_vm8, %v13061_v44, %v13060_v53  ;;  %v591_v12 = vrot.slane %v590_v38, 3  ;;  %v5188_v38 = vmov 9   ;;  %v6917_v29 = vpop.permute.xlu2 %2172 }
 0x47b   : > { %vm604_vm15 = vcmp.ne.s32.totalorder %v582_v6, 0  ;;  %v13067_v6 = vmov 0  ;;  %13071 = vst [vmem:[#allocation206_spill] sm:$0xff] %v6917_v29  ;;  %v13095_v29 = vperm.slane %v13047_v62, 1 }
 0x47c   : > { %vm607_vm0 = vcmp.ne.s32.totalorder %v591_v12, 0  ;;  %v716_v22 = vsel %vm604_vm15, 1, %v12749_v28 }
 0x47d   : > { %v719_v45 = vsel %vm607_vm0, 1, %v12749_v28  ;;  %v724_v44 = vperm.slane %v716_v22, 0  ;;  %v725_v53 = vperm.slane %v716_v22, 1  ;;  %v13083_v22 = vmov 0 }
 0x47e   : > { %v730_v3 = vperm.slane %v719_v45, 0  ;;  %v13084_v22 = vsel %vm6949_vm13, 4294967295, %v13083_v22 }
 0x47f   : > { %vm6906_vm0 = vcmp.eq.s32.totalorder %v724_v44, 1  ;;  %vm6910_vm15 = vcmp.eq.s32.totalorder %v725_v53, 1  ;;  %v13072_v44 = vperm.slane %v5687_v31, 1  ;;  %13085 = vst [vmem:[#allocation211_spill] sm:$0xff] %v13084_v22 }
 0x480   : > { %v13065_v46 = vsel %vm6906_vm0, 4294967295, %v13064_v46  ;;  %v13068_v6 = vsel %vm6910_vm15, 4294967295, %v13067_v6  ;;  %vm6921_vm1 = vcmp.eq.s32.totalorder %v730_v3, 1 }
 0x481   : > { %13066 = vst [vmem:[#allocation204_spill] sm:$0xff] %v13065_v46 }
 0x482   : > { %2521 = vperm.xlu2 %4843, %v2516_v48   ;;  %2592 = vperm.xlu1 %4849, %v12138_v60   ;;  %v805_v48 = vsel %vm12150_vm2, %v6009_v5, %v5998_v61  ;;  %v6890_v60 = vpop.permute.xlu1 %2311  ;;  %13069 = vst [vmem:[#allocation205_spill] sm:$0xff] %v13068_v6  ;;  %vm13070_vm2 = vcmask 1046534   ;;  %v6986_v6 = vld [vmem:[%s5393_s13] sm:$0xff] }
 0x483   : > { %13063 = vst [vmem:[#allocation95_spill] sm:$0xff] %v6890_v60  ;;  %v806_v12 = vrot.slane %v805_v48, 3  ;;  %v731_v60 = vperm.slane %v719_v45, 1  ;;  %v811_v45 = vsel %vm13070_vm2, %v6009_v5, %v5998_v61  ;;  %v13073_v48 = vmov 0 }
 0x484   : > { %v13074_v48 = vsel %vm6921_vm1, 4294967295, %v13073_v48  ;;  %vm12187_vm15 = vcmp.eq.s32.totalorder %v6986_v6, 8 }
 0x485   : > { %vm818_vm10 = vcmp.ne.s32.totalorder %v806_v12, 0  ;;  %13075 = vst [vmem:[#allocation207_spill] sm:$0xff] %v13074_v48  ;;  %vm6933_vm2 = vcmp.eq.s32.totalorder %v731_v60, 1  ;;  %v812_v12 = vrot.slane %v811_v45, 6  ;;  %v13090_v45 = vld [vmem:[#allocation59_spill] sm:$0xff] }
 0x486   : > { %v930_v3 = vsel %vm818_vm10, 1, %v12749_v28  ;;  %vm6953_vm10 = vcmp.eq.s32.totalorder %v737_v0, 1  ;;  %v768_v56 = vsel %vm6921_vm1, %v13090_v45, 0.0  ;;  %v1021_v0 = vsel %vm13091_vm14, %v12922_v27, %v12921_v11  ;;  %13094 = vst [vmem:[#allocation59_spill] sm:$0xff] %v6986_v6 }
 0x487   : > { %v941_v60 = vperm.slane %v930_v3, 0  ;;  %v769_v24 = vsel %vm6933_vm2, %v13090_v45, 0.0  ;;  %v942_v48 = vperm.slane %v930_v3, 1  ;;  %vm821_vm12 = vcmp.ne.s32.totalorder %v812_v12, 0 }
 0x488   : > { %v13096_v12 = vmov 0 }
 0x48a   : > { %4846 = vset.pattern.permute.xlu2 %v5560_v18  ;;  %4851 = vset.pattern.permute.xlu1 %v5188_v38  ;;  %v800_v38 = vsel %vm12149_vm8, %v6009_v5, %v5998_v61  ;;  %v6925_v53 = vpop.permute.xlu1 %2330  ;;  %v13078_v61 = vmov 0 }
 0x48b   : > { %2680 = vperm.xlu1 %4851, %v13005_v47   ;;  %vm815_vm8 = vcmp.ne.s32.totalorder %v800_v38, 0  ;;  %13076 = vst [vmem:[#allocation208_spill] sm:$0xff] %v6925_v53  ;;  %v13079_v61 = vsel %vm6933_vm2, 4294967295, %v13078_v61  ;;  %v13086_v47 = vmov 0  ;;  %v1140_v38 = vsel %vm1028_vm3, 1, %v12749_v28 }
 0x48c   : > { %13080 = vst [vmem:[#allocation209_spill] sm:$0xff] %v13079_v61  ;;  %v6944_v51 = vsel %vm815_vm8, 1, %v12749_v28  ;;  %v13087_v47 = vsel %vm6953_vm10, 4294967295, %v13086_v47  ;;  %v1022_v61 = vrot.slane %v1021_v0, 6  ;;  %vm6992_vm8 = vcmp.eq.s32.totalorder %v941_v60, 1 }
 0x48d   : > { %13081 = vst [vmem:[#allocation210_spill] sm:$0xff] %v6944_v51  ;;  %v13097_v12 = vsel %vm6992_vm8, 4294967295, %v13096_v12  ;;  %v1151_v3 = vperm.slane %v1140_v38, 0  ;;  %v1152_v5 = vperm.slane %v1140_v38, 1  ;;  %v933_v51 = vsel %vm821_vm12, 1, %v12749_v28 }
 0x48e   : > { %13088 = vst [vmem:[#allocation212_spill] sm:$0xff] %v13087_v47  ;;  %vm13101_vm3 = vcmask 1043459   ;;  %v13103_v38 = vperm.slane %v6771_v37, 2  ;;  %vm7012_vm2 = vcmp.eq.s32.totalorder %v942_v48, 1  ;;  %v13104_v60 = vmov 0 }
 0x48f   : > { %13098 = vst [vmem:[#allocation68_spill] sm:$0xff] %v13097_v12  ;;  %v1225_v53 = vsel %vm13101_vm3, %v6104_v33, %v6095_v9  ;;  %v13105_v60 = vsel %vm7012_vm2, 4294967295, %v13104_v60  ;;  %vm13107_vm12 = vcmask 1046528   ;;  %vm13108_vm3 = vcmp.eq.s32.totalorder %v6986_v6, 6 }
 0x490   : > { %13106 = vst [vmem:[#allocation216_spill] sm:$0xff] %v13105_v60  ;;  %vm1031_vm14 = vcmp.ne.s32.totalorder %v1022_v61, 0  ;;  %vm13110_vm6 = vmmov %vm13107_vm12  ;;  %v947_v32 = vperm.slane %v933_v51, 0  ;;  %v948_v26 = vperm.slane %v933_v51, 1  ;;  %v1226_v36 = vrot.slane %v1225_v53, 3 }
 0x491   : > { %v1143_v53 = vsel %vm1031_vm14, 1, %v12749_v28  ;;  %vm7066_vm14 = vcmp.eq.s32.totalorder %v1152_v5, 1  ;;  %v13138_v60 = vmov 0 }
 0x492   : > { %2540 = vperm.xlu2 %4846, %v13072_v44   ;;  %v6958_v44 = vld [vmem:[%s5393_s13 + $0x8] sm:$0xff]  ;;  %v13122_v35 = vsel %vm7066_vm14, 4294967295, %v13121_v35  ;;  %v1157_v5 = vperm.slane %v1143_v53, 0 }
 0x493   : > { %4853 = vset.pattern.permute.xlu1 %v5560_v18  ;;  %13089 = vst [vmem:[#allocation213_spill] sm:$0xff] %v6958_v44  ;;  %vm13093_vm1 = vcmp.eq.s32.totalorder %v6958_v44, 6 }
 0x494   : > { %v1848_v46 = vsel %vm13093_vm1, 1, %v12749_v28  ;;  %vm13099_vm1 = vcmp.eq.s32.totalorder %v6958_v44, 7  ;;  %v6999_v0 = vpop.permute.xlu1 %2350  ;;  %13123 = vst [vmem:[#allocation220_spill] sm:$0xff] %v13122_v35 }
 0x495   : > { %v2058_v45 = vsel %vm13099_vm1, 1, %v12749_v28  ;;  %13100 = vst [vmem:[#allocation214_spill] sm:$0xff] %v6999_v0  ;;  %v7005_v15 = vrot.slane %v1848_v46, 7  ;;  %v1653_v0 = vsel %vm13107_vm12, %v6330_v17, %v6336_v42  ;;  %v7022_v46 = vsel %vm13108_vm3, 1, %v12749_v28 }
 0x496   : > { %vm13109_vm1 = vcmp.eq.s32.totalorder %v6958_v44, 8  ;;  %vm13111_vm12 = vcmp.eq.s32.totalorder %v6986_v6, 7  ;;  %vm13112_vm3 = vcmask 1040384   ;;  %v1654_v40 = vrot.slane %v1653_v0, 7 }
 0x497   : > { %v1863_v48 = vsel %vm13110_vm6, %v7005_v15, %v7022_v46  ;;  %v7036_v1 = vsel %vm13111_vm12, 1, %v12749_v28  ;;  %v1010_v61 = vsel %vm13112_vm3, %v12922_v27, %v12921_v11  ;;  %v7055_v27 = vsel %vm12187_vm15, 1, %v12749_v28  ;;  %v13117_v11 = vld [vmem:[#allocation60_spill] sm:$0xff]  ;;  %vm13124_vm3 = vmmov %vm13110_vm6 }
 0x498   : > { %v1864_v39 = vrot.slane %v1863_v48, 7  ;;  %13116 = vst [vmem:[#allocation219_spill] sm:$0xff] %v7055_v27  ;;  %v7060_v0 = vsel %vm6992_vm8, %v13117_v11, %v768_v56  ;;  %vm7062_vm12 = vcmp.eq.s32.totalorder %v1151_v3, 1  ;;  %v7077_v12 = vsel %vm7012_vm2, %v13117_v11, %v769_v24  ;;  %v13132_v24 = vld [vmem:[#allocation39_spill] sm:$0xff] }
 0x499   : > { %vm7079_vm15 = vcmp.eq.s32.totalorder %v947_v32, 1  ;;  %v13125_v3 = vmov 0  ;;  %vm1662_vm8 = vcmp.ne.s32.totalorder %v1654_v40, 0  ;;  %v13134_v40 = vsel %vm6949_vm13, %v13092_v10, 0.0 }
 0x49a   : > { %2553 = vperm.xlu2 %4846, %v13095_v29   ;;  %v7008_v29 = vpop.permute.xlu2 %2260  ;;  %v13126_v3 = vsel %vm7079_vm15, 4294967295, %v13125_v3  ;;  %vm1872_vm2 = vcmp.ne.s32.totalorder %v1864_v39, 0  ;;  %vm13171_vm13 = vcmask 1041409  }
 0x49b   : > { %13102 = vst [vmem:[#allocation215_spill] sm:$0xff] %v7008_v29  ;;  %2724 = vperm.xlu1 %4853, %v13103_v38   ;;  %v2268_v29 = vsel %vm13109_vm1, 1, %v12749_v28  ;;  %v7030_v38 = vrot.slane %v2058_v45, 7  ;;  %vm13115_vm1 = vcmask 1046534  }
 0x49c   : > { %v7046_v30 = vrot.slane %v2268_v29, 7  ;;  %v1231_v51 = vsel %vm13115_vm1, %v6104_v33, %v6095_v9  ;;  %v13118_v29 = vmov 0  ;;  %vm1238_vm1 = vcmp.ne.s32.totalorder %v1226_v36, 0  ;;  %13127 = vst [vmem:[#allocation221_spill] sm:$0xff] %v13126_v3  ;;  %v7094_v32 = vpop.permute.xlu1 %2363 }
 0x49d   : > { %v2073_v45 = vsel %vm13110_vm6, %v7030_v38, %v7036_v1  ;;  %v13119_v29 = vsel %vm7062_vm12, 4294967295, %v13118_v29  ;;  %vm1025_vm6 = vcmp.ne.s32.totalorder %v1010_v61, 0  ;;  %v1232_v52 = vrot.slane %v1231_v51, 6  ;;  %13133 = vst [vmem:[#allocation39_spill] sm:$0xff] %v7094_v32 }
 0x49e   : > { %13114 = vst [vmem:[#allocation218_spill] sm:$0xff] %v7046_v30  ;;  %v2283_v48 = vsel %vm13124_vm3, %v7046_v30, %v7055_v27  ;;  %v2074_v56 = vrot.slane %v2073_v45, 7  ;;  %vm7086_vm3 = vcmp.eq.s32.totalorder %v948_v26, 1  ;;  %v13135_v45 = vld [vmem:[#allocation70_spill] sm:$0xff]  ;;  %v7106_v51 = vsel %vm1025_vm6, 1, %v12749_v28 }
 0x49f   : > { %13120 = vst [vmem:[#allocation60_spill] sm:$0xff] %v13119_v29  ;;  %v13130_v58 = vsel %vm7086_vm3, 4294967295, %v13129_v58  ;;  %v2284_v61 = vrot.slane %v2283_v48, 7  ;;  %v7103_v26 = vsel %vm7079_vm15, %v13135_v45, %v13134_v40  ;;  %v1350_v11 = vsel %vm1238_vm1, 1, %v12749_v28 }
 0x4a0   : > { %13131 = vst [vmem:[#allocation223_spill] sm:$0xff] %v13130_v58  ;;  %v13137_v48 = vsel %vm6953_vm10, %v13092_v10, 0.0  ;;  %v1158_v40 = vperm.slane %v1143_v53, 1  ;;  %v1774_v32 = vsel %vm1662_vm8, 1, %v12749_v28  ;;  %vm2082_vm6 = vcmp.ne.s32.totalorder %v2074_v56, 0  ;;  %v13148_v58 = vld [vmem:[#allocation114_spill] sm:$0xff] }
 0x4a1   : > { %13136 = vst [vmem:[#allocation70_spill] sm:$0xff] %v7106_v51  ;;  %v7120_v36 = vsel %vm7086_vm3, %v13135_v45, %v13137_v48  ;;  %vm7123_vm15 = vcmp.eq.s32.totalorder %v1157_v5, 1  ;;  %vm13140_vm1 = vcmask 1040384   ;;  %vm1241_vm0 = vcmp.ne.s32.totalorder %v1232_v52, 0  ;;  %v7143_v45 = vpop.permute.xlu0 %2120 }
 0x4a2   : > { %4848 = vset.pattern.permute.xlu2 %v5554_v13  ;;  %v7083_v37 = vpop.permute.xlu2 %2304  ;;  %v13139_v60 = vsel %vm7123_vm15, 4294967295, %v13138_v60  ;;  %v7130_v39 = vsel %vm13140_vm1, %v6104_v33, %v6095_v9  ;;  %v1984_v10 = vsel %vm1872_vm2, 1, %v12749_v28  ;;  %vm13142_vm3 = vcmask 1043459   ;;  %13146 = vst [vmem:[#allocation225_spill] sm:$0xff] %v7143_v45 }
 0x4a3   : > { %13128 = vst [vmem:[#allocation222_spill] sm:$0xff] %v7083_v37  ;;  %4855 = vset.pattern.permute.xlu1 %v5554_v13  ;;  %v1361_v37 = vperm.slane %v1350_v11, 0  ;;  %v1435_v53 = vsel %vm13142_vm3, %v6177_v23, %v6169_v4  ;;  %vm13143_vm8 = vmmov %vm13142_vm3  ;;  %vm7139_vm10 = vcmp.ne.s32.totalorder %v2284_v61, 0  ;;  %v1789_v9 = vperm.slane %v1774_v32, 0 }
 0x4a4   : > { %13141 = vst [vmem:[#allocation224_spill] sm:$0xff] %v7130_v39  ;;  %v1645_v56 = vsel %vm13143_vm8, %v6336_v42, %v6330_v17  ;;  %v1790_v33 = vperm.slane %v1774_v32, 1  ;;  %v2194_v52 = vsel %vm2082_vm6, 1, %v12749_v28  ;;  %v13147_v48 = vperm.slane %v5717_v19, 1 }
 0x4a5   : > { %vm12219_vm2 = vcmp.eq.s32.totalorder %v6958_v44, 9  ;;  %v1362_v61 = vperm.slane %v1350_v11, 1  ;;  %v7154_v47 = vsel %vm1241_vm0, 1, %v12749_v28  ;;  %v1999_v22 = vperm.slane %v1984_v10, 0 }
 0x4a6   : > { %v1436_v39 = vrot.slane %v1435_v53, 3  ;;  %vm13149_vm3 = vcmask 1041409   ;;  %v2000_v51 = vperm.slane %v1984_v10, 1  ;;  %v2404_v3 = vsel %vm7139_vm10, 1, %v12749_v28 }
 0x4a7   : > { %v1851_v32 = vsel %vm13149_vm3, %v7022_v46, %v7005_v15  ;;  %vm7166_vm6 = vcmp.eq.s32.totalorder %v1361_v37, 1  ;;  %v13152_v11 = vmov 0  ;;  %v1646_v45 = vrot.slane %v1645_v56, 3  ;;  %vm13155_vm0 = vmmov %vm13149_vm3 }
 0x4a8   : > { %v13153_v11 = vsel %vm7166_vm6, 4294967295, %v13152_v11  ;;  %v2061_v53 = vsel %vm13155_vm0, %v7036_v1, %v7030_v38  ;;  %v2209_v55 = vperm.slane %v2194_v52, 0  ;;  %vm7178_vm1 = vcmp.eq.s32.totalorder %v1158_v40, 1 }
 0x4a9   : > { %13154 = vst [vmem:[#allocation226_spill] sm:$0xff] %v13153_v11  ;;  %vm7182_vm10 = vcmp.eq.s32.totalorder %v1789_v9, 1  ;;  %v13159_v37 = vmov 0  ;;  %vm7186_vm8 = vcmp.eq.s32.totalorder %v1790_v33, 1  ;;  %v13162_v56 = vmov 0 }
 0x4aa   : > { %2573 = vperm.xlu2 %4848, %v13147_v48   ;;  %v7159_v19 = vpop.permute.xlu2 %2324  ;;  %v13151_v48 = vperm.slane %v5687_v31, 2  ;;  %v13160_v37 = vsel %vm7182_vm10, 4294967295, %v13159_v37  ;;  %v13163_v56 = vsel %vm7186_vm8, 4294967295, %v13162_v56  ;;  %v2210_v5 = vperm.slane %v2194_v52, 1 }
 0x4ab   : > { %13150 = vst [vmem:[#allocation114_spill] sm:$0xff] %v7159_v19  ;;  %v13157_v19 = vmov 0  ;;  %vm12226_vm3 = vcmp.eq.s32.totalorder %v6986_v6, 9  ;;  %v1852_v31 = vrot.slane %v1851_v32, 1  ;;  %vm7191_vm0 = vcmp.eq.s32.totalorder %v1999_v22, 1 }
 0x4ac   : > { %2744 = vperm.xlu1 %4855, %v13151_v48   ;;  %v7173_v10 = vpop.permute.xlu1 %2382  ;;  %v2478_v48 = vsel %vm12219_vm2, 1, %v12749_v28  ;;  %v13158_v19 = vsel %vm7178_vm1, 4294967295, %v13157_v19  ;;  %13161 = vst [vmem:[#allocation228_spill] sm:$0xff] %v13160_v37  ;;  %v2419_v40 = vperm.slane %v2404_v3, 0  ;;  %v2420_v44 = vperm.slane %v2404_v3, 1 }
 0x4ad   : > { %13156 = vst [vmem:[#allocation227_spill] sm:$0xff] %v7173_v10  ;;  %v13165_v10 = vmov 0  ;;  %vm7195_vm2 = vcmp.eq.s32.totalorder %v2000_v51, 1  ;;  %v13168_v13 = vmov 0  ;;  %v2062_v9 = vrot.slane %v2061_v53, 1 }
 0x4ae   : > { %13164 = vst [vmem:[#allocation229_spill] sm:$0xff] %v13163_v56  ;;  %v13166_v10 = vsel %vm7191_vm0, 4294967295, %v13165_v10  ;;  %v13169_v13 = vsel %vm7195_vm2, 4294967295, %v13168_v13  ;;  %v2271_v33 = vsel %vm13171_vm13, %v7055_v27, %v7046_v30  ;;  %v7202_v16 = vrot.slane %v2478_v48, 7 }
 0x4af   : > { %13167 = vst [vmem:[#allocation230_spill] sm:$0xff] %v13166_v10  ;;  %v13172_v22 = vsel %vm6451_vm5, %v6483_v59, %v6476_v43  ;;  %v13173_v51 = vsel %vm6455_vm4, %v6483_v59, %v6481_v41  ;;  %vm7220_vm13 = vcmp.eq.s32.totalorder %v2209_v55, 1  ;;  %v13174_v32 = vmov 0 }
 0x4b0   : > { %13170 = vst [vmem:[#allocation231_spill] sm:$0xff] %v13169_v13  ;;  %v1837_v3 = vsel %vm7182_vm10, %v6778_v21, %v13172_v22  ;;  %v1838_v52 = vsel %vm7186_vm8, %v6778_v21, %v13173_v51  ;;  %v13175_v32 = vsel %vm7220_vm13, 4294967295, %v13174_v32  ;;  %v7227_v43 = vsel %vm12226_vm3, 1, %v12749_v28 }
 0x4b1   : > { %13176 = vst [vmem:[#allocation232_spill] sm:$0xff] %v13175_v32  ;;  %v2047_v53 = vsel %vm7191_vm0, %v6843_v7, %v1837_v3  ;;  %v2048_v41 = vsel %vm7195_vm2, %v6843_v7, %v1838_v52  ;;  %vm7235_vm10 = vcmp.eq.s32.totalorder %v2210_v5, 1  ;;  %v13177_v59 = vmov 0 }
 0x4b2   : > { %v13178_v59 = vsel %vm7235_vm10, 4294967295, %v13177_v59  ;;  %v13180_v21 = vperm.slane %v13041_v25, 1  ;;  %vm13181_vm8 = vcmask 1041409   ;;  %v1367_v48 = vperm.slane %v7154_v47, 0 }
 0x4b3   : > { %13179 = vst [vmem:[#allocation233_spill] sm:$0xff] %v13178_v59  ;;  %v2481_v55 = vsel %vm13181_vm8, %v7227_v43, %v7202_v16  ;;  %v2272_v22 = vrot.slane %v2271_v33, 1  ;;  %vm7245_vm3 = vcmp.eq.s32.totalorder %v2419_v40, 1  ;;  %v13182_v3 = vmov 0  ;;  %v7262_v40 = vpop.permute.xlu2 %2343 }
 0x4b4   : > { %2586 = vperm.xlu2 %4848, %v13180_v21   ;;  %v13183_v3 = vsel %vm7245_vm3, 4294967295, %v13182_v3  ;;  %vm7249_vm0 = vcmp.eq.s32.totalorder %v2420_v44, 1  ;;  %v13185_v7 = vmov 0  ;;  %vm7253_vm2 = vcmp.eq.s32.totalorder %v1362_v61, 1  ;;  %v2186_v21 = vpop.permute.xlu0 %2185  ;;  %13193 = vst [vmem:[#allocation237_spill] sm:$0xff] %v7262_v40  ;;  %4857 = vset.pattern.permute.xlu1 %v5560_v18  ;;  %v7269_v61 = vpop.permute.xlu1 %2395 }
 0x4b5   : > { %13184 = vst [vmem:[#allocation234_spill] sm:$0xff] %v13183_v3  ;;  %v13186_v7 = vsel %vm7249_vm0, 4294967295, %v13185_v7  ;;  %v13188_v5 = vmov 0  ;;  %v1368_v51 = vperm.slane %v7154_v47, 1  ;;  %vm7258_vm4 = vcmp.ne.s32.totalorder %v1436_v39, 0 }
 0x4b6   : > { %13187 = vst [vmem:[#allocation235_spill] sm:$0xff] %v13186_v7  ;;  %v13189_v5 = vsel %vm7253_vm2, 4294967295, %v13188_v5  ;;  %vm1866_vm8 = vcmp.ne.s32.totalorder %v1852_v31, 0  ;;  %vm7265_vm5 = vcmp.ne.s32.totalorder %v1646_v45, 0  ;;  %v7273_v33 = vsel %vm7220_vm13, %v2186_v21, %v2047_v53 }
 0x4b7   : > { %13190 = vst [vmem:[#allocation236_spill] sm:$0xff] %v13189_v5  ;;  %v7277_v47 = vsel %vm7235_vm10, %v2186_v21, %v2048_v41  ;;  %v2482_v39 = vrot.slane %v2481_v55, 1  ;;  %v1441_v31 = vsel %vm13199_vm11, %v6177_v23, %v6169_v4  ;;  %vm2076_vm9 = vcmp.ne.s32.totalorder %v2062_v9, 0 }
 0x4b8   : > { %13196 = vst [vmem:[#allocation238_spill] sm:$0xff] %v7269_v61  ;;  %v1204_v41 = vsel %vm7178_vm1, %v13148_v58, %v7120_v36  ;;  %vm7294_vm10 = vcmp.eq.s32.totalorder %v1367_v48, 1  ;;  %v13200_v55 = vmov 0  ;;  %v1978_v9 = vsel %vm1866_vm8, 1, %v12749_v28 }
 0x4b9   : > { %13197 = vst [vmem:[#allocation239_spill] sm:$0xff] %v7273_v33  ;;  %v13201_v55 = vsel %vm7294_vm10, 4294967295, %v13200_v55  ;;  %vm2286_vm11 = vcmp.ne.s32.totalorder %v2272_v22, 0  ;;  %v13202_v21 = vsel %vm7062_vm12, %v13132_v24, %v7060_v0  ;;  %v13203_v36 = vsel %vm7066_vm14, %v13132_v24, %v7077_v12 }
 0x4ba   : > { %13198 = vst [vmem:[#allocation240_spill] sm:$0xff] %v7277_v47  ;;  %v7307_v53 = vsel %vm7166_vm6, %v6564_v49, %v13202_v21  ;;  %v7317_v48 = vsel %vm7253_vm2, %v6564_v49, %v13203_v36  ;;  %vm7319_vm8 = vcmp.eq.s32.totalorder %v1368_v51, 1  ;;  %v13204_v22 = vmov 0 }
 0x4bb   : > { %v13205_v22 = vsel %vm7319_vm8, 4294967295, %v13204_v22  ;;  %v1560_v0 = vsel %vm7258_vm4, 1, %v12749_v28  ;;  %v1442_v21 = vrot.slane %v1441_v31, 6  ;;  %v7329_v45 = vsel %vm7265_vm5, 1, %v12749_v28  ;;  %v7374_v8 = vpop.permute.xlu2 %2356 }
 0x4bc   : > { %v2188_v12 = vsel %vm2076_vm9, 1, %v12749_v28  ;;  %vm2496_vm13 = vcmp.ne.s32.totalorder %v2482_v39, 0  ;;  %v1987_v24 = vperm.slane %v1978_v9, 0  ;;  %v1988_v49 = vperm.slane %v1978_v9, 1  ;;  %4850 = vset.pattern.permute.xlu2 %v5560_v18  ;;  %13218 = vst [vmem:[#allocation243_spill] sm:$0xff] %v7374_v8 }
 0x4bd   : > { %vm13206_vm0 = vcmask 1043459   ;;  %v2398_v36 = vsel %vm2286_vm11, 1, %v12749_v28  ;;  %v13207_v52 = vsel %vm7123_vm15, %v13148_v58, %v7103_v26  ;;  %v7350_v39 = vsel %vm7319_vm8, %v6709_v34, %v1204_v41  ;;  %v7360_v41 = vpop.permute.xlu1 %2514 }
 0x4be   : > { %v1855_v51 = vsel %vm13206_vm0, %v7022_v46, %v7005_v15  ;;  %v7345_v44 = vsel %vm7294_vm10, %v6709_v34, %v13207_v52  ;;  %v1571_v31 = vperm.slane %v1560_v0, 0  ;;  %v1572_v9 = vperm.slane %v1560_v0, 1 }
 0x4bf   : > { %vm13208_vm4 = vcmask 1042434   ;;  %v2197_v32 = vperm.slane %v2188_v12, 0  ;;  %v2198_v13 = vperm.slane %v2188_v12, 1  ;;  %v13209_v58 = vperm.slane %v13047_v62, 2 }
 0x4c0   : > { %v1643_v59 = vsel %vm13208_vm4, %v6336_v42, %v6330_v17  ;;  %v2608_v26 = vsel %vm2496_vm13, 1, %v12749_v28  ;;  %v1781_v52 = vperm.slane %v7329_v45, 0  ;;  %v1782_v10 = vperm.slane %v7329_v45, 1  ;;  %vm13219_vm13 = vmmov %vm13208_vm4 }
 0x4c1   : > { %2763 = vperm.xlu1 %4857, %v13209_v58   ;;  %v1856_v56 = vrot.slane %v1855_v51, 3  ;;  %v2407_v34 = vperm.slane %v2398_v36, 0  ;;  %vm7362_vm5 = vcmp.ne.s32.totalorder %v1442_v21, 0  ;;  %vm7366_vm9 = vcmp.eq.s32.totalorder %v1987_v24, 1 }
 0x4c2   : > { %v13212_v37 = vmov 0  ;;  %vm7370_vm0 = vcmp.eq.s32.totalorder %v1988_v49, 1  ;;  %v13215_v12 = vmov 0  ;;  %v2408_v58 = vperm.slane %v2398_v36, 1  ;;  %v13258_v36 = vld [vmem:[#allocation151_spill] sm:$0xff] }
 0x4c3   : > { %v13213_v37 = vsel %vm7366_vm9, 4294967295, %v13212_v37  ;;  %v13216_v12 = vsel %vm7370_vm0, 4294967295, %v13215_v12  ;;  %v1644_v45 = vrot.slane %v1643_v59, 2  ;;  %v1853_v51 = vsel %vm13219_vm13, %v7022_v46, %v7005_v15 }
 0x4c4   : > { %13214 = vst [vmem:[#allocation241_spill] sm:$0xff] %v13213_v37  ;;  %v2617_v21 = vperm.slane %v2608_v26, 0  ;;  %v2618_v50 = vperm.slane %v2608_v26, 1  ;;  %vm7379_vm11 = vcmp.eq.s32.totalorder %v2197_v32, 1  ;;  %v13220_v40 = vmov 0 }
 0x4c5   : > { %13217 = vst [vmem:[#allocation242_spill] sm:$0xff] %v13216_v12  ;;  %v13221_v40 = vsel %vm7379_vm11, 4294967295, %v13220_v40  ;;  %vm7383_vm4 = vcmp.eq.s32.totalorder %v2198_v13, 1  ;;  %v13223_v24 = vmov 0  ;;  %vm13226_vm3 = vcmask 1043459  }
 0x4c6   : > { %13222 = vst [vmem:[#allocation244_spill] sm:$0xff] %v13221_v40  ;;  %v13224_v24 = vsel %vm7383_vm4, 4294967295, %v13223_v24  ;;  %v2065_v49 = vsel %vm13226_vm3, %v7036_v1, %v7030_v38  ;;  %vm13227_vm2 = vmmov %vm13226_vm3  ;;  %v2023_v32 = vsel %vm7366_vm9, %v6795_v20, %v6568_v57  ;;  %v2024_v13 = vsel %vm7370_vm0, %v6795_v20, %v6572_v63 }
 0x4c7   : > { %13225 = vst [vmem:[#allocation245_spill] sm:$0xff] %v13224_v24  ;;  %v2275_v59 = vsel %vm13227_vm2, %v7055_v27, %v7046_v30  ;;  %vm7401_vm13 = vcmp.ne.s32.totalorder %v1856_v56, 0  ;;  %vm7405_vm6 = vcmp.eq.s32.totalorder %v2407_v34, 1  ;;  %v13230_v26 = vmov 0 }
 0x4c8   : > { %v13231_v26 = vsel %vm7405_vm6, 4294967295, %v13230_v26  ;;  %v2233_v8 = vsel %vm7379_vm11, %v6857_v2, %v2023_v32  ;;  %v2234_v57 = vsel %vm7383_vm4, %v6857_v2, %v2024_v13  ;;  %vm7415_vm2 = vcmp.eq.s32.totalorder %v2408_v58, 1  ;;  %v2318_v13 = vpop.permute.xlu0 %2317 }
 0x4c9   : > { %13232 = vst [vmem:[#allocation246_spill] sm:$0xff] %v13231_v26  ;;  %v13233_v37 = vmov 0  ;;  %v13236_v63 = vperm.slane %v12919_v14, 1  ;;  %v2485_v20 = vsel %vm13226_vm3, %v7227_v43, %v7202_v16  ;;  %v2066_v56 = vrot.slane %v2065_v49, 3 }
 0x4ca   : > { %v13234_v37 = vsel %vm7415_vm2, 4294967295, %v13233_v37  ;;  %v2276_v34 = vrot.slane %v2275_v59, 3  ;;  %vm7424_vm0 = vcmp.eq.s32.totalorder %v2617_v21, 1  ;;  %v13237_v40 = vmov 0  ;;  %v2528_v59 = vpop.permute.xlu1 %2527 }
 0x4cb   : > { %13235 = vst [vmem:[#allocation247_spill] sm:$0xff] %v13234_v37  ;;  %2605 = vperm.xlu2 %4850, %v13236_v63   ;;  %v13238_v40 = vsel %vm7424_vm0, 4294967295, %v13237_v40  ;;  %vm7428_vm11 = vcmp.eq.s32.totalorder %v2618_v50, 1  ;;  %v13240_v32 = vmov 0  ;;  %vm7432_vm4 = vcmp.eq.s32.totalorder %v1571_v31, 1 }
 0x4cc   : > { %13239 = vst [vmem:[#allocation248_spill] sm:$0xff] %v13238_v40  ;;  %v13241_v32 = vsel %vm7428_vm11, 4294967295, %v13240_v32  ;;  %v13243_v2 = vmov 0  ;;  %vm7436_vm9 = vcmp.eq.s32.totalorder %v1572_v9, 1  ;;  %v13246_v58 = vmov 0 }
 0x4cd   : > { %13242 = vst [vmem:[#allocation249_spill] sm:$0xff] %v13241_v32  ;;  %v13244_v2 = vsel %vm7432_vm4, 4294967295, %v13243_v2  ;;  %v13247_v58 = vsel %vm7436_vm9, 4294967295, %v13246_v58  ;;  %vm1657_vm3 = vcmp.ne.s32.totalorder %v1644_v45, 0  ;;  %v1854_v49 = vrot.slane %v1853_v51, 2  ;;  %v7458_v51 = vpop.permute.xlu2 %2376  ;;  %v13260_v32 = vld [vmem:[#allocation19_spill] sm:$0xff] }
 0x4ce   : > { %13245 = vst [vmem:[#allocation250_spill] sm:$0xff] %v13244_v2  ;;  %v13249_v21 = vperm.slane %v5974_v54, 2  ;;  %v7445_v50 = vsel %vm7362_vm5, 1, %v12749_v28  ;;  %v2443_v31 = vsel %vm7405_vm6, %v2318_v13, %v2233_v8  ;;  %v2444_v9 = vsel %vm7415_vm2, %v2318_v13, %v2234_v57 }
 0x4cf   : > { %13248 = vst [vmem:[#allocation251_spill] sm:$0xff] %v13247_v58  ;;  %v2486_v63 = vrot.slane %v2485_v20, 3  ;;  %vm7451_vm14 = vcmp.eq.s32.totalorder %v1781_v52, 1  ;;  %v13250_v24 = vmov 0  ;;  %v1980_v45 = vsel %vm7401_vm13, 1, %v12749_v28 }
 0x4d0   : > { %2776 = vperm.xlu1 %4857, %v13249_v21   ;;  %v13251_v24 = vsel %vm7451_vm14, 4294967295, %v13250_v24  ;;  %v7462_v0 = vsel %vm7424_vm0, %v2528_v59, %v2443_v31  ;;  %v7466_v8 = vsel %vm7428_vm11, %v2528_v59, %v2444_v9  ;;  %v1769_v57 = vsel %vm1657_vm3, 1, %v12749_v28 }
 0x4d1   : > { %13252 = vst [vmem:[#allocation252_spill] sm:$0xff] %v13251_v24  ;;  %vm7469_vm5 = vcmp.eq.s32.totalorder %v1782_v10, 1  ;;  %v13255_v52 = vmov 0  ;;  %vm2078_vm2 = vcmp.ne.s32.totalorder %v2066_v56, 0  ;;  %vm2288_vm6 = vcmp.ne.s32.totalorder %v2276_v34, 0 }
 0x4d2   : > { %13253 = vst [vmem:[#allocation253_spill] sm:$0xff] %v7462_v0  ;;  %v13256_v52 = vsel %vm7469_vm5, 4294967295, %v13255_v52  ;;  %v1609_v20 = vsel %vm7432_vm4, %v13258_v36, %v7307_v53  ;;  %v1610_v13 = vsel %vm7436_vm9, %v13258_v36, %v7317_v48  ;;  %vm1867_vm13 = vcmp.ne.s32.totalorder %v1854_v49, 0  ;;  %v13261_v36 = vld [vmem:[#allocation46_spill] sm:$0xff] }
 0x4d3   : > { %13254 = vst [vmem:[#allocation254_spill] sm:$0xff] %v7466_v8  ;;  %v1991_v59 = vperm.slane %v1980_v45, 0  ;;  %vm13259_vm3 = vcmask 1042434   ;;  %vm2498_vm11 = vcmp.ne.s32.totalorder %v2486_v63, 0  ;;  %v1779_v34 = vperm.slane %v1769_v57, 0  ;;  %4852 = vset.pattern.permute.xlu2 %v13260_v32 }
 0x4d4   : > { %13257 = vst [vmem:[#allocation255_spill] sm:$0xff] %v13256_v52  ;;  %v2063_v56 = vsel %vm13259_vm3, %v7036_v1, %v7030_v38  ;;  %v1992_v31 = vperm.slane %v1980_v45, 1  ;;  %v2190_v53 = vsel %vm2078_vm2, 1, %v12749_v28  ;;  %v2400_v9 = vsel %vm2288_vm6, 1, %v12749_v28 }
 0x4d5   : > { %v1780_v48 = vperm.slane %v1769_v57, 1  ;;  %v1819_v49 = vsel %vm7451_vm14, %v13261_v36, %v1609_v20  ;;  %v1820_v10 = vsel %vm7469_vm5, %v13261_v36, %v1610_v13  ;;  %v7496_v21 = vsel %vm1867_vm13, 1, %v12749_v28 }
 0x4d6   : > { %vm13262_vm3 = vcmask 1046534   ;;  %vm13263_vm6 = vcmask 1045509   ;;  %v2064_v57 = vrot.slane %v2063_v56, 2  ;;  %v2610_v20 = vsel %vm2498_vm11, 1, %v12749_v28 }
 0x4d7   : > { %v1651_v63 = vsel %vm13262_vm3, %v6336_v42, %v6330_v17  ;;  %v1859_v45 = vsel %vm13263_vm6, %v7022_v46, %v7005_v15  ;;  %vm7506_vm2 = vcmp.eq.s32.totalorder %v1991_v59, 1  ;;  %v13264_v40 = vmov 0 }
 0x4d8   : > { %4859 = vset.pattern.permute.xlu1 %v13260_v32  ;;  %v13265_v40 = vsel %vm7506_vm2, 4294967295, %v13264_v40  ;;  %v2201_v13 = vperm.slane %v2190_v53, 0  ;;  %v2202_v36 = vperm.slane %v2190_v53, 1  ;;  %v2411_v37 = vperm.slane %v2400_v9, 0  ;;  %v13276_v53 = vld [vmem:[#allocation182_spill] sm:$0xff] }
 0x4d9   : > { %13266 = vst [vmem:[#allocation151_spill] sm:$0xff] %v13265_v40  ;;  %vm7510_vm13 = vcmp.eq.s32.totalorder %v1779_v34, 1  ;;  %v13267_v26 = vmov 0  ;;  %vm7514_vm3 = vcmp.eq.s32.totalorder %v1992_v31, 1  ;;  %v13270_v12 = vmov 0 }
 0x4da   : > { %v13268_v26 = vsel %vm7510_vm13, 4294967295, %v13267_v26  ;;  %v13271_v12 = vsel %vm7514_vm3, 4294967295, %v13270_v12  ;;  %v1989_v56 = vperm.slane %v7496_v21, 0  ;;  %v2412_v8 = vperm.slane %v2400_v9, 1 }
 0x4db   : > { %13269 = vst [vmem:[#allocation19_spill] sm:$0xff] %v13268_v26  ;;  %v1652_v0 = vrot.slane %v1651_v63, 6  ;;  %v1860_v52 = vrot.slane %v1859_v45, 5  ;;  %v2621_v59 = vperm.slane %v2610_v20, 0  ;;  %v2622_v24 = vperm.slane %v2610_v20, 1  ;;  %v13291_v20 = vld [vmem:[#allocation200_spill] sm:$0xff] }
 0x4dc   : > { %13272 = vst [vmem:[#allocation46_spill] sm:$0xff] %v13271_v12  ;;  %vm7519_vm11 = vcmp.eq.s32.totalorder %v1780_v48, 1  ;;  %v13273_v58 = vmov 0  ;;  %v2029_v34 = vsel %vm7506_vm2, %v13276_v53, %v1819_v49  ;;  %vm13277_vm6 = vcmask 1046534   ;;  %v7536_v48 = vpop.permute.xlu2 %2389  ;;  %v13297_v12 = vld [vmem:[#allocation213_spill] sm:$0xff] }
 0x4dd   : > { %v13274_v58 = vsel %vm7519_vm11, 4294967295, %v13273_v58  ;;  %v1861_v31 = vsel %vm13277_vm6, %v7022_v46, %v7005_v15  ;;  %vm7529_vm0 = vcmp.ne.s32.totalorder %v2064_v57, 0  ;;  %vm13280_vm5 = vcmask 1045509   ;;  %13281 = vst [vmem:[#allocation182_spill] sm:$0xff] %v7536_v48 }
 0x4de   : > { %13275 = vst [vmem:[#allocation256_spill] sm:$0xff] %v13274_v58  ;;  %v2069_v9 = vsel %vm13280_vm5, %v7036_v1, %v7030_v38  ;;  %v2030_v63 = vsel %vm7514_vm3, %v13276_v53, %v1820_v10  ;;  %vm7541_vm14 = vcmp.eq.s32.totalorder %v2201_v13, 1  ;;  %v13282_v49 = vmov 0 }
 0x4df   : > { %v13283_v49 = vsel %vm7541_vm14, 4294967295, %v13282_v49  ;;  %vm7545_vm2 = vcmp.eq.s32.totalorder %v2202_v36, 1  ;;  %v13285_v45 = vmov 0  ;;  %vm7549_vm6 = vcmp.eq.s32.totalorder %v2411_v37, 1  ;;  %v13295_v36 = vld [vmem:[#allocation16_spill] sm:$0xff] }
 0x4e0   : > { %13284 = vst [vmem:[#allocation257_spill] sm:$0xff] %v13283_v49  ;;  %v13286_v45 = vsel %vm7545_vm2, 4294967295, %v13285_v45  ;;  %v13288_v57 = vmov 0  ;;  %v2239_v48 = vsel %vm7541_vm14, %v13291_v20, %v2029_v34  ;;  %v2240_v10 = vsel %vm7545_vm2, %v13291_v20, %v2030_v63  ;;  %v13330_v49 = vld [vmem:[#allocation136_spill] sm:$0xff] }
 0x4e1   : > { %13287 = vst [vmem:[#allocation258_spill] sm:$0xff] %v13286_v45  ;;  %v13289_v57 = vsel %vm7549_vm6, 4294967295, %v13288_v57  ;;  %vm7559_vm5 = vcmp.eq.s32.totalorder %v2412_v8, 1  ;;  %v13292_v13 = vmov 0  ;;  %v13296_v53 = vperm.slane %v13295_v36, 2 }
 0x4e2   : > { %13290 = vst [vmem:[#allocation259_spill] sm:$0xff] %v13289_v57  ;;  %v13293_v13 = vsel %vm7559_vm5, 4294967295, %v13292_v13  ;;  %vm1870_vm9 = vcmp.ne.s32.totalorder %v1860_v52, 0  ;;  %v2070_v37 = vrot.slane %v2069_v9, 5  ;;  %vm7566_vm4 = vcmp.eq.s32.totalorder %v2621_v59, 1  ;;  %v2548_v59 = vpop.permute.xlu1 %2547  ;;  %v13314_v57 = vld [vmem:[#allocation171_spill] sm:$0xff] }
 0x4e3   : > { %13294 = vst [vmem:[#allocation200_spill] sm:$0xff] %v13293_v13  ;;  %2718 = vperm.xlu2 %4852, %v13296_v53   ;;  %v13298_v40 = vmov 0  ;;  %vm7570_vm14 = vcmp.eq.s32.totalorder %v2622_v24, 1  ;;  %v13301_v34 = vmov 0  ;;  %vm1661_vm2 = vcmp.ne.s32.totalorder %v1652_v0, 0  ;;  %v13306_v24 = vld [vmem:[#allocation58_spill] sm:$0xff] }
 0x4e4   : > { %v13299_v40 = vsel %vm7566_vm4, 4294967295, %v13298_v40  ;;  %v13302_v34 = vsel %vm7570_vm14, 4294967295, %v13301_v34  ;;  %v1990_v8 = vperm.slane %v7496_v21, 1  ;;  %v1862_v63 = vrot.slane %v1861_v31, 6  ;;  %v13311_v13 = vld [vmem:[#allocation137_spill] sm:$0xff] }
 0x4e5   : > { %13300 = vst [vmem:[#allocation260_spill] sm:$0xff] %v13299_v40  ;;  %v2189_v20 = vsel %vm7529_vm0, 1, %v12749_v28  ;;  %v13304_v53 = vperm.slane %v13041_v25, 2  ;;  %vm13305_vm3 = vcmask 1045509   ;;  %v2449_v9 = vsel %vm7549_vm6, %v13306_v24, %v2239_v48  ;;  %v13328_v40 = vld [vmem:[#allocation135_spill] sm:$0xff] }
 0x4e6   : > { %13303 = vst [vmem:[#allocation261_spill] sm:$0xff] %v13302_v34  ;;  %v2279_v52 = vsel %vm13305_vm3, %v7055_v27, %v7046_v30  ;;  %v2450_v0 = vsel %vm7559_vm5, %v13306_v24, %v2240_v10  ;;  %vm13307_vm12 = vcmp.eq.s32.totalorder %v13297_v12, 10  ;;  %v1982_v21 = vsel %vm1870_vm9, 1, %v12749_v28  ;;  %v13312_v10 = vld [vmem:[#allocation133_spill] sm:$0xff]  ;;  %v7622_v34 = vpop.permute.xlu0 %2369 }
 0x4e7   : > { %2796 = vperm.xlu1 %4859, %v13304_v53   ;;  %v2688_v2 = vsel %vm13307_vm12, 1, %v12749_v28  ;;  %v7595_v31 = vsel %vm7566_vm4, %v2548_v59, %v2449_v9  ;;  %v7599_v53 = vsel %vm7570_vm14, %v2548_v59, %v2450_v0  ;;  %v13313_v24 = vsel %vm6372_vm7, %v13311_v13, %v13312_v10 }
 0x4e8   : > { %13308 = vst [vmem:[#allocation58_spill] sm:$0xff] %v7595_v31  ;;  %v1817_v12 = vsel %vm7510_vm13, %v13314_v57, %v13313_v24  ;;  %v7611_v45 = vsel %vm1661_vm2, 1, %v12749_v28  ;;  %vm7613_vm12 = vcmp.eq.s32.totalorder %v1989_v56, 1  ;;  %v13315_v9 = vmov 0 }
 0x4e9   : > { %13309 = vst [vmem:[#allocation262_spill] sm:$0xff] %v7599_v53  ;;  %v13316_v9 = vsel %vm7613_vm12, 4294967295, %v13315_v9  ;;  %v2199_v59 = vperm.slane %v2189_v20, 0  ;;  %vm2080_vm9 = vcmp.ne.s32.totalorder %v2070_v37, 0  ;;  %v2200_v0 = vperm.slane %v2189_v20, 1 }
 0x4ea   : > { %13317 = vst [vmem:[#allocation137_spill] sm:$0xff] %v13316_v9  ;;  %vm13318_vm3 = vcmask 1042434   ;;  %v2280_v31 = vrot.slane %v2279_v52, 5  ;;  %v7620_v10 = vrot.slane %v2688_v2, 7  ;;  %v1995_v24 = vperm.slane %v1982_v21, 0  ;;  %v13361_v9 = vld [vmem:[#allocation160_spill] sm:$0xff] }
 0x4eb   : > { %v2273_v53 = vsel %vm13318_vm3, %v7055_v27, %v7046_v30  ;;  %vm1871_vm0 = vcmp.ne.s32.totalorder %v1862_v63, 0  ;;  %vm13319_vm2 = vmmov %vm13318_vm3  ;;  %vm13320_vm14 = vcmp.eq.s32.totalorder %v6986_v6, 10  ;;  %vm7632_vm4 = vcmp.eq.s32.totalorder %v1990_v8, 1  ;;  %v7640_v63 = vpop.permute.xlu2 %2508  ;;  %4854 = vset.pattern.permute.xlu2 %v5560_v18 }
 0x4ec   : > { %v2483_v56 = vsel %vm13319_vm2, %v7227_v43, %v7202_v16  ;;  %v7630_v37 = vsel %vm13320_vm14, 1, %v12749_v28  ;;  %v13321_v20 = vmov 0  ;;  %vm13324_vm3 = vcmask 1046534   ;;  %13325 = vst [vmem:[#allocation171_spill] sm:$0xff] %v7640_v63 }
 0x4ed   : > { %v13322_v20 = vsel %vm7632_vm4, 4294967295, %v13321_v20  ;;  %v2071_v52 = vsel %vm13324_vm3, %v7036_v1, %v7030_v38  ;;  %v2192_v2 = vsel %vm2080_vm9, 1, %v12749_v28  ;;  %vm13326_vm2 = vcmask 1045509  }
 0x4ee   : > { %13323 = vst [vmem:[#allocation133_spill] sm:$0xff] %v13322_v20  ;;  %v2489_v6 = vsel %vm13326_vm2, %v7227_v43, %v7202_v16  ;;  %vm13327_vm14 = vcmask 1042434   ;;  %vm13329_vm5 = vnez %v13328_v40  ;;  %v1787_v63 = vperm.slane %v7611_v45, 0 }
 0x4ef   : > { %v2693_v8 = vsel %vm13327_vm14, %v7630_v37, %v7620_v10  ;;  %v13331_v47 = vsel %vm13329_vm5, %v13311_v13, %v13330_v49  ;;  %v1996_v33 = vperm.slane %v1982_v21, 1  ;;  %v2274_v61 = vrot.slane %v2273_v53, 2  ;;  %v13345_v53 = vld [vmem:[#allocation189_spill] sm:$0xff] }
 0x4f0   : > { %v7657_v7 = vsel %vm7519_vm11, %v13314_v57, %v13331_v47  ;;  %v1788_v3 = vperm.slane %v7611_v45, 1  ;;  %v1983_v5 = vsel %vm1871_vm0, 1, %v12749_v28  ;;  %vm2290_vm9 = vcmp.ne.s32.totalorder %v2280_v31, 0 }
 0x4f1   : > { %v13332_v11 = vperm.slane %v12919_v14, 2  ;;  %v2484_v26 = vrot.slane %v2483_v56, 2  ;;  %v2072_v40 = vrot.slane %v2071_v52, 6  ;;  %v2205_v49 = vperm.slane %v2192_v2, 0  ;;  %v13370_v56 = vld [vmem:[#allocation94_spill] sm:$0xff] }
 0x4f2   : > { %v2490_v13 = vrot.slane %v2489_v6, 5  ;;  %v2694_v48 = vrot.slane %v2693_v8, 2  ;;  %vm7664_vm3 = vcmp.eq.s32.totalorder %v1995_v24, 1  ;;  %v13333_v47 = vmov 0  ;;  %v7709_v8 = vpop.permute.xlu0 %2566 }
 0x4f3   : > { %2809 = vperm.xlu1 %4859, %v13332_v11   ;;  %v13334_v47 = vsel %vm7664_vm3, 4294967295, %v13333_v47  ;;  %vm7668_vm2 = vcmp.eq.s32.totalorder %v2199_v59, 1  ;;  %v13336_v57 = vmov 0  ;;  %vm7672_vm14 = vcmp.eq.s32.totalorder %v2200_v0, 1  ;;  %13359 = vst [vmem:[#allocation267_spill] sm:$0xff] %v7709_v8  ;;  %v7726_v8 = vpop.permute.xlu2 %2521 }
 0x4f4   : > { %13335 = vst [vmem:[#allocation136_spill] sm:$0xff] %v13334_v47  ;;  %v13337_v57 = vsel %vm7668_vm2, 4294967295, %v13336_v57  ;;  %v13339_v45 = vmov 0  ;;  %v2206_v21 = vperm.slane %v2192_v2, 1  ;;  %vm7676_vm0 = vcmp.eq.s32.totalorder %v1996_v33, 1 }
 0x4f5   : > { %13338 = vst [vmem:[#allocation263_spill] sm:$0xff] %v13337_v57  ;;  %v13340_v45 = vsel %vm7672_vm14, 4294967295, %v13339_v45  ;;  %v13342_v11 = vmov 0  ;;  %v1997_v31 = vperm.slane %v1983_v5, 0  ;;  %vm2287_vm6 = vcmp.ne.s32.totalorder %v2274_v61, 0 }
 0x4f6   : > { %13341 = vst [vmem:[#allocation264_spill] sm:$0xff] %v13340_v45  ;;  %v13343_v11 = vsel %vm7676_vm0, 4294967295, %v13342_v11  ;;  %v2402_v6 = vsel %vm2290_vm9, 1, %v12749_v28  ;;  %v2027_v59 = vsel %vm7613_vm12, %v13345_v53, %v1817_v12  ;;  %v1998_v24 = vperm.slane %v1983_v5, 1  ;;  %v13479_v45 = vld [vmem:[#allocation73_spill] sm:$0xff] }
 0x4f7   : > { %13344 = vst [vmem:[#allocation265_spill] sm:$0xff] %v13343_v11  ;;  %vm13346_vm11 = vcmask 1046534   ;;  %vm2497_vm13 = vcmp.ne.s32.totalorder %v2484_v26, 0  ;;  %vm2081_vm5 = vcmp.ne.s32.totalorder %v2072_v40, 0  ;;  %vm7687_vm7 = vcmp.eq.s32.totalorder %v2205_v49, 1  ;;  %v13357_v40 = vld [vmem:[#allocation34_spill] sm:$0xff] }
 0x4f8   : > { %v2281_v0 = vsel %vm13346_vm11, %v7055_v27, %v7046_v30  ;;  %v13347_v33 = vmov 0  ;;  %vm7691_vm8 = vcmp.ne.s32.totalorder %v2490_v13, 0  ;;  %vm7695_vm9 = vcmp.ne.s32.totalorder %v2694_v48, 0  ;;  %v13360_v49 = vld [vmem:[#allocation225_spill] sm:$0xff] }
 0x4f9   : > { %v13348_v33 = vsel %vm7687_vm7, 4294967295, %v13347_v33  ;;  %vm7699_vm12 = vcmp.eq.s32.totalorder %v2206_v21, 1  ;;  %v13354_v5 = vmov 0  ;;  %v2399_v12 = vsel %vm2287_vm6, 1, %v12749_v28  ;;  %13363 = vst [vmem:[#allocation225_spill] sm:$0xff] %v7726_v8 }
 0x4fa   : > { %13349 = vst [vmem:[#allocation189_spill] sm:$0xff] %v13348_v33  ;;  %v13355_v5 = vsel %vm7699_vm12, 4294967295, %v13354_v5  ;;  %v2415_v26 = vperm.slane %v2402_v6, 0  ;;  %v13358_v52 = vperm.slane %v13357_v40, 2  ;;  %v2491_v2 = vsel %vm13346_vm11, %v7227_v43, %v7202_v16 }
 0x4fb   : > { %13356 = vst [vmem:[#allocation266_spill] sm:$0xff] %v13355_v5  ;;  %v2028_v48 = vsel %vm7632_vm4, %v13345_v53, %v7657_v7  ;;  %v2237_v13 = vsel %vm7668_vm2, %v13360_v49, %v2027_v59  ;;  %v2282_v21 = vrot.slane %v2281_v0, 6  ;;  %v2609_v14 = vsel %vm2497_vm13, 1, %v12749_v28 }
 0x4fc   : > { %2737 = vperm.xlu2 %4854, %v13358_v52   ;;  %v13362_v52 = vld [vmem:[#allocation186_spill] sm:$0xff]  ;;  %v7724_v35 = vsel %vm2081_vm5, 1, %v12749_v28  ;;  %v13364_v20 = vperm.slane %v13295_v36, 3  ;;  %v2612_v7 = vsel %vm7691_vm8, 1, %v12749_v28  ;;  %v2819_v53 = vsel %vm7695_vm9, 1, %v12749_v28  ;;  %v13384_v36 = vld [vmem:[#allocation161_spill] sm:$0xff] }
 0x4fd   : > { %v2039_v58 = vsel %vm7664_vm3, %v13362_v52, %v13361_v9  ;;  %v2409_v59 = vperm.slane %v2399_v12, 0  ;;  %v2410_v0 = vperm.slane %v2399_v12, 1  ;;  %v2416_v47 = vperm.slane %v2402_v6, 1  ;;  %v7736_v9 = vpop.permute.xlu1 %2560 }
 0x4fe   : > { %2928 = vperm.xlu1 %4859, %v13364_v20   ;;  %13365 = vst [vmem:[#allocation160_spill] sm:$0xff] %v7736_v9  ;;  %v2492_v57 = vrot.slane %v2491_v2, 6  ;;  %vm7738_vm13 = vcmp.eq.s32.totalorder %v1787_v63, 1  ;;  %vm7742_vm6 = vcmp.eq.s32.totalorder %v1788_v3, 1  ;;  %v2249_v8 = vsel %vm7687_vm7, %v13370_v56, %v2039_v58  ;;  %v13521_v20 = vld [vmem:[#allocation192_spill] sm:$0xff] }
 0x4ff   : > { %vm7749_vm8 = vcmp.eq.s32.totalorder %v2415_v26, 1  ;;  %v13371_v61 = vmov 0  ;;  %v2619_v6 = vperm.slane %v2609_v14, 0  ;;  %v2620_v12 = vperm.slane %v2609_v14, 1  ;;  %v13528_v26 = vld [vmem:[#allocation36_spill] sm:$0xff] }
 0x500   : > { %v13372_v61 = vsel %vm7749_vm8, 4294967295, %v13371_v61  ;;  %v13374_v2 = vperm.slane %v7445_v50, 0  ;;  %v13377_v3 = vperm.slane %v7445_v50, 1  ;;  %vm7765_vm11 = vcmp.eq.s32.totalorder %v1997_v31, 1 }
 0x501   : > { %13373 = vst [vmem:[#allocation186_spill] sm:$0xff] %v13372_v61  ;;  %vm7769_vm7 = vcmp.eq.s32.totalorder %v1998_v24, 1  ;;  %vm2291_vm3 = vcmp.ne.s32.totalorder %v2282_v21, 0  ;;  %v2625_v14 = vperm.slane %v2612_v7, 0  ;;  %v2829_v33 = vperm.slane %v2819_v53, 0 }
 0x502   : > { %vm7755_vm5 = vcmp.eq.s32.totalorder %v13374_v2, 1  ;;  %vm7761_vm9 = vcmp.eq.s32.totalorder %v13377_v3, 1  ;;  %v2626_v2 = vperm.slane %v2612_v7, 1  ;;  %v2040_v50 = vsel %vm7676_vm0, %v13362_v52, %v13384_v36 }
 0x503   : > { %v2207_v3 = vperm.slane %v7724_v35, 0  ;;  %v2238_v31 = vsel %vm7672_vm14, %v13360_v49, %v2028_v48  ;;  %v2830_v25 = vperm.slane %v2819_v53, 1  ;;  %vm7781_vm2 = vcmp.eq.s32.totalorder %v2409_v59, 1 }
 0x504   : > { %v13385_v24 = vmov 0  ;;  %vm7785_vm4 = vcmp.eq.s32.totalorder %v2410_v0, 1  ;;  %v13388_v21 = vmov 0  ;;  %vm7789_vm10 = vcmp.eq.s32.totalorder %v2416_v47, 1  ;;  %4856 = vset.pattern.permute.xlu2 %v13260_v32 }
 0x505   : > { %v13386_v24 = vsel %vm7781_vm2, 4294967295, %v13385_v24  ;;  %v13389_v21 = vsel %vm7785_vm4, 4294967295, %v13388_v21  ;;  %v13391_v7 = vmov 0  ;;  %vm2501_vm0 = vcmp.ne.s32.totalorder %v2492_v57, 0  ;;  %v2580_v61 = vpop.permute.xlu1 %2579 }
 0x506   : > { %13387 = vst [vmem:[#allocation94_spill] sm:$0xff] %v13386_v24  ;;  %v13392_v7 = vsel %vm7789_vm10, 4294967295, %v13391_v7  ;;  %v2250_v36 = vsel %vm7699_vm12, %v13370_v56, %v2040_v50  ;;  %v2403_v48 = vsel %vm2291_vm3, 1, %v12749_v28  ;;  %v2459_v49 = vsel %vm7749_vm8, %v7622_v34, %v2249_v8  ;;  %v13409_v8 = vld [vmem:[#allocation208_spill] sm:$0xff] }
 0x507   : > { %13390 = vst [vmem:[#allocation161_spill] sm:$0xff] %v13389_v21  ;;  %vm7801_vm14 = vcmp.eq.s32.totalorder %v2619_v6, 1  ;;  %v13394_v52 = vmov 0  ;;  %vm7805_vm1 = vcmp.eq.s32.totalorder %v2625_v14, 1  ;;  %v13397_v47 = vmov 0  ;;  %v2541_v14 = vpop.permute.xlu2 %2540  ;;  %v13476_v21 = vld [vmem:[#allocation223_spill] sm:$0xff] }
 0x508   : > { %13393 = vst [vmem:[#allocation268_spill] sm:$0xff] %v13392_v7  ;;  %v13395_v52 = vsel %vm7801_vm14, 4294967295, %v13394_v52  ;;  %v13398_v47 = vsel %vm7805_vm1, 4294967295, %v13397_v47  ;;  %vm7809_vm15 = vcmp.eq.s32.totalorder %v2626_v2, 1  ;;  %v13400_v57 = vmov 0 }
 0x509   : > { %13396 = vst [vmem:[#allocation269_spill] sm:$0xff] %v13395_v52  ;;  %v13401_v57 = vsel %vm7809_vm15, 4294967295, %v13400_v57  ;;  %vm7813_vm12 = vcmp.eq.s32.totalorder %v2620_v12, 1  ;;  %v13403_v53 = vmov 0  ;;  %vm7817_vm3 = vcmp.eq.s32.totalorder %v2829_v33, 1  ;;  %v7834_v33 = vpop.permute.xlu0 %2750 }
 0x50a   : > { %13399 = vst [vmem:[#allocation270_spill] sm:$0xff] %v13398_v47  ;;  %v13404_v53 = vsel %vm7813_vm12, 4294967295, %v13403_v53  ;;  %v13406_v59 = vmov 0  ;;  %v2447_v0 = vsel %vm7781_vm2, %v13409_v8, %v2237_v13  ;;  %v2448_v56 = vsel %vm7785_vm4, %v13409_v8, %v2238_v31 }
 0x50b   : > { %13402 = vst [vmem:[#allocation271_spill] sm:$0xff] %v13401_v57  ;;  %v13407_v59 = vsel %vm7817_vm3, 4294967295, %v13406_v59  ;;  %v13410_v6 = vperm.slane %v13357_v40, 3  ;;  %v2613_v12 = vsel %vm2501_vm0, 1, %v12749_v28  ;;  %vm7830_vm8 = vcmp.eq.s32.totalorder %v2830_v25, 1 }
 0x50c   : > { %13405 = vst [vmem:[#allocation272_spill] sm:$0xff] %v13404_v53  ;;  %v13411_v2 = vmov 0  ;;  %v2417_v50 = vperm.slane %v2403_v48, 0  ;;  %v2460_v13 = vsel %vm7789_vm10, %v7622_v34, %v2250_v36  ;;  %v7841_v31 = vsel %vm7801_vm14, %v2541_v14, %v2447_v0  ;;  %v13424_v34 = vld [vmem:[#allocation176_spill] sm:$0xff]  ;;  %v13474_v53 = vld [vmem:[#allocation221_spill] sm:$0xff] }
 0x50d   : > { %13408 = vst [vmem:[#allocation273_spill] sm:$0xff] %v13407_v59  ;;  %2941 = vperm.xlu1 %4859, %v13410_v6   ;;  %v13412_v2 = vsel %vm7830_vm8, 4294967295, %v13411_v2  ;;  %v7845_v8 = vsel %vm7813_vm12, %v2541_v14, %v2448_v56  ;;  %v2418_v25 = vperm.slane %v2403_v48, 1  ;;  %v7849_v6 = vsel %vm7805_vm1, %v2580_v61, %v2459_v49  ;;  %v13419_v49 = vld [vmem:[#allocation210_spill] sm:$0xff] }
 0x50e   : > { %13413 = vst [vmem:[#allocation208_spill] sm:$0xff] %v13412_v2  ;;  %v7853_v5 = vsel %vm7809_vm15, %v2580_v61, %v2460_v13  ;;  %v2208_v36 = vperm.slane %v7724_v35, 1  ;;  %v2627_v0 = vperm.slane %v2613_v12, 0  ;;  %v2628_v7 = vperm.slane %v2613_v12, 1  ;;  %v13420_v14 = vld [vmem:[#allocation70_spill] sm:$0xff]  ;;  %v13421_v61 = vld [vmem:[#allocation172_spill] sm:$0xff] }
 0x50f   : > { %13414 = vst [vmem:[#allocation274_spill] sm:$0xff] %v7834_v33  ;;  %v936_v56 = vperm.slane %v13419_v49, 1  ;;  %v1145_v57 = vperm.slane %v13420_v14, 0  ;;  %v1623_v13 = vsel %vm7755_vm5, %v13421_v61, %v7345_v44  ;;  %v1624_v35 = vsel %vm7761_vm9, %v13421_v61, %v7350_v39  ;;  %v13422_v12 = vld [vmem:[#allocation224_spill] sm:$0xff]  ;;  %v13470_v2 = vld [vmem:[#allocation205_spill] sm:$0xff] }
 0x510   : > { %13415 = vst [vmem:[#allocation275_spill] sm:$0xff] %v7841_v31  ;;  %vm13423_vm15 = vcmask 1040384   ;;  %v1833_v47 = vsel %vm7738_vm13, %v13424_v34, %v1623_v13  ;;  %v1834_v11 = vsel %vm7742_vm6, %v13424_v34, %v1624_v35  ;;  %v13425_v44 = vld [vmem:[#allocation188_spill] sm:$0xff]  ;;  %vm7890_vm0 = vcmp.eq.s32.totalorder %v2417_v50, 1  ;;  %v13439_v35 = vld [vmem:[#allocation206_spill] sm:$0xff] }
 0x511   : > { %13416 = vst [vmem:[#allocation276_spill] sm:$0xff] %v7845_v8  ;;  %v1430_v48 = vsel %vm13423_vm15, %v6177_v23, %v6169_v4  ;;  %v2043_v8 = vsel %vm7765_vm11, %v13425_v44, %v1833_v47  ;;  %v2044_v39 = vsel %vm7769_vm7, %v13425_v44, %v1834_v11  ;;  %v13426_v61 = vmov 0  ;;  %v13441_v44 = vld [vmem:[#allocation103_spill] sm:$0xff] }
 0x512   : > { %13417 = vst [vmem:[#allocation277_spill] sm:$0xff] %v7849_v6  ;;  %v13427_v61 = vsel %vm7890_vm0, 4294967295, %v13426_v61  ;;  %vm7894_vm15 = vcmp.eq.s32.totalorder %v2418_v25, 1  ;;  %v13428_v31 = vmov 0  ;;  %v13430_v13 = vperm.slane %v13047_v62, 2  ;;  %v13466_v62 = vld [vmem:[#allocation40_spill] sm:$0xff] }
 0x513   : > { %13418 = vst [vmem:[#allocation278_spill] sm:$0xff] %v7853_v5  ;;  %v13429_v31 = vsel %vm7894_vm15, 4294967295, %v13428_v31  ;;  %vm7900_vm1 = vcmp.eq.s32.totalorder %v2207_v3, 1  ;;  %v13431_v34 = vmov 0  ;;  %vm7904_vm10 = vcmp.eq.s32.totalorder %v2208_v36, 1  ;;  %v2593_v5 = vpop.permute.xlu1 %2592 }
 0x514   : > { %2757 = vperm.xlu2 %4856, %v13430_v13   ;;  %v13432_v34 = vsel %vm7900_vm1, 4294967295, %v13431_v34  ;;  %v13433_v47 = vmov 0  ;;  %vm7908_vm8 = vcmp.eq.s32.totalorder %v2627_v0, 1  ;;  %v13435_v11 = vmov 0  ;;  %v13440_v0 = vld [vmem:[#allocation57_spill] sm:$0xff] }
 0x515   : > { %v13434_v47 = vsel %vm7904_vm10, 4294967295, %v13433_v47  ;;  %v13436_v11 = vsel %vm7908_vm8, 4294967295, %v13435_v11  ;;  %vm7912_vm3 = vcmp.eq.s32.totalorder %v2628_v7, 1  ;;  %v13437_v50 = vmov 0  ;;  %4863 = vset.pattern.permute.xlu1 %v5560_v18 }
 0x516   : > { %v13438_v50 = vsel %vm7912_vm3, 4294967295, %v13437_v50  ;;  %v1146_v25 = vperm.slane %v13420_v14, 1  ;;  %v2253_v3 = vsel %vm7900_vm1, %v13439_v35, %v2043_v8  ;;  %v2254_v36 = vsel %vm7904_vm10, %v13439_v35, %v2044_v39  ;;  %v13444_v14 = vld [vmem:[#allocation227_spill] sm:$0xff] }
 0x517   : > { %vm13443_vm4 = vcmp.ne.s32.totalorder %v13422_v12, 0  ;;  %v2463_v33 = vsel %vm7890_vm0, %v13444_v14, %v2253_v3  ;;  %v2464_v8 = vsel %vm7894_vm15, %v13444_v14, %v2254_v36  ;;  %v13445_v39 = vperm.slane %v13419_v49, 0  ;;  %v13451_v36 = vld [vmem:[#allocation51_spill] sm:$0xff] }
 0x518   : > { %v1347_v13 = vsel %vm13443_vm4, 1, %v12749_v28  ;;  %v13446_v35 = vmov 0  ;;  %vm13448_vm2 = vcmask 1040384   ;;  %v7947_v7 = vsel %vm7908_vm8, %v2593_v5, %v2463_v33  ;;  %v13452_v14 = vld [vmem:[#allocation211_spill] sm:$0xff] }
 0x519   : > { %vm7938_vm12 = vcmp.eq.s32.totalorder %v13445_v39, 1  ;;  %v1640_v12 = vsel %vm13448_vm2, %v6336_v42, %v6330_v17  ;;  %13449 = vst [vmem:[#allocation210_spill] sm:$0xff] %v7947_v7  ;;  %v7951_v3 = vsel %vm7912_vm3, %v2593_v5, %v2464_v8  ;;  %vm13453_vm4 = vnez %v13452_v14  ;;  %v13462_v14 = vld [vmem:[#allocation212_spill] sm:$0xff] }
 0x51a   : > { %v13447_v35 = vsel %vm7938_vm12, 4294967295, %v13446_v35  ;;  %13450 = vst [vmem:[#allocation70_spill] sm:$0xff] %v7951_v3  ;;  %v780_v49 = vsel %vm13453_vm4, %v13451_v36, 0.0  ;;  %vm7956_vm14 = vcmp.eq.s32.totalorder %v936_v56, 1  ;;  %v13454_v39 = vmov 0  ;;  %v13464_v3 = vld [vmem:[#allocation204_spill] sm:$0xff] }
 0x51b   : > { %v13455_v39 = vsel %vm7956_vm14, 4294967295, %v13454_v39  ;;  %vm7960_vm15 = vcmp.eq.s32.totalorder %v1145_v57, 1  ;;  %v13456_v6 = vmov 0  ;;  %vm13458_vm2 = vcmp.ne.s32.totalorder %v1430_v48, 0  ;;  %v13468_v48 = vld [vmem:[#allocation72_spill] sm:$0xff] }
 0x51c   : > { %v13457_v6 = vsel %vm7960_vm15, 4294967295, %v13456_v6  ;;  %v1557_v33 = vsel %vm13458_vm2, 1, %v12749_v28  ;;  %vm7966_vm8 = vcmp.eq.s32.totalorder %v1146_v25, 1  ;;  %v13459_v7 = vmov 0 }
 0x51d   : > { %v13460_v7 = vsel %vm7966_vm8, 4294967295, %v13459_v7  ;;  %v1355_v5 = vperm.slane %v1347_v13, 0  ;;  %v1356_v8 = vperm.slane %v1347_v13, 1  ;;  %vm13461_vm4 = vcmask 1040384  }
 0x51e   : > { %v1850_v56 = vsel %vm13461_vm4, %v7022_v46, %v7005_v15  ;;  %vm13463_vm3 = vnez %v13462_v14  ;;  %vm13465_vm0 = vnez %v13464_v3  ;;  %vm1655_vm2 = vcmp.ne.s32.totalorder %v1640_v12, 0  ;;  %vm13469_vm10 = vmmov %vm13461_vm4  ;;  %v13473_v14 = vld [vmem:[#allocation82_spill] sm:$0xff] }
 0x51f   : > { %v781_v57 = vsel %vm13463_vm3, %v13451_v36, 0.0  ;;  %v13467_v40 = vsel %vm13465_vm0, %v13466_v62, 0.0  ;;  %v2060_v13 = vsel %vm13469_vm10, %v7036_v1, %v7030_v38  ;;  %vm13471_vm1 = vnez %v13470_v2  ;;  %v13571_v2 = vld [vmem:[#allocation45_spill] sm:$0xff] }
 0x520   : > { %v969_v25 = vsel %vm7938_vm12, %v13468_v48, %v13467_v40  ;;  %v13472_v59 = vsel %vm13471_vm1, %v13466_v62, 0.0  ;;  %vm13475_vm3 = vnez %v13474_v53  ;;  %vm13477_vm4 = vnez %v13476_v21 }
 0x521   : > { %v970_v36 = vsel %vm7956_vm14, %v13468_v48, %v13472_v59  ;;  %v991_v52 = vsel %vm13475_vm3, %v13473_v14, %v780_v49  ;;  %v992_v40 = vsel %vm13477_vm4, %v13473_v14, %v781_v57  ;;  %v1565_v12 = vperm.slane %v1557_v33, 0  ;;  %v8016_v49 = vpop.permute.xlu2 %2553  ;;  %v13485_v57 = vld [vmem:[#allocation30_spill] sm:$0xff]  ;;  %v13487_v14 = vld [vmem:[#allocation83_spill] sm:$0xff] }
 0x522   : > { %v13478_v24 = vperm.slane %v5974_v54, 2  ;;  %v1179_v62 = vsel %vm7960_vm15, %v13479_v45, %v969_v25  ;;  %v1180_v59 = vsel %vm7966_vm8, %v13479_v45, %v970_v36  ;;  %v1566_v48 = vperm.slane %v1557_v33, 1  ;;  %13484 = vst [vmem:[#allocation172_spill] sm:$0xff] %v8016_v49 }
 0x523   : > { %vm1865_vm10 = vcmp.ne.s32.totalorder %v1850_v56, 0  ;;  %vm8007_vm14 = vcmp.eq.s32.totalorder %v1355_v5, 1  ;;  %v13480_v53 = vmov 0  ;;  %vm8011_vm3 = vcmp.eq.s32.totalorder %v1356_v8, 1  ;;  %v13490_v5 = vld [vmem:[#allocation132_spill] sm:$0xff] }
 0x524   : > { %2770 = vperm.xlu2 %4856, %v13478_v24   ;;  %v13481_v53 = vsel %vm8007_vm14, 4294967295, %v13480_v53  ;;  %v13482_v21 = vmov 0  ;;  %v1767_v24 = vsel %vm1655_vm2, 1, %v12749_v28  ;;  %vm2075_vm4 = vcmp.ne.s32.totalorder %v2060_v13, 0 }
 0x525   : > { %v13483_v21 = vsel %vm8011_vm3, 4294967295, %v13482_v21  ;;  %v13486_v25 = vperm.slane %v13485_v57, 3  ;;  %vm13488_vm8 = vnez %v13139_v60  ;;  %vm13489_vm15 = vnez %v13158_v19  ;;  %v13501_v57 = vld [vmem:[#allocation163_spill] sm:$0xff] }
 0x526   : > { %v1201_v45 = vsel %vm13488_vm8, %v13487_v14, %v991_v52  ;;  %v1202_v33 = vsel %vm13489_vm15, %v13487_v14, %v992_v40  ;;  %v1389_v8 = vsel %vm8007_vm14, %v13490_v5, %v1179_v62  ;;  %vm13491_vm2 = vcmask 1040384  }
 0x527   : > { %2960 = vperm.xlu1 %4863, %v13486_v25   ;;  %v2270_v56 = vsel %vm13491_vm2, %v7055_v27, %v7046_v30  ;;  %v1390_v13 = vsel %vm8011_vm3, %v13490_v5, %v1180_v59  ;;  %vm8035_vm12 = vcmp.eq.s32.totalorder %v1565_v12, 1  ;;  %v1977_v60 = vsel %vm1865_vm10, 1, %v12749_v28  ;;  %vm13494_vm8 = vmmov %vm13491_vm2  ;;  %v13497_v59 = vld [vmem:[#allocation120_spill] sm:$0xff] }
 0x528   : > { %v2480_v19 = vsel %vm13494_vm8, %v7227_v43, %v7202_v16  ;;  %vm8043_vm15 = vcmp.eq.s32.totalorder %v1566_v48, 1  ;;  %v1775_v40 = vperm.slane %v1767_v24, 0  ;;  %v2187_v62 = vsel %vm2075_vm4, 1, %v12749_v28 }
 0x529   : > { %v2690_v12 = vsel %vm13491_vm2, %v7630_v37, %v7620_v10  ;;  %vm13498_vm3 = vnez %v13201_v55  ;;  %vm13499_vm10 = vcmask 1044484   ;;  %v1776_v48 = vperm.slane %v1767_v24, 1 }
 0x52a   : > { %v1411_v25 = vsel %vm13498_vm3, %v13497_v59, %v1201_v45  ;;  %v8057_v14 = vsel %vm13499_vm10, %v6177_v23, %v6169_v4  ;;  %vm2285_vm8 = vcmp.ne.s32.totalorder %v2270_v56, 0  ;;  %vm13500_vm14 = vnez %v13205_v22 }
 0x52b   : > { %v1412_v5 = vsel %vm13500_vm14, %v13497_v59, %v1202_v33  ;;  %v1599_v49 = vsel %vm8035_vm12, %v13501_v57, %v1389_v8  ;;  %v1985_v27 = vperm.slane %v1977_v60, 0  ;;  %vm2495_vm4 = vcmp.ne.s32.totalorder %v2480_v19, 0  ;;  %v13504_v33 = vld [vmem:[#allocation167_spill] sm:$0xff] }
 0x52c   : > { %v1600_v55 = vsel %vm8043_vm15, %v13501_v57, %v1390_v13  ;;  %v1986_v45 = vperm.slane %v1977_v60, 1  ;;  %v2195_v30 = vperm.slane %v2187_v62, 0  ;;  %4858 = vset.pattern.permute.xlu2 %v5560_v18  ;;  %vm2705_vm3 = vcmp.ne.s32.totalorder %v2690_v12, 0  ;;  %v8087_v60 = vpop.permute.xlu2 %2573  ;;  %v13508_v19 = vld [vmem:[#allocation175_spill] sm:$0xff] }
 0x52d   : > { %vm8070_vm2 = vcmp.eq.s32.totalorder %v1775_v40, 1  ;;  %v2196_v22 = vperm.slane %v2187_v62, 1  ;;  %v2397_v24 = vsel %vm2285_vm8, 1, %v12749_v28  ;;  %v1621_v8 = vsel %vm7755_vm5, %v13504_v33, %v1411_v25  ;;  %13507 = vst [vmem:[#allocation224_spill] sm:$0xff] %v8087_v60 }
 0x52e   : > { %v1622_v57 = vsel %vm7761_vm9, %v13504_v33, %v1412_v5  ;;  %vm8081_vm14 = vcmp.eq.s32.totalorder %v1776_v48, 1  ;;  %v2607_v13 = vsel %vm2495_vm4, 1, %v12749_v28  ;;  %v1809_v40 = vsel %vm8070_vm2, %v13508_v19, %v1599_v49  ;;  %v8108_v48 = vpop.permute.xlu1 %2680  ;;  %v13516_v5 = vld [vmem:[#allocation181_spill] sm:$0xff] }
 0x52f   : > { %4865 = vset.pattern.permute.xlu1 %v13260_v32  ;;  %v1810_v63 = vsel %vm8081_vm14, %v13508_v19, %v1600_v55  ;;  %vm8095_vm5 = vcmp.eq.s32.totalorder %v1985_v27, 1  ;;  %v2817_v62 = vsel %vm2705_vm3, 1, %v12749_v28  ;;  %vm8100_vm9 = vcmp.eq.s32.totalorder %v1986_v45, 1  ;;  %13515 = vst [vmem:[#allocation176_spill] sm:$0xff] %v8108_v48  ;;  %v13519_v19 = vld [vmem:[#allocation179_spill] sm:$0xff] }
 0x530   : > { %v13511_v12 = vmov 0  ;;  %vm8104_vm10 = vcmp.eq.s32.totalorder %v2195_v30, 1  ;;  %v13513_v59 = vmov 0  ;;  %v2405_v25 = vperm.slane %v2397_v24, 0 }
 0x531   : > { %v13512_v12 = vsel %vm8100_vm9, 4294967295, %v13511_v12  ;;  %v13514_v59 = vsel %vm8104_vm10, 4294967295, %v13513_v59  ;;  %v2406_v49 = vperm.slane %v2397_v24, 1  ;;  %v1831_v27 = vsel %vm7738_vm13, %v13516_v5, %v1621_v8 }
 0x532   : > { %vm8113_vm8 = vcmp.eq.s32.totalorder %v2196_v22, 1  ;;  %v13517_v55 = vmov 0  ;;  %v2615_v45 = vperm.slane %v2607_v13, 0  ;;  %v2616_v33 = vperm.slane %v2607_v13, 1  ;;  %v13520_v22 = vld [vmem:[#allocation195_spill] sm:$0xff] }
 0x533   : > { %v13518_v55 = vsel %vm8113_vm8, 4294967295, %v13517_v55  ;;  %v1832_v30 = vsel %vm7742_vm6, %v13516_v5, %v1622_v57  ;;  %v2019_v24 = vsel %vm8095_vm5, %v13519_v19, %v1809_v40  ;;  %v2825_v4 = vperm.slane %v2817_v62, 0 }
 0x534   : > { %v2826_v60 = vperm.slane %v2817_v62, 1  ;;  %v2020_v29 = vsel %vm8100_vm9, %v13519_v19, %v1810_v63  ;;  %v2041_v8 = vsel %vm7765_vm11, %v13520_v22, %v1831_v27  ;;  %v2042_v13 = vsel %vm7769_vm7, %v13520_v22, %v1832_v30  ;;  %v13522_v62 = vld [vmem:[#allocation199_spill] sm:$0xff]  ;;  %v13543_v22 = vld [vmem:[#allocation222_spill] sm:$0xff]  ;;  %v13736_v19 = vld [vmem:[#allocation200_spill] sm:$0xff] }
 0x535   : > { %v2229_v57 = vsel %vm8104_vm10, %v13521_v20, %v2019_v24  ;;  %v2230_v40 = vsel %vm8113_vm8, %v13521_v20, %v2020_v29  ;;  %vm13523_vm13 = vnez %v13432_v34  ;;  %vm8141_vm6 = vcmp.eq.s32.totalorder %v2405_v25, 1  ;;  %v2587_v24 = vpop.permute.xlu2 %2586 }
 0x536   : > { %v2251_v63 = vsel %vm13523_vm13, %v13522_v62, %v2041_v8  ;;  %vm8145_vm11 = vcmp.eq.s32.totalorder %v2406_v49, 1  ;;  %v13529_v27 = vperm.slane %v13528_v26, 2  ;;  %vm13530_vm7 = vnez %v13434_v47 }
 0x537   : > { %v2252_v30 = vsel %vm13530_vm7, %v13522_v62, %v2042_v13  ;;  %vm8154_vm4 = vcmp.eq.s32.totalorder %v2615_v45, 1  ;;  %vm8158_vm3 = vcmp.eq.s32.totalorder %v2616_v33, 1  ;;  %v13533_v34 = vmov 0  ;;  %v13556_v62 = vld [vmem:[#allocation115_spill] sm:$0xff] }
 0x538   : > { %2789 = vperm.xlu2 %4858, %v13529_v27   ;;  %v13534_v34 = vsel %vm8158_vm3, 4294967295, %v13533_v34  ;;  %vm13535_vm13 = vcmask 1046528   ;;  %vm13536_vm8 = vnez %v13427_v61  ;;  %vm13537_vm10 = vnez %v13429_v31  ;;  %v13558_v27 = vld [vmem:[#allocation119_spill] sm:$0xff] }
 0x539   : > { %v2493_v25 = vsel %vm13535_vm13, %v7202_v16, %v7227_v43  ;;  %v2461_v49 = vsel %vm13536_vm8, %v7458_v51, %v2251_v63  ;;  %v2462_v47 = vsel %vm13537_vm10, %v7458_v51, %v2252_v30  ;;  %v13538_v45 = vperm.slane %v5974_v54, 3 }
 0x53a   : > { %vm8173_vm7 = vcmp.eq.s32.totalorder %v2825_v4, 1  ;;  %v13539_v33 = vmov 0  ;;  %vm8177_vm9 = vcmp.eq.s32.totalorder %v2826_v60, 1  ;;  %v13541_v29 = vmov 0  ;;  %v13548_v60 = vld [vmem:[#allocation105_spill] sm:$0xff] }
 0x53b   : > { %2980 = vperm.xlu1 %4865, %v13538_v45   ;;  %v13540_v33 = vsel %vm8173_vm7, 4294967295, %v13539_v33  ;;  %v13542_v29 = vsel %vm8177_vm9, 4294967295, %v13541_v29  ;;  %v2439_v61 = vsel %vm8141_vm6, %v13543_v22, %v2229_v57  ;;  %v2440_v51 = vsel %vm8145_vm11, %v13543_v22, %v2230_v40  ;;  %v13555_v40 = vld [vmem:[#allocation75_spill] sm:$0xff]  ;;  %v13562_v45 = vld [vmem:[#allocation121_spill] sm:$0xff] }
 0x53c   : > { %vm13544_vm10 = vnez %v13436_v11  ;;  %vm13546_vm8 = vnez %v13438_v50  ;;  %vm13549_vm13 = vnez %v13548_v60  ;;  %v8201_v13 = vsel %vm8154_vm4, %v7360_v41, %v2439_v61  ;;  %v8208_v11 = vpop.permute.xlu1 %2724  ;;  %v13564_v22 = vld [vmem:[#allocation129_spill] sm:$0xff] }
 0x53d   : > { %v8189_v31 = vsel %vm13544_vm10, %v2587_v24, %v2461_v49  ;;  %v8193_v4 = vsel %vm13546_vm8, %v2587_v24, %v2462_v47  ;;  %v765_v8 = vsel %vm13549_vm13, %v13440_v0, 0.0  ;;  %13550 = vst [vmem:[#allocation57_spill] sm:$0xff] %v8201_v13  ;;  %v8206_v20 = vsel %vm8158_vm3, %v7360_v41, %v2440_v51  ;;  %v13561_v47 = vld [vmem:[#allocation76_spill] sm:$0xff]  ;;  %v13566_v51 = vld [vmem:[#allocation55_spill] sm:$0xff]  ;;  %v13680_v41 = vld [vmem:[#allocation166_spill] sm:$0xff] }
 0x53e   : > { %13545 = vst [vmem:[#allocation188_spill] sm:$0xff] %v8189_v31  ;;  %v2494_v57 = vrot.slane %v2493_v25, 7  ;;  %vm13553_vm10 = vnez %v13441_v44  ;;  %vm13557_vm8 = vnez %v13556_v62  ;;  %vm13559_vm13 = vnez %v13558_v27  ;;  %v13560_v25 = vld [vmem:[#allocation53_spill] sm:$0xff]  ;;  %v13574_v62 = vld [vmem:[#allocation68_spill] sm:$0xff]  ;;  %v13679_v44 = vld [vmem:[#allocation127_spill] sm:$0xff] }
 0x53f   : > { %13547 = vst [vmem:[#allocation206_spill] sm:$0xff] %v8193_v4  ;;  %v13554_v50 = vsel %vm13553_vm10, %v13440_v0, 0.0  ;;  %v976_v30 = vsel %vm13559_vm13, %v13555_v40, %v765_v8  ;;  %v756_v0 = vsel %vm13465_vm0, %v13560_v25, 0.0  ;;  %v757_v49 = vsel %vm13471_vm1, %v13560_v25, 0.0  ;;  %v13569_v8 = vld [vmem:[#allocation207_spill] sm:$0xff]  ;;  %v13580_v25 = vld [vmem:[#allocation216_spill] sm:$0xff] }
 0x540   : > { %13551 = vst [vmem:[#allocation103_spill] sm:$0xff] %v8206_v20  ;;  %v975_v63 = vsel %vm13557_vm8, %v13555_v40, %v13554_v50  ;;  %vm13563_vm10 = vnez %v13562_v45  ;;  %vm13565_vm8 = vnez %v13564_v22  ;;  %vm13567_vm13 = vnez %v13447_v35  ;;  %v13573_v40 = vld [vmem:[#allocation78_spill] sm:$0xff]  ;;  %v13809_v20 = vld [vmem:[#allocation147_spill] sm:$0xff] }
 0x541   : > { %13552 = vst [vmem:[#allocation227_spill] sm:$0xff] %v8208_v11  ;;  %v1185_v24 = vsel %vm13563_vm10, %v13561_v47, %v975_v63  ;;  %v1186_v61 = vsel %vm13565_vm8, %v13561_v47, %v976_v30  ;;  %v967_v60 = vsel %vm13567_vm13, %v13566_v51, %v756_v0  ;;  %vm13568_vm9 = vnez %v13455_v39  ;;  %v13577_v30 = vld [vmem:[#allocation209_spill] sm:$0xff]  ;;  %v13582_v0 = vld [vmem:[#allocation88_spill] sm:$0xff]  ;;  %v13585_v45 = vld [vmem:[#allocation50_spill] sm:$0xff] }
 0x542   : > { %v968_v3 = vsel %vm13568_vm9, %v13566_v51, %v757_v49  ;;  %vm13570_vm0 = vnez %v13569_v8  ;;  %vm13575_vm1 = vnez %v13574_v62  ;;  %v13576_v27 = vrot.slane %v8057_v14, 4  ;;  %v13588_v51 = vld [vmem:[#allocation79_spill] sm:$0xff]  ;;  %v13589_v8 = vld [vmem:[#allocation60_spill] sm:$0xff]  ;;  %v13598_v62 = vld [vmem:[#allocation90_spill] sm:$0xff] }
 0x543   : > { %v13572_v50 = vsel %vm13570_vm0, %v13571_v2, 0.0  ;;  %vm13578_vm8 = vnez %v13577_v30  ;;  %vm13581_vm13 = vnez %v13580_v25  ;;  %vm13583_vm9 = vnez %v13457_v6  ;;  %v13802_v11 = vld [vmem:[#allocation113_spill] sm:$0xff]  ;;  %v13847_v4 = vld [vmem:[#allocation98_spill] sm:$0xff] }
 0x544   : > { %v981_v63 = vsel %vm13575_vm1, %v13573_v40, %v13572_v50  ;;  %vm1449_vm10 = vcmp.ne.s32.totalorder %v13576_v27, 0  ;;  %v13579_v35 = vsel %vm13578_vm8, %v13571_v2, 0.0  ;;  %v1177_v49 = vsel %vm13583_vm9, %v13582_v0, %v967_v60  ;;  %v13591_v50 = vld [vmem:[#allocation41_spill] sm:$0xff]  ;;  %v13594_v60 = vld [vmem:[#allocation131_spill] sm:$0xff]  ;;  %v13602_v27 = vld [vmem:[#allocation164_spill] sm:$0xff] }
 0x545   : > { %v982_v39 = vsel %vm13581_vm13, %v13573_v40, %v13579_v35  ;;  %vm13584_vm0 = vcmask 1044484   ;;  %v13586_v22 = vperm.slane %v13585_v45, 2  ;;  %vm2502_vm1 = vcmp.ne.s32.totalorder %v2494_v57, 0  ;;  %v13592_v40 = vld [vmem:[#allocation130_spill] sm:$0xff]  ;;  %v13605_v35 = vld [vmem:[#allocation135_spill] sm:$0xff] }
 0x546   : > { %v1647_v47 = vsel %vm13584_vm0, %v6336_v42, %v6330_v17  ;;  %vm13587_vm7 = vnez %v13460_v7  ;;  %vm13590_vm8 = vnez %v13589_v8  ;;  %vm13593_vm13 = vnez %v13592_v40  ;;  %v13596_v17 = vld [vmem:[#allocation220_spill] sm:$0xff]  ;;  %v13848_v31 = vld [vmem:[#allocation122_spill] sm:$0xff] }
 0x547   : > { %2802 = vperm.xlu2 %4858, %v13586_v22   ;;  %v1178_v14 = vsel %vm13587_vm7, %v13582_v0, %v968_v3  ;;  %v1191_v2 = vsel %vm13590_vm8, %v13588_v51, %v981_v63  ;;  %v1395_v6 = vsel %vm13593_vm13, %v13591_v50, %v1185_v24  ;;  %vm13595_vm9 = vnez %v13594_v60  ;;  %v13611_v22 = vld [vmem:[#allocation256_spill] sm:$0xff]  ;;  %v13619_v60 = vld [vmem:[#allocation139_spill] sm:$0xff] }
 0x548   : > { %v1396_v42 = vsel %vm13595_vm9, %v13591_v50, %v1186_v61  ;;  %vm13597_vm0 = vnez %v13596_v17  ;;  %vm13599_vm3 = vnez %v13481_v53  ;;  %v1561_v3 = vsel %vm1449_vm10, 1, %v12749_v28  ;;  %v13603_v61 = vld [vmem:[#allocation134_spill] sm:$0xff]  ;;  %v13614_v50 = vld [vmem:[#allocation104_spill] sm:$0xff] }
 0x549   : > { %v1192_v57 = vsel %vm13597_vm0, %v13588_v51, %v982_v39  ;;  %v8288_v7 = vsel %vm13599_vm3, %v13598_v62, %v1177_v49  ;;  %vm13600_vm7 = vcmask 1044484   ;;  %v13601_v24 = vperm.slane %v13528_v26, 3  ;;  %v13608_v49 = vld [vmem:[#allocation177_spill] sm:$0xff] }
 0x54a   : > { %v1857_v63 = vsel %vm13600_vm7, %v7022_v46, %v7005_v15  ;;  %vm13604_vm8 = vnez %v13603_v61  ;;  %vm13606_vm13 = vnez %v13605_v35  ;;  %v1648_v53 = vrot.slane %v1647_v47, 4  ;;  %v13609_v15 = vld [vmem:[#allocation19_spill] sm:$0xff]  ;;  %vm13613_vm0 = vmmov %vm13600_vm7  ;;  %v13615_v47 = vld [vmem:[#allocation226_spill] sm:$0xff] }
 0x54b   : > { %2993 = vperm.xlu1 %4865, %v13601_v24   ;;  %v1605_v30 = vsel %vm13604_vm8, %v13602_v27, %v1395_v6  ;;  %v1606_v25 = vsel %vm13606_vm13, %v13602_v27, %v1396_v42  ;;  %v2614_v39 = vsel %vm2502_vm1, 1, %v12749_v28  ;;  %vm13607_vm3 = vnez %v13483_v21  ;;  %v13617_v21 = vld [vmem:[#allocation236_spill] sm:$0xff]  ;;  %v13628_v35 = vld [vmem:[#allocation263_spill] sm:$0xff] }
 0x54c   : > { %v1388_v0 = vsel %vm13607_vm3, %v13598_v62, %v1178_v14  ;;  %vm13610_vm10 = vnez %v13609_v15  ;;  %vm13612_vm9 = vnez %v13611_v22  ;;  %v2067_v8 = vsel %vm13613_vm0, %v7036_v1, %v7030_v38  ;;  %v13622_v38 = vld [vmem:[#allocation48_spill] sm:$0xff]  ;;  %v13632_v15 = vld [vmem:[#allocation114_spill] sm:$0xff] }
 0x54d   : > { %v1815_v46 = vsel %vm13610_vm10, %v13608_v49, %v1605_v30  ;;  %v1816_v51 = vsel %vm13612_vm9, %v13608_v49, %v1606_v25  ;;  %vm13616_vm7 = vnez %v13615_v47  ;;  %vm13618_vm1 = vnez %v13617_v21  ;;  %v13627_v30 = vld [vmem:[#allocation194_spill] sm:$0xff] }
 0x54e   : > { %v8318_v40 = vsel %vm13616_vm7, %v13614_v50, %v1191_v2  ;;  %v8323_v14 = vsel %vm13618_vm1, %v13614_v50, %v1192_v57  ;;  %v1858_v6 = vrot.slane %v1857_v63, 4  ;;  %v1597_v42 = vsel %vm8035_vm12, %v13619_v60, %v8288_v7  ;;  %v13623_v2 = vld [vmem:[#allocation137_spill] sm:$0xff]  ;;  %v13650_v1 = vld [vmem:[#allocation238_spill] sm:$0xff] }
 0x54f   : > { %v1573_v17 = vperm.slane %v1561_v3, 0  ;;  %v2629_v62 = vperm.slane %v2614_v39, 0  ;;  %v2630_v24 = vperm.slane %v2614_v39, 1  ;;  %vm8329_vm8 = vcmp.ne.s32.totalorder %v1648_v53, 0  ;;  %v13625_v57 = vld [vmem:[#allocation133_spill] sm:$0xff]  ;;  %v13630_v53 = vld [vmem:[#allocation264_spill] sm:$0xff] }
 0x550   : > { %vm13624_vm13 = vnez %v13623_v2  ;;  %vm13626_vm3 = vnez %v13625_v57  ;;  %v2068_v61 = vrot.slane %v2067_v8, 4  ;;  %v1598_v36 = vsel %vm8043_vm15, %v13619_v60, %v1388_v0  ;;  %v13645_v60 = vld [vmem:[#allocation218_spill] sm:$0xff] }
 0x551   : > { %v2025_v27 = vsel %vm13624_vm13, %v13622_v38, %v1815_v46  ;;  %v2026_v63 = vsel %vm13626_vm3, %v13622_v38, %v1816_v51  ;;  %v1574_v7 = vperm.slane %v1561_v3, 1  ;;  %vm13629_vm12 = vnez %v13628_v35  ;;  %v13633_v46 = vld [vmem:[#allocation94_spill] sm:$0xff]  ;;  %v13635_v51 = vld [vmem:[#allocation161_spill] sm:$0xff] }
 0x552   : > { %v2235_v25 = vsel %vm13629_vm12, %v13627_v30, %v2025_v27  ;;  %vm13631_vm10 = vnez %v13630_v53  ;;  %v5189_v49 = vmov 10   ;;  %vm1869_vm9 = vcmp.ne.s32.totalorder %v1858_v6, 0  ;;  %v13637_v3 = vld [vmem:[#allocation18_spill] sm:$0xff]  ;;  %v2606_v6 = vpop.permute.xlu2 %2605  ;;  %v13651_v27 = vld [vmem:[#allocation239_spill] sm:$0xff]  ;;  %v13660_v53 = vld [vmem:[#allocation61_spill] sm:$0xff] }
 0x553   : > { %v2236_v39 = vsel %vm13631_vm10, %v13627_v30, %v2026_v63  ;;  %4860 = vset.pattern.permute.xlu2 %v5189_v49  ;;  %vm13634_vm0 = vnez %v13633_v46  ;;  %vm13636_vm7 = vnez %v13635_v51  ;;  %vm13638_vm15 = vcmask 1043459   ;;  %4867 = vset.pattern.permute.xlu1 %v5560_v18  ;;  %v13648_v2 = vld [vmem:[#allocation234_spill] sm:$0xff]  ;;  %v13654_v63 = vld [vmem:[#allocation235_spill] sm:$0xff] }
 0x554   : > { %v2445_v22 = vsel %vm13634_vm0, %v13632_v15, %v2235_v25  ;;  %v2446_v52 = vsel %vm13636_vm7, %v13632_v15, %v2236_v39  ;;  %2890 = vperm.xlu2 %4860, %v13637_v3   ;;  %v2695_v0 = vsel %vm13638_vm15, %v7630_v37, %v7620_v10  ;;  %vm8358_vm1 = vcmp.eq.s32.totalorder %v1573_v17, 1  ;;  %v13646_v17 = vld [vmem:[#allocation219_spill] sm:$0xff]  ;;  %v8396_v25 = vpop.permute.xlu1 %2744  ;;  %v13661_v39 = vld [vmem:[#allocation269_spill] sm:$0xff]  ;;  %v13664_v15 = vld [vmem:[#allocation272_spill] sm:$0xff] }
 0x555   : > { %v1771_v50 = vsel %vm8329_vm8, 1, %v12749_v28  ;;  %vm8366_vm13 = vcmp.eq.s32.totalorder %v2629_v62, 1  ;;  %v13641_v47 = vmov 0  ;;  %vm8370_vm3 = vcmp.eq.s32.totalorder %v2630_v24, 1  ;;  %v13656_v24 = vld [vmem:[#allocation240_spill] sm:$0xff]  ;;  %13659 = vst [vmem:[#allocation212_spill] sm:$0xff] %v8396_v25 }
 0x556   : > { %v13642_v47 = vsel %vm8366_vm13, 4294967295, %v13641_v47  ;;  %v13643_v21 = vmov 0  ;;  %vm2079_vm12 = vcmp.ne.s32.totalorder %v2068_v61, 0  ;;  %vm13647_vm10 = vcmask 1044484   ;;  %v13985_v8 = vld [vmem:[#allocation70_spill] sm:$0xff] }
 0x557   : > { %v13644_v21 = vsel %vm8370_vm3, 4294967295, %v13643_v21  ;;  %v2277_v38 = vsel %vm13647_vm10, %v13646_v17, %v13645_v60  ;;  %vm13649_vm0 = vnez %v13648_v2  ;;  %vm13655_vm8 = vnez %v13654_v63 }
 0x558   : > { %v13652_v57 = vsel %vm13649_vm0, %v13650_v1, %v13651_v27  ;;  %v13657_v30 = vsel %vm13655_vm8, %v13650_v1, %v13656_v24  ;;  %v1981_v35 = vsel %vm1869_vm9, 1, %v12749_v28  ;;  %vm13662_vm7 = vnez %v13661_v39 }
 0x559   : > { %v8384_v62 = vsel %vm8366_vm13, %v2606_v6, %v13652_v57  ;;  %v8393_v61 = vsel %vm8370_vm3, %v2606_v6, %v13657_v30  ;;  %v8401_v49 = vsel %vm13662_vm7, %v13660_v53, %v2445_v22  ;;  %vm13665_vm15 = vnez %v13664_v15  ;;  %v13673_v57 = vld [vmem:[#allocation165_spill] sm:$0xff]  ;;  %v13829_v22 = vld [vmem:[#allocation64_spill] sm:$0xff] }
 0x55a   : > { %13653 = vst [vmem:[#allocation51_spill] sm:$0xff] %v8384_v62  ;;  %v8406_v46 = vsel %vm13665_vm15, %v13660_v53, %v2446_v52  ;;  %v2696_v51 = vrot.slane %v2695_v0, 3  ;;  %vm8408_vm10 = vcmp.eq.s32.totalorder %v1574_v7, 1  ;;  %v1783_v6 = vperm.slane %v1771_v50, 0  ;;  %v13674_v52 = vld [vmem:[#allocation250_spill] sm:$0xff]  ;;  %v13676_v53 = vld [vmem:[#allocation251_spill] sm:$0xff] }
 0x55b   : > { %13658 = vst [vmem:[#allocation211_spill] sm:$0xff] %v8393_v61  ;;  %vm13675_vm15 = vnez %v13674_v52  ;;  %v1784_v7 = vperm.slane %v1771_v50, 1  ;;  %v2191_v24 = vsel %vm2079_vm12, 1, %v12749_v28  ;;  %v2278_v30 = vrot.slane %v2277_v38, 4  ;;  %v13681_v50 = vld [vmem:[#allocation128_spill] sm:$0xff]  ;;  %v13682_v52 = vld [vmem:[#allocation169_spill] sm:$0xff] }
 0x55c   : > { %13663 = vst [vmem:[#allocation204_spill] sm:$0xff] %v8401_v49  ;;  %v1611_v0 = vsel %vm13675_vm15, %v13673_v57, %v8318_v40  ;;  %vm13677_vm3 = vnez %v13676_v53  ;;  %v1993_v15 = vperm.slane %v1981_v35, 0  ;;  %v1994_v1 = vperm.slane %v1981_v35, 1  ;;  %4861 = vset.pattern.permute.xlu2 %v5560_v18  ;;  %v13707_v35 = vld [vmem:[#allocation46_spill] sm:$0xff] }
 0x55d   : > { %13666 = vst [vmem:[#allocation40_spill] sm:$0xff] %v8406_v46  ;;  %v1612_v39 = vsel %vm13677_vm3, %v13673_v57, %v8323_v14  ;;  %vm13678_vm9 = vcmask 1044484   ;;  %v1615_v40 = vsel %vm8358_vm1, %v13680_v41, %v13679_v44  ;;  %v1616_v38 = vsel %vm8408_vm10, %v13680_v41, %v13681_v50  ;;  %v13693_v57 = vld [vmem:[#allocation252_spill] sm:$0xff]  ;;  %v13695_v50 = vld [vmem:[#allocation255_spill] sm:$0xff]  ;;  %v13789_v49 = vld [vmem:[#allocation86_spill] sm:$0xff] }
 0x55e   : > { %v2487_v27 = vsel %vm13678_vm9, %v7227_v43, %v7202_v16  ;;  %v1807_v14 = vsel %vm8070_vm2, %v13682_v52, %v1597_v42  ;;  %vm8443_vm3 = vcmp.ne.s32.totalorder %v2696_v51, 0  ;;  %v1808_v16 = vsel %vm8081_vm14, %v13682_v52, %v1598_v36  ;;  %v13697_v52 = vld [vmem:[#allocation180_spill] sm:$0xff] }
 0x55f   : > { %vm8450_vm12 = vcmp.eq.s32.totalorder %v1783_v6, 1  ;;  %v13685_v43 = vmov 0  ;;  %v2203_v44 = vperm.slane %v2191_v24, 0  ;;  %v2697_v23 = vsel %vm13678_vm9, %v7630_v37, %v7620_v10  ;;  %v13692_v6 = vld [vmem:[#allocation178_spill] sm:$0xff] }
 0x560   : > { %v13686_v43 = vsel %vm8450_vm12, 4294967295, %v13685_v43  ;;  %vm8458_vm2 = vcmp.eq.s32.totalorder %v1784_v7, 1  ;;  %v13687_v41 = vmov 0  ;;  %v2204_v42 = vperm.slane %v2191_v24, 1 }
 0x561   : > { %v13688_v41 = vsel %vm8458_vm2, 4294967295, %v13687_v41  ;;  %vm8462_vm15 = vcmp.ne.s32.totalorder %v2278_v30, 0  ;;  %v2488_v56 = vrot.slane %v2487_v27, 4  ;;  %v13691_v36 = vperm.slane %v13585_v45, 3 }
 0x562   : > { %vm13694_vm14 = vnez %v13693_v57  ;;  %vm13696_vm9 = vnez %v13695_v50  ;;  %v1825_v24 = vsel %vm8450_vm12, %v13697_v52, %v1615_v40  ;;  %vm8477_vm7 = vcmp.eq.s32.totalorder %v1993_v15, 1  ;;  %v13705_v57 = vld [vmem:[#allocation151_spill] sm:$0xff] }
 0x563   : > { %3012 = vperm.xlu1 %4867, %v13691_v36   ;;  %v1821_v53 = vsel %vm13694_vm14, %v13692_v6, %v1611_v0  ;;  %v1822_v7 = vsel %vm13696_vm9, %v13692_v6, %v1612_v39  ;;  %vm8481_vm13 = vcmp.eq.s32.totalorder %v1994_v1, 1  ;;  %v2820_v0 = vsel %vm8443_vm3, 1, %v12749_v28  ;;  %v13702_v36 = vld [vmem:[#allocation185_spill] sm:$0xff]  ;;  %v13704_v6 = vld [vmem:[#allocation191_spill] sm:$0xff] }
 0x564   : > { %v1826_v39 = vsel %vm8458_vm2, %v13697_v52, %v1616_v38  ;;  %v2017_v40 = vsel %vm8095_vm5, %v13702_v36, %v1807_v14  ;;  %vm13703_vm14 = vnez %v13512_v12  ;;  %v2698_v1 = vrot.slane %v2697_v23, 4 }
 0x565   : > { %v2018_v15 = vsel %vm13703_vm14, %v13702_v36, %v1808_v16  ;;  %vm13706_vm9 = vnez %v13705_v57  ;;  %vm13708_vm3 = vnez %v13707_v35  ;;  %vm8503_vm12 = vcmp.eq.s32.totalorder %v2203_v44, 1  ;;  %v13713_v16 = vld [vmem:[#allocation198_spill] sm:$0xff]  ;;  %v13721_v36 = vld [vmem:[#allocation203_spill] sm:$0xff] }
 0x566   : > { %v2031_v50 = vsel %vm13706_vm9, %v13704_v6, %v1821_v53  ;;  %v2032_v61 = vsel %vm13708_vm3, %v13704_v6, %v1822_v7  ;;  %v13709_v62 = vmov 0  ;;  %v2401_v9 = vsel %vm8462_vm15, 1, %v12749_v28  ;;  %v13716_v53 = vld [vmem:[#allocation196_spill] sm:$0xff]  ;;  %v13717_v7 = vld [vmem:[#allocation257_spill] sm:$0xff] }
 0x567   : > { %v13710_v62 = vsel %vm8503_vm12, 4294967295, %v13709_v62  ;;  %vm8510_vm5 = vcmp.eq.s32.totalorder %v2204_v42, 1  ;;  %v13711_v12 = vmov 0  ;;  %vm2499_vm14 = vcmp.ne.s32.totalorder %v2488_v56, 0  ;;  %v13719_v42 = vld [vmem:[#allocation258_spill] sm:$0xff] }
 0x568   : > { %v13712_v12 = vsel %vm8510_vm5, 4294967295, %v13711_v12  ;;  %v2831_v38 = vperm.slane %v2820_v0, 0  ;;  %v2832_v14 = vperm.slane %v2820_v0, 1  ;;  %vm13714_vm9 = vnez %v13514_v59 }
 0x569   : > { %v2227_v23 = vsel %vm13714_vm9, %v13713_v16, %v2017_v40  ;;  %vm13715_vm3 = vnez %v13518_v55  ;;  %vm13718_vm2 = vnez %v13717_v7  ;;  %vm13720_vm15 = vnez %v13719_v42  ;;  %v13722_v40 = vld [vmem:[#allocation237_spill] sm:$0xff]  ;;  %v13740_v42 = vld [vmem:[#allocation172_spill] sm:$0xff] }
 0x56a   : > { %v2228_v44 = vsel %vm13715_vm3, %v13713_v16, %v2018_v15  ;;  %v2241_v51 = vsel %vm13718_vm2, %v13716_v53, %v2031_v50  ;;  %v2242_v52 = vsel %vm13720_vm15, %v13716_v53, %v2032_v61  ;;  %v2437_v56 = vsel %vm8141_vm6, %v13721_v36, %v2227_v23  ;;  %v13723_v15 = vld [vmem:[#allocation259_spill] sm:$0xff]  ;;  %v13725_v50 = vld [vmem:[#allocation16_spill] sm:$0xff]  ;;  %v8553_v23 = vpop.permute.xlu2 %2718 }
 0x56b   : > { %v2438_v59 = vsel %vm8145_vm11, %v13721_v36, %v2228_v44  ;;  %v2413_v0 = vperm.slane %v2401_v9, 0  ;;  %vm2709_vm9 = vcmp.ne.s32.totalorder %v2698_v1, 0  ;;  %v2414_v55 = vperm.slane %v2401_v9, 1  ;;  %v13728_v61 = vld [vmem:[#allocation171_spill] sm:$0xff]  ;;  %v13730_v9 = vld [vmem:[#allocation32_spill] sm:$0xff] }
 0x56c   : > { %vm13724_vm3 = vnez %v13723_v15  ;;  %v2611_v57 = vsel %vm2499_vm14, 1, %v12749_v28  ;;  %v13726_v35 = vperm.slane %v13725_v50, 3  ;;  %vm13727_vm2 = vcmask 1041409   ;;  %v13741_v36 = vld [vmem:[#allocation260_spill] sm:$0xff] }
 0x56d   : > { %v2451_v6 = vsel %vm13724_vm3, %v13722_v40, %v2241_v51  ;;  %v2691_v5 = vsel %vm13727_vm2, %v7630_v37, %v7620_v10  ;;  %v8544_v58 = vsel %vm8154_vm4, %v13728_v61, %v2437_v56  ;;  %vm13729_vm6 = vnez %v13534_v34 }
 0x56e   : > { %2934 = vperm.xlu2 %4861, %v13726_v35   ;;  %v8549_v1 = vsel %vm13729_vm6, %v13728_v61, %v2438_v59  ;;  %v13731_v16 = vperm.slane %v13730_v9, 3  ;;  %vm8555_vm11 = vcmp.eq.s32.totalorder %v2831_v38, 1  ;;  %v13732_v44 = vmov 0 }
 0x56f   : > { %v13733_v44 = vsel %vm8555_vm11, 4294967295, %v13732_v44  ;;  %vm8559_vm14 = vcmp.eq.s32.totalorder %v2832_v14, 1  ;;  %v13734_v53 = vmov 0  ;;  %vm13737_vm4 = vnez %v13736_v19 }
 0x570   : > { %3025 = vperm.xlu1 %4867, %v13731_v16   ;;  %v13735_v53 = vsel %vm8559_vm14, 4294967295, %v13734_v53  ;;  %v2452_v7 = vsel %vm13737_vm4, %v13722_v40, %v2242_v52  ;;  %v2821_v51 = vsel %vm2709_vm9, 1, %v12749_v28  ;;  %v2623_v14 = vperm.slane %v2611_v57, 0  ;;  %v13744_v52 = vld [vmem:[#allocation261_spill] sm:$0xff]  ;;  %v8585_v40 = vpop.permute.xlu1 %2763 }
 0x571   : > { %vm13742_vm2 = vnez %v13741_v36  ;;  %vm13745_vm6 = vnez %v13744_v52  ;;  %13747 = vst [vmem:[#allocation82_spill] sm:$0xff] %v8585_v40  ;;  %v2692_v15 = vrot.slane %v2691_v5, 1  ;;  %v2624_v35 = vperm.slane %v2611_v57, 1  ;;  %v13748_v16 = vld [vmem:[#allocation217_spill] sm:$0xff]  ;;  %v13785_v40 = vld [vmem:[#allocation126_spill] sm:$0xff] }
 0x572   : > { %v8578_v56 = vsel %vm13742_vm2, %v13740_v42, %v2451_v6  ;;  %v8583_v59 = vsel %vm13745_vm6, %v13740_v42, %v2452_v7  ;;  %v2035_v19 = vsel %vm8477_vm7, %v13748_v16, %v1825_v24  ;;  %v2036_v7 = vsel %vm8481_vm13, %v13748_v16, %v1826_v39  ;;  %v13749_v42 = vld [vmem:[#allocation197_spill] sm:$0xff] }
 0x573   : > { %13743 = vst [vmem:[#allocation72_spill] sm:$0xff] %v8578_v56  ;;  %v2833_v5 = vperm.slane %v2821_v51, 0  ;;  %v2834_v57 = vperm.slane %v2821_v51, 1  ;;  %v2245_v36 = vsel %vm8503_vm12, %v13749_v42, %v2035_v19  ;;  %v2246_v52 = vsel %vm8510_vm5, %v13749_v42, %v2036_v7  ;;  %v13756_v51 = vld [vmem:[#allocation243_spill] sm:$0xff] }
 0x574   : > { %13746 = vst [vmem:[#allocation205_spill] sm:$0xff] %v8583_v59  ;;  %v12411_v6 = vperm.slane %v13725_v50, 4  ;;  %vm8608_vm9 = vcmp.eq.s32.totalorder %v2413_v0, 1  ;;  %v13750_v61 = vmov 0  ;;  %vm8612_vm4 = vcmp.eq.s32.totalorder %v2414_v55, 1  ;;  %v13765_v42 = vld [vmem:[#allocation267_spill] sm:$0xff] }
 0x575   : > { %v13751_v61 = vsel %vm8608_vm9, 4294967295, %v13750_v61  ;;  %v13752_v24 = vmov 0  ;;  %vm8616_vm2 = vcmp.eq.s32.totalorder %v2623_v14, 1  ;;  %v13754_v39 = vmov 0  ;;  %v13769_v59 = vld [vmem:[#allocation30_spill] sm:$0xff] }
 0x576   : > { %v13753_v24 = vsel %vm8612_vm4, 4294967295, %v13752_v24  ;;  %v13755_v39 = vsel %vm8616_vm2, 4294967295, %v13754_v39  ;;  %vm2706_vm6 = vcmp.ne.s32.totalorder %v2692_v15, 0  ;;  %v2455_v16 = vsel %vm8608_vm9, %v13756_v51, %v2245_v36  ;;  %4862 = vset.pattern.permute.xlu2 %v13260_v32 }
 0x577   : > { %v2456_v0 = vsel %vm8612_vm4, %v13756_v51, %v2246_v52  ;;  %vm8626_vm3 = vcmp.eq.s32.totalorder %v2624_v35, 1  ;;  %v13757_v19 = vmov 0  ;;  %vm13759_vm15 = vcmask 1046534   ;;  %v8681_v51 = vpop.permute.xlu2 %2737 }
 0x578   : > { %v13758_v19 = vsel %vm8626_vm3, 4294967295, %v13757_v19  ;;  %v2701_v55 = vsel %vm13759_vm15, %v7630_v37, %v7620_v10  ;;  %3144 = vperm.xlu1 %4867, %v12411_v6   ;;  %vm8636_vm5 = vcmp.eq.s32.totalorder %v2833_v5, 1  ;;  %v13760_v14 = vmov 0  ;;  %v8645_v7 = vpop.permute.xlu1 %2776  ;;  %13778 = vst [vmem:[#allocation83_spill] sm:$0xff] %v8681_v51  ;;  %v8708_v51 = vld [vmem:[%s5393_s13 + $0x8] sm:$0xff] }
 0x579   : > { %v13761_v14 = vsel %vm8636_vm5, 4294967295, %v13760_v14  ;;  %vm8640_vm9 = vcmp.eq.s32.totalorder %v2834_v57, 1  ;;  %v13762_v15 = vmov 0  ;;  %v2818_v35 = vsel %vm2706_vm6, 1, %v12749_v28  ;;  %13764 = vst [vmem:[#allocation221_spill] sm:$0xff] %v8645_v7  ;;  %v13784_v7 = vld [vmem:[#allocation85_spill] sm:$0xff] }
 0x57a   : > { %v13763_v15 = vsel %vm8640_vm9, 4294967295, %v13762_v15  ;;  %v8650_v36 = vsel %vm8616_vm2, %v13765_v42, %v2455_v16  ;;  %v8655_v5 = vsel %vm8626_vm3, %v13765_v42, %v2456_v0  ;;  %v2702_v52 = vrot.slane %v2701_v55, 6  ;;  %v13768_v16 = vld [vmem:[#allocation34_spill] sm:$0xff]  ;;  %v13771_v55 = vld [vmem:[#allocation33_spill] sm:$0xff]  ;;  %v13772_v42 = vld [vmem:[#allocation111_spill] sm:$0xff]  ;;  %13792 = vst [vmem:[#allocation132_spill] sm:$0xff] %v8708_v51 }
 0x57b   : > { %13766 = vst [vmem:[#allocation223_spill] sm:$0xff] %v8650_v36  ;;  %v2827_v6 = vperm.slane %v2818_v35, 0  ;;  %v2828_v38 = vperm.slane %v2818_v35, 1  ;;  %v12418_v34 = vperm.slane %v13768_v16, 4  ;;  %v13770_v0 = vperm.slane %v13769_v59, 3  ;;  %v13795_v59 = vld [vmem:[#allocation28_spill] sm:$0xff] }
 0x57c   : > { %13767 = vst [vmem:[#allocation73_spill] sm:$0xff] %v8655_v5  ;;  %vm2711_vm15 = vcmp.ne.s32.totalorder %v2702_v52, 0  ;;  %vm13773_vm6 = vnez %v13772_v42  ;;  %v13774_v57 = vmov 0  ;;  %v13776_v35 = vmov 0  ;;  %v13782_v5 = vld [vmem:[#allocation112_spill] sm:$0xff] }
 0x57d   : > { %v784_v56 = vsel %vm13773_vm6, %v13771_v55, 0.0  ;;  %vm8673_vm5 = vcmp.eq.s32.totalorder %v2827_v6, 1  ;;  %vm8677_vm9 = vcmp.eq.s32.totalorder %v2828_v38, 1  ;;  %v2823_v6 = vsel %vm2711_vm15, 1, %v12749_v28 }
 0x57e   : > { %2954 = vperm.xlu2 %4862, %v13770_v0   ;;  %v13775_v57 = vsel %vm8673_vm5, 4294967295, %v13774_v57  ;;  %v13777_v35 = vsel %vm8677_vm9, 4294967295, %v13776_v35  ;;  %vm13781_vm6 = vcmask 1046528   ;;  %vm13783_vm3 = vnez %v13782_v5  ;;  %v13787_v0 = vld [vmem:[#allocation138_spill] sm:$0xff] }
 0x57f   : > { %v2703_v38 = vsel %vm13781_vm6, %v7620_v10, %v7630_v37  ;;  %v785_v36 = vsel %vm13783_vm3, %v13771_v55, 0.0  ;;  %vm13786_vm2 = vnez %v13785_v40  ;;  %vm13788_vm5 = vnez %v13787_v0  ;;  %v13793_v5 = vld [vmem:[#allocation142_spill] sm:$0xff]  ;;  %v13796_v0 = vld [vmem:[#allocation31_spill] sm:$0xff] }
 0x580   : > { %3157 = vperm.xlu1 %4867, %v12418_v34   ;;  %v995_v46 = vsel %vm13786_vm2, %v13784_v7, %v784_v56  ;;  %v996_v52 = vsel %vm13788_vm5, %v13784_v7, %v785_v36  ;;  %v13790_v34 = vld [vmem:[#allocation141_spill] sm:$0xff]  ;;  %vm12444_vm15 = vcmp.eq.s32.totalorder %v8708_v51, 11  ;;  %vm13794_vm3 = vnez %v13793_v5  ;;  %v13797_v7 = vld [vmem:[#allocation99_spill] sm:$0xff]  ;;  %v13807_v5 = vld [vmem:[#allocation146_spill] sm:$0xff] }
 0x581   : > { %vm13791_vm9 = vnez %v13790_v34  ;;  %v1206_v55 = vsel %vm13794_vm3, %v13789_v49, %v996_v52  ;;  %v2837_v25 = vperm.slane %v2823_v6, 0  ;;  %v2838_v40 = vperm.slane %v2823_v6, 1  ;;  %v13799_v34 = vld [vmem:[#allocation62_spill] sm:$0xff]  ;;  %v13804_v52 = vld [vmem:[#allocation100_spill] sm:$0xff] }
 0x582   : > { %v1205_v42 = vsel %vm13791_vm9, %v13789_v49, %v995_v46  ;;  %v2704_v56 = vrot.slane %v2703_v38, 7  ;;  %vm13798_vm5 = vnez %v13797_v7  ;;  %v13800_v46 = vld [vmem:[#allocation109_spill] sm:$0xff]  ;;  %vm13803_vm2 = vnez %v13802_v11  ;;  %v13806_v38 = vld [vmem:[#allocation42_spill] sm:$0xff]  ;;  %v13813_v51 = vld [vmem:[#allocation144_spill] sm:$0xff] }
 0x583   : > { %v760_v36 = vsel %vm13798_vm5, %v13796_v0, 0.0  ;;  %vm13801_vm9 = vnez %v13800_v46  ;;  %v773_v16 = vsel %vm13803_vm2, %v13799_v34, 0.0  ;;  %v2898_v49 = vsel %vm12444_vm15, 1, %v12749_v28  ;;  %v8738_v11 = vld [vmem:[%s5393_s13] sm:$0xff] }
 0x584   : > { %v772_v13 = vsel %vm13801_vm9, %v13799_v34, 0.0  ;;  %vm13805_vm6 = vnez %v13804_v52  ;;  %vm13808_vm3 = vnez %v13807_v5  ;;  %vm13810_vm5 = vnez %v13809_v20  ;;  %13811 = vst [vmem:[#allocation120_spill] sm:$0xff] %v8738_v11  ;;  %v13812_v34 = vld [vmem:[#allocation168_spill] sm:$0xff]  ;;  %v13819_v20 = vld [vmem:[#allocation35_spill] sm:$0xff] }
 0x585   : > { %v761_v6 = vsel %vm13805_vm6, %v13796_v0, 0.0  ;;  %v1415_v7 = vsel %vm13808_vm3, %v13806_v38, %v1205_v42  ;;  %v1416_v46 = vsel %vm13810_vm5, %v13806_v38, %v1206_v55  ;;  %vm13814_vm2 = vnez %v13813_v51  ;;  %v13820_v55 = vld [vmem:[#allocation140_spill] sm:$0xff]  ;;  %v13822_v38 = vld [vmem:[#allocation145_spill] sm:$0xff]  ;;  %v13824_v5 = vld [vmem:[#allocation183_spill] sm:$0xff] }
 0x586   : > { %4864 = vset.pattern.permute.xlu2 %v5560_v18  ;;  %v1625_v3 = vsel %vm13814_vm2, %v13812_v34, %v1415_v7  ;;  %vm8745_vm6 = vcmp.eq.s32.totalorder %v2837_v25, 1  ;;  %v13815_v0 = vmov 0  ;;  %vm8749_vm3 = vcmp.eq.s32.totalorder %v2838_v40, 1  ;;  %v13825_v7 = vld [vmem:[#allocation228_spill] sm:$0xff]  ;;  %v13827_v40 = vld [vmem:[#allocation143_spill] sm:$0xff] }
 0x587   : > { %v13816_v0 = vsel %vm8745_vm6, 4294967295, %v13815_v0  ;;  %v13817_v42 = vmov 0  ;;  %vm2712_vm5 = vcmp.ne.s32.totalorder %v2704_v56, 0  ;;  %vm13821_vm15 = vnez %v13820_v55  ;;  %v13830_v56 = vld [vmem:[#allocation116_spill] sm:$0xff] }
 0x588   : > { %4870 = vset.pattern.permute.xlu1 %v13260_v32  ;;  %v13818_v42 = vsel %vm8749_vm3, 4294967295, %v13817_v42  ;;  %v971_v52 = vsel %vm13821_vm15, %v13819_v20, %v760_v36  ;;  %vm13823_vm9 = vnez %v13822_v38  ;;  %vm13826_vm2 = vnez %v13825_v7  ;;  %v13832_v36 = vld [vmem:[#allocation229_spill] sm:$0xff]  ;;  %v8773_v38 = vpop.permute.xlu1 %2796 }
 0x589   : > { %v1626_v51 = vsel %vm13823_vm9, %v13812_v34, %v1416_v46  ;;  %v1835_v25 = vsel %vm13826_vm2, %v13824_v5, %v1625_v3  ;;  %v8762_v48 = vrot.slane %v2898_v49, 7  ;;  %vm13828_vm4 = vnez %v13827_v40  ;;  %13834 = vst [vmem:[#allocation163_spill] sm:$0xff] %v8773_v38  ;;  %v13837_v34 = vld [vmem:[#allocation93_spill] sm:$0xff] }
 0x58a   : > { %v972_v50 = vsel %vm13828_vm4, %v13819_v20, %v761_v6  ;;  %vm13831_vm12 = vnez %v13830_v56  ;;  %vm13833_vm15 = vnez %v13832_v36  ;;  %vm13835_vm9 = vcmp.eq.s32.totalorder %v8738_v11, 11  ;;  %v13838_v20 = vld [vmem:[#allocation148_spill] sm:$0xff]  ;;  %v13842_v40 = vld [vmem:[#allocation117_spill] sm:$0xff]  ;;  %v13850_v11 = vld [vmem:[#allocation123_spill] sm:$0xff] }
 0x58b   : > { %v983_v17 = vsel %vm13831_vm12, %v13829_v22, %v772_v13  ;;  %v1836_v55 = vsel %vm13833_vm15, %v13824_v5, %v1626_v51  ;;  %v8778_v3 = vsel %vm13835_vm9, 1, %v12749_v28  ;;  %v2824_v6 = vsel %vm2712_vm5, 1, %v12749_v28  ;;  %v13840_v5 = vld [vmem:[#allocation149_spill] sm:$0xff]  ;;  %v13844_v36 = vld [vmem:[#allocation52_spill] sm:$0xff]  ;;  %v13845_v13 = vld [vmem:[#allocation230_spill] sm:$0xff] }
 0x58c   : > { %vm13836_vm12 = vcmask 1040384   ;;  %vm13839_vm4 = vnez %v13838_v20  ;;  %vm13841_vm2 = vnez %v13840_v5  ;;  %vm13843_vm15 = vnez %v13842_v40  ;;  %v13852_v20 = vld [vmem:[#allocation231_spill] sm:$0xff]  ;;  %v13855_v5 = vld [vmem:[#allocation232_spill] sm:$0xff] }
 0x58d   : > { %v2900_v46 = vsel %vm13836_vm12, %v8778_v3, %v8762_v48  ;;  %v1181_v51 = vsel %vm13839_vm4, %v13837_v34, %v971_v52  ;;  %v1182_v7 = vsel %vm13841_vm2, %v13837_v34, %v972_v50  ;;  %v984_v56 = vsel %vm13843_vm15, %v13829_v22, %v773_v16  ;;  %v13854_v34 = vld [vmem:[#allocation201_spill] sm:$0xff] }
 0x58e   : > { %vm13846_vm9 = vnez %v13845_v13  ;;  %vm13849_vm5 = vnez %v13848_v31  ;;  %vm13851_vm12 = vnez %v13850_v11  ;;  %vm13853_vm4 = vnez %v13852_v20  ;;  %v13857_v16 = vld [vmem:[#allocation233_spill] sm:$0xff]  ;;  %v13859_v31 = vld [vmem:[#allocation152_spill] sm:$0xff] }
 0x58f   : > { %v2045_v49 = vsel %vm13846_vm9, %v13844_v36, %v1835_v25  ;;  %v1193_v38 = vsel %vm13849_vm5, %v13847_v4, %v983_v17  ;;  %v1194_v52 = vsel %vm13851_vm12, %v13847_v4, %v984_v56  ;;  %v2046_v50 = vsel %vm13853_vm4, %v13844_v36, %v1836_v55  ;;  %v13860_v17 = vld [vmem:[#allocation124_spill] sm:$0xff]  ;;  %v13862_v4 = vld [vmem:[#allocation125_spill] sm:$0xff]  ;;  %v13864_v55 = vld [vmem:[#allocation182_spill] sm:$0xff] }
 0x590   : > { %vm13856_vm2 = vnez %v13855_v5  ;;  %vm13858_vm15 = vnez %v13857_v16  ;;  %v2839_v13 = vperm.slane %v2824_v6, 0  ;;  %v2840_v40 = vperm.slane %v2824_v6, 1  ;;  %v13866_v6 = vld [vmem:[#allocation96_spill] sm:$0xff]  ;;  %v13873_v16 = vld [vmem:[#allocation58_spill] sm:$0xff] }
 0x591   : > { %v2255_v22 = vsel %vm13856_vm2, %v13854_v34, %v2045_v49  ;;  %v2256_v25 = vsel %vm13858_vm15, %v13854_v34, %v2046_v50  ;;  %vm2915_vm9 = vcmp.ne.s32.totalorder %v2900_v46, 0  ;;  %vm13861_vm5 = vnez %v13860_v17  ;;  %v13867_v46 = vld [vmem:[#allocation110_spill] sm:$0xff] }
 0x592   : > { %v1403_v11 = vsel %vm13861_vm5, %v13859_v31, %v1193_v38  ;;  %vm13863_vm12 = vnez %v13862_v4  ;;  %v2465_v36 = vsel %vm13649_vm0, %v13864_v55, %v2255_v22  ;;  %v2466_v49 = vsel %vm13655_vm8, %v13864_v55, %v2256_v25  ;;  %v13869_v38 = vld [vmem:[#allocation23_spill] sm:$0xff]  ;;  %v8847_v22 = vpop.permute.xlu2 %2757  ;;  %v13874_v25 = vld [vmem:[#allocation262_spill] sm:$0xff] }
 0x593   : > { %v1404_v56 = vsel %vm13863_vm12, %v13859_v31, %v1194_v52  ;;  %v13865_v20 = vperm.slane %v13795_v59, 3  ;;  %vm13868_vm4 = vnez %v13867_v46  ;;  %vm13870_vm2 = vnez %v13869_v38  ;;  %v13871_v52 = vld [vmem:[#allocation153_spill] sm:$0xff]  ;;  %v13880_v4 = vld [vmem:[#allocation63_spill] sm:$0xff] }
 0x594   : > { %v1391_v50 = vsel %vm13868_vm4, %v13866_v6, %v1181_v51  ;;  %v1392_v34 = vsel %vm13870_vm2, %v13866_v6, %v1182_v7  ;;  %v1613_v2 = vsel %vm8358_vm1, %v13871_v52, %v1403_v11  ;;  %v1614_v63 = vsel %vm8408_vm10, %v13871_v52, %v1404_v56  ;;  %v8869_v11 = vpop.permute.xlu1 %2809  ;;  %v13889_v38 = vld [vmem:[#allocation43_spill] sm:$0xff] }
 0x595   : > { %2973 = vperm.xlu2 %4864, %v13865_v20   ;;  %v13872_v5 = vperm.slane %v13795_v59, 4  ;;  %v3027_v7 = vsel %vm2915_vm9, 1, %v12749_v28  ;;  %vm13875_vm1 = vcmask 1041409   ;;  %vm8861_vm0 = vcmp.eq.s32.totalorder %v2839_v13, 1  ;;  %v13885_v13 = vld [vmem:[#allocation173_spill] sm:$0xff] }
 0x596   : > { %v2901_v60 = vsel %vm13875_vm1, %v8778_v3, %v8762_v48  ;;  %v13876_v31 = vmov 0  ;;  %vm8865_vm8 = vcmp.eq.s32.totalorder %v2840_v40, 1  ;;  %v13878_v17 = vmov 0 }
 0x597   : > { %3177 = vperm.xlu1 %4870, %v13872_v5   ;;  %v13877_v31 = vsel %vm8861_vm0, 4294967295, %v13876_v31  ;;  %v13879_v17 = vsel %vm8865_vm8, 4294967295, %v13878_v17  ;;  %vm13881_vm10 = vnez %v13642_v47  ;;  %vm13883_vm15 = vnez %v13644_v21  ;;  %v13972_v47 = vld [vmem:[#allocation162_spill] sm:$0xff] }
 0x598   : > { %v8874_v56 = vsel %vm13881_vm10, %v13880_v4, %v2465_v36  ;;  %v8879_v55 = vsel %vm13883_vm15, %v13880_v4, %v2466_v49  ;;  %vm13886_vm9 = vnez %v13686_v43  ;;  %vm13887_vm5 = vnez %v13688_v41  ;;  %v13888_v36 = vld [vmem:[#allocation184_spill] sm:$0xff]  ;;  %v13890_v41 = vld [vmem:[#allocation101_spill] sm:$0xff]  ;;  %v13894_v4 = vld [vmem:[#allocation150_spill] sm:$0xff] }
 0x599   : > { %13882 = vst [vmem:[#allocation167_spill] sm:$0xff] %v8874_v56  ;;  %v1823_v20 = vsel %vm13886_vm9, %v13885_v13, %v1613_v2  ;;  %v1824_v40 = vsel %vm13887_vm5, %v13885_v13, %v1614_v63  ;;  %v3035_v43 = vperm.slane %v3027_v7, 0  ;;  %v3036_v6 = vperm.slane %v3027_v7, 1  ;;  %v13892_v63 = vld [vmem:[#allocation202_spill] sm:$0xff]  ;;  %v14036_v56 = vld [vmem:[#allocation108_spill] sm:$0xff] }
 0x59a   : > { %13884 = vst [vmem:[#allocation175_spill] sm:$0xff] %v8879_v55  ;;  %v2033_v49 = vsel %vm8477_vm7, %v13888_v36, %v1823_v20  ;;  %v2902_v46 = vrot.slane %v2901_v60, 1  ;;  %vm13891_vm12 = vnez %v13890_v41  ;;  %v2034_v2 = vsel %vm8481_vm13, %v13888_v36, %v1824_v40  ;;  %v13896_v13 = vld [vmem:[#allocation170_spill] sm:$0xff]  ;;  %v13905_v36 = vld [vmem:[#allocation160_spill] sm:$0xff]  ;;  %v8942_v41 = vpop.permute.xlu2 %2770 }
 0x59b   : > { %v1601_v52 = vsel %vm13891_vm12, %v13889_v38, %v1391_v50  ;;  %vm13893_vm4 = vnez %v13710_v62  ;;  %vm13895_vm2 = vnez %v13894_v4  ;;  %v13897_v20 = vld [vmem:[#allocation106_spill] sm:$0xff]  ;;  %vm13899_vm1 = vnez %v13712_v12 }
 0x59c   : > { %v2243_v5 = vsel %vm13893_vm4, %v13892_v63, %v2033_v49  ;;  %v1602_v30 = vsel %vm13895_vm2, %v13889_v38, %v1392_v34  ;;  %vm13898_vm7 = vnez %v13897_v20  ;;  %v2244_v50 = vsel %vm13899_vm1, %v13892_v63, %v2034_v2  ;;  %v13900_v60 = vld [vmem:[#allocation214_spill] sm:$0xff] }
 0x59d   : > { %v1811_v7 = vsel %vm13898_vm7, %v13896_v13, %v1601_v52  ;;  %vm13901_vm10 = vnez %v13751_v61  ;;  %v13902_v40 = vld [vmem:[#allocation102_spill] sm:$0xff]  ;;  %vm13904_vm15 = vnez %v13753_v24  ;;  %vm13906_vm9 = vnez %v13755_v39 }
 0x59e   : > { %v2453_v27 = vsel %vm13901_vm10, %v13900_v60, %v2243_v5  ;;  %vm13903_vm13 = vnez %v13902_v40  ;;  %v2454_v34 = vsel %vm13904_vm15, %v13900_v60, %v2244_v50  ;;  %v13907_v12 = vperm.slane %v5974_v54, 3  ;;  %v13918_v2 = vld [vmem:[#allocation242_spill] sm:$0xff]  ;;  %v2929_v5 = vpop.permute.xlu1 %2928  ;;  %v13929_v60 = vld [vmem:[#allocation244_spill] sm:$0xff] }
 0x59f   : > { %v1812_v62 = vsel %vm13903_vm13, %v13896_v13, %v1602_v30  ;;  %v8928_v49 = vsel %vm13906_vm9, %v13905_v36, %v2453_v27  ;;  %vm13908_vm5 = vcmask 1045509   ;;  %vm13909_vm12 = vnez %v13758_v19  ;;  %v13928_v50 = vld [vmem:[#allocation54_spill] sm:$0xff] }
 0x5a0   : > { %2986 = vperm.xlu2 %4864, %v13907_v12   ;;  %v2699_v61 = vsel %vm13908_vm5, %v7630_v37, %v7620_v10  ;;  %v8938_v38 = vsel %vm13909_vm12, %v13905_v36, %v2454_v34  ;;  %v13910_v24 = vperm.slane %v5974_v54, 4  ;;  %vm8944_vm4 = vcmp.eq.s32.totalorder %v3035_v43, 1  ;;  %v13915_v10 = vld [vmem:[#allocation187_spill] sm:$0xff]  ;;  %v13916_v37 = vld [vmem:[#allocation241_spill] sm:$0xff]  ;;  %v13934_v34 = vld [vmem:[#allocation246_spill] sm:$0xff] }
 0x5a1   : > { %vm8948_vm2 = vcmp.eq.s32.totalorder %v3036_v6, 1  ;;  %vm2916_vm7 = vcmp.ne.s32.totalorder %v2902_v46, 0  ;;  %vm13917_vm1 = vnez %v13916_v37  ;;  %vm13919_vm10 = vnez %v13918_v2  ;;  %v13938_v12 = vld [vmem:[#allocation225_spill] sm:$0xff]  ;;  %v13991_v6 = vld [vmem:[#allocation274_spill] sm:$0xff]  ;;  %v13992_v43 = vld [vmem:[#allocation275_spill] sm:$0xff] }
 0x5a2   : > { %3190 = vperm.xlu1 %4870, %v13910_v24   ;;  %v2021_v19 = vsel %vm13917_vm1, %v13915_v10, %v1811_v7  ;;  %v2022_v63 = vsel %vm13919_vm10, %v13915_v10, %v1812_v62  ;;  %vm13920_vm13 = vnez %v13761_v14  ;;  %vm13921_vm15 = vnez %v13763_v15  ;;  %v13933_v62 = vld [vmem:[#allocation95_spill] sm:$0xff]  ;;  %v14034_v55 = vld [vmem:[#allocation154_spill] sm:$0xff] }
 0x5a3   : > { %v2700_v46 = vrot.slane %v2699_v61, 5  ;;  %vm13922_vm9 = vnez %v13540_v33  ;;  %vm13925_vm5 = vnez %v13542_v29  ;;  %v3028_v7 = vsel %vm2916_vm7, 1, %v12749_v28  ;;  %v13939_v61 = vld [vmem:[#allocation248_spill] sm:$0xff]  ;;  %v14096_v39 = vld [vmem:[#allocation30_spill] sm:$0xff] }
 0x5a4   : > { %v13923_v4 = vsel %vm13922_vm9, %v8553_v23, %v8544_v58  ;;  %v13926_v13 = vsel %vm13925_vm5, %v8553_v23, %v8549_v1  ;;  %vm13930_vm12 = vnez %v13929_v60  ;;  %v13931_v58 = vld [vmem:[#allocation245_spill] sm:$0xff]  ;;  %vm13935_vm10 = vnez %v13934_v34  ;;  %v13936_v1 = vld [vmem:[#allocation247_spill] sm:$0xff] }
 0x5a5   : > { %v8973_v30 = vsel %vm8944_vm4, %v2929_v5, %v13923_v4  ;;  %v8982_v20 = vsel %vm8948_vm2, %v2929_v5, %v13926_v13  ;;  %v2231_v27 = vsel %vm13930_vm12, %v13928_v50, %v2021_v19  ;;  %vm13932_vm1 = vnez %v13931_v58  ;;  %v13941_v19 = vld [vmem:[#allocation249_spill] sm:$0xff]  ;;  %v13944_v5 = vld [vmem:[#allocation66_spill] sm:$0xff] }
 0x5a6   : > { %13924 = vst [vmem:[#allocation181_spill] sm:$0xff] %v8973_v30  ;;  %v2232_v40 = vsel %vm13932_vm1, %v13928_v50, %v2022_v63  ;;  %v2441_v36 = vsel %vm13935_vm10, %v13933_v62, %v2231_v27  ;;  %vm13937_vm14 = vnez %v13936_v1  ;;  %vm13940_vm11 = vnez %v13939_v61  ;;  %v2942_v50 = vpop.permute.xlu1 %2941 }
 0x5a7   : > { %13927 = vst [vmem:[#allocation179_spill] sm:$0xff] %v8982_v20  ;;  %v2442_v23 = vsel %vm13937_vm14, %v13933_v62, %v2232_v40  ;;  %v2651_v24 = vsel %vm13940_vm11, %v13938_v12, %v2441_v36  ;;  %v3037_v10 = vperm.slane %v3028_v7, 0  ;;  %v3038_v37 = vperm.slane %v3028_v7, 1 }
 0x5a8   : > { %vm2710_vm7 = vcmp.ne.s32.totalorder %v2700_v46, 0  ;;  %vm13942_vm12 = vnez %v13941_v19  ;;  %4866 = vset.pattern.permute.xlu2 %v13260_v32  ;;  %vm13943_vm1 = vcmask 1042434   ;;  %vm13945_vm14 = vnez %v13775_v57 }
 0x5a9   : > { %v2652_v2 = vsel %vm13942_vm12, %v13938_v12, %v2442_v23  ;;  %v2903_v63 = vsel %vm13943_vm1, %v8778_v3, %v8762_v48  ;;  %v2861_v4 = vsel %vm13945_vm14, %v13944_v5, %v2651_v24  ;;  %v2822_v13 = vsel %vm2710_vm7, 1, %v12749_v28  ;;  %v13954_v23 = vld [vmem:[#allocation49_spill] sm:$0xff]  ;;  %v13955_v12 = vld [vmem:[#allocation91_spill] sm:$0xff] }
 0x5aa   : > { %4872 = vset.pattern.permute.xlu1 %v5560_v18  ;;  %vm9012_vm11 = vcmp.eq.s32.totalorder %v3037_v10, 1  ;;  %v13946_v46 = vmov 0  ;;  %vm9016_vm10 = vcmp.eq.s32.totalorder %v3038_v37, 1  ;;  %v13948_v7 = vmov 0  ;;  %v13957_v24 = vld [vmem:[#allocation89_spill] sm:$0xff] }
 0x5ab   : > { %v13947_v46 = vsel %vm9012_vm11, 4294967295, %v13946_v46  ;;  %v13949_v7 = vsel %vm9016_vm10, 4294967295, %v13948_v7  ;;  %vm13950_vm12 = vnez %v13777_v35  ;;  %v2904_v27 = vrot.slane %v2903_v63, 2  ;;  %v14022_v63 = vld [vmem:[#allocation18_spill] sm:$0xff] }
 0x5ac   : > { %v2862_v60 = vsel %vm13950_vm12, %v13944_v5, %v2652_v2  ;;  %v9025_v58 = vsel %vm9012_vm11, %v2942_v50, %v2861_v4  ;;  %v2835_v62 = vperm.slane %v2822_v13, 0  ;;  %v2836_v34 = vperm.slane %v2822_v13, 1  ;;  %v9050_v2 = vpop.permute.xlu2 %2789  ;;  %v14005_v4 = vld [vmem:[#allocation215_spill] sm:$0xff] }
 0x5ad   : > { %13951 = vst [vmem:[#allocation195_spill] sm:$0xff] %v9025_v58  ;;  %v9029_v40 = vsel %vm9016_vm10, %v2942_v50, %v2862_v60  ;;  %v12464_v36 = vperm.slane %v13528_v26, 4  ;;  %vm2917_vm7 = vcmp.ne.s32.totalorder %v2904_v27, 0  ;;  %v13953_v1 = vperm.slane %v13585_v45, 3  ;;  %v13966_v60 = vld [vmem:[#allocation38_spill] sm:$0xff] }
 0x5ae   : > { %13952 = vst [vmem:[#allocation192_spill] sm:$0xff] %v9029_v40  ;;  %vm13956_vm1 = vcmp.eq.s32.totalorder %v13955_v12, 0  ;;  %vm13958_vm12 = vcmp.eq.s32.totalorder %v13957_v24, 0  ;;  %vm9042_vm10 = vcmp.eq.s32.totalorder %v2835_v62, 1  ;;  %v13959_v37 = vmov 0 }
 0x5af   : > { %v793_v61 = vsel %vm13956_vm1, %v13954_v23, 0.0  ;;  %v794_v10 = vsel %vm13958_vm12, %v13954_v23, 0.0  ;;  %v13960_v37 = vsel %vm9042_vm10, 4294967295, %v13959_v37  ;;  %vm9046_vm11 = vcmp.eq.s32.totalorder %v2836_v34, 1  ;;  %13963 = vst [vmem:[#allocation199_spill] sm:$0xff] %v9050_v2  ;;  %v13969_v23 = vld [vmem:[#allocation24_spill] sm:$0xff] }
 0x5b0   : > { %3006 = vperm.xlu2 %4866, %v13953_v1   ;;  %v13961_v19 = vmov 0  ;;  %v3029_v50 = vsel %vm2917_vm7, 1, %v12749_v28  ;;  %vm13967_vm12 = vcmp.eq.s32.totalorder %v13955_v12, 1  ;;  %vm13968_vm1 = vcmp.eq.s32.totalorder %v13957_v24, 1  ;;  %v14024_v2 = vld [vmem:[#allocation21_spill] sm:$0xff] }
 0x5b1   : > { %v13962_v19 = vsel %vm9046_vm11, 4294967295, %v13961_v19  ;;  %v1003_v27 = vsel %vm13967_vm12, %v13966_v60, %v793_v61  ;;  %v1004_v62 = vsel %vm13968_vm1, %v13966_v60, %v794_v10  ;;  %v3039_v34 = vperm.slane %v3029_v50, 0 }
 0x5b2   : > { %3209 = vperm.xlu1 %4872, %v12464_v36   ;;  %v3040_v1 = vperm.slane %v3029_v50, 1  ;;  %vm13970_vm14 = vcmp.eq.s32.totalorder %v13955_v12, 2  ;;  %vm13971_vm8 = vcmp.eq.s32.totalorder %v13957_v24, 2  ;;  %v12463_v21 = vperm.slane %v13585_v45, 4  ;;  %v13989_v36 = vld [vmem:[#allocation273_spill] sm:$0xff] }
 0x5b3   : > { %v1213_v5 = vsel %vm13970_vm14, %v13969_v23, %v1003_v27  ;;  %v1214_v13 = vsel %vm13971_vm8, %v13969_v23, %v1004_v62  ;;  %vm13973_vm7 = vcmp.eq.s32.totalorder %v13955_v12, 3  ;;  %vm13974_vm12 = vcmp.eq.s32.totalorder %v13957_v24, 3  ;;  %v13977_v27 = vld [vmem:[#allocation17_spill] sm:$0xff] }
 0x5b4   : > { %v1423_v61 = vsel %vm13973_vm7, %v13972_v47, %v1213_v5  ;;  %v1424_v10 = vsel %vm13974_vm12, %v13972_v47, %v1214_v13  ;;  %v13975_v50 = vperm.slane %v13730_v9, 3  ;;  %vm13976_vm14 = vcmask 1044484   ;;  %v9093_v5 = vpop.permute.xlu2 %2802 }
 0x5b5   : > { %v2907_v60 = vsel %vm13976_vm14, %v8778_v3, %v8762_v48  ;;  %vm13978_vm8 = vcmp.eq.s32.totalorder %v13955_v12, 4  ;;  %vm13979_vm1 = vcmp.eq.s32.totalorder %v13957_v24, 4  ;;  %vm9095_vm7 = vcmp.eq.s32.totalorder %v3039_v34, 1  ;;  %v13986_v34 = vld [vmem:[#allocation25_spill] sm:$0xff] }
 0x5b6   : > { %v1633_v62 = vsel %vm13978_vm8, %v13977_v27, %v1423_v61  ;;  %v1634_v23 = vsel %vm13979_vm1, %v13977_v27, %v1424_v10  ;;  %v13980_v47 = vmov 0  ;;  %vm9099_vm12 = vcmp.eq.s32.totalorder %v3040_v1, 1  ;;  %v2961_v27 = vpop.permute.xlu1 %2960  ;;  %v13995_v10 = vld [vmem:[#allocation208_spill] sm:$0xff] }
 0x5b7   : > { %v13981_v47 = vsel %vm9095_vm7, 4294967295, %v13980_v47  ;;  %v13982_v13 = vmov 0  ;;  %v2908_v51 = vrot.slane %v2907_v60, 4  ;;  %vm13987_vm14 = vcmp.eq.s32.totalorder %v13955_v12, 5  ;;  %v13997_v60 = vld [vmem:[#allocation276_spill] sm:$0xff] }
 0x5b8   : > { %3019 = vperm.xlu2 %4866, %v13975_v50   ;;  %v13983_v13 = vsel %vm9099_vm12, 4294967295, %v13982_v13  ;;  %v13984_v50 = vld [vmem:[#allocation210_spill] sm:$0xff]  ;;  %vm13988_vm8 = vcmp.eq.s32.totalorder %v13957_v24, 5  ;;  %vm13990_vm1 = vnez %v13989_v36  ;;  %vm13996_vm0 = vnez %v13995_v10 }
 0x5b9   : > { %v1844_v1 = vsel %vm13988_vm8, %v13986_v34, %v1634_v23  ;;  %v13993_v61 = vsel %vm13990_vm1, %v13991_v6, %v13992_v43  ;;  %v13998_v58 = vsel %vm13996_vm0, %v13991_v6, %v13997_v60  ;;  %v14000_v24 = vld [vmem:[#allocation190_spill] sm:$0xff]  ;;  %vm2919_vm0 = vcmp.ne.s32.totalorder %v2908_v51, 0  ;;  %v14008_v60 = vld [vmem:[#allocation16_spill] sm:$0xff] }
 0x5ba   : > { %3222 = vperm.xlu1 %4872, %v12463_v21   ;;  %v1843_v21 = vsel %vm13987_vm14, %v13986_v34, %v1633_v62  ;;  %v9124_v40 = vsel %vm9095_vm7, %v2961_v27, %v13993_v61  ;;  %v9133_v12 = vsel %vm9099_vm12, %v2961_v27, %v13998_v58  ;;  %v14001_v62 = vld [vmem:[#allocation59_spill] sm:$0xff]  ;;  %v14003_v34 = vld [vmem:[#allocation213_spill] sm:$0xff]  ;;  %v14009_v58 = vperm.slane %v14008_v60, 4 }
 0x5bb   : > { %13994 = vst [vmem:[#allocation222_spill] sm:$0xff] %v9124_v40  ;;  %vm14002_vm14 = vcmp.eq.s32.totalorder %v14001_v62, 6  ;;  %vm14004_vm8 = vcmp.eq.s32.totalorder %v14003_v34, 6  ;;  %vm14006_vm3 = vcmp.eq.s32.totalorder %v14001_v62, 7  ;;  %vm14007_vm6 = vcmp.eq.s32.totalorder %v14003_v34, 7  ;;  %v14010_v27 = vld [vmem:[#allocation47_spill] sm:$0xff] }
 0x5bc   : > { %13999 = vst [vmem:[#allocation105_spill] sm:$0xff] %v9133_v12  ;;  %v2053_v23 = vsel %vm14002_vm14, %v14000_v24, %v1843_v21  ;;  %v2054_v43 = vsel %vm14004_vm8, %v14000_v24, %v1844_v1  ;;  %v14011_v12 = vld [vmem:[#allocation20_spill] sm:$0xff]  ;;  %v14013_v40 = vld [vmem:[#allocation26_spill] sm:$0xff]  ;;  %vm14014_vm14 = vcmp.eq.s32.totalorder %v14001_v62, 8  ;;  %vm14015_vm8 = vcmp.eq.s32.totalorder %v14003_v34, 8 }
 0x5bd   : > { %v2263_v61 = vsel %vm14006_vm3, %v14005_v4, %v2053_v23  ;;  %v2264_v6 = vsel %vm14007_vm6, %v14005_v4, %v2054_v43  ;;  %vm14012_vm12 = vnez %v14011_v12  ;;  %v5190_v23 = vmov 12   ;;  %v14017_v4 = vld [vmem:[#allocation22_spill] sm:$0xff]  ;;  %v14019_v12 = vld [vmem:[#allocation176_spill] sm:$0xff] }
 0x5be   : > { %v776_v21 = vsel %vm14012_vm12, %v14010_v27, 0.0  ;;  %v2473_v1 = vsel %vm14014_vm14, %v14013_v40, %v2263_v61  ;;  %v2474_v24 = vsel %vm14015_vm8, %v14013_v40, %v2264_v6  ;;  %vm14016_vm6 = vcmask 1045509   ;;  %v2891_v40 = vpop.permute.xlu2 %2890 }
 0x5bf   : > { %v2909_v51 = vsel %vm14016_vm6, %v8778_v3, %v8762_v48  ;;  %vm14018_vm3 = vnez %v14017_v4  ;;  %vm14020_vm12 = vcmp.eq.s32.totalorder %v14001_v62, 9  ;;  %vm14021_vm14 = vcmp.eq.s32.totalorder %v14003_v34, 9  ;;  %v14026_v4 = vld [vmem:[#allocation65_spill] sm:$0xff] }
 0x5c0   : > { %3138 = vperm.xlu2 %4866, %v14009_v58   ;;  %v777_v43 = vsel %vm14018_vm3, %v14010_v27, 0.0  ;;  %v2683_v58 = vsel %vm14020_vm12, %v14019_v12, %v2473_v1  ;;  %v2684_v61 = vsel %vm14021_vm14, %v14019_v12, %v2474_v24  ;;  %v3031_v6 = vsel %vm2919_vm0, 1, %v12749_v28  ;;  %v14031_v12 = vld [vmem:[#allocation107_spill] sm:$0xff] }
 0x5c1   : > { %vm14025_vm8 = vnez %v14024_v2  ;;  %vm14027_vm6 = vnez %v14026_v4  ;;  %vm14028_vm3 = vcmp.eq.s32.totalorder %v14001_v62, 10  ;;  %vm14029_vm12 = vcmp.eq.s32.totalorder %v14003_v34, 10  ;;  %v14037_v4 = vld [vmem:[#allocation118_spill] sm:$0xff]  ;;  %v14039_v62 = vld [vmem:[#allocation155_spill] sm:$0xff] }
 0x5c2   : > { %4874 = vset.pattern.permute.xlu1 %v5190_v23  ;;  %v14023_v23 = vld [vmem:[#allocation37_spill] sm:$0xff]  ;;  %v9180_v1 = vsel %vm14028_vm3, %v2891_v40, %v2683_v58  ;;  %v9184_v24 = vsel %vm14029_vm12, %v2891_v40, %v2684_v61  ;;  %vm14035_vm0 = vnez %v14034_v55  ;;  %v3043_v34 = vperm.slane %v3031_v6, 0  ;;  %v14041_v40 = vld [vmem:[#allocation44_spill] sm:$0xff] }
 0x5c3   : > { %3310 = vperm.xlu1 %4874, %v14022_v63   ;;  %v987_v20 = vsel %vm14025_vm8, %v14023_v23, %v776_v21  ;;  %v988_v27 = vsel %vm14027_vm6, %v14023_v23, %v777_v43  ;;  %14030 = vst [vmem:[#allocation75_spill] sm:$0xff] %v9184_v24  ;;  %v14032_v63 = vld [vmem:[#allocation67_spill] sm:$0xff]  ;;  %v2910_v21 = vrot.slane %v2909_v51, 5  ;;  %vm14038_vm8 = vnez %v14037_v4  ;;  %v14042_v23 = vld [vmem:[#allocation158_spill] sm:$0xff] }
 0x5c4   : > { %vm14033_vm14 = vnez %v14032_v63  ;;  %v1198_v2 = vsel %vm14035_vm0, %v14031_v12, %v988_v27  ;;  %vm14040_vm6 = vnez %v14039_v62  ;;  %v3044_v61 = vperm.slane %v3031_v6, 1  ;;  %v14046_v27 = vld [vmem:[#allocation34_spill] sm:$0xff]  ;;  %v14057_v62 = vld [vmem:[#allocation193_spill] sm:$0xff] }
 0x5c5   : > { %v1197_v30 = vsel %vm14033_vm14, %v14031_v12, %v987_v20  ;;  %v1408_v58 = vsel %vm14040_vm6, %v14036_v56, %v1198_v2  ;;  %vm14043_vm3 = vnez %v14042_v23  ;;  %v14044_v20 = vld [vmem:[#allocation159_spill] sm:$0xff]  ;;  %v14047_v51 = vperm.slane %v14046_v27, 4  ;;  %v14048_v12 = vld [vmem:[#allocation174_spill] sm:$0xff] }
 0x5c6   : > { %v1407_v43 = vsel %vm14038_vm8, %v14036_v56, %v1197_v30  ;;  %vm14045_vm12 = vnez %v14044_v20  ;;  %vm2920_vm14 = vcmp.ne.s32.totalorder %v2910_v21, 0  ;;  %v14049_v30 = vld [vmem:[#allocation156_spill] sm:$0xff]  ;;  %v14051_v56 = vld [vmem:[#allocation157_spill] sm:$0xff]  ;;  %vm9212_vm6 = vcmp.eq.s32.totalorder %v3043_v34, 1 }
 0x5c7   : > { %v1617_v63 = vsel %vm14043_vm3, %v14041_v40, %v1407_v43  ;;  %v1618_v55 = vsel %vm14045_vm12, %v14041_v40, %v1408_v58  ;;  %vm14050_vm0 = vnez %v14049_v30  ;;  %vm14052_vm8 = vnez %v14051_v56  ;;  %v14058_v58 = vld [vmem:[#allocation136_spill] sm:$0xff]  ;;  %v14060_v40 = vld [vmem:[#allocation265_spill] sm:$0xff]  ;;  %v14069_v56 = vld [vmem:[#allocation266_spill] sm:$0xff] }
 0x5c8   : > { %3151 = vperm.xlu2 %4866, %v14047_v51   ;;  %v1827_v4 = vsel %vm14050_vm0, %v14048_v12, %v1617_v63  ;;  %v1828_v6 = vsel %vm14052_vm8, %v14048_v12, %v1618_v55  ;;  %vm9216_vm3 = vcmp.eq.s32.totalorder %v3044_v61, 1  ;;  %vm14059_vm12 = vnez %v14058_v58  ;;  %v2981_v63 = vpop.permute.xlu1 %2980  ;;  %v14066_v12 = vld [vmem:[#allocation56_spill] sm:$0xff]  ;;  %v14067_v30 = vld [vmem:[#allocation189_spill] sm:$0xff] }
 0x5c9   : > { %v2037_v21 = vsel %vm14059_vm12, %v14057_v62, %v1827_v4  ;;  %vm14061_vm7 = vnez %v14060_v40  ;;  %v3032_v34 = vsel %vm2920_vm14, 1, %v12749_v28  ;;  %v14062_v61 = vsel %vm13920_vm13, %v8942_v41, %v8928_v49  ;;  %v14074_v40 = vld [vmem:[#allocation268_spill] sm:$0xff] }
 0x5ca   : > { %v2038_v23 = vsel %vm14061_vm7, %v14057_v62, %v1828_v6  ;;  %v9235_v20 = vsel %vm9212_vm6, %v2981_v63, %v14062_v61  ;;  %v14064_v55 = vsel %vm13921_vm15, %v8942_v41, %v8938_v38  ;;  %vm14068_vm7 = vnez %v14067_v30  ;;  %v14071_v6 = vld [vmem:[#allocation39_spill] sm:$0xff]  ;;  %v14072_v62 = vld [vmem:[#allocation186_spill] sm:$0xff]  ;;  %v14076_v61 = vld [vmem:[#allocation224_spill] sm:$0xff] }
 0x5cb   : > { %4876 = vset.pattern.permute.xlu1 %v5560_v18  ;;  %14063 = vst [vmem:[#allocation115_spill] sm:$0xff] %v9235_v20  ;;  %v9244_v51 = vsel %vm9216_vm3, %v2981_v63, %v14064_v55  ;;  %v2247_v4 = vsel %vm14068_vm7, %v14066_v12, %v2037_v21  ;;  %vm14070_vm14 = vnez %v14069_v56  ;;  %vm14073_vm0 = vnez %v14072_v62  ;;  %v14077_v63 = vld [vmem:[#allocation270_spill] sm:$0xff]  ;;  %v14079_v30 = vld [vmem:[#allocation271_spill] sm:$0xff]  ;;  %v14084_v56 = vld [vmem:[#allocation69_spill] sm:$0xff] }
 0x5cc   : > { %14065 = vst [vmem:[#allocation119_spill] sm:$0xff] %v9244_v51  ;;  %v2248_v49 = vsel %vm14070_vm14, %v14066_v12, %v2038_v23  ;;  %v2457_v58 = vsel %vm14073_vm0, %v14071_v6, %v2247_v4  ;;  %vm14075_vm8 = vnez %v14074_v40  ;;  %v3045_v41 = vperm.slane %v3032_v34, 0  ;;  %v14087_v40 = vld [vmem:[#allocation227_spill] sm:$0xff] }
 0x5cd   : > { %v2458_v38 = vsel %vm14075_vm8, %v14071_v6, %v2248_v49  ;;  %vm14078_vm12 = vnez %v14077_v63  ;;  %vm14080_vm7 = vnez %v14079_v30  ;;  %v3046_v24 = vperm.slane %v3032_v34, 1  ;;  %v2935_v6 = vpop.permute.xlu2 %2934  ;;  %v14091_v63 = vld [vmem:[#allocation103_spill] sm:$0xff] }
 0x5ce   : > { %v2667_v55 = vsel %vm14078_vm12, %v14076_v61, %v2457_v58  ;;  %v2668_v21 = vsel %vm14080_vm7, %v14076_v61, %v2458_v38  ;;  %v12483_v23 = vperm.slane %v14008_v60, 5  ;;  %vm14081_vm14 = vcmask 1046534   ;;  %v14088_v38 = vld [vmem:[#allocation57_spill] sm:$0xff] }
 0x5cf   : > { %v2911_v12 = vsel %vm14081_vm14, %v8778_v3, %v8762_v48  ;;  %vm9271_vm0 = vcmp.eq.s32.totalorder %v3045_v41, 1  ;;  %v14082_v4 = vmov 0  ;;  %v2877_v49 = vsel %vm9042_vm10, %v14084_v56, %v2667_v55 }
 0x5d0   : > { %4869 = vset.pattern.permute.xlu2 %v5560_v18  ;;  %v14083_v4 = vsel %vm9271_vm0, 4294967295, %v14082_v4  ;;  %v2878_v34 = vsel %vm9046_vm11, %v14084_v56, %v2668_v21  ;;  %vm9281_vm8 = vcmp.eq.s32.totalorder %v3046_v24, 1  ;;  %v14085_v62 = vmov 0  ;;  %v2994_v58 = vpop.permute.xlu1 %2993 }
 0x5d1   : > { %v14086_v62 = vsel %vm9281_vm8, 4294967295, %v14085_v62  ;;  %v14089_v41 = vsel %vm13922_vm9, %v14087_v40, %v14088_v38  ;;  %v14092_v55 = vsel %vm13925_vm5, %v14087_v40, %v14091_v63  ;;  %v2912_v30 = vrot.slane %v2911_v12, 6  ;;  %v14101_v38 = vld [vmem:[#allocation120_spill] sm:$0xff] }
 0x5d2   : > { %v9292_v61 = vsel %vm8944_vm4, %v2935_v6, %v14089_v41  ;;  %v9301_v24 = vsel %vm8948_vm2, %v2935_v6, %v14092_v55  ;;  %v9305_v33 = vsel %vm9271_vm0, %v2994_v58, %v2877_v49  ;;  %v9309_v21 = vsel %vm9281_vm8, %v2994_v58, %v2878_v34  ;;  %v14099_v6 = vld [vmem:[#allocation132_spill] sm:$0xff] }
 0x5d3   : > { %3354 = vperm.xlu1 %4876, %v12483_v23   ;;  %14090 = vst [vmem:[#allocation53_spill] sm:$0xff] %v9292_v61  ;;  %vm2921_vm4 = vcmp.ne.s32.totalorder %v2912_v30, 0  ;;  %v14097_v56 = vperm.slane %v14096_v39, 4  ;;  %vm14098_vm9 = vcmask 1046528   ;;  %vm12484_vm2 = vcmp.eq.s32.totalorder %v14099_v6, 12 }
 0x5d4   : > { %14093 = vst [vmem:[#allocation76_spill] sm:$0xff] %v9301_v24  ;;  %v2913_v29 = vsel %vm14098_vm9, %v8762_v48, %v8778_v3  ;;  %v3033_v52 = vsel %vm2921_vm4, 1, %v12749_v28  ;;  %v3108_v34 = vsel %vm12484_vm2, 1, %v12749_v28  ;;  %v14100_v58 = vperm.slane %v13795_v59, 4 }
 0x5d5   : > { %14094 = vst [vmem:[#allocation121_spill] sm:$0xff] %v9305_v33  ;;  %v2914_v12 = vrot.slane %v2913_v29, 7  ;;  %v3047_v49 = vperm.slane %v3033_v52, 0  ;;  %v3048_v40 = vperm.slane %v3033_v52, 1  ;;  %vm12485_vm12 = vcmp.eq.s32.totalorder %v14101_v38, 12 }
 0x5d6   : > { %14095 = vst [vmem:[#allocation129_spill] sm:$0xff] %v9309_v21  ;;  %v14104_v63 = vmov 0  ;;  %vm14106_vm4 = vcmask 1043459   ;;  %v14107_v30 = vperm.slane %v14096_v39, 5  ;;  %v9339_v52 = vrot.slane %v3108_v34, 7 }
 0x5d7   : > { %vm2922_vm5 = vcmp.ne.s32.totalorder %v2914_v12, 0  ;;  %vm9325_vm7 = vcmp.eq.s32.totalorder %v3047_v49, 1  ;;  %vm9329_vm14 = vcmp.eq.s32.totalorder %v3048_v40, 1  ;;  %v2905_v55 = vsel %vm14106_vm4, %v8778_v3, %v8762_v48  ;;  %v14108_v49 = vld [vmem:[#allocation212_spill] sm:$0xff] }
 0x5d8   : > { %3170 = vperm.xlu2 %4869, %v14097_v56   ;;  %v14105_v63 = vsel %vm9329_vm14, 4294967295, %v14104_v63  ;;  %v2955_v56 = vpop.permute.xlu2 %2954  ;;  %v3034_v29 = vsel %vm2922_vm5, 1, %v12749_v28  ;;  %v3013_v12 = vpop.permute.xlu1 %3012  ;;  %v14109_v40 = vld [vmem:[#allocation204_spill] sm:$0xff]  ;;  %vm14111_vm9 = vnez %v13981_v47  ;;  %vm14113_vm4 = vnez %v13995_v10 }
 0x5d9   : > { %v14114_v48 = vld [vmem:[#allocation40_spill] sm:$0xff]  ;;  %vm14116_vm2 = vnez %v13983_v13  ;;  %v9362_v36 = vsel %vm12485_vm12, 1, %v12749_v28  ;;  %vm14121_vm5 = vnez %v13818_v42  ;;  %vm14125_vm12 = vcmask 1041409  }
 0x5da   : > { %v14115_v3 = vsel %vm14113_vm4, %v14108_v49, %v14114_v48  ;;  %v14122_v13 = vsel %vm14121_vm5, %v9093_v5, %v13985_v8  ;;  %v14126_v8 = vmov 0  ;;  %v14130_v48 = vld [vmem:[#allocation51_spill] sm:$0xff]  ;;  %vm14167_vm5 = vnez %v13949_v7 }
 0x5db   : > { %4878 = vset.pattern.permute.xlu1 %v13260_v32  ;;  %v9380_v34 = vsel %vm9329_vm14, %v3013_v12, %v14122_v13  ;;  %vm14163_vm14 = vnez %v13947_v46 }
 0x5dc   : > { %14123 = vst [vmem:[#allocation78_spill] sm:$0xff] %v9380_v34 }
 0x5e0   : > { %3183 = vperm.xlu2 %4869, %v14100_v58   ;;  %v14110_v58 = vsel %vm13990_vm1, %v14108_v49, %v14109_v40  ;;  %vm14118_vm1 = vnez %v13816_v0  ;;  %v2906_v49 = vrot.slane %v2905_v55, 3  ;;  %v3049_v40 = vperm.slane %v3034_v29, 0  ;;  %v14221_v0 = vld [vmem:[#allocation277_spill] sm:$0xff] }
 0x5e1   : > { %v9348_v23 = vsel %vm14111_vm9, %v2955_v56, %v14110_v58  ;;  %v14119_v47 = vsel %vm14118_vm1, %v9093_v5, %v13984_v50  ;;  %v3050_v50 = vperm.slane %v3034_v29, 1  ;;  %v3111_v58 = vsel %vm14125_vm12, %v9362_v36, %v9339_v52 }
 0x5e2   : > { %14112 = vst [vmem:[#allocation55_spill] sm:$0xff] %v9348_v23  ;;  %v9371_v10 = vsel %vm9325_vm7, %v3013_v12, %v14119_v47  ;;  %vm2918_vm4 = vcmp.ne.s32.totalorder %v2906_v49, 0  ;;  %vm9389_vm8 = vcmp.eq.s32.totalorder %v3049_v40, 1  ;;  %v14128_v5 = vmov 0  ;;  %v2816_v12 = vpop.permute.xlu0 %2815  ;;  %v3026_v29 = vpop.permute.xlu1 %3025  ;;  %v14132_v47 = vld [vmem:[#allocation211_spill] sm:$0xff] }
 0x5e3   : > { %3374 = vperm.xlu1 %4878, %v14107_v30   ;;  %v9357_v30 = vsel %vm14116_vm2, %v2955_v56, %v14115_v3  ;;  %14120 = vst [vmem:[#allocation45_spill] sm:$0xff] %v9371_v10  ;;  %vm14124_vm2 = vcmask 1040384   ;;  %v14127_v8 = vsel %vm9389_vm8, 4294967295, %v14126_v8  ;;  %vm9393_vm11 = vcmp.eq.s32.totalorder %v3050_v50, 1 }
 0x5e4   : > { %14117 = vst [vmem:[#allocation207_spill] sm:$0xff] %v9357_v30  ;;  %v3110_v56 = vsel %vm14124_vm2, %v9362_v36, %v9339_v52  ;;  %v14129_v5 = vsel %vm9393_vm11, 4294967295, %v14128_v5  ;;  %vm14131_vm2 = vnez %v13877_v31  ;;  %vm14133_vm12 = vnez %v13879_v17 }
 0x5e5   : > { %vm3125_vm9 = vcmp.ne.s32.totalorder %v3110_v56, 0  ;;  %v2887_v3 = vsel %vm14131_vm2, %v2816_v12, %v14130_v48  ;;  %v2888_v13 = vsel %vm14133_vm12, %v2816_v12, %v14132_v47  ;;  %v3030_v56 = vsel %vm2918_vm4, 1, %v12749_v28 }
 0x5e6   : > { %v3237_v55 = vsel %vm3125_vm9, 1, %v12749_v28  ;;  %v3112_v49 = vrot.slane %v3111_v58, 1  ;;  %v9408_v40 = vsel %vm9389_vm8, %v3026_v29, %v2887_v3  ;;  %v9412_v50 = vsel %vm9393_vm11, %v3026_v29, %v2888_v13 }
 0x5e7   : > { %14134 = vst [vmem:[#allocation68_spill] sm:$0xff] %v9408_v40  ;;  %v3245_v30 = vperm.slane %v3237_v55, 0  ;;  %v3246_v23 = vperm.slane %v3237_v55, 1  ;;  %v3041_v21 = vperm.slane %v3030_v56, 0  ;;  %v3042_v33 = vperm.slane %v3030_v56, 1  ;;  %v14148_v56 = vld [vmem:[#allocation72_spill] sm:$0xff] }
 0x5e8   : > { %4871 = vset.pattern.permute.xlu2 %v13260_v32  ;;  %14135 = vst [vmem:[#allocation209_spill] sm:$0xff] %v9412_v50  ;;  %vm3126_vm9 = vcmp.ne.s32.totalorder %v3112_v49, 0  ;;  %v14136_v48 = vperm.slane %v13528_v26, 4  ;;  %v12494_v12 = vperm.slane %v13795_v59, 5  ;;  %v14137_v58 = vmov 0 }
 0x5e9   : > { %vm9417_vm4 = vcmp.eq.s32.totalorder %v3245_v30, 1  ;;  %vm9421_vm0 = vcmp.eq.s32.totalorder %v3246_v23, 1  ;;  %v14139_v3 = vmov 0  ;;  %vm9427_vm10 = vcmp.eq.s32.totalorder %v3041_v21, 1  ;;  %v14147_v23 = vld [vmem:[#allocation82_spill] sm:$0xff] }
 0x5ea   : > { %v14138_v58 = vsel %vm9417_vm4, 4294967295, %v14137_v58  ;;  %v14140_v3 = vsel %vm9421_vm0, 4294967295, %v14139_v3  ;;  %vm9431_vm11 = vcmp.eq.s32.totalorder %v3042_v33, 1  ;;  %v3238_v30 = vsel %vm3126_vm9, 1, %v12749_v28  ;;  %v9436_v13 = vpop.permute.xlu1 %3144  ;;  %v14151_v33 = vld [vmem:[#allocation205_spill] sm:$0xff] }
 0x5eb   : > { %4880 = vset.pattern.permute.xlu1 %v5560_v18  ;;  %14145 = vst [vmem:[#allocation216_spill] sm:$0xff] %v9436_v13  ;;  %vm14146_vm12 = vnez %v13733_v44  ;;  %vm14150_vm8 = vnez %v13735_v53  ;;  %v3248_v40 = vperm.slane %v3238_v30, 1  ;;  %v14153_v26 = vperm.slane %v13585_v45, 4  ;;  %v14186_v53 = vld [vmem:[#allocation206_spill] sm:$0xff] }
 0x5ec   : > { %v14149_v49 = vsel %vm14146_vm12, %v14147_v23, %v14148_v56  ;;  %vm14154_vm9 = vcmask 1043459   ;;  %v14157_v50 = vmov 0  ;;  %vm14159_vm0 = vnez %v13775_v57  ;;  %v14168_v57 = vld [vmem:[#allocation221_spill] sm:$0xff] }
 0x5ed   : > { %vm9474_vm4 = vcmp.eq.s32.totalorder %v3248_v40, 1  ;;  %v14165_v40 = vld [vmem:[#allocation254_spill] sm:$0xff] }
 0x5ee   : > { %v14158_v50 = vsel %vm9474_vm4, 4294967295, %v14157_v50  ;;  %vm14249_vm4 = vcmp.eq.s32.totalorder %v14101_v38, 13 }
 0x5ef   : > { %v2974_v47 = vpop.permute.xlu2 %2973 }
 0x5f0   : > { %3203 = vperm.xlu2 %4871, %v14136_v48   ;;  %v9445_v21 = vsel %vm9427_vm10, %v2974_v47, %v14149_v49  ;;  %v14152_v48 = vsel %vm14150_vm8, %v14147_v23, %v14151_v33  ;;  %v3247_v49 = vperm.slane %v3238_v30, 0  ;;  %v12507_v23 = vperm.slane %v5974_v54, 5  ;;  %v2948_v33 = vpop.permute.xlu0 %2947  ;;  %v14161_v30 = vld [vmem:[#allocation253_spill] sm:$0xff] }
 0x5f2   : > { %vm9470_vm2 = vcmp.eq.s32.totalorder %v3247_v49, 1  ;;  %v9489_v61 = vpop.permute.xlu1 %3157 }
 0x5f3   : > { %3393 = vperm.xlu1 %4880, %v12494_v12   ;;  %v9454_v12 = vsel %vm9431_vm11, %v2974_v47, %v14152_v48  ;;  %v3115_v47 = vsel %vm14154_vm9, %v9362_v36, %v9339_v52  ;;  %v14155_v48 = vmov 0  ;;  %vm14164_vm9 = vnez %v13777_v35  ;;  %v14171_v35 = vld [vmem:[#allocation73_spill] sm:$0xff] }
 0x5f4   : > { %v14156_v48 = vsel %vm9470_vm2, 4294967295, %v14155_v48  ;;  %v3116_v7 = vrot.slane %v3115_v47, 3  ;;  %vm14250_vm2 = vcmp.eq.s32.totalorder %v14101_v38, 12 }
 0x5f8   : > { %3216 = vperm.xlu2 %4871, %v14153_v26   ;;  %v14160_v26 = vld [vmem:[#allocation83_spill] sm:$0xff]  ;;  %v3000_v41 = vpop.permute.xlu0 %2999 }
 0x5f9   : > { %v14162_v56 = vsel %vm14159_vm0, %v14160_v26, %v14161_v30  ;;  %v14166_v13 = vsel %vm14164_vm9, %v14160_v26, %v14165_v40  ;;  %v14169_v30 = vld [vmem:[#allocation223_spill] sm:$0xff]  ;;  %vm14203_vm9 = vnez %v14129_v5 }
 0x5fa   : > { %v9487_v24 = vsel %vm14163_vm14, %v2948_v33, %v14162_v56  ;;  %v2987_v49 = vpop.permute.xlu2 %2986  ;;  %v14170_v54 = vsel %vm13920_vm13, %v14168_v57, %v14169_v30  ;;  %v14172_v56 = vsel %vm13921_vm15, %v14168_v57, %v14171_v35  ;;  %vm3128_vm13 = vcmp.ne.s32.totalorder %v3116_v7, 0  ;;  %v14180_v35 = vld [vmem:[#allocation71_spill] sm:$0xff] }
 0x5fb   : > { %3406 = vperm.xlu1 %4880, %v12507_v23   ;;  %v9498_v23 = vsel %vm14167_vm5, %v2948_v33, %v14166_v13  ;;  %v9507_v46 = vsel %vm9212_vm6, %v2987_v49, %v14170_v54  ;;  %v9516_v26 = vsel %vm9216_vm3, %v2987_v49, %v14172_v56  ;;  %vm14173_vm15 = vcmask 1044484  }
 0x5fc   : > { %v3117_v15 = vsel %vm14173_vm15, %v9362_v36, %v9339_v52  ;;  %v3240_v2 = vsel %vm3128_vm13, 1, %v12749_v28  ;;  %v14174_v33 = vperm.slane %v13730_v9, 4  ;;  %v12511_v49 = vperm.slane %v13585_v45, 5 }
 0x5fd   : > { %v3118_v43 = vrot.slane %v3117_v15, 4  ;;  %v3251_v13 = vperm.slane %v3240_v2, 0  ;;  %v3252_v47 = vperm.slane %v3240_v2, 1  ;;  %v14179_v30 = vsel %vm14146_vm12, %v8847_v22, %v13873_v16  ;;  %v14182_v16 = vld [vmem:[#allocation163_spill] sm:$0xff] }
 0x5fe   : > { %v9553_v56 = vsel %vm9427_vm10, %v14180_v35, %v14179_v30  ;;  %v14181_v2 = vsel %vm14150_vm8, %v8847_v22, %v13874_v25  ;;  %vm14185_vm10 = vnez %v13818_v42  ;;  %vm14188_vm8 = vnez %v14105_v63 }
 0x5ff   : > { %vm3129_vm6 = vcmp.ne.s32.totalorder %v3118_v43, 0  ;;  %vm9535_vm3 = vcmp.eq.s32.totalorder %v3251_v13, 1  ;;  %vm9539_vm0 = vcmp.eq.s32.totalorder %v3252_v47, 1  ;;  %v9565_v44 = vsel %vm9431_vm11, %v14180_v35, %v14181_v2  ;;  %v14183_v43 = vld [vmem:[#allocation188_spill] sm:$0xff] }
 0x600   : > { %4873 = vset.pattern.permute.xlu2 %v5560_v18  ;;  %v14184_v55 = vsel %vm14118_vm1, %v14182_v16, %v14183_v43  ;;  %v14187_v47 = vsel %vm14185_vm10, %v14182_v16, %v14186_v53  ;;  %v3241_v25 = vsel %vm3129_vm6, 1, %v12749_v28  ;;  %vm14189_vm11 = vcmask 1045509   ;;  %v14197_v16 = vld [vmem:[#allocation167_spill] sm:$0xff] }
 0x601   : > { %v3253_v42 = vperm.slane %v3241_v25, 0  ;;  %v3254_v29 = vperm.slane %v3241_v25, 1  ;;  %v3119_v63 = vsel %vm14189_vm11, %v9362_v36, %v9339_v52  ;;  %v14191_v30 = vmov 0  ;;  %v14201_v53 = vld [vmem:[#allocation175_spill] sm:$0xff] }
 0x602   : > { %vm14196_vm1 = vnez %v13877_v31  ;;  %vm14199_vm5 = vnez %v14127_v8  ;;  %vm14200_vm12 = vnez %v13879_v17  ;;  %v14204_v17 = vperm.slane %v14008_v60, 5 }
 0x603   : > { %4882 = vset.pattern.permute.xlu1 %v13260_v32  ;;  %vm9604_vm14 = vcmp.eq.s32.totalorder %v3254_v29, 1  ;;  %v14198_v43 = vsel %vm14196_vm1, %v8869_v11, %v14197_v16  ;;  %vm14205_vm15 = vcmask 1046534   ;;  %vm14207_vm6 = vnez %v14138_v58  ;;  %v14208_v16 = vld [vmem:[#allocation179_spill] sm:$0xff] }
 0x604   : > { %v3121_v5 = vsel %vm14205_vm15, %v9362_v36, %v9339_v52  ;;  %vm14209_vm10 = vnez %v14140_v3  ;;  %v14213_v8 = vmov 0  ;;  %vm14228_vm15 = vnez %v14086_v62 }
 0x605   : > { %v14364_v57 = vmov 0 }
 0x608   : > { %3235 = vperm.xlu2 %4873, %v14174_v33   ;;  %v14190_v33 = vperm.slane %v13730_v9, 5 }
 0x609   : > { %v9555_v15 = vpop.permute.xlu1 %3177 }
 0x60a   : > { %v3007_v7 = vpop.permute.xlu2 %3006 }
 0x60b   : > { %3426 = vperm.xlu1 %4882, %v12511_v49   ;;  %v9574_v13 = vsel %vm9325_vm7, %v3007_v7, %v14184_v55  ;;  %v9583_v22 = vsel %vm14188_vm8, %v3007_v7, %v14187_v47  ;;  %vm9600_vm7 = vcmp.eq.s32.totalorder %v3253_v42, 1  ;;  %v14193_v7 = vmov 0  ;;  %v14280_v49 = vld [vmem:[#allocation207_spill] sm:$0xff] }
 0x60c   : > { %v14192_v30 = vsel %vm9600_vm7, 4294967295, %v14191_v30  ;;  %v14194_v7 = vsel %vm9604_vm14, 4294967295, %v14193_v7  ;;  %v14202_v47 = vsel %vm14200_vm12, %v8869_v11, %v14201_v53  ;;  %v3120_v42 = vrot.slane %v3119_v63, 5 }
 0x60d   : > { %v12510_v11 = vperm.slane %v14008_v60, 6  ;;  %v3122_v53 = vrot.slane %v3121_v5, 6  ;;  %v14217_v5 = vperm.slane %v14046_v27, 6  ;;  %vm14219_vm12 = vnez %v13960_v37 }
 0x60e   : > { %vm3130_vm13 = vcmp.ne.s32.totalorder %v3120_v42, 0  ;;  %v9770_v37 = vsel %vm14249_vm4, 1, %v12749_v28  ;;  %vm14252_vm14 = vcmp.eq.s32.totalorder %v14099_v6, 12 }
 0x60f   : > { %v3242_v63 = vsel %vm3130_vm13, 1, %v12749_v28  ;;  %vm3131_vm8 = vcmp.ne.s32.totalorder %v3122_v53, 0  ;;  %vm14225_vm13 = vnez %v13962_v19 }
 0x610   : > { %4875 = vset.pattern.permute.xlu2 %v13260_v32  ;;  %v3256_v42 = vperm.slane %v3242_v63, 1  ;;  %v3243_v53 = vsel %vm3131_vm8, 1, %v12749_v28 }
 0x612   : > { %v3020_v35 = vpop.permute.xlu2 %3019  ;;  %vm9660_vm1 = vcmp.eq.s32.totalorder %v3256_v42, 1  ;;  %v14220_v42 = vld [vmem:[#allocation199_spill] sm:$0xff] }
 0x613   : > { %3439 = vperm.xlu1 %4882, %v14190_v33   ;;  %v9617_v55 = vsel %vm14199_vm5, %v3020_v35, %v14198_v43  ;;  %v9626_v25 = vsel %vm14203_vm9, %v3020_v35, %v14202_v47  ;;  %v14206_v33 = vld [vmem:[#allocation181_spill] sm:$0xff]  ;;  %v3255_v47 = vperm.slane %v3242_v63, 0  ;;  %v14214_v8 = vsel %vm9660_vm1, 4294967295, %v14213_v8  ;;  %v14226_v43 = vld [vmem:[#allocation278_spill] sm:$0xff] }
 0x614   : > { %v9608_v2 = vpop.permute.xlu1 %3190  ;;  %14215 = vst [vmem:[#allocation79_spill] sm:$0xff] %v14214_v8  ;;  %vm14216_vm5 = vcmask 1042434   ;;  %v14222_v54 = vsel %vm14219_vm12, %v14220_v42, %v14221_v0  ;;  %vm14223_vm9 = vnez %v14083_v4  ;;  %v3257_v0 = vperm.slane %v3243_v53, 0  ;;  %v14264_v4 = vld [vmem:[#allocation53_spill] sm:$0xff] }
 0x615   : > { %14195 = vst [vmem:[#allocation88_spill] sm:$0xff] %v9608_v2  ;;  %vm9656_vm11 = vcmp.eq.s32.totalorder %v3255_v47, 1  ;;  %v3113_v31 = vsel %vm14216_vm5, %v9362_v36, %v9339_v52  ;;  %v9681_v14 = vsel %vm14223_vm9, %v3000_v41, %v14222_v54  ;;  %vm12515_vm9 = vcmp.eq.s32.totalorder %v14099_v6, 13  ;;  %v14270_v2 = vld [vmem:[#allocation36_spill] sm:$0xff] }
 0x616   : > { %14224 = vst [vmem:[#allocation41_spill] sm:$0xff] %v9681_v14  ;;  %v3114_v54 = vrot.slane %v3113_v31, 2  ;;  %vm9710_vm5 = vcmp.eq.s32.totalorder %v3257_v0, 1  ;;  %v3318_v62 = vsel %vm12515_vm9, 1, %v12749_v28  ;;  %vm14246_vm9 = vcmp.eq.s32.totalorder %v14101_v38, 11 }
 0x618   : > { %3348 = vperm.xlu2 %4875, %v14204_v17   ;;  %v14210_v17 = vmov 0  ;;  %vm3127_vm8 = vcmp.ne.s32.totalorder %v3114_v54, 0  ;;  %v14240_v54 = vmov 0 }
 0x619   : > { %v14211_v17 = vsel %vm9656_vm11, 4294967295, %v14210_v17  ;;  %v3239_v31 = vsel %vm3127_vm8, 1, %v12749_v28  ;;  %vm14288_vm11 = vcmask 1044484  }
 0x61a   : > { %v9644_v29 = vpop.permute.xlu2 %3138  ;;  %14212 = vst [vmem:[#allocation50_spill] sm:$0xff] %v14211_v17  ;;  %v3249_v0 = vperm.slane %v3239_v31, 0 }
 0x61b   : > { %3558 = vperm.xlu1 %4882, %v12510_v11   ;;  %v14230_v11 = vld [vmem:[#allocation195_spill] sm:$0xff] }
 0x620   : > { %4877 = vset.pattern.permute.xlu2 %v5560_v18 }
 0x622   : > { %v9669_v63 = vpop.permute.xlu2 %3151 }
 0x623   : > { %3571 = vperm.xlu1 %4882, %v14217_v5   ;;  %v14227_v5 = vsel %vm14225_vm13, %v14220_v42, %v14226_v43  ;;  %v14232_v43 = vperm.slane %v14046_v27, 5  ;;  %v14233_v42 = vmov 0  ;;  %vm14248_vm13 = vcmp.eq.s32.totalorder %v14099_v6, 11 }
 0x624   : > { %v9672_v47 = vpop.permute.xlu1 %3209  ;;  %v9690_v35 = vsel %vm14228_vm15, %v3000_v41, %v14227_v5  ;;  %v3258_v41 = vperm.slane %v3243_v53, 1  ;;  %v14234_v42 = vsel %vm9710_vm5, 4294967295, %v14233_v42  ;;  %v14235_v5 = vmov 0 }
 0x625   : > { %14218 = vst [vmem:[#allocation60_spill] sm:$0xff] %v9672_v47  ;;  %vm9739_vm15 = vcmp.eq.s32.totalorder %v3249_v0, 1  ;;  %v14238_v53 = vmov 0  ;;  %v9757_v0 = vrot.slane %v3318_v62, 7  ;;  %v14255_v47 = vperm.slane %v13795_v59, 5 }
 0x626   : > { %14229 = vst [vmem:[#allocation130_spill] sm:$0xff] %v9690_v35  ;;  %vm9714_vm12 = vcmp.eq.s32.totalorder %v3258_v41, 1  ;;  %v3250_v41 = vperm.slane %v3239_v31, 1  ;;  %v14239_v53 = vsel %vm9739_vm15, 4294967295, %v14238_v53  ;;  %v14247_v35 = vld [vmem:[#allocation75_spill] sm:$0xff] }
 0x627   : > { %v14236_v5 = vsel %vm9714_vm12, 4294967295, %v14235_v5 }
 0x628   : > { %3367 = vperm.xlu2 %4877, %v14232_v43   ;;  %v12513_v43 = vperm.slane %v14096_v39, 6  ;;  %vm9743_vm8 = vcmp.eq.s32.totalorder %v3250_v41, 1  ;;  %v14245_v41 = vld [vmem:[#allocation27_spill] sm:$0xff] }
 0x629   : > { %v14241_v54 = vsel %vm9743_vm8, 4294967295, %v14240_v54  ;;  %v3104_v14 = vsel %vm14248_vm13, %v14245_v41, %v14247_v35 }
 0x62b   : > { %4886 = vset.pattern.permute.xlu1 %v5560_v18 }
 0x62c   : > { %v9719_v19 = vpop.permute.xlu1 %3222 }
 0x62d   : > { %14237 = vst [vmem:[#allocation131_spill] sm:$0xff] %v9719_v19  ;;  %v3103_v19 = vsel %vm14246_vm9, %v14245_v41, %v9180_v1  ;;  %vm14254_vm9 = vcmask 1040384  }
 0x62e   : > { %v3320_v1 = vsel %vm14254_vm9, %v9770_v37, %v9757_v0 }
 0x62f   : > { %vm3335_vm13 = vcmp.ne.s32.totalorder %v3320_v1, 0 }
 0x630   : > { %4879 = vset.pattern.permute.xlu2 %v13260_v32 }
 0x632   : > { %v9747_v31 = vpop.permute.xlu2 %3170 }
 0x633   : > { %3590 = vperm.xlu1 %4886, %v12513_v43   ;;  %14242 = vst [vmem:[#allocation220_spill] sm:$0xff] %v9747_v31 }
 0x635   : > { %v3311_v10 = vpop.permute.xlu1 %3310 }
 0x636   : > { %v9774_v62 = vsel %vm14250_vm2, %v3311_v10, %v3103_v19  ;;  %v9778_v43 = vsel %vm14252_vm14, %v3311_v10, %v3104_v14  ;;  %v3447_v14 = vsel %vm3335_vm13, 1, %v12749_v28  ;;  %vm14262_vm14 = vcmask 1042434  }
 0x637   : > { %14251 = vst [vmem:[#allocation90_spill] sm:$0xff] %v9774_v62  ;;  %v3455_v41 = vperm.slane %v3447_v14, 0  ;;  %vm14276_vm13 = vcmask 1046528  }
 0x638   : > { %14253 = vst [vmem:[#allocation164_spill] sm:$0xff] %v9778_v43  ;;  %3387 = vperm.xlu2 %4879, %v14255_v47   ;;  %v3456_v43 = vperm.slane %v3447_v14, 1  ;;  %v14256_v47 = vld [vmem:[#allocation97_spill] sm:$0xff]  ;;  %v3323_v14 = vsel %vm14262_vm14, %v9770_v37, %v9757_v0  ;;  %vm14277_vm14 = vcmask 1043459  }
 0x639   : > { %v14257_v1 = vperm.slane %v14256_v47, 5  ;;  %v12530_v62 = vperm.slane %v14256_v47, 6  ;;  %vm9802_vm2 = vcmp.eq.s32.totalorder %v3455_v41, 1  ;;  %v3324_v20 = vrot.slane %v3323_v14, 2 }
 0x63a   : > { %v9786_v35 = vpop.permute.xlu2 %3183  ;;  %vm9806_vm4 = vcmp.eq.s32.totalorder %v3456_v43, 1  ;;  %v14267_v43 = vld [vmem:[#allocation76_spill] sm:$0xff]  ;;  %v14271_v47 = vperm.slane %v14270_v2, 6  ;;  %v14275_v14 = vperm.slane %v14270_v2, 5 }
 0x63b   : > { %4888 = vset.pattern.permute.xlu1 %v13260_v32  ;;  %vm3337_vm9 = vcmp.ne.s32.totalorder %v3324_v20, 0  ;;  %v3123_v20 = vsel %vm14276_vm13, %v9339_v52, %v9362_v36  ;;  %v14279_v52 = vld [vmem:[#allocation74_spill] sm:$0xff] }
 0x640   : > { %3400 = vperm.xlu2 %4879, %v14257_v1   ;;  %v14263_v1 = vld [vmem:[#allocation216_spill] sm:$0xff] }
 0x641   : > { %v14265_v31 = vsel %vm14207_vm6, %v14263_v1, %v14264_v4 }
 0x643   : > { %3610 = vperm.xlu1 %4888, %v12530_v62   ;;  %v14268_v62 = vsel %vm14209_vm10, %v14263_v1, %v14267_v43  ;;  %v3325_v43 = vsel %vm14277_vm14, %v9770_v37, %v9757_v0 }
 0x644   : > { %v3326_v8 = vrot.slane %v3325_v43, 3 }
 0x645   : > { %v3355_v10 = vpop.permute.xlu1 %3354 }
 0x646   : > { %v9820_v41 = vsel %vm9802_vm2, %v3355_v10, %v14265_v31  ;;  %v9829_v51 = vsel %vm9806_vm4, %v3355_v10, %v14268_v62  ;;  %v3449_v10 = vsel %vm3337_vm9, 1, %v12749_v28  ;;  %v3286_v31 = vsel %vm9743_vm8, %v14279_v52, %v14280_v49 }
 0x647   : > { %14266 = vst [vmem:[#allocation134_spill] sm:$0xff] %v9820_v41  ;;  %v3459_v1 = vperm.slane %v3449_v10, 0  ;;  %v14283_v62 = vmov 0  ;;  %v14287_v49 = vperm.slane %v13585_v45, 5  ;;  %vm3338_vm1 = vcmp.ne.s32.totalorder %v3326_v8, 0 }
 0x648   : > { %14269 = vst [vmem:[#allocation135_spill] sm:$0xff] %v9829_v51  ;;  %4881 = vset.pattern.permute.xlu2 %v5560_v18  ;;  %v3450_v43 = vsel %vm3338_vm1, 1, %v12749_v28  ;;  %v12550_v8 = vperm.slane %v13730_v9, 6 }
 0x649   : > { %vm9872_vm9 = vcmp.eq.s32.totalorder %v3459_v1, 1  ;;  %v12548_v1 = vperm.slane %v13585_v45, 6 }
 0x64a   : > { %v9834_v4 = vpop.permute.xlu2 %3203 }
 0x64b   : > { %3623 = vperm.xlu1 %4888, %v14271_v47   ;;  %14272 = vst [vmem:[#allocation177_spill] sm:$0xff] %v9834_v4  ;;  %v3460_v47 = vperm.slane %v3449_v10, 1  ;;  %v14281_v4 = vmov 0  ;;  %v3124_v10 = vrot.slane %v3123_v20, 7 }
 0x64c   : > { %v14282_v4 = vsel %vm9872_vm9, 4294967295, %v14281_v4 }
 0x64d   : > { %vm9876_vm13 = vcmp.eq.s32.totalorder %v3460_v47, 1  ;;  %vm3132_vm14 = vcmp.ne.s32.totalorder %v3124_v10, 0  ;;  %v3327_v47 = vsel %vm14288_vm11, %v9770_v37, %v9757_v0  ;;  %v14289_v10 = vld [vmem:[#allocation18_spill] sm:$0xff] }
 0x64e   : > { %v14284_v62 = vsel %vm9876_vm13, 4294967295, %v14283_v62  ;;  %v3244_v20 = vsel %vm3132_vm14, 1, %v12749_v28 }
 0x650   : > { %3419 = vperm.xlu2 %4881, %v14275_v14   ;;  %v14278_v14 = vld [vmem:[#allocation55_spill] sm:$0xff] }
 0x651   : > { %v3285_v36 = vsel %vm9739_vm15, %v14279_v52, %v14278_v14  ;;  %v3260_v52 = vperm.slane %v3244_v20, 1 }
 0x652   : > { %v9854_v41 = vpop.permute.xlu2 %3216 }
 0x653   : > { %4890 = vset.pattern.permute.xlu1 %v5560_v18  ;;  %vm9906_vm1 = vcmp.eq.s32.totalorder %v3260_v52, 1 }
 0x655   : > { %v3375_v51 = vpop.permute.xlu1 %3374 }
 0x656   : > { %v9882_v17 = vsel %vm9872_vm9, %v3375_v51, %v3285_v36  ;;  %v9886_v14 = vsel %vm9876_vm13, %v3375_v51, %v3286_v31  ;;  %v3328_v51 = vrot.slane %v3327_v47, 4  ;;  %v3259_v31 = vperm.slane %v3244_v20, 0 }
 0x657   : > { %14285 = vst [vmem:[#allocation19_spill] sm:$0xff] %v9882_v17  ;;  %v3461_v36 = vperm.slane %v3450_v43, 0  ;;  %v14292_v47 = vmov 0 }
 0x658   : > { %14286 = vst [vmem:[#allocation256_spill] sm:$0xff] %v9886_v14  ;;  %3432 = vperm.xlu2 %4881, %v14287_v49   ;;  %v3462_v49 = vperm.slane %v3450_v43, 1  ;;  %v5191_v14 = vmov 13   ;;  %vm3339_vm13 = vcmp.ne.s32.totalorder %v3328_v51, 0  ;;  %vm9902_vm11 = vcmp.eq.s32.totalorder %v3259_v31, 1 }
 0x659   : > { %v14293_v47 = vsel %vm9906_vm1, 4294967295, %v14292_v47  ;;  %vm9912_vm14 = vcmp.eq.s32.totalorder %v3461_v36, 1  ;;  %v14297_v43 = vmov 0  ;;  %v3451_v17 = vsel %vm3339_vm13, 1, %v12749_v28 }
 0x65a   : > { %vm9916_vm8 = vcmp.eq.s32.totalorder %v3462_v49, 1  ;;  %v14301_v49 = vsel %vm9535_vm3, %v9786_v35, %v9445_v21  ;;  %v14303_v31 = vsel %vm9539_vm0, %v9786_v35, %v9454_v12  ;;  %v3464_v51 = vperm.slane %v3451_v17, 1 }
 0x65b   : > { %3642 = vperm.xlu1 %4890, %v12548_v1   ;;  %v14298_v43 = vsel %vm9916_vm8, 4294967295, %v14297_v43  ;;  %vm14305_vm13 = vcmask 1046534  }
 0x65c   : > { %v3331_v21 = vsel %vm14305_vm13, %v9770_v37, %v9757_v0  ;;  %vm9958_vm15 = vcmp.eq.s32.totalorder %v3464_v51, 1  ;;  %vm14310_vm13 = vnez %v14194_v7  ;;  %v14383_v7 = vmov 0 }
 0x660   : > { %4883 = vset.pattern.permute.xlu2 %v5191_v14  ;;  %v14361_v14 = vmov 0 }
 0x661   : > { %3520 = vperm.xlu2 %4883, %v14289_v10  }
 0x662   : > { %v9910_v20 = vpop.permute.xlu2 %3235 }
 0x663   : > { %3655 = vperm.xlu1 %4890, %v12550_v8   ;;  %14294 = vst [vmem:[#allocation104_spill] sm:$0xff] %v9910_v20  ;;  %v3463_v8 = vperm.slane %v3451_v17, 0  ;;  %v12558_v20 = vperm.slane %v14008_v60, 7  ;;  %v3197_v17 = vpop.permute.xlu0 %3196 }
 0x665   : > { %v3394_v36 = vpop.permute.xlu1 %3393  ;;  %vm9954_vm9 = vcmp.eq.s32.totalorder %v3463_v8, 1 }
 0x666   : > { %v9936_v9 = vsel %vm9912_vm14, %v3394_v36, %v14301_v49  ;;  %v9945_v52 = vsel %vm9916_vm8, %v3394_v36, %v14303_v31  ;;  %v3295_v31 = vsel %vm9600_vm7, %v3197_v17, %v9507_v46  ;;  %v3296_v36 = vsel %vm14310_vm13, %v3197_v17, %v9516_v26 }
 0x667   : > { %14302 = vst [vmem:[#allocation226_spill] sm:$0xff] %v9936_v9  ;;  %v14313_v9 = vperm.slane %v14008_v60, 6  ;;  %vm14314_vm7 = vcmask 1041409   ;;  %v14382_v49 = vperm.slane %v13585_v45, 7 }
 0x668   : > { %14304 = vst [vmem:[#allocation236_spill] sm:$0xff] %v9945_v52  ;;  %v3332_v52 = vrot.slane %v3331_v21, 6  ;;  %v3321_v46 = vsel %vm14314_vm7, %v9770_v37, %v9757_v0  ;;  %v14315_v21 = vsel %vm14207_vm6, %v9644_v29, %v14206_v33  ;;  %vm14319_vm7 = vcmask 1046528  }
 0x669   : > { %4884 = vset.pattern.permute.xlu2 %v5560_v18  ;;  %v3333_v58 = vsel %vm14319_vm7, %v9757_v0, %v9770_v37  ;;  %v3322_v33 = vrot.slane %v3321_v46, 1  ;;  %vm12563_vm6 = vcmp.eq.s32.totalorder %v14099_v6, 14 }
 0x66a   : > { %vm3341_vm8 = vcmp.ne.s32.totalorder %v3332_v52, 0  ;;  %v3528_v3 = vsel %vm12563_vm6, 1, %v12749_v28 }
 0x66b   : > { %3774 = vperm.xlu1 %4890, %v12558_v20   ;;  %v12562_v20 = vperm.slane %v14046_v27, 7  ;;  %v10022_v46 = vrot.slane %v3528_v3, 7  ;;  %v3802_v3 = vperm.slane %v13795_v59, 7  ;;  %v3381_v12 = vpop.permute.xlu0 %3380 }
 0x66d   : > { %v3407_v35 = vpop.permute.xlu1 %3406 }
 0x66e   : > { %v9970_v8 = vsel %vm9954_vm9, %v3407_v35, %v3295_v31  ;;  %v9974_v51 = vsel %vm9958_vm15, %v3407_v35, %v3296_v36  ;;  %v3453_v35 = vsel %vm3341_vm8, 1, %v12749_v28  ;;  %v3334_v36 = vrot.slane %v3333_v58, 7 }
 0x66f   : > { %14311 = vst [vmem:[#allocation139_spill] sm:$0xff] %v9970_v8  ;;  %v3467_v34 = vperm.slane %v3453_v35, 0  ;;  %v3468_v31 = vperm.slane %v3453_v35, 1  ;;  %v14326_v58 = vsel %vm9714_vm12, %v9854_v41, %v9583_v22  ;;  %vm14338_vm12 = vcmask 1041409  }
 0x670   : > { %14312 = vst [vmem:[#allocation48_spill] sm:$0xff] %v9974_v51  ;;  %vm3342_vm7 = vcmp.ne.s32.totalorder %v3334_v36, 0  ;;  %v5192_v8 = vmov 15  }
 0x671   : > { %3564 = vperm.xlu2 %4884, %v14313_v9   ;;  %v14317_v9 = vsel %vm14209_vm10, %v9644_v29, %v14208_v16  ;;  %vm12564_vm10 = vcmp.eq.s32.totalorder %v14101_v38, 14  ;;  %vm10013_vm8 = vcmp.eq.s32.totalorder %v3467_v34, 1  ;;  %v14320_v29 = vmov 0  ;;  %4900 = vset.pattern.permute.xlu0 %v5192_v8 }
 0x672   : > { %v3349_v26 = vpop.permute.xlu2 %3348  ;;  %v14321_v29 = vsel %vm10013_vm8, 4294967295, %v14320_v29  ;;  %v14322_v16 = vmov 0  ;;  %v3454_v34 = vsel %vm3342_vm7, 1, %v12749_v28 }
 0x673   : > { %3787 = vperm.xlu1 %4890, %v12562_v20   ;;  %v9991_v17 = vsel %vm9802_vm2, %v3349_v26, %v14315_v21  ;;  %v10000_v52 = vsel %vm9806_vm4, %v3349_v26, %v14317_v9  ;;  %vm3336_vm2 = vcmp.ne.s32.totalorder %v3322_v33, 0  ;;  %vm10017_vm4 = vcmp.eq.s32.totalorder %v3468_v31, 1  ;;  %v10368_v22 = vpop.permute.xlu0 %3445 }
 0x674   : > { %14316 = vst [vmem:[#allocation137_spill] sm:$0xff] %v9991_v17  ;;  %v14323_v16 = vsel %vm10017_vm4, 4294967295, %v14322_v16  ;;  %v3448_v19 = vsel %vm3336_vm2, 1, %v12749_v28  ;;  %v10027_v21 = vsel %vm12564_vm10, 1, %v12749_v28  ;;  %v14324_v9 = vsel %vm9710_vm5, %v9854_v41, %v9574_v13 }
 0x675   : > { %14318 = vst [vmem:[#allocation133_spill] sm:$0xff] %v10000_v52  ;;  %vm14328_vm2 = vcmask 1040384   ;;  %v3457_v13 = vperm.slane %v3448_v19, 0  ;;  %v3458_v36 = vperm.slane %v3448_v19, 1  ;;  %v3470_v20 = vperm.slane %v3454_v34, 1 }
 0x676   : > { %v3530_v31 = vsel %vm14328_vm2, %v10027_v21, %v10022_v46  ;;  %vm14334_vm2 = vnez %v14156_v48  ;;  %v14368_v48 = vld [vmem:[#allocation192_spill] sm:$0xff] }
 0x677   : > { %vm3545_vm6 = vcmp.ne.s32.totalorder %v3530_v31, 0  ;;  %vm10054_vm10 = vcmp.eq.s32.totalorder %v3457_v13, 1  ;;  %vm10058_vm7 = vcmp.eq.s32.totalorder %v3458_v36, 1  ;;  %v14335_v19 = vsel %vm14334_vm2, %v9489_v61, %v9487_v24 }
 0x678   : > { %v3657_v31 = vsel %vm3545_vm6, 1, %v12749_v28  ;;  %v3531_v13 = vsel %vm14338_vm12, %v10027_v21, %v10022_v46  ;;  %vm10088_vm5 = vcmp.eq.s32.totalorder %v3470_v20, 1  ;;  %v14341_v36 = vmov 0 }
 0x679   : > { %4885 = vset.pattern.permute.xlu2 %v13260_v32  ;;  %v14342_v36 = vsel %vm10088_vm5, 4294967295, %v14341_v36  ;;  %v3532_v51 = vrot.slane %v3531_v13, 1  ;;  %v14355_v13 = vsel %vm9535_vm3, %v9555_v15, %v9553_v56  ;;  %v14358_v40 = vsel %vm14334_vm2, %v9669_v63, %v14230_v11 }
 0x67a   : > { %vm14396_vm2 = vnez %v14241_v54  ;;  %v14401_v54 = vperm.slane %v13585_v45, 6 }
 0x67b   : > { %4894 = vset.pattern.permute.xlu1 %v13260_v32 }
 0x67d   : > { %v3427_v26 = vpop.permute.xlu1 %3426 }
 0x67e   : > { %v10036_v35 = vsel %vm10013_vm8, %v3427_v26, %v14324_v9  ;;  %v10045_v33 = vsel %vm10017_vm4, %v3427_v26, %v14326_v58  ;;  %v3469_v9 = vperm.slane %v3454_v34, 0  ;;  %vm14336_vm4 = vnez %v14158_v50  ;;  %v14371_v50 = vld [vmem:[#allocation97_spill] sm:$0xff] }
 0x67f   : > { %14325 = vst [vmem:[#allocation194_spill] sm:$0xff] %v10036_v35  ;;  %v14329_v35 = vperm.slane %v14096_v39, 6 }
 0x680   : > { %14327 = vst [vmem:[#allocation263_spill] sm:$0xff] %v10045_v33  ;;  %vm10084_vm8 = vcmp.eq.s32.totalorder %v3469_v9, 1  ;;  %v3666_v33 = vperm.slane %v3657_v31, 1 }
 0x681   : > { %3584 = vperm.xlu2 %4885, %v14329_v35   ;;  %v14337_v35 = vsel %vm14336_vm4, %v9489_v61, %v9498_v23  ;;  %v14343_v61 = vld [vmem:[#allocation77_spill] sm:$0xff] }
 0x682   : > { %v3368_v26 = vpop.permute.xlu2 %3367  ;;  %v3305_v23 = vsel %vm9902_vm11, %v14343_v61, %v9617_v55  ;;  %v12573_v55 = vperm.slane %v14270_v2, 7  ;;  %vm10116_vm6 = vcmp.eq.s32.totalorder %v3666_v33, 1 }
 0x683   : > { %3807 = vperm.xlu1 %4894, %v3802_v3   ;;  %v10069_v58 = vsel %vm10054_vm10, %v3368_v26, %v14335_v19  ;;  %v10078_v34 = vsel %vm10058_vm7, %v3368_v26, %v14337_v35  ;;  %v3306_v26 = vsel %vm9906_vm1, %v14343_v61, %v9626_v25  ;;  %v3665_v35 = vperm.slane %v3657_v31, 0 }
 0x684   : > { %v14346_v25 = vmov 0  ;;  %v14349_v61 = vmov 0  ;;  %vm14354_vm1 = vcmask 1042434  }
 0x685   : > { %v3440_v19 = vpop.permute.xlu1 %3439  ;;  %vm10112_vm12 = vcmp.eq.s32.totalorder %v3665_v35, 1  ;;  %v14350_v61 = vsel %vm10116_vm6, 4294967295, %v14349_v61  ;;  %v14353_v35 = vperm.slane %v13795_v59, 6  ;;  %v14356_v59 = vsel %vm9539_vm0, %v9555_v15, %v9565_v44 }
 0x686   : > { %v10102_v9 = vsel %vm10084_vm8, %v3440_v19, %v3305_v23  ;;  %v10106_v20 = vsel %vm10088_vm5, %v3440_v19, %v3306_v26  ;;  %v14347_v25 = vsel %vm10112_vm12, 4294967295, %v14346_v25  ;;  %14351 = vst [vmem:[#allocation161_spill] sm:$0xff] %v14350_v61  ;;  %vm3546_vm5 = vcmp.ne.s32.totalorder %v3532_v51, 0 }
 0x687   : > { %14344 = vst [vmem:[#allocation264_spill] sm:$0xff] %v10102_v9  ;;  %v3658_v23 = vsel %vm3546_vm5, 1, %v12749_v28  ;;  %v3533_v51 = vsel %vm14354_vm1, %v10027_v21, %v10022_v46  ;;  %vm14357_vm5 = vnez %v14298_v43  ;;  %v14369_v44 = vsel %vm14336_vm4, %v9669_v63, %v14368_v48 }
 0x688   : > { %14345 = vst [vmem:[#allocation114_spill] sm:$0xff] %v10106_v20  ;;  %v3667_v26 = vperm.slane %v3658_v23, 0  ;;  %v3668_v33 = vperm.slane %v3658_v23, 1  ;;  %v3534_v43 = vrot.slane %v3533_v51, 2  ;;  %v14470_v61 = vmov 0 }
 0x689   : > { %4887 = vset.pattern.permute.xlu2 %v5560_v18  ;;  %14348 = vst [vmem:[#allocation94_spill] sm:$0xff] %v14347_v25 }
 0x68a   : > { %vm10165_vm3 = vcmp.eq.s32.totalorder %v3667_v26, 1  ;;  %vm10169_vm1 = vcmp.eq.s32.totalorder %v3668_v33, 1  ;;  %vm3547_vm0 = vcmp.ne.s32.totalorder %v3534_v43, 0  ;;  %v14375_v26 = vld [vmem:[#allocation88_spill] sm:$0xff]  ;;  %v14376_v33 = vld [vmem:[#allocation115_spill] sm:$0xff] }
 0x68b   : > { %3833 = vperm.xlu1 %4894, %v12573_v55   ;;  %v14362_v14 = vsel %vm10165_vm3, 4294967295, %v14361_v14  ;;  %v14365_v57 = vsel %vm10169_vm1, 4294967295, %v14364_v57 }
 0x68c   : > { %14363 = vst [vmem:[#allocation234_spill] sm:$0xff] %v14362_v14 }
 0x68d   : > { %v10120_v31 = vpop.permute.xlu1 %3558  ;;  %14366 = vst [vmem:[#allocation238_spill] sm:$0xff] %v14365_v57 }
 0x68e   : > { %14352 = vst [vmem:[#allocation218_spill] sm:$0xff] %v10120_v31 }
 0x691   : > { %3603 = vperm.xlu2 %4887, %v14353_v35   ;;  %v14359_v35 = vld [vmem:[#allocation80_spill] sm:$0xff] }
 0x692   : > { %v3388_v55 = vpop.permute.xlu2 %3387  ;;  %v10163_v56 = vsel %vm10054_vm10, %v14359_v35, %v14358_v40  ;;  %v10183_v11 = vsel %vm10058_vm7, %v14359_v35, %v14369_v44  ;;  %vm14374_vm10 = vnez %v14192_v30  ;;  %v14379_v40 = vld [vmem:[#allocation119_spill] sm:$0xff]  ;;  %v14386_v44 = vmov 0 }
 0x693   : > { %4897 = vset.pattern.permute.xlu1 %v5560_v18  ;;  %v10144_v19 = vsel %vm9912_vm14, %v3388_v55, %v14355_v13  ;;  %v10153_v23 = vsel %vm14357_vm5, %v3388_v55, %v14356_v59  ;;  %14360 = vst [vmem:[#allocation219_spill] sm:$0xff] %v10163_v56  ;;  %v14372_v13 = vperm.slane %v14371_v50, 6  ;;  %vm14373_vm14 = vcmask 1045509  }
 0x694   : > { %14370 = vst [vmem:[#allocation235_spill] sm:$0xff] %v10183_v11  ;;  %v3329_v63 = vsel %vm14373_vm14, %v9770_v37, %v9757_v0  ;;  %v14377_v51 = vsel %vm14374_vm10, %v14375_v26, %v14376_v33  ;;  %v14380_v35 = vsel %vm14310_vm13, %v14375_v26, %v14379_v40  ;;  %v3659_v37 = vsel %vm3547_vm0, 1, %v12749_v28 }
 0x695   : > { %v10173_v15 = vpop.permute.xlu1 %3571  ;;  %v3330_v0 = vrot.slane %v3329_v63, 5  ;;  %v3669_v30 = vperm.slane %v3659_v37, 0  ;;  %v14391_v63 = vld [vmem:[#allocation220_spill] sm:$0xff]  ;;  %vm14394_vm7 = vnez %v14282_v4  ;;  %vm14399_vm5 = vnez %v14284_v62 }
 0x696   : > { %14367 = vst [vmem:[#allocation239_spill] sm:$0xff] %v10173_v15  ;;  %v14451_v55 = vperm.slane %v14096_v39, 7 }
 0x697   : > { %vm3340_vm4 = vcmp.ne.s32.totalorder %v3330_v0, 0 }
 0x698   : > { %v3452_v43 = vsel %vm3340_vm4, 1, %v12749_v28 }
 0x699   : > { %3616 = vperm.xlu2 %4887, %v14372_v13   ;;  %v3466_v0 = vperm.slane %v3452_v43, 1 }
 0x69a   : > { %v3401_v41 = vpop.permute.xlu2 %3400 }
 0x69b   : > { %3813 = vperm.xlu1 %4897, %v3802_v3   ;;  %v10205_v59 = vsel %vm9954_vm9, %v3401_v41, %v14377_v51  ;;  %v10214_v48 = vsel %vm9958_vm15, %v3401_v41, %v14380_v35  ;;  %v3670_v3 = vperm.slane %v3659_v37, 1  ;;  %vm10220_vm9 = vcmp.eq.s32.totalorder %v3669_v30, 1  ;;  %v14392_v41 = vld [vmem:[#allocation222_spill] sm:$0xff]  ;;  %v14397_v51 = vld [vmem:[#allocation105_spill] sm:$0xff] }
 0x69c   : > { %14378 = vst [vmem:[#allocation240_spill] sm:$0xff] %v10205_v59  ;;  %v14384_v7 = vsel %vm10220_vm9, 4294967295, %v14383_v7  ;;  %vm14390_vm15 = vnez %v14239_v53  ;;  %v14398_v40 = vsel %vm14396_vm2, %v14391_v63, %v14397_v51  ;;  %v3465_v37 = vperm.slane %v3452_v43, 0  ;;  %v14409_v43 = vld [vmem:[#allocation41_spill] sm:$0xff] }
 0x69d   : > { %14381 = vst [vmem:[#allocation61_spill] sm:$0xff] %v10214_v48  ;;  %vm10224_vm13 = vcmp.eq.s32.totalorder %v3670_v3, 1  ;;  %v14393_v26 = vsel %vm14390_vm15, %v14391_v63, %v14392_v41  ;;  %v10247_v35 = vsel %vm14399_vm5, %v3381_v12, %v14398_v40  ;;  %vm10263_vm14 = vcmp.eq.s32.totalorder %v3466_v0, 1  ;;  %v14414_v41 = vld [vmem:[#allocation130_spill] sm:$0xff]  ;;  %v14417_v40 = vld [vmem:[#allocation32_spill] sm:$0xff]  ;;  %v14420_v0 = vld [vmem:[#allocation131_spill] sm:$0xff] }
 0x69e   : > { %14385 = vst [vmem:[#allocation269_spill] sm:$0xff] %v14384_v7  ;;  %v14387_v44 = vsel %vm10224_vm13, 4294967295, %v14386_v44  ;;  %v10238_v33 = vsel %vm14394_vm7, %v3381_v12, %v14393_v26  ;;  %vm10259_vm0 = vcmp.eq.s32.totalorder %v3465_v37, 1  ;;  %v14408_v12 = vld [vmem:[#allocation60_spill] sm:$0xff]  ;;  %vm14419_vm15 = vnez %v14234_v42 }
 0x69f   : > { %14388 = vst [vmem:[#allocation272_spill] sm:$0xff] %v14387_v44  ;;  %vm14423_vm7 = vnez %v14321_v29  ;;  %vm14425_vm2 = vnez %v14236_v5  ;;  %vm14428_vm5 = vnez %v14323_v16  ;;  %v14438_v16 = vperm.slane %v14046_v27, 7 }
 0x6a0   : > { %14395 = vst [vmem:[#allocation250_spill] sm:$0xff] %v10238_v33 }
 0x6a1   : > { %4889 = vset.pattern.permute.xlu2 %v13260_v32  ;;  %14400 = vst [vmem:[#allocation251_spill] sm:$0xff] %v10247_v35 }
 0x6a3   : > { %3852 = vperm.xlu1 %4897, %v14382_v49   ;;  %v14406_v49 = vld [vmem:[#allocation50_spill] sm:$0xff] }
 0x6a4   : > { %vm14407_vm10 = vnez %v14406_v49 }
 0x6a5   : > { %v10229_v13 = vpop.permute.xlu1 %3590  ;;  %v14410_v63 = vsel %vm14407_vm10, %v14408_v12, %v14409_v43 }
 0x6a6   : > { %14389 = vst [vmem:[#allocation165_spill] sm:$0xff] %v10229_v13  ;;  %v3578_v13 = vpop.permute.xlu0 %3577 }
 0x6a7   : > { %v3704_v15 = vsel %vm10169_vm1, %v3578_v13, %v10078_v34  ;;  %vm14484_vm1 = vcmask 1041409  }
 0x6a9   : > { %3636 = vperm.xlu2 %4889, %v14401_v54   ;;  %v14421_v54 = vld [vmem:[#allocation45_spill] sm:$0xff] }
 0x6aa   : > { %v3420_v3 = vpop.permute.xlu2 %3419  ;;  %v14422_v43 = vsel %vm14419_vm15, %v14420_v0, %v14421_v54  ;;  %v14432_v54 = vld [vmem:[#allocation90_spill] sm:$0xff]  ;;  %vm14433_vm15 = vcmp.eq.s32.totalorder %v14101_v38, 13 }
 0x6ab   : > { %4899 = vset.pattern.permute.xlu1 %v5192_v8  ;;  %v10275_v45 = vsel %vm10259_vm0, %v3420_v3, %v14410_v63  ;;  %v14412_v8 = vld [vmem:[#allocation79_spill] sm:$0xff] }
 0x6ac   : > { %3940 = vperm.xlu1 %4899, %v14289_v10   ;;  %14411 = vst [vmem:[#allocation127_spill] sm:$0xff] %v10275_v45  ;;  %vm14413_vm4 = vnez %v14412_v8  ;;  %v14418_v10 = vperm.slane %v14417_v40, 6  ;;  %v14506_v8 = vld [vmem:[#allocation104_spill] sm:$0xff]  ;;  %v14557_v45 = vld [vmem:[#allocation87_spill] sm:$0xff] }
 0x6ad   : > { %v14415_v26 = vsel %vm14413_vm4, %v14408_v12, %v14414_v41  ;;  %v14426_v12 = vld [vmem:[#allocation78_spill] sm:$0xff] }
 0x6ae   : > { %v10284_v51 = vsel %vm10263_vm14, %v3420_v3, %v14415_v26  ;;  %v14427_v3 = vsel %vm14425_vm2, %v14420_v0, %v14426_v12  ;;  %v14430_v26 = vperm.slane %v14008_v60, 7  ;;  %v10325_v60 = vld [vmem:[%s5393_s13 + $0x8] sm:$0xff]  ;;  %v10333_v12 = vld [vmem:[%s5393_s13] sm:$0xff] }
 0x6af   : > { %14416 = vst [vmem:[#allocation166_spill] sm:$0xff] %v10284_v51  ;;  %vm12574_vm2 = vcmp.eq.s32.totalorder %v10325_v60, 15  ;;  %v14555_v51 = vld [vmem:[#allocation19_spill] sm:$0xff] }
 0x6b0   : > { %14439 = vst [vmem:[#allocation180_spill] sm:$0xff] %v10325_v60  ;;  %v3738_v0 = vsel %vm12574_vm2, 1, %v12749_v28  ;;  %vm14448_vm2 = vcmask 1043459  }
 0x6b1   : > { %3649 = vperm.xlu2 %4889, %v14418_v10   ;;  %14440 = vst [vmem:[#allocation185_spill] sm:$0xff] %v10333_v12 }
 0x6b2   : > { %v3433_v37 = vpop.permute.xlu2 %3432 }
 0x6b3   : > { %v10295_v63 = vsel %vm14423_vm7, %v3433_v37, %v14422_v43  ;;  %v10304_v41 = vsel %vm14428_vm5, %v3433_v37, %v14427_v3  ;;  %v14435_v43 = vld [vmem:[#allocation164_spill] sm:$0xff]  ;;  %vm14436_vm7 = vcmp.eq.s32.totalorder %v14099_v6, 13  ;;  %vm12576_vm5 = vcmp.eq.s32.totalorder %v10333_v12, 15 }
 0x6b4   : > { %14424 = vst [vmem:[#allocation128_spill] sm:$0xff] %v10295_v63  ;;  %v10349_v4 = vsel %vm12576_vm5, 1, %v12749_v28  ;;  %vm14450_vm5 = vcmask 1045509  }
 0x6b5   : > { %14429 = vst [vmem:[#allocation169_spill] sm:$0xff] %v10304_v41  ;;  %v10308_v42 = vpop.permute.xlu1 %3610 }
 0x6b6   : > { %14431 = vst [vmem:[#allocation178_spill] sm:$0xff] %v10308_v42 }
 0x6b7   : > { %14445 = vst [vmem:[#allocation46_spill] sm:$0xff] %v10349_v4 }
 0x6b9   : > { %3768 = vperm.xlu2 %4889, %v14430_v26   ;;  %v10336_v26 = vrot.slane %v3738_v0, 7 }
 0x6bb   : > { %v3521_v10 = vpop.permute.xlu2 %3520  ;;  %14441 = vst [vmem:[#allocation191_spill] sm:$0xff] %v10336_v26 }
 0x6bc   : > { %v10313_v29 = vsel %vm14433_vm15, %v3521_v10, %v14432_v54  ;;  %v10318_v5 = vsel %vm14436_vm7, %v3521_v10, %v14435_v43  ;;  %v14443_v10 = vld [vmem:[#allocation134_spill] sm:$0xff]  ;;  %v14444_v43 = vld [vmem:[#allocation135_spill] sm:$0xff]  ;;  %vm14446_vm15 = vcmask 1040384   ;;  %vm14447_vm7 = vcmask 1041409  }
 0x6bd   : > { %14434 = vst [vmem:[#allocation252_spill] sm:$0xff] %v10313_v29  ;;  %v10322_v37 = vpop.permute.xlu1 %3623  ;;  %v3740_v0 = vsel %vm14446_vm15, %v10349_v4, %v10336_v26  ;;  %v3741_v53 = vsel %vm14447_vm7, %v10349_v4, %v10336_v26 }
 0x6be   : > { %14437 = vst [vmem:[#allocation255_spill] sm:$0xff] %v10318_v5  ;;  %vm3755_vm15 = vcmp.ne.s32.totalorder %v3740_v0, 0  ;;  %v3742_v60 = vrot.slane %v3741_v53, 1 }
 0x6bf   : > { %v3867_v29 = vsel %vm3755_vm15, 1, %v12749_v28  ;;  %vm14468_vm15 = vcmask 1042434  }
 0x6c0   : > { %v3875_v35 = vperm.slane %v3867_v29, 0  ;;  %v3876_v33 = vperm.slane %v3867_v29, 1  ;;  %v10420_v62 = vsel %vm14468_vm15, %v10349_v4, %v10336_v26 }
 0x6c1   : > { %3781 = vperm.xlu2 %4889, %v14438_v16   ;;  %v3744_v34 = vrot.slane %v10420_v62, 2 }
 0x6c9   : > { %4893 = vset.pattern.permute.xlu2 %v5560_v18 }
 0x6cb   : > { %v3565_v3 = vpop.permute.xlu2 %3564 }
 0x6cc   : > { %v3699_v54 = vsel %vm10112_vm12, %v3565_v3, %v14443_v10  ;;  %v3700_v16 = vsel %vm10116_vm6, %v3565_v3, %v14444_v43  ;;  %v3535_v10 = vsel %vm14448_vm2, %v10027_v21, %v10022_v46  ;;  %vm14449_vm6 = vcmask 1044484  }
 0x6cd   : > { %v10338_v27 = vpop.permute.xlu1 %3642  ;;  %v3537_v3 = vsel %vm14449_vm6, %v10027_v21, %v10022_v46  ;;  %v3539_v43 = vsel %vm14450_vm5, %v10027_v21, %v10022_v46  ;;  %v3536_v12 = vrot.slane %v3535_v10, 3  ;;  %vm3756_vm2 = vcmp.ne.s32.totalorder %v3742_v60, 0  ;;  %v14453_v60 = vld [vmem:[#allocation177_spill] sm:$0xff] }
 0x6ce   : > { %14442 = vst [vmem:[#allocation151_spill] sm:$0xff] %v10338_v27  ;;  %v3538_v6 = vrot.slane %v3537_v3, 4  ;;  %v3540_v5 = vrot.slane %v3539_v43, 5  ;;  %v3868_v39 = vsel %vm3756_vm2, 1, %v12749_v28  ;;  %vm10395_vm5 = vcmp.eq.s32.totalorder %v3875_v35, 1 }
 0x6cf   : > { %vm3548_vm6 = vcmp.ne.s32.totalorder %v3536_v12, 0  ;;  %v14454_v12 = vld [vmem:[#allocation121_spill] sm:$0xff]  ;;  %v14458_v3 = vmov 0  ;;  %v14461_v43 = vmov 0  ;;  %v3877_v11 = vperm.slane %v3868_v39, 0 }
 0x6d0   : > { %vm3549_vm7 = vcmp.ne.s32.totalorder %v3538_v6, 0  ;;  %vm3550_vm12 = vcmp.ne.s32.totalorder %v3540_v5, 0  ;;  %v14455_v6 = vsel %vm14407_vm10, %v14453_v60, %v14454_v12  ;;  %v14456_v5 = vld [vmem:[#allocation81_spill] sm:$0xff]  ;;  %v3660_v10 = vsel %vm3548_vm6, 1, %v12749_v28 }
 0x6d1   : > { %3800 = vperm.xlu2 %4893, %v14451_v55   ;;  %v10377_v53 = vsel %vm3549_vm7, 1, %v12749_v28  ;;  %v10380_v0 = vsel %vm3550_vm12, 1, %v12749_v28  ;;  %v10390_v29 = vsel %vm10259_vm0, %v14456_v5, %v14455_v6  ;;  %v14459_v3 = vsel %vm10395_vm5, 4294967295, %v14458_v3 }
 0x6d2   : > { %14460 = vst [vmem:[#allocation257_spill] sm:$0xff] %v14459_v3  ;;  %vm10399_vm12 = vcmp.eq.s32.totalorder %v3876_v33, 1  ;;  %vm14466_vm0 = vcmask 1046534   ;;  %vm14467_vm10 = vcmask 1046528   ;;  %v3878_v56 = vperm.slane %v3868_v39, 1 }
 0x6d3   : > { %v14462_v43 = vsel %vm10399_vm12, 4294967295, %v14461_v43  ;;  %v3541_v35 = vsel %vm14466_vm0, %v10027_v21, %v10022_v46  ;;  %v3543_v33 = vsel %vm14467_vm10, %v10022_v46, %v10027_v21  ;;  %v3703_v6 = vsel %vm10165_vm3, %v3578_v13, %v10069_v58  ;;  %vm14486_vm3 = vmmov %vm14484_vm1 }
 0x6d4   : > { %14463 = vst [vmem:[#allocation258_spill] sm:$0xff] %v14462_v43  ;;  %v3671_v52 = vperm.slane %v3660_v10, 0  ;;  %v3672_v39 = vperm.slane %v3660_v10, 1  ;;  %v3542_v14 = vrot.slane %v3541_v35, 6  ;;  %v3544_v31 = vrot.slane %v3543_v33, 7 }
 0x6d5   : > { %v10370_v38 = vpop.permute.xlu1 %3655  ;;  %v14469_v13 = vperm.slane %v14371_v50, 7  ;;  %vm10442_vm2 = vcmp.eq.s32.totalorder %v3877_v11, 1  ;;  %vm10446_vm6 = vcmp.eq.s32.totalorder %v3878_v56, 1  ;;  %vm14475_vm7 = vcmask 1043459  }
 0x6d6   : > { %14452 = vst [vmem:[#allocation198_spill] sm:$0xff] %v10370_v38  ;;  %v14471_v61 = vsel %vm10442_vm2, 4294967295, %v14470_v61  ;;  %vm10463_vm0 = vcmp.eq.s32.totalorder %v3671_v52, 1  ;;  %vm10467_vm10 = vcmp.eq.s32.totalorder %v3672_v39, 1  ;;  %vm10471_vm15 = vcmp.ne.s32.totalorder %v3542_v14, 0 }
 0x6d9   : > { %4895 = vset.pattern.permute.xlu2 %v13260_v32 }
 0x6db   : > { %v10392_v32 = vpop.permute.xlu2 %3584 }
 0x6dc   : > { %14457 = vst [vmem:[#allocation196_spill] sm:$0xff] %v10392_v32 }
 0x6dd   : > { %v3775_v49 = vpop.permute.xlu1 %3774 }
 0x6de   : > { %v10431_v46 = vsel %vm10395_vm5, %v3775_v49, %v3699_v54  ;;  %v10435_v21 = vsel %vm10399_vm12, %v3775_v49, %v3700_v16  ;;  %v14472_v54 = vmov 0  ;;  %v10453_v16 = vsel %vm14475_vm7, %v10349_v4, %v10336_v26  ;;  %vm14488_vm12 = vmmov %vm14484_vm1 }
 0x6df   : > { %v14473_v54 = vsel %vm10446_vm6, 4294967295, %v14472_v54  ;;  %v4282_v10 = vrot.slane %v10431_v46, 1  ;;  %v4296_v49 = vrot.slane %v10435_v21, 1  ;;  %v4316_v50 = vrot.slane %v10431_v46, 2 }
 0x6e0   : > { %14474 = vst [vmem:[#allocation203_spill] sm:$0xff] %v14473_v54  ;;  %v4330_v11 = vrot.slane %v10435_v21, 2  ;;  %v4350_v62 = vrot.slane %v10431_v46, 3  ;;  %v4364_v56 = vrot.slane %v10435_v21, 3  ;;  %v4384_v35 = vrot.slane %v10431_v46, 4 }
 0x6e1   : > { %3820 = vperm.xlu2 %4895, %v14469_v13   ;;  %v4398_v33 = vrot.slane %v10435_v21, 4  ;;  %v4418_v57 = vrot.slane %v10431_v46, 5  ;;  %v4432_v43 = vrot.slane %v10435_v21, 5  ;;  %v4452_v3 = vrot.slane %v10431_v46, 6 }
 0x6e2   : > { %v4466_v25 = vrot.slane %v10435_v21, 6  ;;  %vm10479_vm7 = vcmp.ne.s32.totalorder %v3544_v31, 0  ;;  %v4486_v39 = vrot.slane %v10431_v46, 7  ;;  %v4500_v14 = vrot.slane %v10435_v21, 7 }
 0x6e3   : > { %v14492_v54 = vperm.slane %v14417_v40, 7 }
 0x6e5   : > { %v3788_v52 = vpop.permute.xlu1 %3787 }
 0x6e6   : > { %v3913_v9 = vsel %vm10442_vm2, %v3788_v52, %v3703_v6  ;;  %v3914_v38 = vsel %vm10446_vm6, %v3788_v52, %v3704_v15  ;;  %vm14489_vm2 = vmmov %vm14484_vm1 }
 0x6e7   : > { %v4248_v12 = vrot.slane %v3913_v9, 7  ;;  %v4262_v44 = vrot.slane %v3914_v38, 7  ;;  %v10490_v55 = vsel %vm14484_vm1, %v3913_v9, %v4282_v10  ;;  %v10493_v31 = vsel %vm14486_vm3, %v3914_v38, %v4296_v49  ;;  %vm14491_vm6 = vmmov %vm14484_vm1 }
 0x6e8   : > { %14485 = vst [vmem:[#allocation237_spill] sm:$0xff] %v10490_v55  ;;  %v4317_v32 = vrot.slane %v3913_v9, 1  ;;  %v4331_v7 = vrot.slane %v3914_v38, 1  ;;  %v4351_v41 = vrot.slane %v3913_v9, 2  ;;  %v4365_v27 = vrot.slane %v3914_v38, 2  ;;  %vm14493_vm3 = vmmov %vm14484_vm1 }
 0x6e9   : > { %14487 = vst [vmem:[#allocation259_spill] sm:$0xff] %v10493_v31  ;;  %v10497_v63 = vsel %vm14488_vm12, %v4248_v12, %v10431_v46  ;;  %v10501_v6 = vsel %vm14489_vm2, %v4262_v44, %v10435_v21  ;;  %v4385_v15 = vrot.slane %v3913_v9, 3  ;;  %v4399_v52 = vrot.slane %v3914_v38, 3  ;;  %3859 = vperm.xlu2 %4895, %v14492_v54   ;;  %vm14494_vm12 = vmmov %vm14484_vm1 }
 0x6ea   : > { %14490 = vst [vmem:[#allocation171_spill] sm:$0xff] %v10501_v6  ;;  %v10504_v10 = vsel %vm14491_vm6, %v4351_v41, %v4350_v62  ;;  %v10507_v49 = vsel %vm14484_vm1, %v4365_v27, %v4364_v56  ;;  %v4419_v31 = vrot.slane %v3913_v9, 4  ;;  %v4433_v55 = vrot.slane %v3914_v38, 4  ;;  %vm14495_vm2 = vmmov %vm14484_vm1 }
 0x6eb   : > { %v10512_v12 = vsel %vm14493_vm3, %v4385_v15, %v4384_v35  ;;  %v10515_v46 = vsel %vm14494_vm12, %v4399_v52, %v4398_v33  ;;  %v4453_v44 = vrot.slane %v3913_v9, 5  ;;  %v4467_v21 = vrot.slane %v3914_v38, 5  ;;  %vm14496_vm6 = vmmov %vm14484_vm1  ;;  %v10523_v56 = vpop.permute.xlu2 %3603  ;;  %v14498_v33 = vld [vmem:[#allocation226_spill] sm:$0xff] }
 0x6ec   : > { %v10518_v6 = vsel %vm14495_vm2, %v4419_v31, %v4418_v57  ;;  %v10521_v41 = vsel %vm14496_vm6, %v4433_v55, %v4432_v43  ;;  %v4487_v27 = vrot.slane %v3913_v9, 6  ;;  %v4501_v62 = vrot.slane %v3914_v38, 6  ;;  %vm14497_vm3 = vmmov %vm14484_vm1  ;;  %v14499_v57 = vld [vmem:[#allocation236_spill] sm:$0xff]  ;;  %v14503_v43 = vld [vmem:[#allocation129_spill] sm:$0xff] }
 0x6ed   : > { %v10526_v54 = vsel %vm14484_vm1, %v4453_v44, %v4452_v3  ;;  %v10529_v35 = vsel %vm14497_vm3, %v4467_v21, %v4466_v25  ;;  %vm3757_vm12 = vcmp.ne.s32.totalorder %v3744_v34, 0  ;;  %vm14500_vm2 = vmmov %vm14484_vm1  ;;  %v3746_v25 = vrot.slane %v10453_v16, 3 }
 0x6ee   : > { %v10540_v38 = vsel %vm14500_vm2, %v4487_v27, %v4486_v39  ;;  %vm14501_vm6 = vmmov %vm14484_vm1  ;;  %v3676_v3 = vperm.slane %v10380_v0, 1  ;;  %v14504_v31 = vsel %vm14413_vm4, %v14453_v60, %v14503_v43  ;;  %v10558_v34 = vsel %vm14484_vm1, %v4317_v32, %v4316_v50 }
 0x6ef   : > { %v10543_v9 = vsel %vm14501_vm6, %v4501_v62, %v4500_v14  ;;  %v10555_v52 = vsel %vm10263_vm14, %v14456_v5, %v14504_v31  ;;  %vm14505_vm3 = vmmov %vm14484_vm1  ;;  %v3663_v16 = vsel %vm10471_vm15, 1, %v12749_v28  ;;  %v14507_v14 = vld [vmem:[#allocation68_spill] sm:$0xff]  ;;  %vm14510_vm14 = vnez %v14293_v47  ;;  %v14511_v5 = vld [vmem:[#allocation209_spill] sm:$0xff] }
 0x6f0   : > { %14502 = vst [vmem:[#allocation200_spill] sm:$0xff] %v10543_v9  ;;  %v10561_v39 = vsel %vm14505_vm3, %v4331_v7, %v4330_v11  ;;  %v14508_v60 = vsel %vm9902_vm11, %v14506_v8, %v14507_v14  ;;  %v14512_v7 = vsel %vm14510_vm14, %v14506_v8, %v14511_v5  ;;  %vm14513_vm4 = vnez %v14342_v36  ;;  %v14519_v36 = vld [vmem:[#allocation84_spill] sm:$0xff] }
 0x6f1   : > { %v10574_v30 = vsel %vm10084_vm8, %v10368_v22, %v14508_v60  ;;  %v10584_v17 = vsel %vm14513_vm4, %v10368_v22, %v14512_v7  ;;  %vm14515_vm15 = vcmask 1044484   ;;  %v14516_v32 = vperm.slane %v10377_v53, 0  ;;  %4898 = vset.pattern.permute.xlu2 %v5560_v18  ;;  %v10625_v7 = vpop.permute.xlu0 %3629  ;;  %v14554_v22 = vld [vmem:[#allocation196_spill] sm:$0xff] }
 0x6f2   : > { %14509 = vst [vmem:[#allocation172_spill] sm:$0xff] %v10574_v30  ;;  %v3747_v1 = vsel %vm14515_vm15, %v10349_v4, %v10336_v26  ;;  %v3664_v47 = vsel %vm10479_vm7, 1, %v12749_v28  ;;  %v3869_v50 = vsel %vm3757_vm12, 1, %v12749_v28  ;;  %v14520_v11 = vperm.slane %v10377_v53, 1 }
 0x6f3   : > { %14514 = vst [vmem:[#allocation260_spill] sm:$0xff] %v10584_v17  ;;  %vm10591_vm11 = vcmp.eq.s32.totalorder %v14516_v32, 1  ;;  %v14521_v44 = vmov 0  ;;  %v14523_v21 = vperm.slane %v10380_v0, 0  ;;  %v14524_v27 = vmov 0  ;;  %v10623_v5 = vpop.permute.xlu2 %3616  ;;  %v14533_v32 = vld [vmem:[#allocation48_spill] sm:$0xff] }
 0x6f4   : > { %vm10605_vm8 = vcmp.eq.s32.totalorder %v14520_v11, 1  ;;  %vm3758_vm7 = vcmp.ne.s32.totalorder %v3746_v25, 0  ;;  %vm14527_vm12 = vcmask 1045509   ;;  %vm10619_vm6 = vcmp.eq.s32.totalorder %v3676_v3, 1  ;;  %14531 = vst [vmem:[#allocation197_spill] sm:$0xff] %v10625_v7  ;;  %v14532_v25 = vld [vmem:[#allocation139_spill] sm:$0xff] }
 0x6f5   : > { %v14522_v44 = vsel %vm10605_vm8, 4294967295, %v14521_v44  ;;  %vm10611_vm2 = vcmp.eq.s32.totalorder %v14523_v21, 1  ;;  %v3749_v20 = vsel %vm14527_vm12, %v10349_v4, %v10336_v26  ;;  %v14528_v62 = vmov 0  ;;  %v14553_v3 = vld [vmem:[#allocation269_spill] sm:$0xff]  ;;  %v14559_v7 = vld [vmem:[#allocation256_spill] sm:$0xff] }
 0x6f6   : > { %v14525_v27 = vsel %vm10611_vm2, 4294967295, %v14524_v27  ;;  %v14529_v62 = vsel %vm10619_vm6, 4294967295, %v14528_v62  ;;  %v3677_v53 = vperm.slane %v3663_v16, 0  ;;  %v3678_v43 = vperm.slane %v3663_v16, 1  ;;  %v14552_v16 = vld [vmem:[#allocation169_spill] sm:$0xff] }
 0x6f7   : > { %14526 = vst [vmem:[#allocation261_spill] sm:$0xff] %v14525_v27  ;;  %v3748_v31 = vrot.slane %v3747_v1, 4  ;;  %v3679_v8 = vperm.slane %v3664_v47, 0  ;;  %v3680_v0 = vperm.slane %v3664_v47, 1  ;;  %v3879_v14 = vperm.slane %v3869_v50, 0 }
 0x6f8   : > { %14530 = vst [vmem:[#allocation217_spill] sm:$0xff] %v14529_v62  ;;  %v3880_v60 = vperm.slane %v3869_v50, 1  ;;  %v3870_v18 = vsel %vm3758_vm7, 1, %v12749_v28  ;;  %v3750_v1 = vrot.slane %v3749_v20, 5  ;;  %v3710_v47 = vsel %vm10467_vm10, %v14519_v36, %v10153_v23  ;;  %v14608_v23 = vld [vmem:[#allocation133_spill] sm:$0xff]  ;;  %v14619_v62 = vld [vmem:[#allocation238_spill] sm:$0xff] }
 0x6f9   : > { %vm14534_vm1 = vcmask 1046534   ;;  %vm10655_vm3 = vcmp.eq.s32.totalorder %v3677_v53, 1  ;;  %vm10659_vm14 = vcmp.eq.s32.totalorder %v3678_v43, 1  ;;  %vm3759_vm4 = vcmp.ne.s32.totalorder %v3748_v31, 0 }
 0x6fa   : > { %v3751_v50 = vsel %vm14534_vm1, %v10349_v4, %v10336_v26  ;;  %vm10663_vm15 = vcmp.eq.s32.totalorder %v3679_v8, 1  ;;  %v14539_v11 = vmov 0  ;;  %vm10667_vm7 = vcmp.eq.s32.totalorder %v3879_v14, 1  ;;  %v3808_v14 = vpop.permute.xlu1 %3807 }
 0x6fb   : > { %v14540_v11 = vsel %vm10663_vm15, 4294967295, %v14539_v11  ;;  %v14542_v21 = vmov 0  ;;  %vm10671_vm12 = vcmp.eq.s32.totalorder %v3880_v60, 1  ;;  %v14544_v15 = vmov 0 }
 0x6fc   : > { %14541 = vst [vmem:[#allocation243_spill] sm:$0xff] %v14540_v11  ;;  %v14543_v21 = vsel %vm10667_vm7, 4294967295, %v14542_v21  ;;  %v14545_v15 = vsel %vm10671_vm12, 4294967295, %v14544_v15  ;;  %v3881_v53 = vperm.slane %v3870_v18, 0  ;;  %vm10675_vm1 = vcmp.eq.s32.totalorder %v3680_v0, 1 }
 0x6fd   : > { %v14546_v20 = vmov 0  ;;  %v3882_v43 = vperm.slane %v3870_v18, 1  ;;  %vm3760_vm5 = vcmp.ne.s32.totalorder %v3750_v1, 0  ;;  %v3752_v31 = vrot.slane %v3751_v50, 6  ;;  %v14550_v1 = vld [vmem:[#allocation128_spill] sm:$0xff]  ;;  %v14551_v50 = vld [vmem:[#allocation151_spill] sm:$0xff] }
 0x6fe   : > { %v14547_v20 = vsel %vm10675_vm1, 4294967295, %v14546_v20  ;;  %v3871_v60 = vsel %vm3759_vm4, 1, %v12749_v28  ;;  %v14549_v18 = vperm.slane %v14270_v2, 7  ;;  %v14556_v0 = vsel %vm10220_vm9, %v14554_v22, %v14555_v51 }
 0x6ff   : > { %14548 = vst [vmem:[#allocation267_spill] sm:$0xff] %v14547_v20  ;;  %v10710_v2 = vsel %vm10667_vm7, %v14557_v45, %v14556_v0  ;;  %v14560_v8 = vsel %vm10224_vm13, %v14554_v22, %v14559_v7  ;;  %vm10730_vm4 = vcmp.eq.s32.totalorder %v3881_v53, 1  ;;  %v3872_v22 = vsel %vm3760_vm5, 1, %v12749_v28  ;;  %v14616_v0 = vld [vmem:[#allocation219_spill] sm:$0xff] }
 0x700   : > { %3839 = vperm.xlu2 %4898, %v14549_v18   ;;  %v14558_v18 = vld [vmem:[#allocation272_spill] sm:$0xff]  ;;  %v10720_v48 = vsel %vm10671_vm12, %v14557_v45, %v14560_v8  ;;  %vm10735_vm13 = vcmp.eq.s32.totalorder %v3882_v43, 1  ;;  %v3883_v7 = vperm.slane %v3871_v60, 0  ;;  %v3884_v8 = vperm.slane %v3871_v60, 1  ;;  %v14599_v45 = vld [vmem:[#allocation94_spill] sm:$0xff] }
 0x701   : > { %vm3761_vm12 = vcmp.ne.s32.totalorder %v3752_v31, 0  ;;  %v3885_v59 = vperm.slane %v3872_v22, 0  ;;  %v3886_v43 = vperm.slane %v3872_v22, 1  ;;  %v14566_v53 = vsel %vm10463_vm0, %v14519_v36, %v10144_v19  ;;  %v14589_v31 = vld [vmem:[#allocation263_spill] sm:$0xff] }
 0x702   : > { %v3873_v60 = vsel %vm3761_vm12, 1, %v12749_v28  ;;  %v10757_v17 = vsel %vm10730_vm4, %v3808_v14, %v14566_v53  ;;  %vm10759_vm5 = vcmp.eq.s32.totalorder %v3883_v7, 1  ;;  %vm10763_vm7 = vcmp.eq.s32.totalorder %v3884_v8, 1  ;;  %v3827_v7 = vpop.permute.xlu0 %3826  ;;  %v3834_v26 = vpop.permute.xlu1 %3833 }
 0x703   : > { %v14569_v9 = vmov 0  ;;  %v10772_v19 = vsel %vm10735_vm13, %v3808_v14, %v3710_v47  ;;  %v14571_v36 = vperm.slane %v14417_v40, 7  ;;  %vm10777_vm12 = vcmp.eq.s32.totalorder %v3885_v59, 1 }
 0x704   : > { %v14570_v9 = vsel %vm10763_vm7, 4294967295, %v14569_v9  ;;  %v14572_v8 = vmov 0  ;;  %vm10781_vm9 = vcmp.eq.s32.totalorder %v3886_v43, 1  ;;  %v14575_v4 = vmov 0 }
 0x705   : > { %v14573_v8 = vsel %vm10777_vm12, 4294967295, %v14572_v8  ;;  %v14576_v4 = vsel %vm10781_vm9, 4294967295, %v14575_v4  ;;  %v3887_v30 = vperm.slane %v3873_v60, 0  ;;  %v14578_v40 = vsel %vm10591_vm11, %v10623_v5, %v14532_v25 }
 0x706   : > { %14574 = vst [vmem:[#allocation33_spill] sm:$0xff] %v14573_v8  ;;  %v10793_v47 = vsel %vm10759_vm5, %v3827_v7, %v14578_v40  ;;  %v14579_v59 = vsel %vm10605_vm8, %v10623_v5, %v14533_v32  ;;  %v3888_v43 = vperm.slane %v3873_v60, 1  ;;  %v14580_v40 = vsel %vm10611_vm2, %v10322_v37, %v10390_v29  ;;  %v14588_v29 = vld [vmem:[#allocation194_spill] sm:$0xff]  ;;  %v14621_v8 = vld [vmem:[#allocation235_spill] sm:$0xff] }
 0x707   : > { %14577 = vst [vmem:[#allocation111_spill] sm:$0xff] %v14576_v4  ;;  %v10802_v14 = vsel %vm10763_vm7, %v3827_v7, %v14579_v59  ;;  %v10833_v51 = vsel %vm10777_vm12, %v3834_v26, %v14580_v40  ;;  %v14582_v5 = vsel %vm10619_vm6, %v10322_v37, %v10555_v52  ;;  %vm10844_vm7 = vcmp.eq.s32.totalorder %v3887_v30, 1  ;;  %v14591_v52 = vld [vmem:[#allocation92_spill] sm:$0xff]  ;;  %v14610_v60 = vld [vmem:[#allocation258_spill] sm:$0xff] }
 0x708   : > { %3865 = vperm.xlu2 %4898, %v14571_v36   ;;  %v3637_v36 = vpop.permute.xlu2 %3636  ;;  %14581 = vst [vmem:[#allocation112_spill] sm:$0xff] %v10833_v51  ;;  %v10842_v7 = vsel %vm10781_vm9, %v3834_v26, %v14582_v5  ;;  %vm10848_vm8 = vcmp.eq.s32.totalorder %v3888_v43, 1  ;;  %v14604_v5 = vld [vmem:[#allocation257_spill] sm:$0xff]  ;;  %v14627_v28 = vrot.slane %v10710_v2, 7 }
 0x709   : > { %14583 = vst [vmem:[#allocation85_spill] sm:$0xff] %v10842_v7  ;;  %v3721_v40 = vsel %vm10655_vm3, %v3637_v36, %v14588_v29  ;;  %v3722_v37 = vsel %vm10659_vm14, %v3637_v36, %v14589_v31  ;;  %v14595_v36 = vsel %vm10467_vm10, %v10523_v56, %v14499_v57  ;;  %v14601_v29 = vld [vmem:[#allocation218_spill] sm:$0xff]  ;;  %v14606_v31 = vld [vmem:[#allocation161_spill] sm:$0xff]  ;;  %v14623_v57 = vld [vmem:[#allocation203_spill] sm:$0xff] }
 0x70a   : > { %v10873_v30 = vsel %vm10844_vm7, %v14591_v52, %v3721_v40  ;;  %v10878_v25 = vsel %vm10848_vm8, %v14591_v52, %v3722_v37  ;;  %v14594_v40 = vsel %vm10463_vm0, %v10523_v56, %v14498_v33  ;;  %v14598_v56 = vsel %vm10655_vm3, %v14551_v50, %v14550_v1  ;;  %v14602_v33 = vld [vmem:[#allocation137_spill] sm:$0xff] }
 0x70b   : > { %14592 = vst [vmem:[#allocation138_spill] sm:$0xff] %v10873_v30  ;;  %vm14605_vm0 = vnez %v14604_v5  ;;  %vm14607_vm10 = vnez %v14606_v31  ;;  %vm14611_vm3 = vnez %v14610_v60  ;;  %v14612_v60 = vsel %vm10659_vm14, %v14551_v50, %v14552_v16 }
 0x70c   : > { %14593 = vst [vmem:[#allocation86_spill] sm:$0xff] %v10878_v25  ;;  %v14609_v42 = vsel %vm14607_vm10, %v14601_v29, %v14608_v23  ;;  %vm14618_vm14 = vnez %v14471_v61  ;;  %vm14628_vm10 = vcmask 1042434   ;;  %v14629_v61 = vrot.slane %v10720_v48, 7 }
 0x70d   : > { %v3814_v53 = vpop.permute.xlu1 %3813 }
 0x70e   : > { %v10902_v4 = vsel %vm10730_vm4, %v3814_v53, %v14594_v40  ;;  %v10914_v13 = vsel %vm10735_vm13, %v3814_v53, %v14595_v36  ;;  %vm14600_vm13 = vnez %v14599_v45  ;;  %vm14624_vm4 = vnez %v14623_v57 }
 0x70f   : > { %v14603_v26 = vsel %vm14600_vm13, %v14601_v29, %v14602_v33  ;;  %vm14625_vm13 = vcmask 1041409   ;;  %v14633_v57 = vrot.slane %v10772_v19, 6 }
 0x710   : > { %v10862_v43 = vpop.permute.xlu2 %3649 }
 0x711   : > { %14590 = vst [vmem:[#allocation126_spill] sm:$0xff] %v10862_v43 }
 0x715   : > { %v3853_v53 = vpop.permute.xlu1 %3852 }
 0x716   : > { %v10942_v37 = vsel %vm10844_vm7, %v3853_v53, %v14598_v56  ;;  %v14615_v56 = vld [vmem:[#allocation239_spill] sm:$0xff]  ;;  %vm14620_vm7 = vnez %v14619_v62 }
 0x717   : > { %v14622_v27 = vsel %vm14620_vm7, %v14615_v56, %v14621_v8  ;;  %v14631_v8 = vrot.slane %v10757_v17, 6 }
 0x718   : > { %v3769_v52 = vpop.permute.xlu2 %3768 }
 0x719   : > { %v10951_v40 = vsel %vm14605_vm0, %v3769_v52, %v14603_v26  ;;  %v10960_v1 = vsel %vm14611_vm3, %v3769_v52, %v14609_v42  ;;  %v10977_v52 = vsel %vm10848_vm8, %v3853_v53, %v14612_v60  ;;  %v14613_v26 = vld [vmem:[#allocation234_spill] sm:$0xff]  ;;  %vm14626_vm0 = vmmov %vm14625_vm13 }
 0x71a   : > { %v3963_v23 = vrot.slane %v10951_v40, 1  ;;  %v3978_v33 = vrot.slane %v10960_v1, 1  ;;  %v4028_v45 = vrot.slane %v10951_v40, 2  ;;  %v4042_v31 = vrot.slane %v10960_v1, 2  ;;  %vm14630_vm3 = vmmov %vm14628_vm10 }
 0x71b   : > { %v4062_v29 = vrot.slane %v10951_v40, 3  ;;  %v4076_v55 = vrot.slane %v10960_v1, 3  ;;  %v4096_v16 = vrot.slane %v10951_v40, 4  ;;  %v4110_v50 = vrot.slane %v10960_v1, 4  ;;  %vm14636_vm7 = vmmov %vm14626_vm0 }
 0x71c   : > { %v4130_v59 = vrot.slane %v10951_v40, 5  ;;  %v4144_v53 = vrot.slane %v10960_v1, 5  ;;  %v4164_v42 = vrot.slane %v10951_v40, 6  ;;  %v4178_v5 = vrot.slane %v10960_v1, 6 }
 0x71d   : > { %vm14614_vm8 = vnez %v14613_v26 }
 0x71e   : > { %v14617_v36 = vsel %vm14614_vm8, %v14615_v56, %v14616_v0  ;;  %vm14632_vm8 = vcmask 1043459  }
 0x720   : > { %v3782_v60 = vpop.permute.xlu2 %3781 }
 0x721   : > { %v3911_v58 = vsel %vm14618_vm14, %v3782_v60, %v14617_v36  ;;  %v3912_v20 = vsel %vm14624_vm4, %v3782_v60, %v14622_v27  ;;  %vm14634_vm14 = vmmov %vm14632_vm8 }
 0x722   : > { %v3964_v32 = vsel %vm14625_vm13, %v3911_v58, %v3963_v23  ;;  %v3979_v43 = vsel %vm14626_vm0, %v3912_v20, %v3978_v33  ;;  %v3994_v11 = vrot.slane %v3911_v58, 7  ;;  %v4008_v26 = vrot.slane %v3912_v20, 7  ;;  %vm14637_vm4 = vmmov %vm14626_vm0 }
 0x723   : > { %v3966_v0 = vsel %vm14628_vm10, %v14627_v28, %v3964_v32  ;;  %v3981_v62 = vsel %vm14630_vm3, %v14629_v61, %v3979_v43  ;;  %v4029_v36 = vrot.slane %v3911_v58, 1  ;;  %v4043_v25 = vrot.slane %v3912_v20, 1  ;;  %vm14639_vm13 = vmmov %vm14630_vm3 }
 0x724   : > { %v11017_v27 = vsel %vm14632_vm8, %v14631_v8, %v3966_v0  ;;  %v11022_v56 = vsel %vm14634_vm14, %v14633_v57, %v3981_v62  ;;  %v3995_v33 = vsel %vm14636_vm7, %v3994_v11, %v10951_v40  ;;  %v4009_v28 = vsel %vm14637_vm4, %v4008_v26, %v10960_v1  ;;  %vm14641_vm0 = vmmov %vm14630_vm3 }
 0x725   : > { %14635 = vst [vmem:[#allocation141_spill] sm:$0xff] %v11022_v56  ;;  %v14638_v32 = vrot.slane %v10710_v2, 6  ;;  %v14640_v23 = vrot.slane %v10720_v48, 6  ;;  %vm14642_vm10 = vmmov %vm14637_vm4  ;;  %v4063_v8 = vrot.slane %v3911_v58, 2  ;;  %v4077_v26 = vrot.slane %v3912_v20, 2 }
 0x726   : > { %v4030_v0 = vsel %vm14642_vm10, %v4029_v36, %v4028_v45  ;;  %vm14643_vm3 = vmmov %vm14637_vm4  ;;  %v4097_v57 = vrot.slane %v3911_v58, 3  ;;  %v4111_v30 = vrot.slane %v3912_v20, 3  ;;  %v4131_v7 = vrot.slane %v3911_v58, 4 }
 0x727   : > { %v3997_v43 = vsel %vm14639_vm13, %v14638_v32, %v3995_v33  ;;  %v4011_v60 = vsel %vm14641_vm0, %v14640_v23, %v4009_v28  ;;  %v4044_v61 = vsel %vm14643_vm3, %v4043_v25, %v4042_v31  ;;  %vm14644_vm8 = vmmov %vm14641_vm0  ;;  %v4145_v33 = vrot.slane %v3912_v20, 4 }
 0x728   : > { %v4031_v62 = vsel %vm14644_vm8, %v10710_v2, %v4030_v0  ;;  %vm14645_vm14 = vmmov %vm14641_vm0  ;;  %v4165_v23 = vrot.slane %v3911_v58, 5  ;;  %v4179_v45 = vrot.slane %v3912_v20, 5  ;;  %v14648_v25 = vrot.slane %v10710_v2, 1 }
 0x729   : > { %v4045_v11 = vsel %vm14645_vm14, %v10720_v48, %v4044_v61  ;;  %vm14646_vm7 = vmmov %vm14643_vm3  ;;  %v14650_v36 = vrot.slane %v10720_v48, 1  ;;  %v4112_v51 = vsel %vm14643_vm3, %v4111_v30, %v4110_v50 }
 0x72a   : > { %v4064_v32 = vsel %vm14646_vm7, %v4063_v8, %v4062_v29  ;;  %vm14647_vm4 = vmmov %vm14643_vm3 }
 0x72b   : > { %v4078_v28 = vsel %vm14647_vm4, %v4077_v26, %v4076_v55  ;;  %vm14649_vm13 = vmmov %vm14641_vm0  ;;  %v14656_v26 = vrot.slane %v10710_v2, 3 }
 0x72c   : > { %v4066_v31 = vsel %vm14649_vm13, %v14648_v25, %v4064_v32  ;;  %v4080_v0 = vsel %vm14641_vm0, %v14650_v36, %v4078_v28  ;;  %vm14651_vm10 = vmmov %vm14643_vm3  ;;  %v14658_v25 = vrot.slane %v10720_v48, 3 }
 0x72d   : > { %v4098_v61 = vsel %vm14651_vm10, %v4097_v57, %v4096_v16  ;;  %vm14652_vm8 = vmmov %vm14643_vm3  ;;  %v14660_v16 = vrot.slane %v10710_v2, 4 }
 0x72e   : > { %v4132_v56 = vsel %vm14652_vm8, %v4131_v7, %v4130_v59  ;;  %vm14653_vm14 = vmmov %vm14643_vm3  ;;  %v14661_v7 = vrot.slane %v10720_v48, 4  ;;  %v4199_v59 = vrot.slane %v3911_v58, 6 }
 0x72f   : > { %v4146_v29 = vsel %vm14653_vm14, %v4145_v33, %v4144_v53  ;;  %vm14654_vm7 = vmmov %vm14643_vm3  ;;  %v4213_v53 = vrot.slane %v3912_v20, 6  ;;  %v14665_v33 = vrot.slane %v10772_v19, 5 }
 0x730   : > { %v4166_v55 = vsel %vm14654_vm7, %v4165_v23, %v4164_v42  ;;  %vm14655_vm4 = vmmov %vm14643_vm3  ;;  %v4198_v42 = vrot.slane %v10951_v40, 7  ;;  %v14669_v40 = vrot.slane %v10772_v19, 7 }
 0x731   : > { %v4180_v8 = vsel %vm14655_vm4, %v4179_v45, %v4178_v5  ;;  %vm14657_vm9 = vmmov %vm14641_vm0  ;;  %v4168_v30 = vsel %vm14641_vm0, %v14660_v16, %v4166_v55  ;;  %v4212_v5 = vrot.slane %v10960_v1, 7  ;;  %v14667_v45 = vrot.slane %v10757_v17, 7  ;;  %v3801_v16 = vpop.permute.xlu2 %3800 }
 0x732   : > { %v4134_v32 = vsel %vm14657_vm9, %v14656_v26, %v4132_v56  ;;  %vm14659_vm13 = vmmov %vm14641_vm0  ;;  %v14663_v56 = vrot.slane %v10757_v17, 5  ;;  %vm14664_vm9 = vcmask 1043459   ;;  %v14675_v55 = vrot.slane %v10720_v48, 5 }
 0x733   : > { %v4148_v28 = vsel %vm14659_vm13, %v14658_v25, %v4146_v29  ;;  %vm14662_vm10 = vmmov %vm14641_vm0  ;;  %v4214_v1 = vsel %vm14655_vm4, %v4213_v53, %v4212_v5  ;;  %v14679_v25 = vrot.slane %v10720_v48, 2  ;;  %v14687_v48 = vrot.slane %v10772_v19, 2  ;;  %v14691_v53 = vld [vmem:[#allocation250_spill] sm:$0xff] }
 0x734   : > { %v4182_v50 = vsel %vm14662_vm10, %v14661_v7, %v4180_v8  ;;  %v11071_v57 = vsel %vm14664_vm9, %v14663_v56, %v3997_v43  ;;  %vm14666_vm3 = vmmov %vm14664_vm9  ;;  %v14677_v8 = vrot.slane %v10710_v2, 2 }
 0x735   : > { %v11076_v23 = vsel %vm14666_vm3, %v14665_v33, %v4011_v60  ;;  %vm14668_vm8 = vmmov %vm14666_vm3 }
 0x736   : > { %v11081_v36 = vsel %vm14668_vm8, %v14667_v45, %v4031_v62  ;;  %vm14670_vm14 = vmmov %vm14666_vm3  ;;  %v14674_v62 = vrot.slane %v10710_v2, 5  ;;  %v14695_v45 = vld [vmem:[#allocation251_spill] sm:$0xff] }
 0x737   : > { %v11086_v58 = vsel %vm14670_vm14, %v14669_v40, %v4045_v11  ;;  %vm14671_vm7 = vmmov %vm14655_vm4 }
 0x738   : > { %v4200_v20 = vsel %vm14671_vm7, %v4199_v59, %v4198_v42  ;;  %vm14672_vm13 = vmmov %vm14666_vm3  ;;  %v14683_v42 = vrot.slane %v10772_v19, 1  ;;  %v14685_v59 = vrot.slane %v10757_v17, 2 }
 0x739   : > { %v11092_v43 = vsel %vm14672_vm13, %v10757_v17, %v4066_v31  ;;  %vm14673_vm0 = vmmov %vm14666_vm3  ;;  %v4202_v29 = vsel %vm14662_vm10, %v14674_v62, %v4200_v20  ;;  %v14698_v20 = vrot.slane %v10757_v17, 3 }
 0x73a   : > { %v11096_v60 = vsel %vm14673_vm0, %v10772_v19, %v4080_v0  ;;  %vm14676_vm9 = vmmov %vm14662_vm10  ;;  %v14681_v0 = vrot.slane %v10757_v17, 1  ;;  %vm14693_vm10 = vnez %v14543_v21 }
 0x73b   : > { %v4216_v11 = vsel %vm14676_vm9, %v14675_v55, %v4214_v1  ;;  %vm14678_vm3 = vmmov %vm14676_vm9  ;;  %vm14694_vm9 = vnez %v14558_v18 }
 0x73c   : > { %v4100_v26 = vsel %vm14678_vm3, %v14677_v8, %v4098_v61  ;;  %vm14680_vm8 = vmmov %vm14678_vm3  ;;  %v14690_v61 = vld [vmem:[#allocation165_spill] sm:$0xff]  ;;  %vm14697_vm3 = vnez %v14545_v15 }
 0x73d   : > { %v4114_v31 = vsel %vm14680_vm8, %v14679_v25, %v4112_v51  ;;  %vm14682_vm14 = vmmov %vm14673_vm0  ;;  %v14696_v40 = vsel %vm14694_vm9, %v14690_v61, %v14695_v45 }
 0x73e   : > { %v11113_v7 = vsel %vm14682_vm14, %v14681_v0, %v4100_v26  ;;  %vm14684_vm7 = vmmov %vm14673_vm0 }
 0x73f   : > { %v11118_v5 = vsel %vm14684_vm7, %v14683_v42, %v4114_v31  ;;  %vm14686_vm4 = vmmov %vm14673_vm0  ;;  %vm14702_vm7 = vcmask 1042434   ;;  %v14705_v31 = vld [vmem:[#allocation171_spill] sm:$0xff] }
 0x740   : > { %v11123_v2 = vsel %vm14686_vm4, %v14685_v59, %v4134_v32  ;;  %vm14688_vm13 = vmmov %vm14673_vm0  ;;  %vm14689_vm0 = vnez %v14553_v3  ;;  %v3918_v32 = vsel %vm14697_vm3, %v3801_v16, %v14696_v40  ;;  %v14700_v3 = vrot.slane %v10772_v19, 3  ;;  %v14709_v42 = vld [vmem:[#allocation259_spill] sm:$0xff] }
 0x741   : > { %v11128_v51 = vsel %vm14688_vm13, %v14687_v48, %v4148_v28  ;;  %v14692_v56 = vsel %vm14689_vm0, %v14690_v61, %v14691_v53  ;;  %vm14699_vm8 = vmmov %vm14686_vm4  ;;  %v4264_v62 = vrot.slane %v3918_v32, 6  ;;  %v4298_v18 = vrot.slane %v3918_v32, 7 }
 0x742   : > { %v3917_v33 = vsel %vm14693_vm10, %v3801_v16, %v14692_v56  ;;  %v11147_v28 = vsel %vm14699_vm8, %v14698_v20, %v4168_v30  ;;  %vm14701_vm14 = vmmov %vm14686_vm4  ;;  %v4367_v25 = vrot.slane %v3918_v32, 1  ;;  %v14711_v48 = vrot.slane %v10902_v4, 5 }
 0x743   : > { %v11152_v1 = vsel %vm14701_vm14, %v14700_v3, %v4182_v50  ;;  %v4250_v21 = vrot.slane %v3917_v33, 6  ;;  %v4284_v55 = vrot.slane %v3917_v33, 7  ;;  %v4319_v8 = vsel %vm14702_vm7, %v3917_v33, %v10558_v34  ;;  %vm14703_vm4 = vmmov %vm14702_vm7  ;;  %v14707_v50 = vld [vmem:[#allocation237_spill] sm:$0xff] }
 0x744   : > { %v4333_v15 = vsel %vm14703_vm4, %v3918_v32, %v10561_v39  ;;  %v4353_v26 = vrot.slane %v3917_v33, 1  ;;  %vm14704_vm13 = vmmov %vm14703_vm4  ;;  %v14713_v39 = vrot.slane %v10914_v13, 5  ;;  %v14717_v56 = vrot.slane %v10914_v13, 6 }
 0x745   : > { %v4251_v30 = vsel %vm14704_vm13, %v4250_v21, %v10497_v63  ;;  %vm14706_vm0 = vmmov %vm14703_vm4  ;;  %v14715_v63 = vrot.slane %v10902_v4, 6  ;;  %v14719_v40 = vrot.slane %v10902_v4, 7  ;;  %v14721_v3 = vrot.slane %v10914_v13, 7 }
 0x746   : > { %v4265_v16 = vsel %vm14706_vm0, %v4264_v62, %v14705_v31  ;;  %vm14708_vm10 = vmmov %vm14706_vm0  ;;  %v4354_v62 = vsel %vm14706_vm0, %v4353_v26, %v10504_v10  ;;  %v14726_v31 = vrot.slane %v10802_v14, 6  ;;  %v4421_v26 = vrot.slane %v3917_v33, 3 }
 0x747   : > { %v4285_v0 = vsel %vm14708_vm10, %v4284_v55, %v14707_v50  ;;  %vm14710_vm9 = vmmov %vm14706_vm0  ;;  %v4455_v50 = vrot.slane %v3917_v33, 4 }
 0x748   : > { %v4299_v59 = vsel %vm14710_vm9, %v4298_v18, %v14709_v42  ;;  %vm14712_vm3 = vmmov %vm14699_vm8  ;;  %v14724_v18 = vrot.slane %v10793_v47, 6  ;;  %vm14725_vm9 = vcmask 1044484   ;;  %v4489_v42 = vrot.slane %v3917_v33, 5 }
 0x749   : > { %v11169_v34 = vsel %vm14712_vm3, %v14711_v48, %v4251_v30  ;;  %vm14714_vm8 = vmmov %vm14712_vm3 }
 0x74a   : > { %v11174_v61 = vsel %vm14714_vm8, %v14713_v39, %v4265_v16  ;;  %vm14716_vm14 = vmmov %vm14712_vm3 }
 0x74b   : > { %v11179_v53 = vsel %vm14716_vm14, %v14715_v63, %v4285_v0  ;;  %vm14718_vm7 = vmmov %vm14712_vm3  ;;  %v4469_v0 = vrot.slane %v3918_v32, 4 }
 0x74c   : > { %v11184_v45 = vsel %vm14718_vm7, %v14717_v56, %v4299_v59  ;;  %vm14720_vm4 = vmmov %vm14712_vm3  ;;  %v4503_v59 = vrot.slane %v3918_v32, 5 }
 0x74d   : > { %v4321_v20 = vsel %vm14720_vm4, %v14719_v40, %v4319_v8  ;;  %vm14722_vm13 = vmmov %vm14712_vm3  ;;  %v14733_v40 = vrot.slane %v10902_v4, 1 }
 0x74e   : > { %v4335_v21 = vsel %vm14722_vm13, %v14721_v3, %v4333_v15  ;;  %vm14723_vm10 = vmmov %vm14706_vm0  ;;  %v11199_v30 = vsel %vm14725_vm9, %v14724_v18, %v4321_v20  ;;  %v4387_v15 = vrot.slane %v3917_v33, 2  ;;  %v14735_v33 = vrot.slane %v10914_v13, 1 }
 0x74f   : > { %v4368_v55 = vsel %vm14723_vm10, %v4367_v25, %v10507_v49  ;;  %vm14727_vm3 = vmmov %vm14725_vm9  ;;  %v4401_v49 = vrot.slane %v3918_v32, 2  ;;  %v4435_v25 = vrot.slane %v3918_v32, 3  ;;  %v14739_v32 = vrot.slane %v10902_v4, 3 }
 0x750   : > { %v11204_v16 = vsel %vm14727_vm3, %v14726_v31, %v4335_v21  ;;  %vm14728_vm8 = vmmov %vm14720_vm4  ;;  %v14741_v3 = vrot.slane %v10914_v13, 3  ;;  %v14748_v31 = vrot.slane %v10914_v13, 4 }
 0x751   : > { %v11208_v8 = vsel %vm14728_vm8, %v10902_v4, %v4354_v62  ;;  %vm14729_vm14 = vmmov %vm14720_vm4  ;;  %v11224_v56 = vsel %vm14706_vm0, %v4435_v25, %v10521_v41 }
 0x752   : > { %v11212_v10 = vsel %vm14729_vm14, %v10914_v13, %v4368_v55  ;;  %vm14730_vm7 = vmmov %vm14706_vm0  ;;  %v14744_v55 = vld [vmem:[#allocation200_spill] sm:$0xff] }
 0x753   : > { %v4388_v48 = vsel %vm14730_vm7, %v4387_v15, %v10512_v12  ;;  %vm14731_vm4 = vmmov %vm14706_vm0 }
 0x754   : > { %v4402_v39 = vsel %vm14731_vm4, %v4401_v49, %v10515_v46  ;;  %vm14732_vm13 = vmmov %vm14706_vm0  ;;  %v14751_v49 = vrot.slane %v10757_v17, 4 }
 0x755   : > { %v11220_v63 = vsel %vm14732_vm13, %v4421_v26, %v10518_v6  ;;  %vm14734_vm10 = vmmov %vm14728_vm8 }
 0x756   : > { %v11229_v20 = vsel %vm14734_vm10, %v14733_v40, %v4388_v48  ;;  %vm14736_vm9 = vmmov %vm14728_vm8  ;;  %v14756_v48 = vld [vmem:[#allocation191_spill] sm:$0xff]  ;;  %v14775_v40 = vld [vmem:[#allocation85_spill] sm:$0xff] }
 0x757   : > { %v11234_v12 = vsel %vm14736_vm9, %v14735_v33, %v4402_v39  ;;  %vm14737_vm3 = vmmov %vm14706_vm0 }
 0x758   : > { %v4456_v46 = vsel %vm14737_vm3, %v4455_v50, %v10526_v54  ;;  %vm14738_vm8 = vmmov %vm14706_vm0  ;;  %v14746_v54 = vrot.slane %v10902_v4, 4 }
 0x759   : > { %v4470_v6 = vsel %vm14738_vm8, %v4469_v0, %v10529_v35  ;;  %vm14740_vm14 = vmmov %vm14736_vm9  ;;  %vm14757_vm8 = vcmask 1046528  }
 0x75a   : > { %v11243_v41 = vsel %vm14740_vm14, %v14739_v32, %v4456_v46  ;;  %vm14742_vm7 = vmmov %vm14736_vm9  ;;  %v3821_v32 = vpop.permute.xlu2 %3820  ;;  %vm14761_vm14 = vnez %v14522_v44 }
 0x75b   : > { %v11248_v21 = vsel %vm14742_vm7, %v14741_v3, %v4470_v6  ;;  %vm14743_vm4 = vmmov %vm14706_vm0 }
 0x75c   : > { %v4490_v62 = vsel %vm14743_vm4, %v4489_v42, %v10540_v38  ;;  %vm14745_vm13 = vmmov %vm14706_vm0  ;;  %v14753_v38 = vrot.slane %v10772_v19, 4 }
 0x75d   : > { %v4504_v18 = vsel %vm14745_vm13, %v4503_v59, %v14744_v55  ;;  %vm14747_vm0 = vmmov %vm14742_vm7  ;;  %v14755_v59 = vld [vmem:[#allocation46_spill] sm:$0xff]  ;;  %vm14764_vm7 = vnez %v14570_v9 }
 0x75e   : > { %v11257_v35 = vsel %vm14747_vm0, %v14746_v54, %v4490_v62  ;;  %vm14749_vm10 = vmmov %vm14747_vm0  ;;  %v3753_v39 = vsel %vm14757_vm8, %v14756_v48, %v14755_v59  ;;  %v14758_v55 = vld [vmem:[#allocation178_spill] sm:$0xff] }
 0x75f   : > { %v11262_v15 = vsel %vm14749_vm10, %v14748_v31, %v4504_v18  ;;  %vm14752_vm9 = vmmov %vm14747_vm0  ;;  %v3754_v19 = vrot.slane %v3753_v39, 7  ;;  %v14759_v18 = vld [vmem:[#allocation240_spill] sm:$0xff]  ;;  %vm14774_vm10 = vcmask 1045509  }
 0x760   : > { %14750 = vst [vmem:[#allocation142_spill] sm:$0xff] %v11262_v15  ;;  %v11267_v26 = vsel %vm14752_vm9, %v14751_v49, %v4202_v29  ;;  %vm14754_vm3 = vmmov %vm14747_vm0  ;;  %v14760_v54 = vsel %vm10591_vm11, %v14758_v55, %v14759_v18  ;;  %v14762_v49 = vld [vmem:[#allocation61_spill] sm:$0xff]  ;;  %vm14767_vm11 = vcmask 1044484   ;;  %v14776_v29 = vrot.slane %v14775_v40, 4 }
 0x761   : > { %v11272_v25 = vsel %vm14754_vm3, %v14753_v38, %v4216_v11  ;;  %v3923_v31 = vsel %vm10759_vm5, %v3821_v32, %v14760_v54  ;;  %v14763_v38 = vsel %vm14761_vm14, %v14758_v55, %v14762_v49  ;;  %vm11303_vm4 = vcmp.ne.s32.totalorder %v3754_v19, 0  ;;  %v14768_v11 = vld [vmem:[#allocation141_spill] sm:$0xff]  ;;  %vm14769_vm5 = vmmov %vm14767_vm11  ;;  %v14772_v55 = vld [vmem:[#allocation112_spill] sm:$0xff] }
 0x762   : > { %v3924_v59 = vsel %vm14764_vm7, %v3821_v32, %v14763_v38  ;;  %v3969_v48 = vrot.slane %v3923_v31, 5  ;;  %v4000_v46 = vrot.slane %v3923_v31, 4  ;;  %v4034_v18 = vrot.slane %v3923_v31, 6  ;;  %vm14770_vm13 = vmmov %vm14769_vm5  ;;  %v3860_v24 = vpop.permute.xlu2 %3859 }
 0x763   : > { %v3984_v39 = vrot.slane %v3924_v59, 5  ;;  %v4014_v62 = vrot.slane %v3924_v59, 4  ;;  %v4048_v33 = vrot.slane %v3924_v59, 6  ;;  %v4068_v22 = vrot.slane %v3923_v31, 7  ;;  %vm14771_vm0 = vmmov %vm14769_vm5 }
 0x764   : > { %v4082_v54 = vrot.slane %v3924_v59, 7  ;;  %v3970_v44 = vsel %vm14767_vm11, %v3969_v48, %v11017_v27  ;;  %v4001_v32 = vsel %vm14770_vm13, %v4000_v46, %v11071_v57  ;;  %v14773_v49 = vrot.slane %v14772_v55, 4  ;;  %vm14777_vm9 = vmmov %vm14774_vm10 }
 0x765   : > { %v3985_v9 = vsel %vm14769_vm5, %v3984_v39, %v14768_v11  ;;  %v4015_v19 = vsel %vm14771_vm0, %v4014_v62, %v11076_v23  ;;  %v14778_v27 = vrot.slane %v14772_v55, 3  ;;  %vm14779_vm3 = vmmov %vm14777_vm9  ;;  %v14780_v11 = vrot.slane %v14775_v40, 3 }
 0x766   : > { %v3972_v38 = vsel %vm14774_vm10, %v14773_v49, %v3970_v44  ;;  %v3987_v17 = vsel %vm14777_vm9, %v14776_v29, %v3985_v9  ;;  %vm14781_vm8 = vmmov %vm14779_vm3  ;;  %v14786_v62 = vrot.slane %v14772_v55, 5  ;;  %v14788_v9 = vrot.slane %v14775_v40, 5 }
 0x767   : > { %v4003_v48 = vsel %vm14779_vm3, %v14778_v27, %v4001_v32  ;;  %v4017_v39 = vsel %vm14781_vm8, %v14780_v11, %v4015_v19  ;;  %vm14782_vm14 = vmmov %vm14771_vm0  ;;  %v14790_v19 = vrot.slane %v14772_v55, 6  ;;  %v4151_v49 = vrot.slane %v3924_v59, 1 }
 0x768   : > { %v4035_v57 = vsel %vm14782_vm14, %v4034_v18, %v11081_v36  ;;  %vm14783_vm7 = vmmov %vm14771_vm0  ;;  %v14796_v27 = vrot.slane %v14772_v55, 7 }
 0x769   : > { %v4049_v23 = vsel %vm14783_vm7, %v4048_v33, %v11086_v58  ;;  %vm14784_vm11 = vmmov %vm14771_vm0  ;;  %v14792_v58 = vrot.slane %v14775_v40, 6 }
 0x76a   : > { %v4069_v46 = vsel %vm14784_vm11, %v4068_v22, %v11092_v43  ;;  %vm14785_vm5 = vmmov %vm14771_vm0  ;;  %v11349_v43 = vld [vmem:[%s303_s6] sm:$0xff]  ;;  %vm14802_vm11 = vcmask 1046534  }
 0x76b   : > { %v4083_v29 = vsel %vm14785_vm5, %v4082_v54, %v11096_v60  ;;  %vm14787_vm13 = vmmov %vm14779_vm3  ;;  %v11353_v60 = vld [vmem:[%s303_s6 + $0x8] sm:$0xff]  ;;  %v4137_v54 = vrot.slane %v3923_v31, 1 }
 0x76c   : > { %v4037_v44 = vsel %vm14787_vm13, %v14786_v62, %v4035_v57  ;;  %vm14789_vm0 = vmmov %vm14779_vm3  ;;  %v14798_v57 = vrot.slane %v14775_v40, 7  ;;  %v14800_v62 = vld [vmem:[#allocation138_spill] sm:$0xff] }
 0x76d   : > { %v4051_v32 = vsel %vm14789_vm0, %v14788_v9, %v4049_v23  ;;  %vm14791_vm10 = vmmov %vm14789_vm0  ;;  %v14801_v9 = vrot.slane %v14800_v62, 6 }
 0x76e   : > { %v4071_v36 = vsel %vm14791_vm10, %v14790_v19, %v4069_v46  ;;  %vm14793_vm9 = vmmov %vm14789_vm0  ;;  %v4171_v46 = vrot.slane %v3923_v31, 2  ;;  %vm3945_vm10 = vcmp.eq.s32.totalorder %v11349_v43, 1 }
 0x76f   : > { %v4085_v33 = vsel %vm14793_vm9, %v14792_v58, %v4083_v29  ;;  %vm14794_vm3 = vmmov %vm14785_vm5  ;;  %v4185_v29 = vrot.slane %v3924_v59, 2  ;;  %vm3946_vm9 = vcmp.eq.s32.totalorder %v11353_v60, 1 }
 0x770   : > { %v4103_v18 = vsel %vm14794_vm3, %v3923_v31, %v11113_v7  ;;  %vm14795_vm8 = vmmov %vm14794_vm3  ;;  %v14803_v7 = vld [vmem:[#allocation86_spill] sm:$0xff] }
 0x771   : > { %v4117_v22 = vsel %vm14795_vm8, %v3924_v59, %v11118_v5  ;;  %vm14797_vm14 = vmmov %vm14789_vm0  ;;  %v14804_v58 = vrot.slane %v14803_v7, 6 }
 0x772   : > { %v4105_v11 = vsel %vm14797_vm14, %v14796_v27, %v4103_v18  ;;  %vm14799_vm7 = vmmov %vm14789_vm0 }
 0x773   : > { %v4119_v23 = vsel %vm14799_vm7, %v14798_v57, %v4117_v22  ;;  %v11368_v19 = vsel %vm14802_vm11, %v14801_v9, %v4105_v11  ;;  %vm14805_vm5 = vmmov %vm14802_vm11  ;;  %vm3976_vm11 = vcmask 1047559   ;;  %v4205_v57 = vrot.slane %v3923_v31, 3 }
 0x774   : > { %v11373_v5 = vsel %vm14805_vm5, %v14804_v58, %v4119_v23  ;;  %vm14806_vm13 = vmmov %vm14794_vm3  ;;  %v4219_v23 = vrot.slane %v3924_v59, 3  ;;  %v14816_v9 = vmov 0  }
 0x775   : > { %v4138_v42 = vsel %vm14806_vm13, %v4137_v54, %v11123_v2  ;;  %vm14807_vm0 = vmmov %vm14794_vm3 }
 0x776   : > { %v4152_v18 = vsel %vm14807_vm0, %v4151_v49, %v11128_v51  ;;  %vm14808_vm3 = vmmov %vm14799_vm7  ;;  %v14812_v51 = vrot.slane %v14772_v55, 1  ;;  %v14814_v49 = vrot.slane %v14775_v40, 1 }
 0x777   : > { %v4139_v22 = vsel %vm14808_vm3, %v14772_v55, %v4138_v42  ;;  %vm14809_vm8 = vmmov %vm14808_vm3 }
 0x778   : > { %v11385_v27 = vsel %vm14809_vm8, %v14775_v40, %v4152_v18  ;;  %vm14810_vm14 = vmmov %vm14807_vm0  ;;  %vm14819_vm8 = vcmask 1046534  }
 0x779   : > { %v4172_v11 = vsel %vm14810_vm14, %v4171_v46, %v11147_v28  ;;  %vm14811_vm7 = vmmov %vm14807_vm0  ;;  %v3874_v28 = vsel %vm11303_vm4, 1, %v14816_v9  ;;  %vm4026_vm0 = vcmp.eq.s32.totalorder %v11349_v43, 2  ;;  %v14834_v9 = vld [vmem:[#allocation264_spill] sm:$0xff] }
 0x77a   : > { %v4186_v2 = vsel %vm14811_vm7, %v4185_v29, %v11152_v1  ;;  %vm14813_vm5 = vmmov %vm14808_vm3  ;;  %v11413_v46 = vsel %vm14811_vm7, %v4219_v23, %v11272_v25  ;;  %v3889_v31 = vperm.slane %v3874_v28, 0  ;;  %v3890_v59 = vperm.slane %v3874_v28, 1  ;;  %v14833_v23 = vld [vmem:[#allocation126_spill] sm:$0xff] }
 0x77b   : > { %v11394_v54 = vsel %vm14813_vm5, %v14812_v51, %v4172_v11  ;;  %vm14815_vm13 = vmmov %vm14808_vm3  ;;  %v14818_v29 = vrot.slane %v14800_v62, 3  ;;  %v14822_v25 = vrot.slane %v14800_v62, 2  ;;  %v14835_v28 = vsel %vm10663_vm15, %v14833_v23, %v14834_v9 }
 0x77c   : > { %v11399_v42 = vsel %vm14815_vm13, %v14814_v49, %v4186_v2  ;;  %vm14817_vm14 = vmmov %vm14811_vm7  ;;  %vm11427_vm3 = vcmp.eq.s32.totalorder %v3889_v31, 1  ;;  %vm11431_vm5 = vcmp.eq.s32.totalorder %v3890_v59, 1  ;;  %v14830_v49 = vrot.slane %v14800_v62, 4 }
 0x77d   : > { %v11409_v1 = vsel %vm14817_vm14, %v4205_v57, %v11267_v26  ;;  %v3974_v58 = vsel %vm14819_vm8, %v14818_v29, %v3972_v38  ;;  %v14820_v26 = vrot.slane %v14803_v7, 3  ;;  %vm14821_vm14 = vmmov %vm14819_vm8  ;;  %v14828_v38 = vrot.slane %v14803_v7, 2  ;;  %v14837_v29 = vld [vmem:[#allocation114_spill] sm:$0xff] }
 0x77e   : > { %vm14823_vm7 = vmmov %vm14819_vm8  ;;  %v3935_v31 = vsel %vm11427_vm3, %v3860_v24, %v14835_v28  ;;  %vm4163_vm13 = vcmp.eq.s32.totalorder %v11353_v60, 6  ;;  %v14925_v59 = vrot.slane %v10942_v37, 3 }
 0x77f   : > { %v3989_v18 = vsel %vm14821_vm14, %v14820_v26, %v3987_v17  ;;  %v4005_v11 = vsel %vm14823_vm7, %v14822_v25, %v4003_v48  ;;  %vm14829_vm4 = vmmov %vm14823_vm7  ;;  %v14838_v26 = vsel %vm10675_vm1, %v14833_v23, %v14837_v29  ;;  %v14839_v25 = vrot.slane %v14803_v7, 4 }
 0x780   : > { %v4019_v17 = vsel %vm14829_vm4, %v14828_v38, %v4017_v39  ;;  %vm14831_vm14 = vmmov %vm14829_vm4  ;;  %v3936_v39 = vsel %vm11431_vm5, %v3860_v24, %v14838_v26  ;;  %v14840_v38 = vrot.slane %v14800_v62, 5  ;;  %v3975_v9 = vrot.slane %v3935_v31, 2 }
 0x781   : > { %v4039_v48 = vsel %vm14831_vm14, %v14830_v49, %v4037_v44  ;;  %v4053_v44 = vsel %vm14829_vm4, %v14839_v25, %v4051_v32  ;;  %vm14841_vm7 = vmmov %vm14829_vm4  ;;  %v3990_v0 = vrot.slane %v3936_v39, 2  ;;  %v4006_v50 = vrot.slane %v3935_v31, 1 }
 0x782   : > { %v4073_v49 = vsel %vm14841_vm7, %v14840_v38, %v4071_v36  ;;  %v4020_v28 = vrot.slane %v3936_v39, 1  ;;  %vm4162_vm14 = vcmp.eq.s32.totalorder %v11349_v43, 6  ;;  %v4040_v3 = vrot.slane %v3935_v31, 3  ;;  %vm14843_vm8 = vmmov %vm14829_vm4 }
 0x783   : > { %v4054_v6 = vrot.slane %v3936_v39, 3  ;;  %v4074_v23 = vrot.slane %v3935_v31, 4  ;;  %v14842_v29 = vrot.slane %v14803_v7, 5  ;;  %vm4196_vm4 = vcmp.eq.s32.totalorder %v11349_v43, 7 }
 0x784   : > { %v3977_v32 = vsel %vm3976_vm11, %v3975_v9, %v3974_v58  ;;  %v3991_v36 = vsel %vm3976_vm11, %v3990_v0, %v3989_v18  ;;  %v4007_v26 = vsel %vm3976_vm11, %v4006_v50, %v4005_v11  ;;  %v4021_v25 = vsel %vm3976_vm11, %v4020_v28, %v4019_v17 }
 0x785   : > { %v4087_v24 = vsel %vm14843_vm8, %v14842_v29, %v4085_v33  ;;  %v4024_v38 = vsel %vm3945_vm10, %v3977_v32, %v4007_v26  ;;  %v4025_v33 = vsel %vm3946_vm9, %v3991_v36, %v4021_v25  ;;  %v4041_v29 = vsel %vm3976_vm11, %v4040_v3, %v4039_v48 }
 0x786   : > { %v4055_v15 = vsel %vm3976_vm11, %v4054_v6, %v4053_v44  ;;  %v4058_v58 = vsel %vm4026_vm0, %v4041_v29, %v4024_v38  ;;  %vm14844_vm8 = vcmp.eq.s32.totalorder %v11353_v60, 2  ;;  %v4075_v0 = vsel %vm3976_vm11, %v4074_v23, %v4073_v49 }
 0x787   : > { %v4059_v50 = vsel %vm14844_vm8, %v4055_v15, %v4025_v33  ;;  %v4088_v18 = vrot.slane %v3936_v39, 4  ;;  %vm14845_vm7 = vcmp.eq.s32.totalorder %v11349_v43, 3  ;;  %v4108_v17 = vrot.slane %v3935_v31, 5 }
 0x788   : > { %v4092_v11 = vsel %vm14845_vm7, %v4075_v0, %v4058_v58  ;;  %v4122_v9 = vrot.slane %v3936_v39, 5  ;;  %v14846_v28 = vrot.slane %v14800_v62, 7  ;;  %vm14847_vm10 = vcmask 1046534  }
 0x789   : > { %v4089_v6 = vsel %vm3976_vm11, %v4088_v18, %v4087_v24  ;;  %v4142_v48 = vrot.slane %v3935_v31, 6  ;;  %v14848_v44 = vrot.slane %v14803_v7, 7  ;;  %vm14849_vm9 = vmmov %vm14847_vm10  ;;  %v4156_v32 = vrot.slane %v3936_v39, 6  ;;  %v3840_v24 = vpop.permute.xlu2 %3839 }
 0x78a   : > { %v4141_v3 = vsel %vm14847_vm10, %v14846_v28, %v4139_v22  ;;  %vm14850_vm0 = vcmp.eq.s32.totalorder %v11353_v60, 3  ;;  %v4109_v23 = vsel %vm3976_vm11, %v4108_v17, %v11368_v19  ;;  %v4123_v36 = vsel %vm3976_vm11, %v4122_v9, %v11373_v5  ;;  %vm14851_vm7 = vmmov %vm14849_vm9  ;;  %v14861_v17 = vld [vmem:[#allocation197_spill] sm:$0xff]  ;;  %v14862_v9 = vld [vmem:[#allocation127_spill] sm:$0xff] }
 0x78b   : > { %v4155_v15 = vsel %vm14849_vm9, %v14848_v44, %v11385_v27  ;;  %v4093_v49 = vsel %vm14850_vm0, %v4089_v6, %v4059_v50  ;;  %v4175_v22 = vsel %vm14851_vm7, %v14800_v62, %v11394_v54  ;;  %vm14852_vm8 = vcmp.eq.s32.totalorder %v11349_v43, 4  ;;  %v14870_v44 = vld [vmem:[#allocation166_spill] sm:$0xff] }
 0x78c   : > { %v4126_v26 = vsel %vm14852_vm8, %v4109_v23, %v4092_v11  ;;  %vm14853_vm10 = vcmp.eq.s32.totalorder %v11353_v60, 4  ;;  %v4143_v25 = vsel %vm3976_vm11, %v4142_v48, %v4141_v3  ;;  %v4157_v38 = vsel %vm3976_vm11, %v4156_v32, %v4155_v15  ;;  %v14872_v32 = vld [vmem:[#allocation111_spill] sm:$0xff] }
 0x78d   : > { %v4127_v27 = vsel %vm14853_vm10, %v4123_v36, %v4093_v49  ;;  %vm14854_vm9 = vcmp.eq.s32.totalorder %v11349_v43, 5  ;;  %vm14855_vm0 = vcmp.eq.s32.totalorder %v11353_v60, 5  ;;  %v4176_v33 = vrot.slane %v3935_v31, 7 }
 0x78e   : > { %v4160_v19 = vsel %vm14854_vm9, %v4143_v25, %v4126_v26  ;;  %v4161_v5 = vsel %vm14855_vm0, %v4157_v38, %v4127_v27  ;;  %v4189_v54 = vsel %vm14851_vm7, %v14803_v7, %v11399_v42  ;;  %v4190_v29 = vrot.slane %v3936_v39, 7  ;;  %vm14866_vm9 = vmmov %vm14851_vm7 }
 0x78f   : > { %v14856_v58 = vrot.slane %v14772_v55, 2  ;;  %vm14857_vm8 = vcmask 1045509   ;;  %v14858_v0 = vrot.slane %v14775_v40, 2  ;;  %v14863_v28 = vsel %vm10611_vm2, %v14861_v17, %v14862_v9  ;;  %vm14868_vm0 = vmmov %vm14851_vm7 }
 0x790   : > { %vm14859_vm10 = vmmov %vm14857_vm8  ;;  %v11532_v6 = vsel %vm10777_vm12, %v3840_v24, %v14863_v28  ;;  %v4177_v42 = vsel %vm3976_vm11, %v4176_v33, %v4175_v22  ;;  %v14865_v55 = vrot.slane %v14800_v62, 1  ;;  %v14867_v48 = vrot.slane %v14803_v7, 1 }
 0x791   : > { %v4208_v50 = vsel %vm14857_vm8, %v14856_v58, %v11409_v1  ;;  %v4222_v18 = vsel %vm14859_vm10, %v14858_v0, %v11413_v46  ;;  %v14871_v15 = vsel %vm10619_vm6, %v14861_v17, %v14870_v44  ;;  %vm14873_vm2 = vnez %v14872_v32 }
 0x792   : > { %v4210_v1 = vsel %vm14866_vm9, %v14865_v55, %v4208_v50  ;;  %v4224_v40 = vsel %vm14868_vm0, %v14867_v48, %v4222_v18  ;;  %v11548_v49 = vsel %vm14873_vm2, %v3840_v24, %v14871_v15  ;;  %v4191_v23 = vsel %vm3976_vm11, %v4190_v29, %v4189_v54 }
 0x793   : > { %v4194_v62 = vsel %vm4162_vm14, %v4177_v42, %v4160_v19  ;;  %v4211_v36 = vsel %vm3976_vm11, %v3935_v31, %v4210_v1  ;;  %v4225_v7 = vsel %vm3976_vm11, %v3936_v39, %v4224_v40  ;;  %v4195_v22 = vsel %vm4163_vm13, %v4191_v23, %v4161_v5 }
 0x794   : > { %v11559_v26 = vsel %vm4196_vm4, %v4211_v36, %v4194_v62  ;;  %v14874_v24 = vrot.slane %v10793_v47, 4  ;;  %vm14875_vm6 = vcmask 1044484   ;;  %v4256_v25 = vrot.slane %v11532_v6, 3  ;;  %vm14881_vm4 = vmmov %vm14857_vm8 }
 0x795   : > { %vm14876_vm12 = vcmp.eq.s32.totalorder %v11353_v60, 7  ;;  %v14877_v31 = vrot.slane %v10802_v14, 4  ;;  %vm14878_vm14 = vmmov %vm14875_vm6  ;;  %v4270_v19 = vrot.slane %v11548_v49, 3  ;;  %v14879_v5 = vrot.slane %v10793_v47, 5 }
 0x796   : > { %v4255_v27 = vsel %vm14875_vm6, %v14874_v24, %v11169_v34  ;;  %v11568_v38 = vsel %vm14876_vm12, %v4225_v7, %v4195_v22  ;;  %vm14880_vm13 = vmmov %vm14875_vm6  ;;  %v4290_v54 = vrot.slane %v11532_v6, 4  ;;  %v14882_v29 = vrot.slane %v10802_v14, 5 }
 0x797   : > { %v4269_v39 = vsel %vm14878_vm14, %v14877_v31, %v11174_v61  ;;  %v4289_v33 = vsel %vm14880_vm13, %v14879_v5, %v11179_v53  ;;  %v4257_v34 = vsel %vm14881_vm4, %v4256_v25, %v4255_v27  ;;  %vm14883_vm7 = vmmov %vm14875_vm6  ;;  %v4304_v50 = vrot.slane %v11548_v49, 4 }
 0x798   : > { %v4303_v58 = vsel %vm14883_vm7, %v14882_v29, %v11184_v45  ;;  %vm14884_vm8 = vmmov %vm14881_vm4  ;;  %v4324_v0 = vrot.slane %v11532_v6, 5  ;;  %v4338_v18 = vrot.slane %v11548_v49, 5  ;;  %v14885_v53 = vrot.slane %v10793_v47, 7 }
 0x799   : > { %v4271_v61 = vsel %vm14884_vm8, %v4270_v19, %v4269_v39  ;;  %vm14886_vm10 = vmmov %vm14875_vm6  ;;  %v4358_v28 = vrot.slane %v11532_v6, 6  ;;  %v14889_v45 = vrot.slane %v10802_v14, 7  ;;  %v4372_v1 = vrot.slane %v11548_v49, 6 }
 0x79a   : > { %v4357_v11 = vsel %vm14886_vm10, %v14885_v53, %v11208_v8  ;;  %vm14887_vm9 = vmmov %vm14881_vm4  ;;  %v4392_v40 = vrot.slane %v11532_v6, 7  ;;  %v4406_v46 = vrot.slane %v11548_v49, 7  ;;  %vm14898_vm8 = vcmask 1043459   ;;  %v14919_v53 = vld [vmem:[#allocation260_spill] sm:$0xff] }
 0x79b   : > { %v4291_v17 = vsel %vm14887_vm9, %v4290_v54, %v4289_v33  ;;  %vm14888_vm0 = vmmov %vm14881_vm4  ;;  %v14901_v32 = vrot.slane %v10793_v47, 2  ;;  %v14904_v36 = vrot.slane %v10793_v47, 1  ;;  %v14910_v22 = vrot.slane %v10802_v14, 2  ;;  %v3866_v33 = vpop.permute.xlu2 %3865 }
 0x79c   : > { %v4305_v9 = vsel %vm14888_vm0, %v4304_v50, %v4303_v58  ;;  %vm14890_vm2 = vmmov %vm14875_vm6  ;;  %v14911_v27 = vrot.slane %v10942_v37, 7  ;;  %v14913_v31 = vrot.slane %v10977_v52, 7  ;;  %v4475_v19 = vrot.slane %v11548_v49, 1  ;;  %v14916_v58 = vld [vmem:[#allocation198_spill] sm:$0xff]  ;;  %v14917_v50 = vld [vmem:[#allocation172_spill] sm:$0xff] }
 0x79d   : > { %v4371_v3 = vsel %vm14890_vm2, %v14889_v45, %v11212_v10  ;;  %vm14891_vm6 = vmmov %vm14888_vm0  ;;  %v4495_v5 = vrot.slane %v11532_v6, 2  ;;  %v14921_v45 = vrot.slane %v10942_v37, 2 }
 0x79e   : > { %v4325_v42 = vsel %vm14891_vm6, %v4324_v0, %v11199_v30  ;;  %vm14892_vm12 = vmmov %vm14888_vm0  ;;  %v14918_v0 = vsel %vm10663_vm15, %v14916_v58, %v14917_v50  ;;  %v14939_v50 = vrot.slane %v10977_v52, 6 }
 0x79f   : > { %v4339_v55 = vsel %vm14892_vm12, %v4338_v18, %v11204_v16  ;;  %vm14893_vm14 = vmmov %vm14890_vm2  ;;  %v14897_v16 = vrot.slane %v10902_v4, 2  ;;  %v11676_v18 = vsel %vm11427_vm3, %v3866_v33, %v14918_v0 }
 0x7a0   : > { %v4391_v8 = vsel %vm14893_vm14, %v10793_v47, %v11229_v20  ;;  %vm14894_vm13 = vmmov %vm14888_vm0  ;;  %v14899_v20 = vrot.slane %v10914_v13, 2  ;;  %v4294_v51 = vrot.slane %v11676_v18, 2 }
 0x7a1   : > { %v4359_v48 = vsel %vm14894_vm13, %v4358_v28, %v4357_v11  ;;  %vm14895_vm4 = vmmov %vm14890_vm2  ;;  %v4424_v44 = vsel %vm14898_vm8, %v14897_v16, %v11220_v63  ;;  %v14906_v63 = vrot.slane %v10802_v14, 1  ;;  %v14920_v11 = vsel %vm10675_vm1, %v14916_v58, %v14919_v53 }
 0x7a2   : > { %v4405_v10 = vsel %vm14895_vm4, %v10802_v14, %v11234_v12  ;;  %vm14896_vm7 = vmmov %vm14888_vm0  ;;  %v4393_v12 = vsel %vm14888_vm0, %v4392_v40, %v4391_v8  ;;  %v4474_v24 = vsel %vm14895_vm4, %v14910_v22, %v11248_v21  ;;  %v4509_v21 = vrot.slane %v11548_v49, 2 }
 0x7a3   : > { %v4373_v30 = vsel %vm14896_vm7, %v4372_v1, %v4371_v3  ;;  %vm14900_vm10 = vmmov %vm14898_vm8  ;;  %vm14912_vm7 = vcmask 1046534   ;;  %v11685_v28 = vsel %vm11431_vm5, %v3866_v33, %v14920_v11  ;;  %v4260_v3 = vrot.slane %v11676_v18, 1 }
 0x7a4   : > { %v4438_v15 = vsel %vm14900_vm10, %v14899_v20, %v11224_v56  ;;  %vm14902_vm9 = vmmov %vm14890_vm2  ;;  %v14923_v1 = vrot.slane %v10977_v52, 2  ;;  %v4274_v8 = vrot.slane %v11685_v28, 1  ;;  %v14929_v16 = vrot.slane %v10942_v37, 4 }
 0x7a5   : > { %v4460_v23 = vsel %vm14902_vm9, %v14901_v32, %v11243_v41  ;;  %vm14903_vm2 = vmmov %vm14888_vm0  ;;  %v4461_v41 = vrot.slane %v11532_v6, 1  ;;  %vm4230_vm9 = vcmp.eq.s32.totalorder %v11349_v43, 8  ;;  %v4396_v33 = vrot.slane %v11676_v18, 5 }
 0x7a6   : > { %v4407_v62 = vsel %vm14903_vm2, %v4406_v46, %v4405_v10  ;;  %vm14905_vm6 = vmmov %vm14895_vm4  ;;  %v11663_v29 = vsel %vm14903_vm2, %v4475_v19, %v4474_v24  ;;  %v14927_v10 = vrot.slane %v10977_v52, 3  ;;  %vm4348_vm2 = vcmp.eq.s32.totalorder %v11349_v43, 11 }
 0x7a7   : > { %v4426_v4 = vsel %vm14905_vm6, %v14904_v36, %v4424_v44  ;;  %vm14907_vm12 = vmmov %vm14895_vm4  ;;  %vm4280_vm6 = vcmp.eq.s32.totalorder %v11349_v43, 9 }
 0x7a8   : > { %v4440_v7 = vsel %vm14907_vm12, %v14906_v63, %v4438_v15  ;;  %vm14908_vm14 = vmmov %vm14888_vm0  ;;  %vm4281_vm12 = vcmp.eq.s32.totalorder %v11353_v60, 9  ;;  %v4328_v15 = vrot.slane %v11676_v18, 3 }
 0x7a9   : > { %v4427_v13 = vsel %vm14908_vm14, %v11532_v6, %v4426_v4  ;;  %vm14909_vm13 = vmmov %vm14888_vm0  ;;  %vm4314_vm14 = vcmp.eq.s32.totalorder %v11349_v43, 10  ;;  %v14958_v6 = vld [vmem:[#allocation132_spill] sm:$0xff] }
 0x7aa   : > { %v4441_v56 = vsel %vm14909_vm13, %v11548_v49, %v4440_v7  ;;  %v11647_v25 = vsel %vm14912_vm7, %v14911_v27, %v4427_v13  ;;  %vm14914_vm8 = vmmov %vm14912_vm7  ;;  %vm4315_vm13 = vcmp.eq.s32.totalorder %v11353_v60, 10  ;;  %v4342_v7 = vrot.slane %v11685_v28, 3 }
 0x7ab   : > { %v11652_v39 = vsel %vm14914_vm8, %v14913_v31, %v4441_v56  ;;  %vm14915_vm10 = vmmov %vm14888_vm0  ;;  %vm4231_vm0 = vcmp.eq.s32.totalorder %v11353_v60, 8  ;;  %v14933_v13 = vrot.slane %v10942_v37, 5  ;;  %v4362_v56 = vrot.slane %v11676_v18, 4 }
 0x7ac   : > { %v11657_v54 = vsel %vm14915_vm10, %v4461_v41, %v4460_v23  ;;  %vm14922_vm4 = vmmov %vm14912_vm7  ;;  %v14935_v41 = vrot.slane %v10977_v52, 5  ;;  %v4376_v27 = vrot.slane %v11685_v28, 4  ;;  %v14937_v31 = vrot.slane %v10942_v37, 6 }
 0x7ad   : > { %v4259_v57 = vsel %vm14922_vm4, %v14921_v45, %v4257_v34  ;;  %vm14924_vm15 = vmmov %vm14922_vm4  ;;  %v4308_v34 = vrot.slane %v11685_v28, 2  ;;  %v4430_v45 = vrot.slane %v11676_v18, 6 }
 0x7ae   : > { %v4273_v2 = vsel %vm14924_vm15, %v14923_v1, %v4271_v61  ;;  %vm14926_vm3 = vmmov %vm14922_vm4  ;;  %v4261_v61 = vsel %vm3976_vm11, %v4260_v3, %v4259_v57  ;;  %v4464_v3 = vrot.slane %v11676_v18, 7  ;;  %v4478_v1 = vrot.slane %v11685_v28, 7 }
 0x7af   : > { %v4293_v40 = vsel %vm14926_vm3, %v14925_v59, %v4291_v17  ;;  %vm14928_vm1 = vmmov %vm14926_vm3  ;;  %v4275_v20 = vsel %vm3976_vm11, %v4274_v8, %v4273_v2  ;;  %v14931_v17 = vrot.slane %v10977_v52, 4  ;;  %vm4417_vm4 = vcmp.eq.s32.totalorder %v11353_v60, 13 }
 0x7b0   : > { %v4307_v46 = vsel %vm14928_vm1, %v14927_v10, %v4305_v9  ;;  %vm14930_vm5 = vmmov %vm14928_vm1  ;;  %v4278_v9 = vsel %vm4230_vm9, %v4261_v61, %v11559_v26  ;;  %v4279_v23 = vsel %vm4231_vm0, %v4275_v20, %v11568_v38  ;;  %vm4450_vm15 = vcmp.eq.s32.totalorder %v11349_v43, 14 }
 0x7b1   : > { %v4327_v44 = vsel %vm14930_vm5, %v14929_v16, %v4325_v42  ;;  %vm14932_vm7 = vmmov %vm14928_vm1  ;;  %v4295_v42 = vsel %vm3976_vm11, %v4294_v51, %v4293_v40  ;;  %v4309_v36 = vsel %vm3976_vm11, %v4308_v34, %v4307_v46  ;;  %v4431_v40 = vsel %vm3976_vm11, %v4430_v45, %v11647_v25 }
 0x7b2   : > { %v4341_v32 = vsel %vm14932_vm7, %v14931_v17, %v4339_v55  ;;  %v4312_v4 = vsel %vm4280_vm6, %v4295_v42, %v4278_v9  ;;  %v4313_v63 = vsel %vm4281_vm12, %v4309_v36, %v4279_v23  ;;  %v4329_v55 = vsel %vm3976_vm11, %v4328_v15, %v4327_v44  ;;  %vm14934_vm8 = vmmov %vm14928_vm1  ;;  %v14953_v42 = vld [vmem:[#allocation252_spill] sm:$0xff]  ;;  %v14954_v36 = vld [vmem:[#allocation29_spill] sm:$0xff] }
 0x7b3   : > { %v4346_v26 = vsel %vm4314_vm14, %v4329_v55, %v4312_v4  ;;  %v4361_v38 = vsel %vm14934_vm8, %v14933_v13, %v4359_v48  ;;  %vm14936_vm10 = vmmov %vm14928_vm1  ;;  %v4343_v24 = vsel %vm3976_vm11, %v4342_v7, %v4341_v32  ;;  %vm4349_vm6 = vcmp.eq.s32.totalorder %v11353_v60, 11  ;;  %v14955_v4 = vld [vmem:[#allocation120_spill] sm:$0xff] }
 0x7b4   : > { %v4375_v22 = vsel %vm14936_vm10, %v14935_v41, %v4373_v30  ;;  %vm14938_vm9 = vmmov %vm14928_vm1  ;;  %v4347_v58 = vsel %vm4315_vm13, %v4343_v24, %v4313_v63  ;;  %v4363_v48 = vsel %vm3976_vm11, %v4362_v56, %v4361_v38  ;;  %v4410_v30 = vrot.slane %v11685_v28, 5  ;;  %v14962_v7 = vld [vmem:[#allocation180_spill] sm:$0xff] }
 0x7b5   : > { %v4395_v19 = vsel %vm14938_vm9, %v14937_v31, %v4393_v12  ;;  %vm14940_vm0 = vmmov %vm14928_vm1  ;;  %v4377_v53 = vsel %vm3976_vm11, %v4376_v27, %v4375_v22  ;;  %v4444_v12 = vrot.slane %v11685_v28, 6  ;;  %vm4382_vm12 = vcmp.eq.s32.totalorder %v11349_v43, 12 }
 0x7b6   : > { %v4409_v0 = vsel %vm14940_vm0, %v14939_v50, %v4407_v62  ;;  %v4397_v11 = vsel %vm3976_vm11, %v4396_v33, %v4395_v19  ;;  %v4380_v62 = vsel %vm4348_vm2, %v4363_v48, %v4346_v26  ;;  %vm4383_vm14 = vcmp.eq.s32.totalorder %v11353_v60, 12  ;;  %vm14941_vm1 = vmmov %vm14940_vm0 }
 0x7b7   : > { %v4411_v57 = vsel %vm3976_vm11, %v4410_v30, %v4409_v0  ;;  %v4381_v2 = vsel %vm4349_vm6, %v4377_v53, %v4347_v58  ;;  %v4414_v8 = vsel %vm4382_vm12, %v4397_v11, %v4380_v62  ;;  %vm4416_vm13 = vcmp.eq.s32.totalorder %v11349_v43, 13  ;;  %vm14942_vm5 = vmmov %vm14940_vm0 }
 0x7b8   : > { %v4415_v59 = vsel %vm4383_vm14, %v4411_v57, %v4381_v2  ;;  %v4445_v51 = vsel %vm3976_vm11, %v4444_v12, %v11652_v39  ;;  %v4448_v10 = vsel %vm4416_vm13, %v4431_v40, %v4414_v8  ;;  %vm4451_vm3 = vcmp.eq.s32.totalorder %v11353_v60, 14  ;;  %vm14951_vm6 = vmmov %vm14941_vm1 }
 0x7b9   : > { %v4449_v46 = vsel %vm4417_vm4, %v4445_v51, %v4415_v59  ;;  %v4463_v34 = vsel %vm14941_vm1, %v10942_v37, %v11657_v54  ;;  %v4511_v16 = vrot.slane %v10977_v52, 1  ;;  %v4477_v25 = vsel %vm14942_vm5, %v10977_v52, %v11663_v29  ;;  %v14945_v54 = vld [vmem:[#allocation142_spill] sm:$0xff]  ;;  %v3941_v52 = vpop.permute.xlu1 %3940  ;;  %vm14952_vm12 = vmmov %vm14941_vm1 }
 0x7ba   : > { %v4465_v44 = vsel %vm3976_vm11, %v4464_v3, %v4463_v34  ;;  %vm4484_vm7 = vcmp.eq.s32.totalorder %v11349_v43, 15  ;;  %v4479_v39 = vsel %vm3976_vm11, %v4478_v1, %v4477_v25  ;;  %v14943_v20 = vrot.slane %v10793_v47, 3 }
 0x7bb   : > { %v4482_v61 = vsel %vm4450_vm15, %v4465_v44, %v4448_v10  ;;  %vm14944_vm8 = vcmask 1044484   ;;  %v14946_v17 = vrot.slane %v10802_v14, 3  ;;  %v4483_v29 = vsel %vm4451_vm3, %v4479_v39, %v4449_v46 }
 0x7bc   : > { %v4494_v15 = vsel %vm14944_vm8, %v14943_v20, %v11257_v35  ;;  %vm14947_vm10 = vmmov %vm14944_vm8  ;;  %vm4485_vm9 = vcmp.eq.s32.totalorder %v11353_v60, 15  ;;  %vm14948_vm0 = vcmask 1045509   ;;  %v14950_v14 = vrot.slane %v10942_v37, 1  ;;  %v14957_v60 = vld [vmem:[#allocation255_spill] sm:$0xff] }
 0x7bd   : > { %v4508_v32 = vsel %vm14947_vm10, %v14946_v17, %v14945_v54  ;;  %v4496_v9 = vsel %vm14948_vm0, %v4495_v5, %v4494_v15  ;;  %vm14949_vm2 = vmmov %vm14948_vm0  ;;  %vm14956_vm14 = vcmp.eq.s32.totalorder %v14955_v4, 14  ;;  %vm14959_vm13 = vcmp.eq.s32.totalorder %v14958_v6, 14 }
 0x7be   : > { %v4510_v47 = vsel %vm14949_vm2, %v4509_v21, %v4508_v32  ;;  %v4498_v35 = vsel %vm14951_vm6, %v14950_v14, %v4496_v9  ;;  %v3733_v63 = vsel %vm14956_vm14, %v14954_v36, %v14953_v42  ;;  %v3734_v5 = vsel %vm14959_vm13, %v14954_v36, %v14957_v60  ;;  %v14960_v21 = vld [vmem:[#allocation185_spill] sm:$0xff] }
 0x7bf   : > { %v4512_v23 = vsel %vm14952_vm12, %v4511_v16, %v4510_v47  ;;  %v4499_v49 = vsel %vm3976_vm11, %v11676_v18, %v4498_v35  ;;  %vm14961_vm4 = vcmp.eq.s32.totalorder %v14960_v21, 15  ;;  %vm14963_vm15 = vcmp.eq.s32.totalorder %v14962_v7, 15 }
 0x7c0   : > { %v4513_v37 = vsel %vm3976_vm11, %v11685_v28, %v4512_v23  ;;  %v3943_v55 = vsel %vm14961_vm4, %v3941_v52, %v3733_v63  ;;  %v3944_v26 = vsel %vm14963_vm15, %v3941_v52, %v3734_v5  ;;  %v4516_v13 = vsel %vm4484_vm7, %v4499_v49, %v4482_v61 }
 0x7c1   : > { %v4517_v38 = vsel %vm4485_vm9, %v4513_v37, %v4483_v29  ;;  %v4518_v56 = vadd.f32 %v4516_v13, %v3943_v55 }
 0x7c2   : > { %v4519_v41 = vadd.f32 %v4517_v38, %v3944_v26 }
 0x7c3   : > { %4520 = vst [vmem:[%s343_s11] sm:$0xff] %v4518_v56 }
 0x7c4   : > { %4521 = vst [vmem:[%s343_s11 + $0x8] sm:$0xff] %v4519_v41 }
 0x7c5   : > { %5125 = shalt.err (!%p5122_p13)
}
 0x7c6   : > { %4722 = dma.vmem_to_hbm [thread:$0]  (%p5266_p9), %s4537_s7, 256, %s4539_s1, %s4523_s30  }
 0x7c7 PF: > { %s4550_s29 = sand.u32 1, %s5160_s15   ;;  %p14964_p10 = scmp.ne.s32.totalorder %s12664_s28, 0 }
 0x7c8   : > { %p14965_p11 = scmp.ge.s32.totalorder %s5172_s18, 2  ;;  %s4551_s12 = scalar_lea.sflag [#allocation4], %s4550_s29 }
 0x7ca   : > { %p4725_p8 = pnand %p14965_p11, %p14964_p10 }
 0x7cc   : > { %p4726_p0 = pneg %p4725_p8 }
 0x7ce   : > { %5155 = dma.done.wait (%p4726_p0), %s4551_s12, 256  }
 0x7cf   : > { %5157 = vsyncadd (%p4726_p0), %s4551_s12, 4294967040  ;;  %s14966_s22 = sld [smem:[#allocation15_spill]]  ;;  %p23_p1 = scmp.ge.s32.totalorder %s5243_s21, 4  }
 0x7d0   : > { %s14967_s15 = smov %s5164_s16  ;;  %s14968_s16 = smov %s5168_s17 }
 0x7d1   : > { %s14970_s18 = smov %s5243_s21  ;;  %25 = sbr.rel (!%p23_p1) target bundleno = 12 (0xc), region = 118 }
 0x7d5   : > { %s14969_s17 = smov %s14966_s22 }
 0x7d6   :  { %4557 = vsyncpa [#allocation3], 1 }
 0x7d7   :  { %4559 = vsyncpa [#allocation3 + $0x1], 1 }
 0x7d8   :  { %4560 = vsyncpa [#allocation6], 1 }
 0x7d9   :  { %4562 = vsyncpa [#allocation6 + $0x1], 1 }
 0x7da   :  { %4563 = vsyncpa [#allocation9], 1 }
 0x7db   :  { %4565 = vsyncpa [#allocation9 + $0x1], 1 }
 0x7dc   :  { %4566 = vsyncpa [#allocation4], 1 }
 0x7dd   :  { %4568 = vsyncpa [#allocation4 + $0x1], 1 }

</bundles_post_ra>
